<compile_context>
chip_gen: v5e
topology: v5e:2x2
jax: 0.10.0
libtpu: 0.0.40
codegen_flags: <defaults>
</compile_context>

<pallas_src>
import functools
from typing import NamedTuple

import jax
import jax.numpy as jnp
from jax.experimental import pallas as pl
from jax.experimental.pallas import tpu as pltpu


# ---------------------------------------------------------------------------
# Pallas kernel: stride-1 VALID conv (as kh*kw shifted matmuls over a flat
# NHWC block) + optional InstanceNorm2d + optional LeakyReLU(0.2).
#   x_ref : (1, L_in, C_in)   bf16   flattened (H, W_phys) spatial, C on lanes
#   w_ref : (T,  C_in, C_out) bf16   one (C_in, C_out) matrix per kernel tap
#   m_ref : (L_rows, 1)       f32    1.0 on valid spatial rows, 0.0 on padding
#   o_ref : (1, L_rows, C_out)       output rows r = oh*W_phys + ow
# ---------------------------------------------------------------------------
def _conv_kernel(x_ref, w_ref, m_ref, o_ref, *, offsets, lrows, count,
                 use_norm, use_relu, eps):
    c_out = o_ref.shape[-1]
    acc = jnp.zeros((lrows, c_out), dtype=jnp.float32)
    # Tap loop == contraction chunking: each step is one lane-dense MXU matmul
    # over a unit-stride shifted window of the VMEM-resident feature map.
    for t, off in enumerate(offsets):
        xs = x_ref[0, pl.ds(off, lrows), :]                      # (L_rows, C_in) bf16
        acc = acc + jnp.dot(xs, w_ref[t],
                            preferred_element_type=jnp.float32)  # f32 accumulate
    y = acc

    if use_norm:
        # InstanceNorm2d (affine=False, biased variance), single-pass stats,
        # masked to the valid spatial rows. All math in f32 (v5e-safe).
        m = m_ref[...]                                           # (L_rows, 1)
        inv_n = 1.0 / count
        s1 = jnp.sum(y * m, axis=0, keepdims=True)               # (1, C_out)
        s2 = jnp.sum((y * y) * m, axis=0, keepdims=True)
        mean = s1 * inv_n
        var = jnp.maximum(s2 * inv_n - mean * mean, 0.0)
        y = (y - mean) * jax.lax.rsqrt(var + eps)

    if use_relu:
        y = jnp.where(y > 0, y, 0.2 * y)                         # LeakyReLU(0.2)

    o_ref[0] = y.astype(o_ref.dtype)


# ---------------------------------------------------------------------------
# Flattened-NHWC activation carried between layers.
#   xf has shape (N, L, C) with L = (h - 1) * w_phys + w_log; logical pixel
#   (oh, ow) lives at flat row oh * w_phys + ow; columns w_log..w_phys-1 are
#   padding rows that downstream kernels mask out / never read as valid data.
# ---------------------------------------------------------------------------
class FlatAct(NamedTuple):
    xf: jax.Array
    h: int
    w_log: int
    w_phys: int
    c: int


def _vmem_limit_bytes(lin, cin, lrows, cout, taps):
    in_b = lin * cin * 2
    w_b = taps * cin * cout * 2
    m_b = lrows * 4
    out_b = lrows * cout * 4          # conservative (f32 final layer)
    acc_b = lrows * cout * 4
    total = 2 * (in_b + w_b + m_b + out_b) + acc_b   # double-buffered streams + acc
    total = int(total * 1.5) + (4 << 20)
    # Floor at the v6e/v7x default scoped limit; cap below v7x's 64 MiB physical.
    return max(32 << 20, min(total, 48 << 20))


def conv_flat(act: FlatAct, w_taps, kh, kw, *, use_norm, use_relu,
              out_dtype=jnp.bfloat16, eps=1e-5) -> FlatAct:
    """Stride-1 VALID conv over a flattened NHWC activation."""
    xf, h_in, w_log, w_phys, c_in = act
    n, l_in, _ = xf.shape
    taps, c_in_w, c_out = w_taps.shape
    assert c_in_w == c_in and taps == kh * kw

    h_out = h_in - kh + 1
    w_out = w_log - kw + 1
    l_rows = (h_out - 1) * w_phys + w_out
    offsets = tuple(a * w_phys + b for a in range(kh) for b in range(kw))

    # Valid-row mask for the InstanceNorm statistics (tiny, built host-side).
    mask = ((jnp.arange(l_rows) % w_phys) < w_out).astype(jnp.float32)
    mask = mask.reshape(l_rows, 1)

    kernel = functools.partial(
        _conv_kernel, offsets=offsets, lrows=l_rows,
        count=float(h_out * w_out), use_norm=use_norm, use_relu=use_relu,
        eps=eps)

    out = pl.pallas_call(
        kernel,
        out_shape=jax.ShapeDtypeStruct((n, l_rows, c_out), out_dtype),
        grid_spec=pltpu.PrefetchScalarGridSpec(
            num_scalar_prefetch=0,
            grid=(n,),
            in_specs=[
                pl.BlockSpec((1, l_in, c_in), lambda i: (i, 0, 0)),
                pl.BlockSpec((taps, c_in, c_out), lambda i: (0, 0, 0)),
                pl.BlockSpec((l_rows, 1), lambda i: (0, 0)),
            ],
            out_specs=pl.BlockSpec((1, l_rows, c_out), lambda i: (i, 0, 0)),
        ),
        compiler_params=pltpu.CompilerParams(
            dimension_semantics=("parallel",),          # batch shards across TCs
            vmem_limit_bytes=_vmem_limit_bytes(l_in, c_in, l_rows, c_out, taps),
        ),
    )(xf.astype(jnp.bfloat16), w_taps.astype(jnp.bfloat16), mask)

    # TODO(synk): for very large images / the non-norm layers, add a P-tile
    # grid axis (overlapping pl.Element windows) for deeper DMA pipelining.
    return FlatAct(out, h_out, w_out, w_phys, c_out)


# ---------------------------------------------------------------------------
# Plain-JAX layout glue (pure permutations / slices, no duplication).
# ---------------------------------------------------------------------------
def _space_to_depth2(x):
    """(N, H, W, C) -> (N, H//2, W//2, 4*C); channel order (p, q, c), p slow."""
    n, h, w, c = x.shape
    h2, w2 = h // 2, w // 2
    x = x[:, :h2 * 2, :w2 * 2, :]
    x = x.reshape(n, h2, 2, w2, 2, c)
    x = jnp.transpose(x, (0, 1, 3, 2, 4, 5))
    return x.reshape(n, h2, w2, 4 * c)


def _to_flat(x_nhwc) -> FlatAct:
    n, h, w, c = x_nhwc.shape
    return FlatAct(x_nhwc.reshape(n, h * w, c), h, w, w, c)


def _to_nhwc(act: FlatAct):
    xf, h, w_log, w_phys, c = act
    n, l, _ = xf.shape
    pad = h * w_phys - l
    if pad > 0:
        xf = jnp.pad(xf, ((0, 0), (0, pad), (0, 0)))
    x = xf.reshape(n, h, w_phys, c)
    return x[:, :, :w_log, :]


# Weight reorg: PyTorch (C_out, C_in, 4, 4) -> per-tap (C_in', C_out) matrices.
def _w_taps_stride2(w):
    """k=4, stride=2 conv expressed as k=2, stride=1 conv over space-to-depth."""
    c_out, c_in = w.shape[0], w.shape[1]
    wt = jnp.transpose(w, (2, 3, 1, 0))            # (kh, kw, Cin, Cout), i=2a+p, j=2b+q
    wt = wt.reshape(2, 2, 2, 2, c_in, c_out)       # (a, p, b, q, Cin, Cout)
    wt = jnp.transpose(wt, (0, 2, 1, 3, 4, 5))     # (a, b, p, q, Cin, Cout)
    return wt.reshape(4, 4 * c_in, c_out)          # tap = a*2+b, chan = (p, q, c)


def _w_taps_stride1(w):
    c_out, c_in, kh, kw = w.shape
    wt = jnp.transpose(w, (2, 3, 1, 0))            # (kh, kw, Cin, Cout)
    return wt.reshape(kh * kw, c_in, c_out)        # tap = i*kw + j


# ---------------------------------------------------------------------------
# Discriminator forward (mirrors the nn.Sequential, all convs bias=False).
# ---------------------------------------------------------------------------
def discriminator_forward(x, params, eps=1e-5):
    w1, w2, w3, w4, w5 = params
    h = jnp.transpose(x, (0, 2, 3, 1))             # NCHW -> NHWC, once

    # Conv(in, ndf, k4, s2) + LeakyReLU
    act = _to_flat(_space_to_depth2(h))
    act = conv_flat(act, _w_taps_stride2(w1), 2, 2, use_norm=False, use_relu=True, eps=eps)

    # Conv(ndf, 2ndf, k4, s2) + InstanceNorm + LeakyReLU
    act = _to_flat(_space_to_depth2(_to_nhwc(act)))
    act = conv_flat(act, _w_taps_stride2(w2), 2, 2, use_norm=True, use_relu=True, eps=eps)

    # Conv(2ndf, 4ndf, k4, s2) + InstanceNorm + LeakyReLU
    act = _to_flat(_space_to_depth2(_to_nhwc(act)))
    act = conv_flat(act, _w_taps_stride2(w3), 2, 2, use_norm=True, use_relu=True, eps=eps)

    # Conv(4ndf, 8ndf, k4, s1) + InstanceNorm + LeakyReLU  (chained, no copy)
    act = conv_flat(act, _w_taps_stride1(w4), 4, 4, use_norm=True, use_relu=True, eps=eps)

    # Conv(8ndf, 1, k4, s1)  — pad C_out 1 -> 128 for lane-dense stores.
    w5p = jnp.pad(w5, ((0, 128 - w5.shape[0]), (0, 0), (0, 0), (0, 0)))
    act = conv_flat(act, _w_taps_stride1(w5p), 4, 4, use_norm=False, use_relu=False,
                    out_dtype=jnp.float32, eps=eps)

    out = _to_nhwc(act)[..., :1]                   # (N, Ho, Wo, 1)
    return jnp.transpose(out, (0, 3, 1, 2))        # back to NCHW


# ---------------------------------------------------------------------------
# Pure-JAX (XLA conv) reference with the same bf16-in / f32-accumulate policy,
# used as an in-script correctness check.
# ---------------------------------------------------------------------------
def reference_forward(x, params, eps=1e-5):
    def conv(h, w, stride):
        return jax.lax.conv_general_dilated(
            h.astype(jnp.bfloat16), w.astype(jnp.bfloat16),
            window_strides=(stride, stride), padding="VALID",
            dimension_numbers=("NCHW", "OIHW", "NCHW"),
            preferred_element_type=jnp.float32)

    def inorm(h):
        m = jnp.mean(h, axis=(2, 3), keepdims=True)
        v = jnp.mean(jnp.square(h - m), axis=(2, 3), keepdims=True)
        return (h - m) * jax.lax.rsqrt(v + eps)

    def lrelu(h):
        return jnp.where(h > 0, h, 0.2 * h)

    w1, w2, w3, w4, w5 = params
    h = lrelu(conv(x, w1, 2))
    h = lrelu(inorm(conv(h, w2, 2)))
    h = lrelu(inorm(conv(h, w3, 2)))
    h = lrelu(inorm(conv(h, w4, 1)))
    return conv(h, w5, 1)


def init_params(key, in_channels, ndf):
    ks = jax.random.split(key, 5)
    shapes = [
        (ndf, in_channels, 4, 4),
        (ndf * 2, ndf, 4, 4),
        (ndf * 4, ndf * 2, 4, 4),
        (ndf * 8, ndf * 4, 4, 4),
        (1, ndf * 8, 4, 4),
    ]
    return [0.05 * jax.random.normal(k, s, dtype=jnp.float32)
            for k, s in zip(ks, shapes)]


if __name__ == "__main__":
    # Minimal valid spatial size: 5 stacked k=4 VALID convs (strides 2,2,2,1,1)
    # require H = W >= 70 to produce a 1x1 patch output.
    N, C_IN, H, W = 2, 3, 70, 70
    NDF = 8

    key = jax.random.PRNGKey(0)
    kx, kp = jax.random.split(key)
    x = jax.random.normal(kx, (N, C_IN, H, W), dtype=jnp.float32)
    params = init_params(kp, C_IN, NDF)

    fwd = jax.jit(discriminator_forward)
    out = jax.block_until_ready(fwd(x, params))
    assert out.shape == (N, 1, 1, 1), out.shape

    ref = jax.block_until_ready(jax.jit(reference_forward)(x, params))
    err = float(jnp.max(jnp.abs(out - ref)))
    assert err < 5e-2, f"max abs err vs reference: {err}"

    print("KERNEL_OK")
</pallas_src>

<mosaic_0001>
module attributes {stable_mosaic.version = 11 : i64} {
  func.func @_conv_kernel(%arg0: i32, %arg1: memref<1x1225x12xbf16, #tpu.memory_space<vmem>>, %arg2: memref<4x12x8xbf16, #tpu.memory_space<vmem>>, %arg3: memref<1189x1xf32, #tpu.memory_space<vmem>>, %arg4: memref<1x1189x8xbf16, #tpu.memory_space<vmem>>) attributes {dimension_semantics = [#tpu.dimension_semantics<parallel>], iteration_bounds = array<i64: 2>, scalar_prefetch = 0 : i64, scratch_operands = 0 : i64, tpu.core_type = #tpu.core_type<tc>, window_params = [{transform_indices = @transform_0, window_bounds = array<i64: 1, 1225, 12>}, {pipeline_mode = #tpu.pipeline_mode<synchronous>, transform_indices = @transform_1, window_bounds = array<i64: 4, 12, 8>}, {pipeline_mode = #tpu.pipeline_mode<synchronous>, transform_indices = @transform_2, window_bounds = array<i64: 1189, 1>}, {transform_indices = @transform_3, window_bounds = array<i64: 1, 1189, 8>}]} {
    %cst = arith.constant 0.000000e+00 : f32
    %0 = vector.broadcast %cst : f32 to vector<1189x8xf32>
    %c0 = arith.constant 0 : index
    %c0_0 = arith.constant 0 : index
    %c0_1 = arith.constant 0 : index
    %1 = vector.load %arg1[%c0, %c0_0, %c0_1] : memref<1x1225x12xbf16, #tpu.memory_space<vmem>>, vector<1x1189x12xbf16>
    %2 = vector.shape_cast %1 : vector<1x1189x12xbf16> to vector<1189x12xbf16>
    %c0_2 = arith.constant 0 : index
    %c0_3 = arith.constant 0 : index
    %c0_4 = arith.constant 0 : index
    %3 = vector.load %arg2[%c0_2, %c0_3, %c0_4] : memref<4x12x8xbf16, #tpu.memory_space<vmem>>, vector<1x12x8xbf16>
    %4 = vector.shape_cast %3 : vector<1x12x8xbf16> to vector<12x8xbf16>
    %cst_5 = arith.constant dense<0.000000e+00> : vector<1189x8xf32>
    %5 = tpu.matmul %2, %4, %cst_5 {dimension_numbers = #tpu.dot_dimension_numbers<[1], [0], [0], [1], [0, 0, 1, 1], [], []>} : vector<1189x12xbf16>, vector<12x8xbf16>, vector<1189x8xf32> -> vector<1189x8xf32>
    %6 = arith.addf %0, %5 : vector<1189x8xf32>
    %c0_6 = arith.constant 0 : index
    %c1 = arith.constant 1 : index
    %c0_7 = arith.constant 0 : index
    %7 = vector.load %arg1[%c0_6, %c1, %c0_7] : memref<1x1225x12xbf16, #tpu.memory_space<vmem>>, vector<1x1189x12xbf16>
    %8 = vector.shape_cast %7 : vector<1x1189x12xbf16> to vector<1189x12xbf16>
    %c1_8 = arith.constant 1 : index
    %c0_9 = arith.constant 0 : index
    %c0_10 = arith.constant 0 : index
    %9 = vector.load %arg2[%c1_8, %c0_9, %c0_10] : memref<4x12x8xbf16, #tpu.memory_space<vmem>>, vector<1x12x8xbf16>
    %10 = vector.shape_cast %9 : vector<1x12x8xbf16> to vector<12x8xbf16>
    %cst_11 = arith.constant dense<0.000000e+00> : vector<1189x8xf32>
    %11 = tpu.matmul %8, %10, %cst_11 {dimension_numbers = #tpu.dot_dimension_numbers<[1], [0], [0], [1], [0, 0, 1, 1], [], []>} : vector<1189x12xbf16>, vector<12x8xbf16>, vector<1189x8xf32> -> vector<1189x8xf32>
    %12 = arith.addf %6, %11 : vector<1189x8xf32>
    %c0_12 = arith.constant 0 : index
    %c35 = arith.constant 35 : index
    %c0_13 = arith.constant 0 : index
    %13 = vector.load %arg1[%c0_12, %c35, %c0_13] : memref<1x1225x12xbf16, #tpu.memory_space<vmem>>, vector<1x1189x12xbf16>
    %14 = vector.shape_cast %13 : vector<1x1189x12xbf16> to vector<1189x12xbf16>
    %c2 = arith.constant 2 : index
    %c0_14 = arith.constant 0 : index
    %c0_15 = arith.constant 0 : index
    %15 = vector.load %arg2[%c2, %c0_14, %c0_15] : memref<4x12x8xbf16, #tpu.memory_space<vmem>>, vector<1x12x8xbf16>
    %16 = vector.shape_cast %15 : vector<1x12x8xbf16> to vector<12x8xbf16>
    %cst_16 = arith.constant dense<0.000000e+00> : vector<1189x8xf32>
    %17 = tpu.matmul %14, %16, %cst_16 {dimension_numbers = #tpu.dot_dimension_numbers<[1], [0], [0], [1], [0, 0, 1, 1], [], []>} : vector<1189x12xbf16>, vector<12x8xbf16>, vector<1189x8xf32> -> vector<1189x8xf32>
    %18 = arith.addf %12, %17 : vector<1189x8xf32>
    %c0_17 = arith.constant 0 : index
    %c36 = arith.constant 36 : index
    %c0_18 = arith.constant 0 : index
    %19 = vector.load %arg1[%c0_17, %c36, %c0_18] : memref<1x1225x12xbf16, #tpu.memory_space<vmem>>, vector<1x1189x12xbf16>
    %20 = vector.shape_cast %19 : vector<1x1189x12xbf16> to vector<1189x12xbf16>
    %c3 = arith.constant 3 : index
    %c0_19 = arith.constant 0 : index
    %c0_20 = arith.constant 0 : index
    %21 = vector.load %arg2[%c3, %c0_19, %c0_20] : memref<4x12x8xbf16, #tpu.memory_space<vmem>>, vector<1x12x8xbf16>
    %22 = vector.shape_cast %21 : vector<1x12x8xbf16> to vector<12x8xbf16>
    %cst_21 = arith.constant dense<0.000000e+00> : vector<1189x8xf32>
    %23 = tpu.matmul %20, %22, %cst_21 {dimension_numbers = #tpu.dot_dimension_numbers<[1], [0], [0], [1], [0, 0, 1, 1], [], []>} : vector<1189x12xbf16>, vector<12x8xbf16>, vector<1189x8xf32> -> vector<1189x8xf32>
    %24 = arith.addf %18, %23 : vector<1189x8xf32>
    %cst_22 = arith.constant 0.000000e+00 : f32
    %25 = vector.broadcast %cst_22 : f32 to vector<1189x8xf32>
    %26 = arith.cmpf ogt, %24, %25 : vector<1189x8xf32>
    %cst_23 = arith.constant 2.000000e-01 : f32
    %27 = vector.broadcast %cst_23 : f32 to vector<1189x8xf32>
    %28 = arith.mulf %27, %24 : vector<1189x8xf32>
    %29 = arith.select %26, %24, %28 : vector<1189x8xi1>, vector<1189x8xf32>
    %30 = arith.truncf %29 : vector<1189x8xf32> to vector<1189x8xbf16>
    %c0_24 = arith.constant 0 : index
    %c0_25 = arith.constant 0 : index
    %c0_26 = arith.constant 0 : index
    %31 = vector.load %arg4[%c0_24, %c0_25, %c0_26] : memref<1x1189x8xbf16, #tpu.memory_space<vmem>>, vector<1x1189x8xbf16>
    %32 = vector.shape_cast %31 : vector<1x1189x8xbf16> to vector<1189x8xbf16>
    %33 = vector.shape_cast %30 : vector<1189x8xbf16> to vector<1x1189x8xbf16>
    tpu.vector_store %arg4[%c0_24, %c0_25, %c0_26], %33 {strides = array<i32>} : memref<1x1189x8xbf16, #tpu.memory_space<vmem>>, vector<1x1189x8xbf16>,
    return
  }
  func.func @transform_0(%arg0: i32) -> (i32, i32, i32) {
    %c0_i32 = arith.constant 0 : i32
    %c0_i32_0 = arith.constant 0 : i32
    %c0_i32_1 = arith.constant 0 : i32
    return %arg0, %c0_i32, %c0_i32_0 : i32, i32, i32
  }
  func.func @transform_1(%arg0: i32) -> (i32, i32, i32) {
    %c0_i32 = arith.constant 0 : i32
    %c0_i32_0 = arith.constant 0 : i32
    %c0_i32_1 = arith.constant 0 : i32
    %c0_i32_2 = arith.constant 0 : i32
    return %c0_i32, %c0_i32_0, %c0_i32_1 : i32, i32, i32
  }
  func.func @transform_2(%arg0: i32) -> (i32, i32) {
    %c0_i32 = arith.constant 0 : i32
    %c0_i32_0 = arith.constant 0 : i32
    %c0_i32_1 = arith.constant 0 : i32
    return %c0_i32, %c0_i32_0 : i32, i32
  }
  func.func @transform_3(%arg0: i32) -> (i32, i32, i32) {
    %c0_i32 = arith.constant 0 : i32
    %c0_i32_0 = arith.constant 0 : i32
    %c0_i32_1 = arith.constant 0 : i32
    return %arg0, %c0_i32, %c0_i32_0 : i32, i32, i32
  }
}

module attributes {stable_mosaic.version = 11 : i64} {
  func.func @_conv_kernel(%arg0: i32, %arg1: memref<1x289x32xbf16, #tpu.memory_space<vmem>>, %arg2: memref<4x32x16xbf16, #tpu.memory_space<vmem>>, %arg3: memref<271x1xf32, #tpu.memory_space<vmem>>, %arg4: memref<1x271x16xbf16, #tpu.memory_space<vmem>>) attributes {dimension_semantics = [#tpu.dimension_semantics<parallel>], iteration_bounds = array<i64: 2>, scalar_prefetch = 0 : i64, scratch_operands = 0 : i64, tpu.core_type = #tpu.core_type<tc>, window_params = [{transform_indices = @transform_0, window_bounds = array<i64: 1, 289, 32>}, {pipeline_mode = #tpu.pipeline_mode<synchronous>, transform_indices = @transform_1, window_bounds = array<i64: 4, 32, 16>}, {pipeline_mode = #tpu.pipeline_mode<synchronous>, transform_indices = @transform_2, window_bounds = array<i64: 271, 1>}, {transform_indices = @transform_3, window_bounds = array<i64: 1, 271, 16>}]} {
    %cst = arith.constant 0.000000e+00 : f32
    %0 = vector.broadcast %cst : f32 to vector<271x16xf32>
    %c0 = arith.constant 0 : index
    %c0_0 = arith.constant 0 : index
    %c0_1 = arith.constant 0 : index
    %1 = vector.load %arg1[%c0, %c0_0, %c0_1] : memref<1x289x32xbf16, #tpu.memory_space<vmem>>, vector<1x271x32xbf16>
    %2 = vector.shape_cast %1 : vector<1x271x32xbf16> to vector<271x32xbf16>
    %c0_2 = arith.constant 0 : index
    %c0_3 = arith.constant 0 : index
    %c0_4 = arith.constant 0 : index
    %3 = vector.load %arg2[%c0_2, %c0_3, %c0_4] : memref<4x32x16xbf16, #tpu.memory_space<vmem>>, vector<1x32x16xbf16>
    %4 = vector.shape_cast %3 : vector<1x32x16xbf16> to vector<32x16xbf16>
    %cst_5 = arith.constant dense<0.000000e+00> : vector<271x16xf32>
    %5 = tpu.matmul %2, %4, %cst_5 {dimension_numbers = #tpu.dot_dimension_numbers<[1], [0], [0], [1], [0, 0, 1, 1], [], []>} : vector<271x32xbf16>, vector<32x16xbf16>, vector<271x16xf32> -> vector<271x16xf32>
    %6 = arith.addf %0, %5 : vector<271x16xf32>
    %c0_6 = arith.constant 0 : index
    %c1 = arith.constant 1 : index
    %c0_7 = arith.constant 0 : index
    %7 = vector.load %arg1[%c0_6, %c1, %c0_7] : memref<1x289x32xbf16, #tpu.memory_space<vmem>>, vector<1x271x32xbf16>
    %8 = vector.shape_cast %7 : vector<1x271x32xbf16> to vector<271x32xbf16>
    %c1_8 = arith.constant 1 : index
    %c0_9 = arith.constant 0 : index
    %c0_10 = arith.constant 0 : index
    %9 = vector.load %arg2[%c1_8, %c0_9, %c0_10] : memref<4x32x16xbf16, #tpu.memory_space<vmem>>, vector<1x32x16xbf16>
    %10 = vector.shape_cast %9 : vector<1x32x16xbf16> to vector<32x16xbf16>
    %cst_11 = arith.constant dense<0.000000e+00> : vector<271x16xf32>
    %11 = tpu.matmul %8, %10, %cst_11 {dimension_numbers = #tpu.dot_dimension_numbers<[1], [0], [0], [1], [0, 0, 1, 1], [], []>} : vector<271x32xbf16>, vector<32x16xbf16>, vector<271x16xf32> -> vector<271x16xf32>
    %12 = arith.addf %6, %11 : vector<271x16xf32>
    %c0_12 = arith.constant 0 : index
    %c17 = arith.constant 17 : index
    %c0_13 = arith.constant 0 : index
    %13 = vector.load %arg1[%c0_12, %c17, %c0_13] : memref<1x289x32xbf16, #tpu.memory_space<vmem>>, vector<1x271x32xbf16>
    %14 = vector.shape_cast %13 : vector<1x271x32xbf16> to vector<271x32xbf16>
    %c2 = arith.constant 2 : index
    %c0_14 = arith.constant 0 : index
    %c0_15 = arith.constant 0 : index
    %15 = vector.load %arg2[%c2, %c0_14, %c0_15] : memref<4x32x16xbf16, #tpu.memory_space<vmem>>, vector<1x32x16xbf16>
    %16 = vector.shape_cast %15 : vector<1x32x16xbf16> to vector<32x16xbf16>
    %cst_16 = arith.constant dense<0.000000e+00> : vector<271x16xf32>
    %17 = tpu.matmul %14, %16, %cst_16 {dimension_numbers = #tpu.dot_dimension_numbers<[1], [0], [0], [1], [0, 0, 1, 1], [], []>} : vector<271x32xbf16>, vector<32x16xbf16>, vector<271x16xf32> -> vector<271x16xf32>
    %18 = arith.addf %12, %17 : vector<271x16xf32>
    %c0_17 = arith.constant 0 : index
    %c18 = arith.constant 18 : index
    %c0_18 = arith.constant 0 : index
    %19 = vector.load %arg1[%c0_17, %c18, %c0_18] : memref<1x289x32xbf16, #tpu.memory_space<vmem>>, vector<1x271x32xbf16>
    %20 = vector.shape_cast %19 : vector<1x271x32xbf16> to vector<271x32xbf16>
    %c3 = arith.constant 3 : index
    %c0_19 = arith.constant 0 : index
    %c0_20 = arith.constant 0 : index
    %21 = vector.load %arg2[%c3, %c0_19, %c0_20] : memref<4x32x16xbf16, #tpu.memory_space<vmem>>, vector<1x32x16xbf16>
    %22 = vector.shape_cast %21 : vector<1x32x16xbf16> to vector<32x16xbf16>
    %cst_21 = arith.constant dense<0.000000e+00> : vector<271x16xf32>
    %23 = tpu.matmul %20, %22, %cst_21 {dimension_numbers = #tpu.dot_dimension_numbers<[1], [0], [0], [1], [0, 0, 1, 1], [], []>} : vector<271x32xbf16>, vector<32x16xbf16>, vector<271x16xf32> -> vector<271x16xf32>
    %24 = arith.addf %18, %23 : vector<271x16xf32>
    %c0_22 = arith.constant 0 : index
    %c0_23 = arith.constant 0 : index
    %25 = vector.load %arg3[%c0_22, %c0_23] : memref<271x1xf32, #tpu.memory_space<vmem>>, vector<271x1xf32>
    %26 = vector.broadcast %25 : vector<271x1xf32> to vector<271x16xf32>
    %27 = arith.mulf %24, %26 : vector<271x16xf32>
    %cst_24 = arith.constant dense<0.000000e+00> : vector<16xf32>
    %28 = vector.multi_reduction <add>, %27, %cst_24 [0] : vector<271x16xf32> to vector<16xf32>
    %29 = vector.shape_cast %28 : vector<16xf32> to vector<1x16xf32>
    %30 = arith.mulf %24, %24 : vector<271x16xf32>
    %31 = vector.broadcast %25 : vector<271x1xf32> to vector<271x16xf32>
    %32 = arith.mulf %30, %31 : vector<271x16xf32>
    %cst_25 = arith.constant dense<0.000000e+00> : vector<16xf32>
    %33 = vector.multi_reduction <add>, %32, %cst_25 [0] : vector<271x16xf32> to vector<16xf32>
    %34 = vector.shape_cast %33 : vector<16xf32> to vector<1x16xf32>
    %cst_26 = arith.constant 3.906250e-03 : f32
    %35 = vector.broadcast %cst_26 : f32 to vector<1x16xf32>
    %36 = arith.mulf %29, %35 : vector<1x16xf32>
    %cst_27 = arith.constant 3.906250e-03 : f32
    %37 = vector.broadcast %cst_27 : f32 to vector<1x16xf32>
    %38 = arith.mulf %34, %37 : vector<1x16xf32>
    %39 = arith.mulf %36, %36 : vector<1x16xf32>
    %40 = arith.subf %38, %39 : vector<1x16xf32>
    %cst_28 = arith.constant 0.000000e+00 : f32
    %41 = vector.broadcast %cst_28 : f32 to vector<1x16xf32>
    %42 = arith.maximumf %40, %41 : vector<1x16xf32>
    %43 = vector.broadcast %36 : vector<1x16xf32> to vector<271x16xf32>
    %44 = arith.subf %24, %43 : vector<271x16xf32>
    %cst_29 = arith.constant 9.99999974E-6 : f32
    %45 = vector.broadcast %cst_29 : f32 to vector<1x16xf32>
    %46 = arith.addf %42, %45 : vector<1x16xf32>
    %47 = math.rsqrt %46 : vector<1x16xf32>
    %48 = vector.broadcast %47 : vector<1x16xf32> to vector<271x16xf32>
    %49 = arith.mulf %44, %48 : vector<271x16xf32>
    %cst_30 = arith.constant 0.000000e+00 : f32
    %50 = vector.broadcast %cst_30 : f32 to vector<271x16xf32>
    %51 = arith.cmpf ogt, %49, %50 : vector<271x16xf32>
    %cst_31 = arith.constant 2.000000e-01 : f32
    %52 = vector.broadcast %cst_31 : f32 to vector<271x16xf32>
    %53 = arith.mulf %52, %49 : vector<271x16xf32>
    %54 = arith.select %51, %49, %53 : vector<271x16xi1>, vector<271x16xf32>
    %55 = arith.truncf %54 : vector<271x16xf32> to vector<271x16xbf16>
    %c0_32 = arith.constant 0 : index
    %c0_33 = arith.constant 0 : index
    %c0_34 = arith.constant 0 : index
    %56 = vector.load %arg4[%c0_32, %c0_33, %c0_34] : memref<1x271x16xbf16, #tpu.memory_space<vmem>>, vector<1x271x16xbf16>
    %57 = vector.shape_cast %56 : vector<1x271x16xbf16> to vector<271x16xbf16>
    %58 = vector.shape_cast %55 : vector<271x16xbf16> to vector<1x271x16xbf16>
    tpu.vector_store %arg4[%c0_32, %c0_33, %c0_34], %58 {strides = array<i32>} : memref<1x271x16xbf16, #tpu.memory_space<vmem>>, vector<1x271x16xbf16>,
    return
  }
  func.func @transform_0(%arg0: i32) -> (i32, i32, i32) {
    %c0_i32 = arith.constant 0 : i32
    %c0_i32_0 = arith.constant 0 : i32
    %c0_i32_1 = arith.constant 0 : i32
    return %arg0, %c0_i32, %c0_i32_0 : i32, i32, i32
  }
  func.func @transform_1(%arg0: i32) -> (i32, i32, i32) {
    %c0_i32 = arith.constant 0 : i32
    %c0_i32_0 = arith.constant 0 : i32
    %c0_i32_1 = arith.constant 0 : i32
    %c0_i32_2 = arith.constant 0 : i32
    return %c0_i32, %c0_i32_0, %c0_i32_1 : i32, i32, i32
  }
  func.func @transform_2(%arg0: i32) -> (i32, i32) {
    %c0_i32 = arith.constant 0 : i32
    %c0_i32_0 = arith.constant 0 : i32
    %c0_i32_1 = arith.constant 0 : i32
    return %c0_i32, %c0_i32_0 : i32, i32
  }
  func.func @transform_3(%arg0: i32) -> (i32, i32, i32) {
    %c0_i32 = arith.constant 0 : i32
    %c0_i32_0 = arith.constant 0 : i32
    %c0_i32_1 = arith.constant 0 : i32
    return %arg0, %c0_i32, %c0_i32_0 : i32, i32, i32
  }
}

module attributes {stable_mosaic.version = 11 : i64} {
  func.func @_conv_kernel(%arg0: i32, %arg1: memref<1x64x64xbf16, #tpu.memory_space<vmem>>, %arg2: memref<4x64x32xbf16, #tpu.memory_space<vmem>>, %arg3: memref<55x1xf32, #tpu.memory_space<vmem>>, %arg4: memref<1x55x32xbf16, #tpu.memory_space<vmem>>) attributes {dimension_semantics = [#tpu.dimension_semantics<parallel>], iteration_bounds = array<i64: 2>, scalar_prefetch = 0 : i64, scratch_operands = 0 : i64, tpu.core_type = #tpu.core_type<tc>, window_params = [{transform_indices = @transform_0, window_bounds = array<i64: 1, 64, 64>}, {pipeline_mode = #tpu.pipeline_mode<synchronous>, transform_indices = @transform_1, window_bounds = array<i64: 4, 64, 32>}, {pipeline_mode = #tpu.pipeline_mode<synchronous>, transform_indices = @transform_2, window_bounds = array<i64: 55, 1>}, {transform_indices = @transform_3, window_bounds = array<i64: 1, 55, 32>}]} {
    %cst = arith.constant 0.000000e+00 : f32
    %0 = vector.broadcast %cst : f32 to vector<55x32xf32>
    %c0 = arith.constant 0 : index
    %c0_0 = arith.constant 0 : index
    %c0_1 = arith.constant 0 : index
    %1 = vector.load %arg1[%c0, %c0_0, %c0_1] : memref<1x64x64xbf16, #tpu.memory_space<vmem>>, vector<1x55x64xbf16>
    %2 = vector.shape_cast %1 : vector<1x55x64xbf16> to vector<55x64xbf16>
    %c0_2 = arith.constant 0 : index
    %c0_3 = arith.constant 0 : index
    %c0_4 = arith.constant 0 : index
    %3 = vector.load %arg2[%c0_2, %c0_3, %c0_4] : memref<4x64x32xbf16, #tpu.memory_space<vmem>>, vector<1x64x32xbf16>
    %4 = vector.shape_cast %3 : vector<1x64x32xbf16> to vector<64x32xbf16>
    %cst_5 = arith.constant dense<0.000000e+00> : vector<55x32xf32>
    %5 = tpu.matmul %2, %4, %cst_5 {dimension_numbers = #tpu.dot_dimension_numbers<[1], [0], [0], [1], [0, 0, 1, 1], [], []>} : vector<55x64xbf16>, vector<64x32xbf16>, vector<55x32xf32> -> vector<55x32xf32>
    %6 = arith.addf %0, %5 : vector<55x32xf32>
    %c0_6 = arith.constant 0 : index
    %c1 = arith.constant 1 : index
    %c0_7 = arith.constant 0 : index
    %7 = vector.load %arg1[%c0_6, %c1, %c0_7] : memref<1x64x64xbf16, #tpu.memory_space<vmem>>, vector<1x55x64xbf16>
    %8 = vector.shape_cast %7 : vector<1x55x64xbf16> to vector<55x64xbf16>
    %c1_8 = arith.constant 1 : index
    %c0_9 = arith.constant 0 : index
    %c0_10 = arith.constant 0 : index
    %9 = vector.load %arg2[%c1_8, %c0_9, %c0_10] : memref<4x64x32xbf16, #tpu.memory_space<vmem>>, vector<1x64x32xbf16>
    %10 = vector.shape_cast %9 : vector<1x64x32xbf16> to vector<64x32xbf16>
    %cst_11 = arith.constant dense<0.000000e+00> : vector<55x32xf32>
    %11 = tpu.matmul %8, %10, %cst_11 {dimension_numbers = #tpu.dot_dimension_numbers<[1], [0], [0], [1], [0, 0, 1, 1], [], []>} : vector<55x64xbf16>, vector<64x32xbf16>, vector<55x32xf32> -> vector<55x32xf32>
    %12 = arith.addf %6, %11 : vector<55x32xf32>
    %c0_12 = arith.constant 0 : index
    %c8 = arith.constant 8 : index
    %c0_13 = arith.constant 0 : index
    %13 = vector.load %arg1[%c0_12, %c8, %c0_13] : memref<1x64x64xbf16, #tpu.memory_space<vmem>>, vector<1x55x64xbf16>
    %14 = vector.shape_cast %13 : vector<1x55x64xbf16> to vector<55x64xbf16>
    %c2 = arith.constant 2 : index
    %c0_14 = arith.constant 0 : index
    %c0_15 = arith.constant 0 : index
    %15 = vector.load %arg2[%c2, %c0_14, %c0_15] : memref<4x64x32xbf16, #tpu.memory_space<vmem>>, vector<1x64x32xbf16>
    %16 = vector.shape_cast %15 : vector<1x64x32xbf16> to vector<64x32xbf16>
    %cst_16 = arith.constant dense<0.000000e+00> : vector<55x32xf32>
    %17 = tpu.matmul %14, %16, %cst_16 {dimension_numbers = #tpu.dot_dimension_numbers<[1], [0], [0], [1], [0, 0, 1, 1], [], []>} : vector<55x64xbf16>, vector<64x32xbf16>, vector<55x32xf32> -> vector<55x32xf32>
    %18 = arith.addf %12, %17 : vector<55x32xf32>
    %c0_17 = arith.constant 0 : index
    %c9 = arith.constant 9 : index
    %c0_18 = arith.constant 0 : index
    %19 = vector.load %arg1[%c0_17, %c9, %c0_18] : memref<1x64x64xbf16, #tpu.memory_space<vmem>>, vector<1x55x64xbf16>
    %20 = vector.shape_cast %19 : vector<1x55x64xbf16> to vector<55x64xbf16>
    %c3 = arith.constant 3 : index
    %c0_19 = arith.constant 0 : index
    %c0_20 = arith.constant 0 : index
    %21 = vector.load %arg2[%c3, %c0_19, %c0_20] : memref<4x64x32xbf16, #tpu.memory_space<vmem>>, vector<1x64x32xbf16>
    %22 = vector.shape_cast %21 : vector<1x64x32xbf16> to vector<64x32xbf16>
    %cst_21 = arith.constant dense<0.000000e+00> : vector<55x32xf32>
    %23 = tpu.matmul %20, %22, %cst_21 {dimension_numbers = #tpu.dot_dimension_numbers<[1], [0], [0], [1], [0, 0, 1, 1], [], []>} : vector<55x64xbf16>, vector<64x32xbf16>, vector<55x32xf32> -> vector<55x32xf32>
    %24 = arith.addf %18, %23 : vector<55x32xf32>
    %c0_22 = arith.constant 0 : index
    %c0_23 = arith.constant 0 : index
    %25 = vector.load %arg3[%c0_22, %c0_23] : memref<55x1xf32, #tpu.memory_space<vmem>>, vector<55x1xf32>
    %26 = vector.broadcast %25 : vector<55x1xf32> to vector<55x32xf32>
    %27 = arith.mulf %24, %26 : vector<55x32xf32>
    %cst_24 = arith.constant dense<0.000000e+00> : vector<32xf32>
    %28 = vector.multi_reduction <add>, %27, %cst_24 [0] : vector<55x32xf32> to vector<32xf32>
    %29 = vector.shape_cast %28 : vector<32xf32> to vector<1x32xf32>
    %30 = arith.mulf %24, %24 : vector<55x32xf32>
    %31 = vector.broadcast %25 : vector<55x1xf32> to vector<55x32xf32>
    %32 = arith.mulf %30, %31 : vector<55x32xf32>
    %cst_25 = arith.constant dense<0.000000e+00> : vector<32xf32>
    %33 = vector.multi_reduction <add>, %32, %cst_25 [0] : vector<55x32xf32> to vector<32xf32>
    %34 = vector.shape_cast %33 : vector<32xf32> to vector<1x32xf32>
    %cst_26 = arith.constant 0.0204081628 : f32
    %35 = vector.broadcast %cst_26 : f32 to vector<1x32xf32>
    %36 = arith.mulf %29, %35 : vector<1x32xf32>
    %cst_27 = arith.constant 0.0204081628 : f32
    %37 = vector.broadcast %cst_27 : f32 to vector<1x32xf32>
    %38 = arith.mulf %34, %37 : vector<1x32xf32>
    %39 = arith.mulf %36, %36 : vector<1x32xf32>
    %40 = arith.subf %38, %39 : vector<1x32xf32>
    %cst_28 = arith.constant 0.000000e+00 : f32
    %41 = vector.broadcast %cst_28 : f32 to vector<1x32xf32>
    %42 = arith.maximumf %40, %41 : vector<1x32xf32>
    %43 = vector.broadcast %36 : vector<1x32xf32> to vector<55x32xf32>
    %44 = arith.subf %24, %43 : vector<55x32xf32>
    %cst_29 = arith.constant 9.99999974E-6 : f32
    %45 = vector.broadcast %cst_29 : f32 to vector<1x32xf32>
    %46 = arith.addf %42, %45 : vector<1x32xf32>
    %47 = math.rsqrt %46 : vector<1x32xf32>
    %48 = vector.broadcast %47 : vector<1x32xf32> to vector<55x32xf32>
    %49 = arith.mulf %44, %48 : vector<55x32xf32>
    %cst_30 = arith.constant 0.000000e+00 : f32
    %50 = vector.broadcast %cst_30 : f32 to vector<55x32xf32>
    %51 = arith.cmpf ogt, %49, %50 : vector<55x32xf32>
    %cst_31 = arith.constant 2.000000e-01 : f32
    %52 = vector.broadcast %cst_31 : f32 to vector<55x32xf32>
    %53 = arith.mulf %52, %49 : vector<55x32xf32>
    %54 = arith.select %51, %49, %53 : vector<55x32xi1>, vector<55x32xf32>
    %55 = arith.truncf %54 : vector<55x32xf32> to vector<55x32xbf16>
    %c0_32 = arith.constant 0 : index
    %c0_33 = arith.constant 0 : index
    %c0_34 = arith.constant 0 : index
    %56 = vector.load %arg4[%c0_32, %c0_33, %c0_34] : memref<1x55x32xbf16, #tpu.memory_space<vmem>>, vector<1x55x32xbf16>
    %57 = vector.shape_cast %56 : vector<1x55x32xbf16> to vector<55x32xbf16>
    %58 = vector.shape_cast %55 : vector<55x32xbf16> to vector<1x55x32xbf16>
    tpu.vector_store %arg4[%c0_32, %c0_33, %c0_34], %58 {strides = array<i32>} : memref<1x55x32xbf16, #tpu.memory_space<vmem>>, vector<1x55x32xbf16>,
    return
  }
  func.func @transform_0(%arg0: i32) -> (i32, i32, i32) {
    %c0_i32 = arith.constant 0 : i32
    %c0_i32_0 = arith.constant 0 : i32
    %c0_i32_1 = arith.constant 0 : i32
    return %arg0, %c0_i32, %c0_i32_0 : i32, i32, i32
  }
  func.func @transform_1(%arg0: i32) -> (i32, i32, i32) {
    %c0_i32 = arith.constant 0 : i32
    %c0_i32_0 = arith.constant 0 : i32
    %c0_i32_1 = arith.constant 0 : i32
    %c0_i32_2 = arith.constant 0 : i32
    return %c0_i32, %c0_i32_0, %c0_i32_1 : i32, i32, i32
  }
  func.func @transform_2(%arg0: i32) -> (i32, i32) {
    %c0_i32 = arith.constant 0 : i32
    %c0_i32_0 = arith.constant 0 : i32
    %c0_i32_1 = arith.constant 0 : i32
    return %c0_i32, %c0_i32_0 : i32, i32
  }
  func.func @transform_3(%arg0: i32) -> (i32, i32, i32) {
    %c0_i32 = arith.constant 0 : i32
    %c0_i32_0 = arith.constant 0 : i32
    %c0_i32_1 = arith.constant 0 : i32
    return %arg0, %c0_i32, %c0_i32_0 : i32, i32, i32
  }
}

module attributes {stable_mosaic.version = 11 : i64} {
  func.func @_conv_kernel(%arg0: i32, %arg1: memref<1x55x32xbf16, #tpu.memory_space<vmem>>, %arg2: memref<16x32x64xbf16, #tpu.memory_space<vmem>>, %arg3: memref<28x1xf32, #tpu.memory_space<vmem>>, %arg4: memref<1x28x64xbf16, #tpu.memory_space<vmem>>) attributes {dimension_semantics = [#tpu.dimension_semantics<parallel>], iteration_bounds = array<i64: 2>, scalar_prefetch = 0 : i64, scratch_operands = 0 : i64, tpu.core_type = #tpu.core_type<tc>, window_params = [{transform_indices = @transform_0, window_bounds = array<i64: 1, 55, 32>}, {pipeline_mode = #tpu.pipeline_mode<synchronous>, transform_indices = @transform_1, window_bounds = array<i64: 16, 32, 64>}, {pipeline_mode = #tpu.pipeline_mode<synchronous>, transform_indices = @transform_2, window_bounds = array<i64: 28, 1>}, {transform_indices = @transform_3, window_bounds = array<i64: 1, 28, 64>}]} {
    %cst = arith.constant 0.000000e+00 : f32
    %0 = vector.broadcast %cst : f32 to vector<28x64xf32>
    %c0 = arith.constant 0 : index
    %c0_0 = arith.constant 0 : index
    %c0_1 = arith.constant 0 : index
    %1 = vector.load %arg1[%c0, %c0_0, %c0_1] : memref<1x55x32xbf16, #tpu.memory_space<vmem>>, vector<1x28x32xbf16>
    %2 = vector.shape_cast %1 : vector<1x28x32xbf16> to vector<28x32xbf16>
    %c0_2 = arith.constant 0 : index
    %c0_3 = arith.constant 0 : index
    %c0_4 = arith.constant 0 : index
    %3 = vector.load %arg2[%c0_2, %c0_3, %c0_4] : memref<16x32x64xbf16, #tpu.memory_space<vmem>>, vector<1x32x64xbf16>
    %4 = vector.shape_cast %3 : vector<1x32x64xbf16> to vector<32x64xbf16>
    %cst_5 = arith.constant dense<0.000000e+00> : vector<28x64xf32>
    %5 = tpu.matmul %2, %4, %cst_5 {dimension_numbers = #tpu.dot_dimension_numbers<[1], [0], [0], [1], [0, 0, 1, 1], [], []>} : vector<28x32xbf16>, vector<32x64xbf16>, vector<28x64xf32> -> vector<28x64xf32>
    %6 = arith.addf %0, %5 : vector<28x64xf32>
    %c0_6 = arith.constant 0 : index
    %c1 = arith.constant 1 : index
    %c0_7 = arith.constant 0 : index
    %7 = vector.load %arg1[%c0_6, %c1, %c0_7] : memref<1x55x32xbf16, #tpu.memory_space<vmem>>, vector<1x28x32xbf16>
    %8 = vector.shape_cast %7 : vector<1x28x32xbf16> to vector<28x32xbf16>
    %c1_8 = arith.constant 1 : index
    %c0_9 = arith.constant 0 : index
    %c0_10 = arith.constant 0 : index
    %9 = vector.load %arg2[%c1_8, %c0_9, %c0_10] : memref<16x32x64xbf16, #tpu.memory_space<vmem>>, vector<1x32x64xbf16>
    %10 = vector.shape_cast %9 : vector<1x32x64xbf16> to vector<32x64xbf16>
    %cst_11 = arith.constant dense<0.000000e+00> : vector<28x64xf32>
    %11 = tpu.matmul %8, %10, %cst_11 {dimension_numbers = #tpu.dot_dimension_numbers<[1], [0], [0], [1], [0, 0, 1, 1], [], []>} : vector<28x32xbf16>, vector<32x64xbf16>, vector<28x64xf32> -> vector<28x64xf32>
    %12 = arith.addf %6, %11 : vector<28x64xf32>
    %c0_12 = arith.constant 0 : index
    %c2 = arith.constant 2 : index
    %c0_13 = arith.constant 0 : index
    %13 = vector.load %arg1[%c0_12, %c2, %c0_13] : memref<1x55x32xbf16, #tpu.memory_space<vmem>>, vector<1x28x32xbf16>
    %14 = vector.shape_cast %13 : vector<1x28x32xbf16> to vector<28x32xbf16>
    %c2_14 = arith.constant 2 : index
    %c0_15 = arith.constant 0 : index
    %c0_16 = arith.constant 0 : index
    %15 = vector.load %arg2[%c2_14, %c0_15, %c0_16] : memref<16x32x64xbf16, #tpu.memory_space<vmem>>, vector<1x32x64xbf16>
    %16 = vector.shape_cast %15 : vector<1x32x64xbf16> to vector<32x64xbf16>
    %cst_17 = arith.constant dense<0.000000e+00> : vector<28x64xf32>
    %17 = tpu.matmul %14, %16, %cst_17 {dimension_numbers = #tpu.dot_dimension_numbers<[1], [0], [0], [1], [0, 0, 1, 1], [], []>} : vector<28x32xbf16>, vector<32x64xbf16>, vector<28x64xf32> -> vector<28x64xf32>
    %18 = arith.addf %12, %17 : vector<28x64xf32>
    %c0_18 = arith.constant 0 : index
    %c3 = arith.constant 3 : index
    %c0_19 = arith.constant 0 : index
    %19 = vector.load %arg1[%c0_18, %c3, %c0_19] : memref<1x55x32xbf16, #tpu.memory_space<vmem>>, vector<1x28x32xbf16>
    %20 = vector.shape_cast %19 : vector<1x28x32xbf16> to vector<28x32xbf16>
    %c3_20 = arith.constant 3 : index
    %c0_21 = arith.constant 0 : index
    %c0_22 = arith.constant 0 : index
    %21 = vector.load %arg2[%c3_20, %c0_21, %c0_22] : memref<16x32x64xbf16, #tpu.memory_space<vmem>>, vector<1x32x64xbf16>
    %22 = vector.shape_cast %21 : vector<1x32x64xbf16> to vector<32x64xbf16>
    %cst_23 = arith.constant dense<0.000000e+00> : vector<28x64xf32>
    %23 = tpu.matmul %20, %22, %cst_23 {dimension_numbers = #tpu.dot_dimension_numbers<[1], [0], [0], [1], [0, 0, 1, 1], [], []>} : vector<28x32xbf16>, vector<32x64xbf16>, vector<28x64xf32> -> vector<28x64xf32>
    %24 = arith.addf %18, %23 : vector<28x64xf32>
    %c0_24 = arith.constant 0 : index
    %c8 = arith.constant 8 : index
    %c0_25 = arith.constant 0 : index
    %25 = vector.load %arg1[%c0_24, %c8, %c0_25] : memref<1x55x32xbf16, #tpu.memory_space<vmem>>, vector<1x28x32xbf16>
    %26 = vector.shape_cast %25 : vector<1x28x32xbf16> to vector<28x32xbf16>
    %c4 = arith.constant 4 : index
    %c0_26 = arith.constant 0 : index
    %c0_27 = arith.constant 0 : index
    %27 = vector.load %arg2[%c4, %c0_26, %c0_27] : memref<16x32x64xbf16, #tpu.memory_space<vmem>>, vector<1x32x64xbf16>
    %28 = vector.shape_cast %27 : vector<1x32x64xbf16> to vector<32x64xbf16>
    %cst_28 = arith.constant dense<0.000000e+00> : vector<28x64xf32>
    %29 = tpu.matmul %26, %28, %cst_28 {dimension_numbers = #tpu.dot_dimension_numbers<[1], [0], [0], [1], [0, 0, 1, 1], [], []>} : vector<28x32xbf16>, vector<32x64xbf16>, vector<28x64xf32> -> vector<28x64xf32>
    %30 = arith.addf %24, %29 : vector<28x64xf32>
    %c0_29 = arith.constant 0 : index
    %c9 = arith.constant 9 : index
    %c0_30 = arith.constant 0 : index
    %31 = vector.load %arg1[%c0_29, %c9, %c0_30] : memref<1x55x32xbf16, #tpu.memory_space<vmem>>, vector<1x28x32xbf16>
    %32 = vector.shape_cast %31 : vector<1x28x32xbf16> to vector<28x32xbf16>
    %c5 = arith.constant 5 : index
    %c0_31 = arith.constant 0 : index
    %c0_32 = arith.constant 0 : index
    %33 = vector.load %arg2[%c5, %c0_31, %c0_32] : memref<16x32x64xbf16, #tpu.memory_space<vmem>>, vector<1x32x64xbf16>
    %34 = vector.shape_cast %33 : vector<1x32x64xbf16> to vector<32x64xbf16>
    %cst_33 = arith.constant dense<0.000000e+00> : vector<28x64xf32>
    %35 = tpu.matmul %32, %34, %cst_33 {dimension_numbers = #tpu.dot_dimension_numbers<[1], [0], [0], [1], [0, 0, 1, 1], [], []>} : vector<28x32xbf16>, vector<32x64xbf16>, vector<28x64xf32> -> vector<28x64xf32>
    %36 = arith.addf %30, %35 : vector<28x64xf32>
    %c0_34 = arith.constant 0 : index
    %c10 = arith.constant 10 : index
    %c0_35 = arith.constant 0 : index
    %37 = vector.load %arg1[%c0_34, %c10, %c0_35] : memref<1x55x32xbf16, #tpu.memory_space<vmem>>, vector<1x28x32xbf16>
    %38 = vector.shape_cast %37 : vector<1x28x32xbf16> to vector<28x32xbf16>
    %c6 = arith.constant 6 : index
    %c0_36 = arith.constant 0 : index
    %c0_37 = arith.constant 0 : index
    %39 = vector.load %arg2[%c6, %c0_36, %c0_37] : memref<16x32x64xbf16, #tpu.memory_space<vmem>>, vector<1x32x64xbf16>
    %40 = vector.shape_cast %39 : vector<1x32x64xbf16> to vector<32x64xbf16>
    %cst_38 = arith.constant dense<0.000000e+00> : vector<28x64xf32>
    %41 = tpu.matmul %38, %40, %cst_38 {dimension_numbers = #tpu.dot_dimension_numbers<[1], [0], [0], [1], [0, 0, 1, 1], [], []>} : vector<28x32xbf16>, vector<32x64xbf16>, vector<28x64xf32> -> vector<28x64xf32>
    %42 = arith.addf %36, %41 : vector<28x64xf32>
    %c0_39 = arith.constant 0 : index
    %c11 = arith.constant 11 : index
    %c0_40 = arith.constant 0 : index
    %43 = vector.load %arg1[%c0_39, %c11, %c0_40] : memref<1x55x32xbf16, #tpu.memory_space<vmem>>, vector<1x28x32xbf16>
    %44 = vector.shape_cast %43 : vector<1x28x32xbf16> to vector<28x32xbf16>
    %c7 = arith.constant 7 : index
    %c0_41 = arith.constant 0 : index
    %c0_42 = arith.constant 0 : index
    %45 = vector.load %arg2[%c7, %c0_41, %c0_42] : memref<16x32x64xbf16, #tpu.memory_space<vmem>>, vector<1x32x64xbf16>
    %46 = vector.shape_cast %45 : vector<1x32x64xbf16> to vector<32x64xbf16>
    %cst_43 = arith.constant dense<0.000000e+00> : vector<28x64xf32>
    %47 = tpu.matmul %44, %46, %cst_43 {dimension_numbers = #tpu.dot_dimension_numbers<[1], [0], [0], [1], [0, 0, 1, 1], [], []>} : vector<28x32xbf16>, vector<32x64xbf16>, vector<28x64xf32> -> vector<28x64xf32>
    %48 = arith.addf %42, %47 : vector<28x64xf32>
    %c0_44 = arith.constant 0 : index
    %c16 = arith.constant 16 : index
    %c0_45 = arith.constant 0 : index
    %49 = vector.load %arg1[%c0_44, %c16, %c0_45] : memref<1x55x32xbf16, #tpu.memory_space<vmem>>, vector<1x28x32xbf16>
    %50 = vector.shape_cast %49 : vector<1x28x32xbf16> to vector<28x32xbf16>
    %c8_46 = arith.constant 8 : index
    %c0_47 = arith.constant 0 : index
    %c0_48 = arith.constant 0 : index
    %51 = vector.load %arg2[%c8_46, %c0_47, %c0_48] : memref<16x32x64xbf16, #tpu.memory_space<vmem>>, vector<1x32x64xbf16>
    %52 = vector.shape_cast %51 : vector<1x32x64xbf16> to vector<32x64xbf16>
    %cst_49 = arith.constant dense<0.000000e+00> : vector<28x64xf32>
    %53 = tpu.matmul %50, %52, %cst_49 {dimension_numbers = #tpu.dot_dimension_numbers<[1], [0], [0], [1], [0, 0, 1, 1], [], []>} : vector<28x32xbf16>, vector<32x64xbf16>, vector<28x64xf32> -> vector<28x64xf32>
    %54 = arith.addf %48, %53 : vector<28x64xf32>
    %c0_50 = arith.constant 0 : index
    %c17 = arith.constant 17 : index
    %c0_51 = arith.constant 0 : index
    %55 = vector.load %arg1[%c0_50, %c17, %c0_51] : memref<1x55x32xbf16, #tpu.memory_space<vmem>>, vector<1x28x32xbf16>
    %56 = vector.shape_cast %55 : vector<1x28x32xbf16> to vector<28x32xbf16>
    %c9_52 = arith.constant 9 : index
    %c0_53 = arith.constant 0 : index
    %c0_54 = arith.constant 0 : index
    %57 = vector.load %arg2[%c9_52, %c0_53, %c0_54] : memref<16x32x64xbf16, #tpu.memory_space<vmem>>, vector<1x32x64xbf16>
    %58 = vector.shape_cast %57 : vector<1x32x64xbf16> to vector<32x64xbf16>
    %cst_55 = arith.constant dense<0.000000e+00> : vector<28x64xf32>
    %59 = tpu.matmul %56, %58, %cst_55 {dimension_numbers = #tpu.dot_dimension_numbers<[1], [0], [0], [1], [0, 0, 1, 1], [], []>} : vector<28x32xbf16>, vector<32x64xbf16>, vector<28x64xf32> -> vector<28x64xf32>
    %60 = arith.addf %54, %59 : vector<28x64xf32>
    %c0_56 = arith.constant 0 : index
    %c18 = arith.constant 18 : index
    %c0_57 = arith.constant 0 : index
    %61 = vector.load %arg1[%c0_56, %c18, %c0_57] : memref<1x55x32xbf16, #tpu.memory_space<vmem>>, vector<1x28x32xbf16>
    %62 = vector.shape_cast %61 : vector<1x28x32xbf16> to vector<28x32xbf16>
    %c10_58 = arith.constant 10 : index
    %c0_59 = arith.constant 0 : index
    %c0_60 = arith.constant 0 : index
    %63 = vector.load %arg2[%c10_58, %c0_59, %c0_60] : memref<16x32x64xbf16, #tpu.memory_space<vmem>>, vector<1x32x64xbf16>
    %64 = vector.shape_cast %63 : vector<1x32x64xbf16> to vector<32x64xbf16>
    %cst_61 = arith.constant dense<0.000000e+00> : vector<28x64xf32>
    %65 = tpu.matmul %62, %64, %cst_61 {dimension_numbers = #tpu.dot_dimension_numbers<[1], [0], [0], [1], [0, 0, 1, 1], [], []>} : vector<28x32xbf16>, vector<32x64xbf16>, vector<28x64xf32> -> vector<28x64xf32>
    %66 = arith.addf %60, %65 : vector<28x64xf32>
    %c0_62 = arith.constant 0 : index
    %c19 = arith.constant 19 : index
    %c0_63 = arith.constant 0 : index
    %67 = vector.load %arg1[%c0_62, %c19, %c0_63] : memref<1x55x32xbf16, #tpu.memory_space<vmem>>, vector<1x28x32xbf16>
    %68 = vector.shape_cast %67 : vector<1x28x32xbf16> to vector<28x32xbf16>
    %c11_64 = arith.constant 11 : index
    %c0_65 = arith.constant 0 : index
    %c0_66 = arith.constant 0 : index
    %69 = vector.load %arg2[%c11_64, %c0_65, %c0_66] : memref<16x32x64xbf16, #tpu.memory_space<vmem>>, vector<1x32x64xbf16>
    %70 = vector.shape_cast %69 : vector<1x32x64xbf16> to vector<32x64xbf16>
    %cst_67 = arith.constant dense<0.000000e+00> : vector<28x64xf32>
    %71 = tpu.matmul %68, %70, %cst_67 {dimension_numbers = #tpu.dot_dimension_numbers<[1], [0], [0], [1], [0, 0, 1, 1], [], []>} : vector<28x32xbf16>, vector<32x64xbf16>, vector<28x64xf32> -> vector<28x64xf32>
    %72 = arith.addf %66, %71 : vector<28x64xf32>
    %c0_68 = arith.constant 0 : index
    %c24 = arith.constant 24 : index
    %c0_69 = arith.constant 0 : index
    %73 = vector.load %arg1[%c0_68, %c24, %c0_69] : memref<1x55x32xbf16, #tpu.memory_space<vmem>>, vector<1x28x32xbf16>
    %74 = vector.shape_cast %73 : vector<1x28x32xbf16> to vector<28x32xbf16>
    %c12 = arith.constant 12 : index
    %c0_70 = arith.constant 0 : index
    %c0_71 = arith.constant 0 : index
    %75 = vector.load %arg2[%c12, %c0_70, %c0_71] : memref<16x32x64xbf16, #tpu.memory_space<vmem>>, vector<1x32x64xbf16>
    %76 = vector.shape_cast %75 : vector<1x32x64xbf16> to vector<32x64xbf16>
    %cst_72 = arith.constant dense<0.000000e+00> : vector<28x64xf32>
    %77 = tpu.matmul %74, %76, %cst_72 {dimension_numbers = #tpu.dot_dimension_numbers<[1], [0], [0], [1], [0, 0, 1, 1], [], []>} : vector<28x32xbf16>, vector<32x64xbf16>, vector<28x64xf32> -> vector<28x64xf32>
    %78 = arith.addf %72, %77 : vector<28x64xf32>
    %c0_73 = arith.constant 0 : index
    %c25 = arith.constant 25 : index
    %c0_74 = arith.constant 0 : index
    %79 = vector.load %arg1[%c0_73, %c25, %c0_74] : memref<1x55x32xbf16, #tpu.memory_space<vmem>>, vector<1x28x32xbf16>
    %80 = vector.shape_cast %79 : vector<1x28x32xbf16> to vector<28x32xbf16>
    %c13 = arith.constant 13 : index
    %c0_75 = arith.constant 0 : index
    %c0_76 = arith.constant 0 : index
    %81 = vector.load %arg2[%c13, %c0_75, %c0_76] : memref<16x32x64xbf16, #tpu.memory_space<vmem>>, vector<1x32x64xbf16>
    %82 = vector.shape_cast %81 : vector<1x32x64xbf16> to vector<32x64xbf16>
    %cst_77 = arith.constant dense<0.000000e+00> : vector<28x64xf32>
    %83 = tpu.matmul %80, %82, %cst_77 {dimension_numbers = #tpu.dot_dimension_numbers<[1], [0], [0], [1], [0, 0, 1, 1], [], []>} : vector<28x32xbf16>, vector<32x64xbf16>, vector<28x64xf32> -> vector<28x64xf32>
    %84 = arith.addf %78, %83 : vector<28x64xf32>
    %c0_78 = arith.constant 0 : index
    %c26 = arith.constant 26 : index
    %c0_79 = arith.constant 0 : index
    %85 = vector.load %arg1[%c0_78, %c26, %c0_79] : memref<1x55x32xbf16, #tpu.memory_space<vmem>>, vector<1x28x32xbf16>
    %86 = vector.shape_cast %85 : vector<1x28x32xbf16> to vector<28x32xbf16>
    %c14 = arith.constant 14 : index
    %c0_80 = arith.constant 0 : index
    %c0_81 = arith.constant 0 : index
    %87 = vector.load %arg2[%c14, %c0_80, %c0_81] : memref<16x32x64xbf16, #tpu.memory_space<vmem>>, vector<1x32x64xbf16>
    %88 = vector.shape_cast %87 : vector<1x32x64xbf16> to vector<32x64xbf16>
    %cst_82 = arith.constant dense<0.000000e+00> : vector<28x64xf32>
    %89 = tpu.matmul %86, %88, %cst_82 {dimension_numbers = #tpu.dot_dimension_numbers<[1], [0], [0], [1], [0, 0, 1, 1], [], []>} : vector<28x32xbf16>, vector<32x64xbf16>, vector<28x64xf32> -> vector<28x64xf32>
    %90 = arith.addf %84, %89 : vector<28x64xf32>
    %c0_83 = arith.constant 0 : index
    %c27 = arith.constant 27 : index
    %c0_84 = arith.constant 0 : index
    %91 = vector.load %arg1[%c0_83, %c27, %c0_84] : memref<1x55x32xbf16, #tpu.memory_space<vmem>>, vector<1x28x32xbf16>
    %92 = vector.shape_cast %91 : vector<1x28x32xbf16> to vector<28x32xbf16>
    %c15 = arith.constant 15 : index
    %c0_85 = arith.constant 0 : index
    %c0_86 = arith.constant 0 : index
    %93 = vector.load %arg2[%c15, %c0_85, %c0_86] : memref<16x32x64xbf16, #tpu.memory_space<vmem>>, vector<1x32x64xbf16>
    %94 = vector.shape_cast %93 : vector<1x32x64xbf16> to vector<32x64xbf16>
    %cst_87 = arith.constant dense<0.000000e+00> : vector<28x64xf32>
    %95 = tpu.matmul %92, %94, %cst_87 {dimension_numbers = #tpu.dot_dimension_numbers<[1], [0], [0], [1], [0, 0, 1, 1], [], []>} : vector<28x32xbf16>, vector<32x64xbf16>, vector<28x64xf32> -> vector<28x64xf32>
    %96 = arith.addf %90, %95 : vector<28x64xf32>
    %c0_88 = arith.constant 0 : index
    %c0_89 = arith.constant 0 : index
    %97 = vector.load %arg3[%c0_88, %c0_89] : memref<28x1xf32, #tpu.memory_space<vmem>>, vector<28x1xf32>
    %98 = vector.broadcast %97 : vector<28x1xf32> to vector<28x64xf32>
    %99 = arith.mulf %96, %98 : vector<28x64xf32>
    %cst_90 = arith.constant dense<0.000000e+00> : vector<64xf32>
    %100 = vector.multi_reduction <add>, %99, %cst_90 [0] : vector<28x64xf32> to vector<64xf32>
    %101 = vector.shape_cast %100 : vector<64xf32> to vector<1x64xf32>
    %102 = arith.mulf %96, %96 : vector<28x64xf32>
    %103 = vector.broadcast %97 : vector<28x1xf32> to vector<28x64xf32>
    %104 = arith.mulf %102, %103 : vector<28x64xf32>
    %cst_91 = arith.constant dense<0.000000e+00> : vector<64xf32>
    %105 = vector.multi_reduction <add>, %104, %cst_91 [0] : vector<28x64xf32> to vector<64xf32>
    %106 = vector.shape_cast %105 : vector<64xf32> to vector<1x64xf32>
    %cst_92 = arith.constant 6.250000e-02 : f32
    %107 = vector.broadcast %cst_92 : f32 to vector<1x64xf32>
    %108 = arith.mulf %101, %107 : vector<1x64xf32>
    %cst_93 = arith.constant 6.250000e-02 : f32
    %109 = vector.broadcast %cst_93 : f32 to vector<1x64xf32>
    %110 = arith.mulf %106, %109 : vector<1x64xf32>
    %111 = arith.mulf %108, %108 : vector<1x64xf32>
    %112 = arith.subf %110, %111 : vector<1x64xf32>
    %cst_94 = arith.constant 0.000000e+00 : f32
    %113 = vector.broadcast %cst_94 : f32 to vector<1x64xf32>
    %114 = arith.maximumf %112, %113 : vector<1x64xf32>
    %115 = vector.broadcast %108 : vector<1x64xf32> to vector<28x64xf32>
    %116 = arith.subf %96, %115 : vector<28x64xf32>
    %cst_95 = arith.constant 9.99999974E-6 : f32
    %117 = vector.broadcast %cst_95 : f32 to vector<1x64xf32>
    %118 = arith.addf %114, %117 : vector<1x64xf32>
    %119 = math.rsqrt %118 : vector<1x64xf32>
    %120 = vector.broadcast %119 : vector<1x64xf32> to vector<28x64xf32>
    %121 = arith.mulf %116, %120 : vector<28x64xf32>
    %cst_96 = arith.constant 0.000000e+00 : f32
    %122 = vector.broadcast %cst_96 : f32 to vector<28x64xf32>
    %123 = arith.cmpf ogt, %121, %122 : vector<28x64xf32>
    %cst_97 = arith.constant 2.000000e-01 : f32
    %124 = vector.broadcast %cst_97 : f32 to vector<28x64xf32>
    %125 = arith.mulf %124, %121 : vector<28x64xf32>
    %126 = arith.select %123, %121, %125 : vector<28x64xi1>, vector<28x64xf32>
    %127 = arith.truncf %126 : vector<28x64xf32> to vector<28x64xbf16>
    %c0_98 = arith.constant 0 : index
    %c0_99 = arith.constant 0 : index
    %c0_100 = arith.constant 0 : index
    %128 = vector.load %arg4[%c0_98, %c0_99, %c0_100] : memref<1x28x64xbf16, #tpu.memory_space<vmem>>, vector<1x28x64xbf16>
    %129 = vector.shape_cast %128 : vector<1x28x64xbf16> to vector<28x64xbf16>
    %130 = vector.shape_cast %127 : vector<28x64xbf16> to vector<1x28x64xbf16>
    tpu.vector_store %arg4[%c0_98, %c0_99, %c0_100], %130 {strides = array<i32>} : memref<1x28x64xbf16, #tpu.memory_space<vmem>>, vector<1x28x64xbf16>,
    return
  }
  func.func @transform_0(%arg0: i32) -> (i32, i32, i32) {
    %c0_i32 = arith.constant 0 : i32
    %c0_i32_0 = arith.constant 0 : i32
    %c0_i32_1 = arith.constant 0 : i32
    return %arg0, %c0_i32, %c0_i32_0 : i32, i32, i32
  }
  func.func @transform_1(%arg0: i32) -> (i32, i32, i32) {
    %c0_i32 = arith.constant 0 : i32
    %c0_i32_0 = arith.constant 0 : i32
    %c0_i32_1 = arith.constant 0 : i32
    %c0_i32_2 = arith.constant 0 : i32
    return %c0_i32, %c0_i32_0, %c0_i32_1 : i32, i32, i32
  }
  func.func @transform_2(%arg0: i32) -> (i32, i32) {
    %c0_i32 = arith.constant 0 : i32
    %c0_i32_0 = arith.constant 0 : i32
    %c0_i32_1 = arith.constant 0 : i32
    return %c0_i32, %c0_i32_0 : i32, i32
  }
  func.func @transform_3(%arg0: i32) -> (i32, i32, i32) {
    %c0_i32 = arith.constant 0 : i32
    %c0_i32_0 = arith.constant 0 : i32
    %c0_i32_1 = arith.constant 0 : i32
    return %arg0, %c0_i32, %c0_i32_0 : i32, i32, i32
  }
}

module attributes {stable_mosaic.version = 11 : i64} {
  func.func @_conv_kernel(%arg0: i32, %arg1: memref<1x28x64xbf16, #tpu.memory_space<vmem>>, %arg2: memref<16x64x128xbf16, #tpu.memory_space<vmem>>, %arg3: memref<1x1xf32, #tpu.memory_space<vmem>>, %arg4: memref<1x1x128xf32, #tpu.memory_space<vmem>>) attributes {dimension_semantics = [#tpu.dimension_semantics<parallel>], iteration_bounds = array<i64: 2>, scalar_prefetch = 0 : i64, scratch_operands = 0 : i64, tpu.core_type = #tpu.core_type<tc>, window_params = [{transform_indices = @transform_0, window_bounds = array<i64: 1, 28, 64>}, {pipeline_mode = #tpu.pipeline_mode<synchronous>, transform_indices = @transform_1, window_bounds = array<i64: 16, 64, 128>}, {pipeline_mode = #tpu.pipeline_mode<synchronous>, transform_indices = @transform_2, window_bounds = array<i64: 1, 1>}, {transform_indices = @transform_3, window_bounds = array<i64: 1, 1, 128>}]} {
    %cst = arith.constant 0.000000e+00 : f32
    %0 = vector.broadcast %cst : f32 to vector<1x128xf32>
    %c0 = arith.constant 0 : index
    %c0_0 = arith.constant 0 : index
    %c0_1 = arith.constant 0 : index
    %1 = vector.load %arg1[%c0, %c0_0, %c0_1] : memref<1x28x64xbf16, #tpu.memory_space<vmem>>, vector<1x1x64xbf16>
    %2 = vector.shape_cast %1 : vector<1x1x64xbf16> to vector<1x64xbf16>
    %c0_2 = arith.constant 0 : index
    %c0_3 = arith.constant 0 : index
    %c0_4 = arith.constant 0 : index
    %3 = vector.load %arg2[%c0_2, %c0_3, %c0_4] : memref<16x64x128xbf16, #tpu.memory_space<vmem>>, vector<1x64x128xbf16>
    %4 = vector.shape_cast %3 : vector<1x64x128xbf16> to vector<64x128xbf16>
    %cst_5 = arith.constant dense<0.000000e+00> : vector<1x128xf32>
    %5 = tpu.matmul %2, %4, %cst_5 {dimension_numbers = #tpu.dot_dimension_numbers<[1], [0], [0], [1], [0, 0, 1, 1], [], []>} : vector<1x64xbf16>, vector<64x128xbf16>, vector<1x128xf32> -> vector<1x128xf32>
    %6 = arith.addf %0, %5 : vector<1x128xf32>
    %c0_6 = arith.constant 0 : index
    %c1 = arith.constant 1 : index
    %c0_7 = arith.constant 0 : index
    %7 = vector.load %arg1[%c0_6, %c1, %c0_7] : memref<1x28x64xbf16, #tpu.memory_space<vmem>>, vector<1x1x64xbf16>
    %8 = vector.shape_cast %7 : vector<1x1x64xbf16> to vector<1x64xbf16>
    %c1_8 = arith.constant 1 : index
    %c0_9 = arith.constant 0 : index
    %c0_10 = arith.constant 0 : index
    %9 = vector.load %arg2[%c1_8, %c0_9, %c0_10] : memref<16x64x128xbf16, #tpu.memory_space<vmem>>, vector<1x64x128xbf16>
    %10 = vector.shape_cast %9 : vector<1x64x128xbf16> to vector<64x128xbf16>
    %cst_11 = arith.constant dense<0.000000e+00> : vector<1x128xf32>
    %11 = tpu.matmul %8, %10, %cst_11 {dimension_numbers = #tpu.dot_dimension_numbers<[1], [0], [0], [1], [0, 0, 1, 1], [], []>} : vector<1x64xbf16>, vector<64x128xbf16>, vector<1x128xf32> -> vector<1x128xf32>
    %12 = arith.addf %6, %11 : vector<1x128xf32>
    %c0_12 = arith.constant 0 : index
    %c2 = arith.constant 2 : index
    %c0_13 = arith.constant 0 : index
    %13 = vector.load %arg1[%c0_12, %c2, %c0_13] : memref<1x28x64xbf16, #tpu.memory_space<vmem>>, vector<1x1x64xbf16>
    %14 = vector.shape_cast %13 : vector<1x1x64xbf16> to vector<1x64xbf16>
    %c2_14 = arith.constant 2 : index
    %c0_15 = arith.constant 0 : index
    %c0_16 = arith.constant 0 : index
    %15 = vector.load %arg2[%c2_14, %c0_15, %c0_16] : memref<16x64x128xbf16, #tpu.memory_space<vmem>>, vector<1x64x128xbf16>
    %16 = vector.shape_cast %15 : vector<1x64x128xbf16> to vector<64x128xbf16>
    %cst_17 = arith.constant dense<0.000000e+00> : vector<1x128xf32>
    %17 = tpu.matmul %14, %16, %cst_17 {dimension_numbers = #tpu.dot_dimension_numbers<[1], [0], [0], [1], [0, 0, 1, 1], [], []>} : vector<1x64xbf16>, vector<64x128xbf16>, vector<1x128xf32> -> vector<1x128xf32>
    %18 = arith.addf %12, %17 : vector<1x128xf32>
    %c0_18 = arith.constant 0 : index
    %c3 = arith.constant 3 : index
    %c0_19 = arith.constant 0 : index
    %19 = vector.load %arg1[%c0_18, %c3, %c0_19] : memref<1x28x64xbf16, #tpu.memory_space<vmem>>, vector<1x1x64xbf16>
    %20 = vector.shape_cast %19 : vector<1x1x64xbf16> to vector<1x64xbf16>
    %c3_20 = arith.constant 3 : index
    %c0_21 = arith.constant 0 : index
    %c0_22 = arith.constant 0 : index
    %21 = vector.load %arg2[%c3_20, %c0_21, %c0_22] : memref<16x64x128xbf16, #tpu.memory_space<vmem>>, vector<1x64x128xbf16>
    %22 = vector.shape_cast %21 : vector<1x64x128xbf16> to vector<64x128xbf16>
    %cst_23 = arith.constant dense<0.000000e+00> : vector<1x128xf32>
    %23 = tpu.matmul %20, %22, %cst_23 {dimension_numbers = #tpu.dot_dimension_numbers<[1], [0], [0], [1], [0, 0, 1, 1], [], []>} : vector<1x64xbf16>, vector<64x128xbf16>, vector<1x128xf32> -> vector<1x128xf32>
    %24 = arith.addf %18, %23 : vector<1x128xf32>
    %c0_24 = arith.constant 0 : index
    %c8 = arith.constant 8 : index
    %c0_25 = arith.constant 0 : index
    %25 = vector.load %arg1[%c0_24, %c8, %c0_25] : memref<1x28x64xbf16, #tpu.memory_space<vmem>>, vector<1x1x64xbf16>
    %26 = vector.shape_cast %25 : vector<1x1x64xbf16> to vector<1x64xbf16>
    %c4 = arith.constant 4 : index
    %c0_26 = arith.constant 0 : index
    %c0_27 = arith.constant 0 : index
    %27 = vector.load %arg2[%c4, %c0_26, %c0_27] : memref<16x64x128xbf16, #tpu.memory_space<vmem>>, vector<1x64x128xbf16>
    %28 = vector.shape_cast %27 : vector<1x64x128xbf16> to vector<64x128xbf16>
    %cst_28 = arith.constant dense<0.000000e+00> : vector<1x128xf32>
    %29 = tpu.matmul %26, %28, %cst_28 {dimension_numbers = #tpu.dot_dimension_numbers<[1], [0], [0], [1], [0, 0, 1, 1], [], []>} : vector<1x64xbf16>, vector<64x128xbf16>, vector<1x128xf32> -> vector<1x128xf32>
    %30 = arith.addf %24, %29 : vector<1x128xf32>
    %c0_29 = arith.constant 0 : index
    %c9 = arith.constant 9 : index
    %c0_30 = arith.constant 0 : index
    %31 = vector.load %arg1[%c0_29, %c9, %c0_30] : memref<1x28x64xbf16, #tpu.memory_space<vmem>>, vector<1x1x64xbf16>
    %32 = vector.shape_cast %31 : vector<1x1x64xbf16> to vector<1x64xbf16>
    %c5 = arith.constant 5 : index
    %c0_31 = arith.constant 0 : index
    %c0_32 = arith.constant 0 : index
    %33 = vector.load %arg2[%c5, %c0_31, %c0_32] : memref<16x64x128xbf16, #tpu.memory_space<vmem>>, vector<1x64x128xbf16>
    %34 = vector.shape_cast %33 : vector<1x64x128xbf16> to vector<64x128xbf16>
    %cst_33 = arith.constant dense<0.000000e+00> : vector<1x128xf32>
    %35 = tpu.matmul %32, %34, %cst_33 {dimension_numbers = #tpu.dot_dimension_numbers<[1], [0], [0], [1], [0, 0, 1, 1], [], []>} : vector<1x64xbf16>, vector<64x128xbf16>, vector<1x128xf32> -> vector<1x128xf32>
    %36 = arith.addf %30, %35 : vector<1x128xf32>
    %c0_34 = arith.constant 0 : index
    %c10 = arith.constant 10 : index
    %c0_35 = arith.constant 0 : index
    %37 = vector.load %arg1[%c0_34, %c10, %c0_35] : memref<1x28x64xbf16, #tpu.memory_space<vmem>>, vector<1x1x64xbf16>
    %38 = vector.shape_cast %37 : vector<1x1x64xbf16> to vector<1x64xbf16>
    %c6 = arith.constant 6 : index
    %c0_36 = arith.constant 0 : index
    %c0_37 = arith.constant 0 : index
    %39 = vector.load %arg2[%c6, %c0_36, %c0_37] : memref<16x64x128xbf16, #tpu.memory_space<vmem>>, vector<1x64x128xbf16>
    %40 = vector.shape_cast %39 : vector<1x64x128xbf16> to vector<64x128xbf16>
    %cst_38 = arith.constant dense<0.000000e+00> : vector<1x128xf32>
    %41 = tpu.matmul %38, %40, %cst_38 {dimension_numbers = #tpu.dot_dimension_numbers<[1], [0], [0], [1], [0, 0, 1, 1], [], []>} : vector<1x64xbf16>, vector<64x128xbf16>, vector<1x128xf32> -> vector<1x128xf32>
    %42 = arith.addf %36, %41 : vector<1x128xf32>
    %c0_39 = arith.constant 0 : index
    %c11 = arith.constant 11 : index
    %c0_40 = arith.constant 0 : index
    %43 = vector.load %arg1[%c0_39, %c11, %c0_40] : memref<1x28x64xbf16, #tpu.memory_space<vmem>>, vector<1x1x64xbf16>
    %44 = vector.shape_cast %43 : vector<1x1x64xbf16> to vector<1x64xbf16>
    %c7 = arith.constant 7 : index
    %c0_41 = arith.constant 0 : index
    %c0_42 = arith.constant 0 : index
    %45 = vector.load %arg2[%c7, %c0_41, %c0_42] : memref<16x64x128xbf16, #tpu.memory_space<vmem>>, vector<1x64x128xbf16>
    %46 = vector.shape_cast %45 : vector<1x64x128xbf16> to vector<64x128xbf16>
    %cst_43 = arith.constant dense<0.000000e+00> : vector<1x128xf32>
    %47 = tpu.matmul %44, %46, %cst_43 {dimension_numbers = #tpu.dot_dimension_numbers<[1], [0], [0], [1], [0, 0, 1, 1], [], []>} : vector<1x64xbf16>, vector<64x128xbf16>, vector<1x128xf32> -> vector<1x128xf32>
    %48 = arith.addf %42, %47 : vector<1x128xf32>
    %c0_44 = arith.constant 0 : index
    %c16 = arith.constant 16 : index
    %c0_45 = arith.constant 0 : index
    %49 = vector.load %arg1[%c0_44, %c16, %c0_45] : memref<1x28x64xbf16, #tpu.memory_space<vmem>>, vector<1x1x64xbf16>
    %50 = vector.shape_cast %49 : vector<1x1x64xbf16> to vector<1x64xbf16>
    %c8_46 = arith.constant 8 : index
    %c0_47 = arith.constant 0 : index
    %c0_48 = arith.constant 0 : index
    %51 = vector.load %arg2[%c8_46, %c0_47, %c0_48] : memref<16x64x128xbf16, #tpu.memory_space<vmem>>, vector<1x64x128xbf16>
    %52 = vector.shape_cast %51 : vector<1x64x128xbf16> to vector<64x128xbf16>
    %cst_49 = arith.constant dense<0.000000e+00> : vector<1x128xf32>
    %53 = tpu.matmul %50, %52, %cst_49 {dimension_numbers = #tpu.dot_dimension_numbers<[1], [0], [0], [1], [0, 0, 1, 1], [], []>} : vector<1x64xbf16>, vector<64x128xbf16>, vector<1x128xf32> -> vector<1x128xf32>
    %54 = arith.addf %48, %53 : vector<1x128xf32>
    %c0_50 = arith.constant 0 : index
    %c17 = arith.constant 17 : index
    %c0_51 = arith.constant 0 : index
    %55 = vector.load %arg1[%c0_50, %c17, %c0_51] : memref<1x28x64xbf16, #tpu.memory_space<vmem>>, vector<1x1x64xbf16>
    %56 = vector.shape_cast %55 : vector<1x1x64xbf16> to vector<1x64xbf16>
    %c9_52 = arith.constant 9 : index
    %c0_53 = arith.constant 0 : index
    %c0_54 = arith.constant 0 : index
    %57 = vector.load %arg2[%c9_52, %c0_53, %c0_54] : memref<16x64x128xbf16, #tpu.memory_space<vmem>>, vector<1x64x128xbf16>
    %58 = vector.shape_cast %57 : vector<1x64x128xbf16> to vector<64x128xbf16>
    %cst_55 = arith.constant dense<0.000000e+00> : vector<1x128xf32>
    %59 = tpu.matmul %56, %58, %cst_55 {dimension_numbers = #tpu.dot_dimension_numbers<[1], [0], [0], [1], [0, 0, 1, 1], [], []>} : vector<1x64xbf16>, vector<64x128xbf16>, vector<1x128xf32> -> vector<1x128xf32>
    %60 = arith.addf %54, %59 : vector<1x128xf32>
    %c0_56 = arith.constant 0 : index
    %c18 = arith.constant 18 : index
    %c0_57 = arith.constant 0 : index
    %61 = vector.load %arg1[%c0_56, %c18, %c0_57] : memref<1x28x64xbf16, #tpu.memory_space<vmem>>, vector<1x1x64xbf16>
    %62 = vector.shape_cast %61 : vector<1x1x64xbf16> to vector<1x64xbf16>
    %c10_58 = arith.constant 10 : index
    %c0_59 = arith.constant 0 : index
    %c0_60 = arith.constant 0 : index
    %63 = vector.load %arg2[%c10_58, %c0_59, %c0_60] : memref<16x64x128xbf16, #tpu.memory_space<vmem>>, vector<1x64x128xbf16>
    %64 = vector.shape_cast %63 : vector<1x64x128xbf16> to vector<64x128xbf16>
    %cst_61 = arith.constant dense<0.000000e+00> : vector<1x128xf32>
    %65 = tpu.matmul %62, %64, %cst_61 {dimension_numbers = #tpu.dot_dimension_numbers<[1], [0], [0], [1], [0, 0, 1, 1], [], []>} : vector<1x64xbf16>, vector<64x128xbf16>, vector<1x128xf32> -> vector<1x128xf32>
    %66 = arith.addf %60, %65 : vector<1x128xf32>
    %c0_62 = arith.constant 0 : index
    %c19 = arith.constant 19 : index
    %c0_63 = arith.constant 0 : index
    %67 = vector.load %arg1[%c0_62, %c19, %c0_63] : memref<1x28x64xbf16, #tpu.memory_space<vmem>>, vector<1x1x64xbf16>
    %68 = vector.shape_cast %67 : vector<1x1x64xbf16> to vector<1x64xbf16>
    %c11_64 = arith.constant 11 : index
    %c0_65 = arith.constant 0 : index
    %c0_66 = arith.constant 0 : index
    %69 = vector.load %arg2[%c11_64, %c0_65, %c0_66] : memref<16x64x128xbf16, #tpu.memory_space<vmem>>, vector<1x64x128xbf16>
    %70 = vector.shape_cast %69 : vector<1x64x128xbf16> to vector<64x128xbf16>
    %cst_67 = arith.constant dense<0.000000e+00> : vector<1x128xf32>
    %71 = tpu.matmul %68, %70, %cst_67 {dimension_numbers = #tpu.dot_dimension_numbers<[1], [0], [0], [1], [0, 0, 1, 1], [], []>} : vector<1x64xbf16>, vector<64x128xbf16>, vector<1x128xf32> -> vector<1x128xf32>
    %72 = arith.addf %66, %71 : vector<1x128xf32>
    %c0_68 = arith.constant 0 : index
    %c24 = arith.constant 24 : index
    %c0_69 = arith.constant 0 : index
    %73 = vector.load %arg1[%c0_68, %c24, %c0_69] : memref<1x28x64xbf16, #tpu.memory_space<vmem>>, vector<1x1x64xbf16>
    %74 = vector.shape_cast %73 : vector<1x1x64xbf16> to vector<1x64xbf16>
    %c12 = arith.constant 12 : index
    %c0_70 = arith.constant 0 : index
    %c0_71 = arith.constant 0 : index
    %75 = vector.load %arg2[%c12, %c0_70, %c0_71] : memref<16x64x128xbf16, #tpu.memory_space<vmem>>, vector<1x64x128xbf16>
    %76 = vector.shape_cast %75 : vector<1x64x128xbf16> to vector<64x128xbf16>
    %cst_72 = arith.constant dense<0.000000e+00> : vector<1x128xf32>
    %77 = tpu.matmul %74, %76, %cst_72 {dimension_numbers = #tpu.dot_dimension_numbers<[1], [0], [0], [1], [0, 0, 1, 1], [], []>} : vector<1x64xbf16>, vector<64x128xbf16>, vector<1x128xf32> -> vector<1x128xf32>
    %78 = arith.addf %72, %77 : vector<1x128xf32>
    %c0_73 = arith.constant 0 : index
    %c25 = arith.constant 25 : index
    %c0_74 = arith.constant 0 : index
    %79 = vector.load %arg1[%c0_73, %c25, %c0_74] : memref<1x28x64xbf16, #tpu.memory_space<vmem>>, vector<1x1x64xbf16>
    %80 = vector.shape_cast %79 : vector<1x1x64xbf16> to vector<1x64xbf16>
    %c13 = arith.constant 13 : index
    %c0_75 = arith.constant 0 : index
    %c0_76 = arith.constant 0 : index
    %81 = vector.load %arg2[%c13, %c0_75, %c0_76] : memref<16x64x128xbf16, #tpu.memory_space<vmem>>, vector<1x64x128xbf16>
    %82 = vector.shape_cast %81 : vector<1x64x128xbf16> to vector<64x128xbf16>
    %cst_77 = arith.constant dense<0.000000e+00> : vector<1x128xf32>
    %83 = tpu.matmul %80, %82, %cst_77 {dimension_numbers = #tpu.dot_dimension_numbers<[1], [0], [0], [1], [0, 0, 1, 1], [], []>} : vector<1x64xbf16>, vector<64x128xbf16>, vector<1x128xf32> -> vector<1x128xf32>
    %84 = arith.addf %78, %83 : vector<1x128xf32>
    %c0_78 = arith.constant 0 : index
    %c26 = arith.constant 26 : index
    %c0_79 = arith.constant 0 : index
    %85 = vector.load %arg1[%c0_78, %c26, %c0_79] : memref<1x28x64xbf16, #tpu.memory_space<vmem>>, vector<1x1x64xbf16>
    %86 = vector.shape_cast %85 : vector<1x1x64xbf16> to vector<1x64xbf16>
    %c14 = arith.constant 14 : index
    %c0_80 = arith.constant 0 : index
    %c0_81 = arith.constant 0 : index
    %87 = vector.load %arg2[%c14, %c0_80, %c0_81] : memref<16x64x128xbf16, #tpu.memory_space<vmem>>, vector<1x64x128xbf16>
    %88 = vector.shape_cast %87 : vector<1x64x128xbf16> to vector<64x128xbf16>
    %cst_82 = arith.constant dense<0.000000e+00> : vector<1x128xf32>
    %89 = tpu.matmul %86, %88, %cst_82 {dimension_numbers = #tpu.dot_dimension_numbers<[1], [0], [0], [1], [0, 0, 1, 1], [], []>} : vector<1x64xbf16>, vector<64x128xbf16>, vector<1x128xf32> -> vector<1x128xf32>
    %90 = arith.addf %84, %89 : vector<1x128xf32>
    %c0_83 = arith.constant 0 : index
    %c27 = arith.constant 27 : index
    %c0_84 = arith.constant 0 : index
    %91 = vector.load %arg1[%c0_83, %c27, %c0_84] : memref<1x28x64xbf16, #tpu.memory_space<vmem>>, vector<1x1x64xbf16>
    %92 = vector.shape_cast %91 : vector<1x1x64xbf16> to vector<1x64xbf16>
    %c15 = arith.constant 15 : index
    %c0_85 = arith.constant 0 : index
    %c0_86 = arith.constant 0 : index
    %93 = vector.load %arg2[%c15, %c0_85, %c0_86] : memref<16x64x128xbf16, #tpu.memory_space<vmem>>, vector<1x64x128xbf16>
    %94 = vector.shape_cast %93 : vector<1x64x128xbf16> to vector<64x128xbf16>
    %cst_87 = arith.constant dense<0.000000e+00> : vector<1x128xf32>
    %95 = tpu.matmul %92, %94, %cst_87 {dimension_numbers = #tpu.dot_dimension_numbers<[1], [0], [0], [1], [0, 0, 1, 1], [], []>} : vector<1x64xbf16>, vector<64x128xbf16>, vector<1x128xf32> -> vector<1x128xf32>
    %96 = arith.addf %90, %95 : vector<1x128xf32>
    %c0_88 = arith.constant 0 : index
    %c0_89 = arith.constant 0 : index
    %c0_90 = arith.constant 0 : index
    %97 = vector.load %arg4[%c0_88, %c0_89, %c0_90] : memref<1x1x128xf32, #tpu.memory_space<vmem>>, vector<1x1x128xf32>
    %98 = vector.shape_cast %97 : vector<1x1x128xf32> to vector<1x128xf32>
    %99 = vector.shape_cast %96 : vector<1x128xf32> to vector<1x1x128xf32>
    tpu.vector_store %arg4[%c0_88, %c0_89, %c0_90], %99 {strides = array<i32>} : memref<1x1x128xf32, #tpu.memory_space<vmem>>, vector<1x1x128xf32>,
    return
  }
  func.func @transform_0(%arg0: i32) -> (i32, i32, i32) {
    %c0_i32 = arith.constant 0 : i32
    %c0_i32_0 = arith.constant 0 : i32
    %c0_i32_1 = arith.constant 0 : i32
    return %arg0, %c0_i32, %c0_i32_0 : i32, i32, i32
  }
  func.func @transform_1(%arg0: i32) -> (i32, i32, i32) {
    %c0_i32 = arith.constant 0 : i32
    %c0_i32_0 = arith.constant 0 : i32
    %c0_i32_1 = arith.constant 0 : i32
    %c0_i32_2 = arith.constant 0 : i32
    return %c0_i32, %c0_i32_0, %c0_i32_1 : i32, i32, i32
  }
  func.func @transform_2(%arg0: i32) -> (i32, i32) {
    %c0_i32 = arith.constant 0 : i32
    %c0_i32_0 = arith.constant 0 : i32
    %c0_i32_1 = arith.constant 0 : i32
    return %c0_i32, %c0_i32_0 : i32, i32
  }
  func.func @transform_3(%arg0: i32) -> (i32, i32, i32) {
    %c0_i32 = arith.constant 0 : i32
    %c0_i32_0 = arith.constant 0 : i32
    %c0_i32_1 = arith.constant 0 : i32
    return %arg0, %c0_i32, %c0_i32_0 : i32, i32, i32
  }
}

</mosaic_0001>

<bundles_post_ra>
// kernel: discriminator_forward.5
= control target key start
LH: loop header
LB: loop body
LE: loop exit
PB: predicated region body
PF: predicated region fallthrough
CT: control target
= control target key end

     0   :  { %s8160_s12 = smov 0   ;;  %s9777_s0 = inlined_call_operand.vmem [shape: bf16[2,1225,12], index: 0, kind: input, shape index: {}]   ;;  %s9778_s1 = inlined_call_operand.vmem [shape: bf16[4,12,8], index: 1, kind: input, shape index: {}]   ;;  %s9779_s2 = inlined_call_operand.vmem [shape: f32[1189,1], index: 2, kind: input, shape index: {}]   ;;  %s9780_s3 = inlined_call_operand.vmem [shape: bf16[2,1189,8], index: 3, kind: output, shape index: {}]  }
   0x1 LB: > { %s6672_s13 = sadd.s32 4294967295, %s8138_s12   ;;  %p6676_p0 = scmp.ge.s32.totalorder %s8138_s12, 1  ;;  %s8138_s12 = sphi %s8160_s12, %s13_s12  }
   0x2   : > { %p137_p1 = scmp.lt.s32.totalorder %s8138_s12, 3 }
   0x4   : > { %p138_p2 = pnand %p6676_p0, %p137_p1 }
   0x5   : > { %p161_p3 = scmp.lt.s32.totalorder (!%p138_p2), %s6672_s13, 1 }
   0x6   : > { %141 = sbr.rel (%p138_p2) target bundleno = 1356 (0x54c), region = 32 }
   0xb   : > { %v7058_v0 = vld [vmem:[%s9778_s1] sm:$0xf]  ;;  %v7969_v1 = vld [vmem:[%s9778_s1] sm:$0x30]  ;;  %vm1530_vm0 = vcmask 1045504   ;;  %s9782_s13 = smov (!%p161_p3, %s6672_s13), 1 }
   0xc   : > { %v7059_v2 = vor.u32 %v7969_v1, %v7058_v0  ;;  %v7816_v3 = vld [vmem:[%s9778_s1 + $0x18] sm:$0xf]  ;;  %v8121_v4 = vld [vmem:[%s9778_s1 + $0x18] sm:$0x30]  ;;  %v6979_v6 = vld [vmem:[%s9778_s1 + $0x8] sm:$0xf] }
   0xd   : > { %v7817_v5 = vor.u32 %v8121_v4, %v7816_v3  ;;  %v7970_v7 = vld [vmem:[%s9778_s1 + $0x8] sm:$0x30]  ;;  %v7435_v10 = vld [vmem:[%s9778_s1 + $0x10] sm:$0xf]  ;;  %v8045_v11 = vld [vmem:[%s9778_s1 + $0x10] sm:$0x30] }
   0xe   : > { %v2073_v8 = vsel %vm1530_vm0, %v7059_v2, 0  ;;  %v6980_v9 = vor.u32 %v7970_v7, %v6979_v6  ;;  %s8122_s29 = smul.u32 616, %s9782_s13  ;;  %v7436_v13 = vor.u32 %v8045_v11, %v7435_v10  ;;  %vm1304_vm1 = vcmask 97280  }
   0xf   : > { %2082 = vmatpush.bf16.msra.mxu1 %v2073_v8  ;;  %v5332_v12 = vsel %vm1530_vm0, %v7817_v5, 0  ;;  %vm699_vm2 = vsmask.f32 7424  ;;  %vm2983_vm3 = vsmask.f32 6400  ;;  %s8123_s6 = smul.u32 596, %s9782_s13 }
  0x10   : > { %5341 = vmatpush.bf16.msra.mxu3 %v5332_v12  ;;  %v1532_v14 = vsel %vm1530_vm0, %v6980_v9, 0  ;;  %s8201_s5 = scalar_lea.vmem %s9777_s0, %s8122_s29  ;;  %v3889_v15 = vsel %vm1530_vm0, %v7436_v13, 0  ;;  %vm6462_vm5 = vcmask 60416  }
  0x11   : > { %1541 = vmatpush.bf16.msra.mxu0 %v1532_v14  ;;  %v7895_v16 = vld [vmem:[%s8201_s5] sm:$0xff]  ;;  %v7516_v17 = vld [vmem:[%s8201_s5 + $0x10] sm:$0xc]  ;;  %v8046_v18 = vld [vmem:[%s8201_s5 + $0x10] sm:$0xf0]  ;;  %3898 = vmatpush.bf16.msra.mxu2 %v3889_v15  ;;  %s8314_s9 = scalar_lea.vmem %s9780_s3, %s8123_s6 }
  0x12   : > { %v8047_v19 = vld [vmem:[%s8201_s5 + $0x18] sm:$0xff]  ;;  %v7517_v20 = vor.u32 %v8046_v18, %v7516_v17  ;;  %v7896_v21 = vld [vmem:[%s8201_s5 + $0x8] sm:$0xff]  ;;  %v7139_v22 = vld [vmem:[%s8201_s5 + $0x10] sm:$0xe]  ;;  %v703_v23 = vshll.u32 %v7895_v16, 16  ;;  %7060 = vmatmul.msk.bf16.vlgmr.msra.gmra.mxu1 %vm1304_vm1, %v7895_v16  ;;  %v701_v24 = vshrl.u32 %v7895_v16, 16 }
  0x13   : > { %v7971_v25 = vld [vmem:[%s8201_s5 + $0x10] sm:$0xf0]  ;;  %v7972_v26 = vld [vmem:[%s8201_s5 + $0x18] sm:$0xff]  ;;  %v4953_v28 = vrot.slane %v8047_v19, 2  ;;  %v708_v29 = vshll.u32 %v7896_v21, 16  ;;  %v7973_v46 = vld [vmem:[%s8201_s5 + $0x20] sm:$0xff] }
  0x14   : > { %v4952_v27 = vrot.slane %v7517_v20, 2  ;;  %v7140_v30 = vor.u32 %v7971_v25, %v7139_v22  ;;  %v705_v31 = vrot.slane %v703_v23, 1  ;;  %v2993_v32 = vshrl.u32 %v7972_v26, 16  ;;  %v7897_v47 = vld [vmem:[%s8201_s5 + $0x10] sm:$0xff]  ;;  %v8048_v49 = vld [vmem:[%s8201_s5 + $0x20] sm:$0xff]  ;;  %v7974_v63 = vld [vmem:[%s8201_s5 + $0x28] sm:$0xff] }
  0x15   : > { %v2996_v33 = vshll.u32 %v7972_v26, 16  ;;  %v710_v35 = vrot.slane %v708_v29, 1  ;;  %v3002_v50 = vshrl.u32 %v7973_v46, 16  ;;  %v3005_v51 = vshll.u32 %v7973_v46, 16  ;;  %v7898_v0 = vld [vmem:[%s8201_s5 + $0x18] sm:$0xff]  ;;  %v8049_v1 = vld [vmem:[%s8201_s5 + $0x28] sm:$0xff] }
  0x16   : > { %v4954_v34 = vsel %vm1530_vm0, %v4952_v27, %v4953_v28  ;;  %v2985_v36 = vshrl.u32 %v7140_v30, 16  ;;  %v2988_v37 = vshll.u32 %v7140_v30, 16  ;;  %v706_v38 = vor.u32 %v705_v31, %v701_v24  ;;  %v7975_v15 = vld [vmem:[%s8201_s5 + $0x30] sm:$0xff]  ;;  %v7899_v16 = vld [vmem:[%s8201_s5 + $0x20] sm:$0xff]  ;;  %v7976_v31 = vld [vmem:[%s8201_s5 + $0x38] sm:$0xff] }
  0x17   : > { %7818 = vmatmul.msk.bf16.vlgmr.msra.gmra.mxu3 %vm1304_vm1, %v4954_v34  ;;  %v2995_v39 = vrot.slane %v2993_v32, 1  ;;  %v2998_v40 = vrot.slane %v2996_v33, 2  ;;  %v712_v52 = vshrl.u32 %v7896_v21, 16  ;;  %v716_v53 = vshll.u32 %v7897_v47, 16  ;;  %v8050_v17 = vld [vmem:[%s8201_s5 + $0x30] sm:$0xff]  ;;  %v7900_v32 = vld [vmem:[%s8201_s5 + $0x28] sm:$0xff] }
  0x18   : > { %v2987_v41 = vrot.slane %v2985_v36, 1  ;;  %v2990_v42 = vrot.slane %v2988_v37, 2  ;;  %v711_v43 = vsel %vm699_vm2, %v706_v38, %v710_v35  ;;  %v4955_v54 = vrot.slane %v8048_v49, 2  ;;  %v8051_v33 = vld [vmem:[%s8201_s5 + $0x38] sm:$0xff]  ;;  %v8052_v49 = vld [vmem:[%s8201_s5 + $0x40] sm:$0xff] }
  0x19   : > { %v2999_v44 = vor.u32 %v2998_v40, %v2995_v39  ;;  %6981 = vmatmul.msk.bf16.vlgmr.msra.gmra.mxu0 %vm1304_vm1, %v711_v43  ;;  %v3004_v55 = vrot.slane %v3002_v50, 1  ;;  %v3007_v56 = vrot.slane %v3005_v51, 2  ;;  %v714_v57 = vor.u32 %v712_v52, %v710_v35 }
  0x1a   : > { %v2991_v45 = vor.u32 %v2990_v42, %v2987_v41  ;;  %v718_v58 = vrot.slane %v716_v53, 1  ;;  %v4956_v59 = vsel %vm1530_vm0, %v4953_v28, %v4955_v54  ;;  %v3011_v2 = vshrl.u32 %v7974_v63, 16 }
  0x1b   : > { %v3008_v60 = vor.u32 %v3007_v56, %v3004_v55  ;;  %v3014_v3 = vshll.u32 %v7974_v63, 16  ;;  %v720_v4 = vshrl.u32 %v7897_v47, 16  ;;  %v724_v5 = vshll.u32 %v7898_v0, 16  ;;  %v7978_v63 = vld [vmem:[%s8201_s5 + $0x48] sm:$0xff] }
  0x1c   : > { %v3000_v48 = vsel %vm2983_vm3, %v2991_v45, %v2999_v44  ;;  %v719_v61 = vsel %vm699_vm2, %v714_v57, %v718_v58  ;;  %v4957_v6 = vrot.slane %v8049_v1, 2  ;;  %v3013_v7 = vrot.slane %v3011_v2, 1  ;;  %v8053_v1 = vld [vmem:[%s8201_s5 + $0x48] sm:$0xff] }
  0x1d   : > { %7437 = vmatmul.msk.bf16.vlgmr.msra.gmra.mxu2 %vm1304_vm1, %v3000_v48  ;;  %v3009_v62 = vsel %vm2983_vm3, %v2999_v44, %v3008_v60  ;;  %v3016_v8 = vrot.slane %v3014_v3, 2  ;;  %v722_v9 = vor.u32 %v720_v4, %v718_v58  ;;  %v726_v10 = vrot.slane %v724_v5, 1  ;;  %v7901_v48 = vld [vmem:[%s8201_s5 + $0x30] sm:$0xff] }
  0x1e   : > { %v4958_v11 = vsel %vm1530_vm0, %v4955_v54, %v4957_v6  ;;  %v3020_v18 = vshrl.u32 %v7975_v15, 16  ;;  %v3023_v19 = vshll.u32 %v7975_v15, 16  ;;  %v728_v20 = vshrl.u32 %v7898_v0, 16  ;;  %v7979_v15 = vld [vmem:[%s8201_s5 + $0x50] sm:$0xff] }
  0x1f   : > { %v3017_v12 = vor.u32 %v3016_v8, %v3013_v7  ;;  %v727_v13 = vsel %vm699_vm2, %v722_v9, %v726_v10  ;;  %v4959_v22 = vrot.slane %v8050_v17, 2  ;;  %v3029_v34 = vshrl.u32 %v7976_v31, 16  ;;  %v8054_v17 = vld [vmem:[%s8201_s5 + $0x50] sm:$0xff] }
  0x20   : > { %v3022_v23 = vrot.slane %v3020_v18, 1  ;;  %v3025_v24 = vrot.slane %v3023_v19, 2  ;;  %v730_v25 = vor.u32 %v728_v20, %v726_v10  ;;  %v3032_v35 = vshll.u32 %v7976_v31, 16  ;;  %v7980_v31 = vld [vmem:[%s8201_s5 + $0x58] sm:$0xff] }
  0x21   : > { %v3018_v14 = vsel %vm2983_vm3, %v3008_v60, %v3017_v12  ;;  %v4960_v27 = vsel %vm1530_vm0, %v4957_v6, %v4959_v22  ;;  %v736_v36 = vshrl.u32 %v7899_v16, 16  ;;  %v740_v37 = vshll.u32 %v7900_v32, 16 }
  0x22   : > { %7061 = vmatmul.msk.bf16.gmra.mxu1 %vm1304_vm1, %v7896_v21  ;;  %v732_v21 = vshll.u32 %v7899_v16, 16  ;;  %v3026_v28 = vor.u32 %v3025_v24, %v3022_v23  ;;  %v4961_v38 = vrot.slane %v8051_v33, 2  ;;  %v3031_v39 = vrot.slane %v3029_v34, 1  ;;  %v8055_v33 = vld [vmem:[%s8201_s5 + $0x58] sm:$0xff] }
  0x23   : > { %v3034_v40 = vrot.slane %v3032_v35, 2  ;;  %v742_v42 = vrot.slane %v740_v37, 1  ;;  %v744_v52 = vshrl.u32 %v7900_v32, 16  ;;  %v748_v53 = vshll.u32 %v7901_v48, 16 }
  0x24   : > { %v734_v26 = vrot.slane %v732_v21, 1  ;;  %v3027_v30 = vsel %vm2983_vm3, %v3017_v12, %v3026_v28  ;;  %v4962_v43 = vsel %vm1530_vm0, %v4959_v22, %v4961_v38  ;;  %v4963_v54 = vrot.slane %v8052_v49, 2 }
  0x25   : > { %v3035_v44 = vor.u32 %v3034_v40, %v3031_v39  ;;  %v746_v57 = vor.u32 %v744_v52, %v742_v42  ;;  %v750_v58 = vrot.slane %v748_v53, 1  ;;  %v3047_v2 = vshrl.u32 %v7978_v63, 16  ;;  %v8300_v52 = vld [vmem:[%s8201_s5 + $0x50] sm:$0xff]  ;;  %v8303_v53 = vld [vmem:[%s8201_s5 + $0x60] sm:$0xff] }
  0x26   : > { %v735_v29 = vsel %vm699_vm2, %v730_v25, %v734_v26  ;;  %v738_v41 = vor.u32 %v736_v36, %v734_v26  ;;  %v3050_v3 = vshll.u32 %v7978_v63, 16  ;;  %v752_v4 = vshrl.u32 %v7901_v48, 16 }
  0x27   : > { %7819 = vmatmul.msk.bf16.gmra.mxu3 %vm1304_vm1, %v4956_v59  ;;  %v3036_v46 = vsel %vm2983_vm3, %v3026_v28, %v3035_v44  ;;  %v4964_v59 = vsel %vm1530_vm0, %v4961_v38, %v4963_v54  ;;  %v4965_v6 = vrot.slane %v8053_v1, 2  ;;  %v3049_v7 = vrot.slane %v3047_v2, 1 }
  0x28   : > { %v743_v45 = vsel %vm699_vm2, %v738_v41, %v742_v42  ;;  %v3052_v8 = vrot.slane %v3050_v3, 2  ;;  %v754_v9 = vor.u32 %v752_v4, %v750_v58  ;;  %v3056_v18 = vshrl.u32 %v7979_v15, 16 }
  0x29   : > { %6982 = vmatmul.msk.bf16.gmra.mxu0 %vm1304_vm1, %v719_v61  ;;  %v751_v61 = vsel %vm699_vm2, %v746_v57, %v750_v58  ;;  %v3059_v19 = vshll.u32 %v7979_v15, 16  ;;  %v4967_v22 = vrot.slane %v8054_v17, 2  ;;  %v3065_v34 = vshrl.u32 %v7980_v31, 16 }
  0x2a   : > { %v3053_v12 = vor.u32 %v3052_v8, %v3049_v7  ;;  %v3058_v23 = vrot.slane %v3056_v18, 1  ;;  %v3068_v35 = vshll.u32 %v7980_v31, 16  ;;  %v4969_v39 = vrot.slane %v8055_v33, 2 }
  0x2b   : > { %v3061_v24 = vrot.slane %v3059_v19, 2  ;;  %v3067_v40 = vrot.slane %v3065_v34, 1  ;;  %v7982_v19 = vld [vmem:[%s8201_s5 + $0x68] sm:$0xff] }
  0x2c   : > { %v3070_v41 = vrot.slane %v3068_v35, 2 }
  0x2d   : > { %7438 = vmatmul.msk.bf16.gmra.mxu2 %vm1304_vm1, %v3009_v62  ;;  %v3062_v28 = vor.u32 %v3061_v24, %v3058_v23 }
  0x32   : > { %7062 = vmatmul.msk.bf16.gmra.mxu1 %vm1304_vm1, %v7897_v47  ;;  %v7977_v47 = vld [vmem:[%s8201_s5 + $0x40] sm:$0xff] }
  0x33   : > { %v3038_v50 = vshrl.u32 %v7977_v47, 16  ;;  %v3041_v51 = vshll.u32 %v7977_v47, 16 }
  0x35   : > { %v3040_v55 = vrot.slane %v3038_v50, 1  ;;  %v3043_v56 = vrot.slane %v3041_v51, 2  ;;  %v7981_v51 = vld [vmem:[%s8201_s5 + $0x60] sm:$0xff] }
  0x37   : > { %7820 = vmatmul.msk.bf16.gmra.mxu3 %vm1304_vm1, %v4958_v11  ;;  %v3044_v60 = vor.u32 %v3043_v56, %v3040_v55  ;;  %v4966_v11 = vsel %vm1530_vm0, %v4963_v54, %v4965_v6  ;;  %v3074_v55 = vshrl.u32 %v7981_v51, 16  ;;  %v3077_v56 = vshll.u32 %v7981_v51, 16 }
  0x39   : > { %6983 = vmatmul.msk.bf16.gmra.mxu0 %vm1304_vm1, %v727_v13  ;;  %v3045_v62 = vsel %vm2983_vm3, %v3035_v44, %v3044_v60  ;;  %v4970_v44 = vsel %vm1530_vm0, %v4967_v22, %v4969_v39  ;;  %v3076_v1 = vrot.slane %v3074_v55, 1  ;;  %v3079_v2 = vrot.slane %v3077_v56, 2  ;;  %v7983_v55 = vld [vmem:[%s8201_s5 + $0x70] sm:$0xff] }
  0x3b   : > { %v3080_v8 = vor.u32 %v3079_v2, %v3076_v1 }
  0x3d   : > { %7439 = vmatmul.msk.bf16.gmra.mxu2 %vm1304_vm1, %v3018_v14  ;;  %v3054_v14 = vsel %vm2983_vm3, %v3044_v60, %v3053_v12 }
  0x42   : > { %7063 = vmatmul.msk.bf16.gmra.mxu1 %vm1304_vm1, %v7898_v0  ;;  %v7902_v0 = vld [vmem:[%s8201_s5 + $0x38] sm:$0xff] }
  0x43   : > { %v756_v5 = vshll.u32 %v7902_v0, 16  ;;  %v760_v20 = vshrl.u32 %v7902_v0, 16 }
  0x45   : > { %v758_v10 = vrot.slane %v756_v5, 1 }
  0x47   : > { %7821 = vmatmul.msk.bf16.gmra.mxu3 %vm1304_vm1, %v4960_v27  ;;  %v759_v13 = vsel %vm699_vm2, %v754_v9, %v758_v10  ;;  %v762_v25 = vor.u32 %v760_v20, %v758_v10  ;;  %v4968_v27 = vsel %vm1530_vm0, %v4965_v6, %v4967_v22  ;;  %v8327_v22 = vld [vmem:[%s8201_s5 + $0x68] sm:$0xff] }
  0x48   : > { %v4973_v34 = vrot.slane %v8327_v22, 2 }
  0x49   : > { %6984 = vmatmul.msk.bf16.gmra.mxu0 %vm1304_vm1, %v735_v29 }
  0x4d   : > { %7440 = vmatmul.msk.bf16.gmra.mxu2 %vm1304_vm1, %v3027_v30  ;;  %v3063_v30 = vsel %vm2983_vm3, %v3053_v12, %v3062_v28 }
  0x52   : > { %7064 = vmatmul.msk.bf16.gmra.mxu1 %vm1304_vm1, %v7899_v16  ;;  %v7903_v16 = vld [vmem:[%s8201_s5 + $0x40] sm:$0xff] }
  0x53   : > { %v764_v21 = vshll.u32 %v7903_v16, 16  ;;  %v768_v36 = vshrl.u32 %v7903_v16, 16 }
  0x55   : > { %v766_v26 = vrot.slane %v764_v21, 1  ;;  %v8324_v21 = vld [vmem:[%s8201_s5 + $0x58] sm:$0xff] }
  0x56   : > { %v792_v1 = vshrl.u32 %v8324_v21, 16 }
  0x57   : > { %7822 = vmatmul.msk.bf16.gmra.mxu3 %vm1304_vm1, %v4962_v43  ;;  %v767_v29 = vsel %vm699_vm2, %v762_v25, %v766_v26  ;;  %v770_v42 = vor.u32 %v768_v36, %v766_v26  ;;  %v3083_v25 = vshrl.u32 %v7982_v19, 16  ;;  %v3086_v26 = vshll.u32 %v7982_v19, 16 }
  0x59   : > { %6985 = vmatmul.msk.bf16.gmra.mxu0 %vm1304_vm1, %v743_v45  ;;  %v3071_v45 = vor.u32 %v3070_v41, %v3067_v40 }
  0x5b   : > { %v3072_v50 = vsel %vm2983_vm3, %v3062_v28, %v3071_v45  ;;  %v3081_v18 = vsel %vm2983_vm3, %v3071_v45, %v3080_v8 }
  0x5d   : > { %7441 = vmatmul.msk.bf16.gmra.mxu2 %vm1304_vm1, %v3036_v46 }
  0x62   : > { %7065 = vmatmul.msk.bf16.gmra.mxu1 %vm1304_vm1, %v7900_v32  ;;  %v7904_v32 = vld [vmem:[%s8201_s5 + $0x48] sm:$0xff] }
  0x63   : > { %v772_v37 = vshll.u32 %v7904_v32, 16  ;;  %v776_v58 = vshrl.u32 %v7904_v32, 16 }
  0x65   : > { %v774_v43 = vrot.slane %v772_v37, 1  ;;  %v3085_v37 = vrot.slane %v3083_v25, 1 }
  0x67   : > { %7823 = vmatmul.msk.bf16.gmra.mxu3 %vm1304_vm1, %v4964_v59  ;;  %v775_v47 = vsel %vm699_vm2, %v770_v42, %v774_v43  ;;  %v780_v59 = vshll.u32 %v8300_v52, 16  ;;  %v778_v4 = vor.u32 %v776_v58, %v774_v43  ;;  %v8349_v58 = vld [vmem:[%s8201_s5 + $0x70] sm:$0xff] }
  0x69   : > { %6986 = vmatmul.msk.bf16.gmra.mxu0 %vm1304_vm1, %v751_v61  ;;  %v782_v5 = vrot.slane %v780_v59, 1 }
  0x6b   : > { %v783_v12 = vsel %vm699_vm2, %v778_v4, %v782_v5 }
  0x6d   : > { %7442 = vmatmul.msk.bf16.gmra.mxu2 %vm1304_vm1, %v3045_v62  ;;  %v4971_v62 = vrot.slane %v8303_v53, 2 }
  0x6f   : > { %v4972_v6 = vsel %vm1530_vm0, %v4969_v39, %v4971_v62  ;;  %v4974_v42 = vsel %vm1530_vm0, %v4971_v62, %v4973_v34  ;;  %v3095_v62 = vshll.u32 %v7983_v55, 16 }
  0x72   : > { %7066 = vmatmul.msk.bf16.gmra.mxu1 %vm1304_vm1, %v7901_v48 }
  0x77   : > { %7824 = vmatmul.msk.bf16.gmra.mxu3 %vm1304_vm1, %v4966_v11 }
  0x79   : > { %6987 = vmatmul.msk.bf16.gmra.mxu0 %vm1304_vm1, %v759_v13 }
  0x7d   : > { %7443 = vmatmul.msk.bf16.gmra.mxu2 %vm1304_vm1, %v3054_v14 }
  0x82   : > { %7067 = vmatmul.msk.bf16.gmra.mxu1 %vm1304_vm1, %v7902_v0 }
  0x87   : > { %7825 = vmatmul.msk.bf16.gmra.mxu3 %vm1304_vm1, %v4968_v27 }
  0x89   : > { %6988 = vmatmul.msk.bf16.gmra.mxu0 %vm1304_vm1, %v767_v29  ;;  %v784_v29 = vshrl.u32 %v8300_v52, 16 }
  0x8b   : > { %v786_v40 = vor.u32 %v784_v29, %v782_v5  ;;  %v8368_v29 = vld [vmem:[%s8201_s5 + $0x68] sm:$0xff] }
  0x8d   : > { %7444 = vmatmul.msk.bf16.gmra.mxu2 %vm1304_vm1, %v3063_v30  ;;  %v788_v30 = vshll.u32 %v8324_v21, 16 }
  0x8f   : > { %v2084_v38 = vpop.f32.mrf.mxu1  ;;  %v790_v41 = vrot.slane %v788_v30, 1  ;;  %v8371_v30 = vld [vmem:[%s8201_s5 + $0x78] sm:$0xff] }
  0x92   : > { %7068 = vmatmul.msk.bf16.gmra.mxu1 %vm1304_vm1, %v7903_v16 }
  0x96   : > { %v1543_v46 = vpop.f32.mrf.mxu0 }
  0x97   : > { %7826 = vmatmul.msk.bf16.gmra.mxu3 %vm1304_vm1, %v4970_v44  ;;  %v2086_v48 = vpop.f32.mrf.mxu1  ;;  %v2085_v54 = vadd.f32 %v2084_v38, %v1543_v46  ;;  %v3088_v38 = vrot.slane %v3086_v26, 2 }
  0x99   : > { %6989 = vmatmul.msk.bf16.gmra.mxu0 %vm1304_vm1, %v775_v47  ;;  %v3089_v44 = vor.u32 %v3088_v38, %v3085_v37  ;;  %v804_v38 = vshll.u32 %v8368_v29, 16 }
  0x9a   : > { %v5343_v49 = vpop.f32.mrf.mxu3 }
  0x9d   : > { %7445 = vmatmul.msk.bf16.gmra.mxu2 %vm1304_vm1, %v3072_v50 }
  0x9e   : > { %v1545_v57 = vpop.f32.mrf.mxu0 }
  0x9f   : > { %v2089_v61 = vpop.f32.mrf.mxu1  ;;  %v2087_v10 = vadd.f32 %v2086_v48, %v1545_v57  ;;  %v791_v48 = vsel %vm699_vm2, %v786_v40, %v790_v41  ;;  %v8346_v57 = vld [vmem:[%s8201_s5 + $0x60] sm:$0xff] }
  0xa0   : > { %v3900_v60 = vpop.f32.mrf.mxu2  ;;  %v796_v2 = vshll.u32 %v8346_v57, 16  ;;  %v800_v37 = vshrl.u32 %v8346_v57, 16 }
  0xa1   : > { %v4274_v63 = vadd.f32 %v3900_v60, %v2085_v54  ;;  %v3090_v54 = vsel %vm2983_vm3, %v3080_v8, %v3089_v44 }
  0xa2   : > { %v5345_v0 = vpop.f32.mrf.mxu3  ;;  %7069 = vmatmul.msk.bf16.gmra.mxu1 %vm1304_vm1, %v7904_v32 }
  0xa3   : > { %v5717_v3 = vadd.f32 %v5343_v49, %v4274_v63 }
  0xa5   : > { %vm5866_vm4 = vcmp.gt.f32.partialorder %v5717_v3, 0.0  ;;  %v6015_v7 = vmul.f32 0.2, %v5717_v3 }
  0xa6   : > { %v1548_v11 = vpop.f32.mrf.mxu0 }
  0xa7   : > { %v6164_v9 = vsel %vm5866_vm4, %v5717_v3, %v6015_v7  ;;  %7827 = vmatmul.msk.bf16.gmra.mxu3 %vm1304_vm1, %v4972_v6  ;;  %v2091_v15 = vpop.f32.mrf.mxu1  ;;  %v2090_v24 = vadd.f32 %v2089_v61, %v1548_v11  ;;  %v3092_v61 = vshrl.u32 %v7983_v55, 16  ;;  %v4975_v6 = vrot.slane %v8349_v58, 2 }
  0xa8   : > { %v6313_v13 = vpack.c.bf16 %v6164_v9, %v6164_v9  ;;  %v3902_v14 = vpop.f32.mrf.mxu2 }
  0xa9   : > { %v4275_v16 = vadd.f32 %v3902_v14, %v2087_v10  ;;  %6990 = vmatmul.msk.bf16.gmra.mxu0 %vm1304_vm1, %v783_v12  ;;  %v3094_v9 = vrot.slane %v3092_v61, 1  ;;  %v3097_v10 = vrot.slane %v3095_v62, 2  ;;  %v794_v12 = vor.u32 %v792_v1, %v790_v41  ;;  %v8390_v1 = vld [vmem:[%s8201_s5 + $0x70] sm:$0xff] }
  0xaa   : > { %6463 = vst.msk [vmem:[%s8314_s9] sm:$0xf] %vm6462_vm5, %v6313_v13  ;;  %v5348_v17 = vpop.f32.mrf.mxu3  ;;  %v798_v13 = vrot.slane %v796_v2, 1  ;;  %v4976_v14 = vsel %vm1530_vm0, %v4973_v34, %v4975_v6  ;;  %v8393_v2 = vld [vmem:[%s8201_s5 + $0x80] sm:$0xff] }
  0xab   : > { %v5718_v20 = vadd.f32 %v5345_v0, %v4275_v16  ;;  %v3098_v16 = vor.u32 %v3097_v10, %v3094_v9  ;;  %v808_v9 = vshrl.u32 %v8368_v29, 16  ;;  %v812_v10 = vshll.u32 %v8390_v1, 16 }
  0xad   : > { %vm5867_vm6 = vcmp.gt.f32.partialorder %v5718_v20, 0.0  ;;  %v6016_v23 = vmul.f32 0.2, %v5718_v20  ;;  %7446 = vmatmul.msk.bf16.gmra.mxu2 %vm1304_vm1, %v3081_v18  ;;  %v3099_v26 = vsel %vm2983_vm3, %v3089_v44, %v3098_v16 }
  0xae   : > { %v1550_v28 = vpop.f32.mrf.mxu0 }
  0xaf   : > { %v6165_v27 = vsel %vm5867_vm6, %v5718_v20, %v6016_v23  ;;  %v2094_v33 = vpop.f32.mrf.mxu1  ;;  %v2092_v46 = vadd.f32 %v2091_v15, %v1550_v28  ;;  %v799_v20 = vsel %vm699_vm2, %v794_v12, %v798_v13 }
  0xb0   : > { %v6314_v31 = vpack.c.bf16 %v6165_v27, %v6165_v27  ;;  %v3905_v32 = vpop.f32.mrf.mxu2  ;;  %v7984_v27 = vld [vmem:[%s8201_s5 + $0x78] sm:$0xff] }
  0xb1   : > { %v4276_v35 = vadd.f32 %v3905_v32, %v2090_v24  ;;  %v3104_v34 = vshll.u32 %v7984_v27, 16 }
  0xb2   : > { %6464 = vst.msk [vmem:[%s8314_s9 + $0x4] sm:$0xf] %vm6462_vm5, %v6314_v31  ;;  %v5350_v36 = vpop.f32.mrf.mxu3  ;;  %7070 = vmatmul.msk.bf16.gmra.mxu1 %vm1304_vm1, %v8300_v52 }
  0xb3   : > { %v5719_v39 = vadd.f32 %v5348_v17, %v4276_v35 }
  0xb5   : > { %vm5868_vm7 = vcmp.gt.f32.partialorder %v5719_v39, 0.0  ;;  %v6017_v43 = vmul.f32 0.2, %v5719_v39 }
  0xb6   : > { %v1553_v47 = vpop.f32.mrf.mxu0 }
  0xb7   : > { %v6166_v45 = vsel %vm5868_vm7, %v5719_v39, %v6017_v43  ;;  %7828 = vmatmul.msk.bf16.gmra.mxu3 %vm1304_vm1, %v4974_v42  ;;  %v2096_v51 = vpop.f32.mrf.mxu1  ;;  %v2095_v60 = vadd.f32 %v2094_v33, %v1553_v47  ;;  %v3101_v33 = vshrl.u32 %v7984_v27, 16  ;;  %v4977_v42 = vrot.slane %v8371_v30, 2 }
  0xb8   : > { %v6315_v49 = vpack.c.bf16 %v6166_v45, %v6166_v45  ;;  %v3907_v50 = vpop.f32.mrf.mxu2 }
  0xb9   : > { %v4277_v52 = vadd.f32 %v3907_v50, %v2092_v46  ;;  %6991 = vmatmul.msk.bf16.gmra.mxu0 %vm1304_vm1, %v791_v48  ;;  %v3103_v45 = vrot.slane %v3101_v33, 1  ;;  %v3106_v46 = vrot.slane %v3104_v34, 2  ;;  %v802_v48 = vor.u32 %v800_v37, %v798_v13  ;;  %v8412_v37 = vld [vmem:[%s8201_s5 + $0x78] sm:$0xff] }
  0xba   : > { %6465 = vst.msk [vmem:[%s8314_s9 + $0x8] sm:$0xf] %vm6462_vm5, %v6315_v49  ;;  %v5353_v53 = vpop.f32.mrf.mxu3  ;;  %v806_v49 = vrot.slane %v804_v38, 1  ;;  %v4978_v50 = vsel %vm1530_vm0, %v4975_v6, %v4977_v42  ;;  %v8415_v38 = vld [vmem:[%s8201_s5 + $0x88] sm:$0xff] }
  0xbb   : > { %v5720_v56 = vadd.f32 %v5350_v36, %v4277_v52  ;;  %v3107_v52 = vor.u32 %v3106_v46, %v3103_v45  ;;  %v816_v45 = vshrl.u32 %v8390_v1, 16  ;;  %v820_v46 = vshll.u32 %v8412_v37, 16 }
  0xbd   : > { %vm5869_vm8 = vcmp.gt.f32.partialorder %v5720_v56, 0.0  ;;  %v6018_v59 = vmul.f32 0.2, %v5720_v56  ;;  %7447 = vmatmul.msk.bf16.gmra.mxu2 %vm1304_vm1, %v3090_v54  ;;  %v3108_v62 = vsel %vm2983_vm3, %v3098_v16, %v3107_v52 }
  0xbe   : > { %v1555_v0 = vpop.f32.mrf.mxu0 }
  0xbf   : > { %v6167_v63 = vsel %vm5869_vm8, %v5720_v56, %v6018_v59  ;;  %v2099_v5 = vpop.f32.mrf.mxu1  ;;  %v2097_v18 = vadd.f32 %v2096_v51, %v1555_v0  ;;  %v807_v56 = vsel %vm699_vm2, %v802_v48, %v806_v49 }
  0xc0   : > { %v6316_v3 = vpack.c.bf16 %v6167_v63, %v6167_v63  ;;  %v3910_v4 = vpop.f32.mrf.mxu2  ;;  %v7985_v63 = vld [vmem:[%s8201_s5 + $0x80] sm:$0xff] }
  0xc1   : > { %v4278_v7 = vadd.f32 %v3910_v4, %v2095_v60  ;;  %v3113_v6 = vshll.u32 %v7985_v63, 16 }
  0xc2   : > { %6466 = vst.msk [vmem:[%s8314_s9 + $0xc] sm:$0xf] %vm6462_vm5, %v6316_v3  ;;  %v5355_v8 = vpop.f32.mrf.mxu3  ;;  %7071 = vmatmul.msk.bf16.gmra.mxu1 %vm1304_vm1, %v8324_v21 }
  0xc3   : > { %v5721_v11 = vadd.f32 %v5353_v53, %v4278_v7 }
  0xc5   : > { %vm5870_vm9 = vcmp.gt.f32.partialorder %v5721_v11, 0.0  ;;  %v6019_v15 = vmul.f32 0.2, %v5721_v11 }
  0xc6   : > { %v1558_v19 = vpop.f32.mrf.mxu0 }
  0xc7   : > { %v6168_v17 = vsel %vm5870_vm9, %v5721_v11, %v6019_v15  ;;  %7829 = vmatmul.msk.bf16.gmra.mxu3 %vm1304_vm1, %v4976_v14  ;;  %v2101_v23 = vpop.f32.mrf.mxu1  ;;  %v2100_v32 = vadd.f32 %v2099_v5, %v1558_v19  ;;  %v3110_v5 = vshrl.u32 %v7985_v63, 16  ;;  %v4979_v14 = vrot.slane %v8393_v2, 2 }
  0xc8   : > { %v6317_v22 = vpack.c.bf16 %v6168_v17, %v6168_v17  ;;  %v3912_v21 = vpop.f32.mrf.mxu2 }
  0xc9   : > { %v4279_v24 = vadd.f32 %v3912_v21, %v2097_v18  ;;  %6992 = vmatmul.msk.bf16.gmra.mxu0 %vm1304_vm1, %v799_v20  ;;  %v3112_v17 = vrot.slane %v3110_v5, 1  ;;  %v3115_v18 = vrot.slane %v3113_v6, 2  ;;  %v810_v20 = vor.u32 %v808_v9, %v806_v49  ;;  %v8434_v9 = vld [vmem:[%s8201_s5 + $0x80] sm:$0xff] }
  0xca   : > { %6467 = vst.msk [vmem:[%s8314_s9 + $0x10] sm:$0xf] %vm6462_vm5, %v6317_v22  ;;  %v5358_v25 = vpop.f32.mrf.mxu3  ;;  %v814_v22 = vrot.slane %v812_v10, 1  ;;  %v4980_v21 = vsel %vm1530_vm0, %v4977_v42, %v4979_v14  ;;  %v8437_v10 = vld [vmem:[%s8201_s5 + $0x90] sm:$0xff] }
  0xcb   : > { %v5722_v28 = vadd.f32 %v5355_v8, %v4279_v24  ;;  %v3116_v24 = vor.u32 %v3115_v18, %v3112_v17  ;;  %v824_v17 = vshrl.u32 %v8412_v37, 16  ;;  %v828_v18 = vshll.u32 %v8434_v9, 16 }
  0xcd   : > { %vm5871_vm10 = vcmp.gt.f32.partialorder %v5722_v28, 0.0  ;;  %v6020_v31 = vmul.f32 0.2, %v5722_v28  ;;  %7448 = vmatmul.msk.bf16.gmra.mxu2 %vm1304_vm1, %v3099_v26  ;;  %v3117_v34 = vsel %vm2983_vm3, %v3107_v52, %v3116_v24 }
  0xce   : > { %v1560_v36 = vpop.f32.mrf.mxu0 }
  0xcf   : > { %v6169_v35 = vsel %vm5871_vm10, %v5722_v28, %v6020_v31  ;;  %v2104_v41 = vpop.f32.mrf.mxu1  ;;  %v2102_v54 = vadd.f32 %v2101_v23, %v1560_v36  ;;  %v815_v28 = vsel %vm699_vm2, %v810_v20, %v814_v22 }
  0xd0   : > { %v6318_v39 = vpack.c.bf16 %v6169_v35, %v6169_v35  ;;  %v3915_v40 = vpop.f32.mrf.mxu2  ;;  %v7986_v35 = vld [vmem:[%s8201_s5 + $0x88] sm:$0xff] }
  0xd1   : > { %v4280_v43 = vadd.f32 %v3915_v40, %v2100_v32  ;;  %v3122_v42 = vshll.u32 %v7986_v35, 16 }
  0xd2   : > { %6468 = vst.msk [vmem:[%s8314_s9 + $0x14] sm:$0xf] %vm6462_vm5, %v6318_v39  ;;  %v5360_v44 = vpop.f32.mrf.mxu3  ;;  %7072 = vmatmul.msk.bf16.gmra.mxu1 %vm1304_vm1, %v8346_v57 }
  0xd3   : > { %v5723_v47 = vadd.f32 %v5358_v25, %v4280_v43 }
  0xd5   : > { %vm5872_vm11 = vcmp.gt.f32.partialorder %v5723_v47, 0.0  ;;  %v6021_v51 = vmul.f32 0.2, %v5723_v47 }
  0xd6   : > { %v1563_v55 = vpop.f32.mrf.mxu0 }
  0xd7   : > { %v6170_v53 = vsel %vm5872_vm11, %v5723_v47, %v6021_v51  ;;  %7830 = vmatmul.msk.bf16.gmra.mxu3 %vm1304_vm1, %v4978_v50  ;;  %v2106_v59 = vpop.f32.mrf.mxu1  ;;  %v2105_v4 = vadd.f32 %v2104_v41, %v1563_v55  ;;  %v3119_v41 = vshrl.u32 %v7986_v35, 16  ;;  %v4981_v50 = vrot.slane %v8415_v38, 2 }
  0xd8   : > { %v6319_v58 = vpack.c.bf16 %v6170_v53, %v6170_v53  ;;  %v3917_v57 = vpop.f32.mrf.mxu2 }
  0xd9   : > { %v4281_v60 = vadd.f32 %v3917_v57, %v2102_v54  ;;  %6993 = vmatmul.msk.bf16.gmra.mxu0 %vm1304_vm1, %v807_v56  ;;  %v3121_v53 = vrot.slane %v3119_v41, 1  ;;  %v3124_v54 = vrot.slane %v3122_v42, 2  ;;  %v818_v56 = vor.u32 %v816_v45, %v814_v22  ;;  %v8456_v45 = vld [vmem:[%s8201_s5 + $0x88] sm:$0xff] }
  0xda   : > { %6469 = vst.msk [vmem:[%s8314_s9 + $0x18] sm:$0xf] %vm6462_vm5, %v6319_v58  ;;  %v5363_v61 = vpop.f32.mrf.mxu3  ;;  %v822_v58 = vrot.slane %v820_v46, 1  ;;  %v4982_v57 = vsel %vm1530_vm0, %v4979_v14, %v4981_v50  ;;  %v8459_v46 = vld [vmem:[%s8201_s5 + $0x98] sm:$0xff] }
  0xdb   : > { %v5724_v0 = vadd.f32 %v5360_v44, %v4281_v60  ;;  %v3125_v60 = vor.u32 %v3124_v54, %v3121_v53  ;;  %v832_v53 = vshrl.u32 %v8434_v9, 16  ;;  %v836_v54 = vshll.u32 %v8456_v45, 16 }
  0xdd   : > { %vm5873_vm12 = vcmp.gt.f32.partialorder %v5724_v0, 0.0  ;;  %v6022_v3 = vmul.f32 0.2, %v5724_v0  ;;  %7449 = vmatmul.msk.bf16.gmra.mxu2 %vm1304_vm1, %v3108_v62  ;;  %v3126_v6 = vsel %vm2983_vm3, %v3116_v24, %v3125_v60 }
  0xde   : > { %v1565_v8 = vpop.f32.mrf.mxu0 }
  0xdf   : > { %v6171_v7 = vsel %vm5873_vm12, %v5724_v0, %v6022_v3  ;;  %v2109_v13 = vpop.f32.mrf.mxu1  ;;  %v2107_v26 = vadd.f32 %v2106_v59, %v1565_v8  ;;  %v823_v0 = vsel %vm699_vm2, %v818_v56, %v822_v58 }
  0xe0   : > { %v6320_v11 = vpack.c.bf16 %v6171_v7, %v6171_v7  ;;  %v3920_v12 = vpop.f32.mrf.mxu2  ;;  %v7987_v7 = vld [vmem:[%s8201_s5 + $0x90] sm:$0xff] }
  0xe1   : > { %v4282_v15 = vadd.f32 %v3920_v12, %v2105_v4  ;;  %v3131_v14 = vshll.u32 %v7987_v7, 16 }
  0xe2   : > { %6470 = vst.msk [vmem:[%s8314_s9 + $0x1c] sm:$0xf] %vm6462_vm5, %v6320_v11  ;;  %v5365_v16 = vpop.f32.mrf.mxu3  ;;  %7073 = vmatmul.msk.bf16.gmra.mxu1 %vm1304_vm1, %v8368_v29 }
  0xe3   : > { %v5725_v19 = vadd.f32 %v5363_v61, %v4282_v15 }
  0xe5   : > { %vm5874_vm13 = vcmp.gt.f32.partialorder %v5725_v19, 0.0  ;;  %v6023_v23 = vmul.f32 0.2, %v5725_v19 }
  0xe6   : > { %v1568_v27 = vpop.f32.mrf.mxu0 }
  0xe7   : > { %v6172_v25 = vsel %vm5874_vm13, %v5725_v19, %v6023_v23  ;;  %7831 = vmatmul.msk.bf16.gmra.mxu3 %vm1304_vm1, %v4980_v21  ;;  %v2111_v31 = vpop.f32.mrf.mxu1  ;;  %v2110_v40 = vadd.f32 %v2109_v13, %v1568_v27  ;;  %v3128_v13 = vshrl.u32 %v7987_v7, 16  ;;  %v4983_v21 = vrot.slane %v8437_v10, 2 }
  0xe8   : > { %v6321_v30 = vpack.c.bf16 %v6172_v25, %v6172_v25  ;;  %v3922_v29 = vpop.f32.mrf.mxu2 }
  0xe9   : > { %v4283_v32 = vadd.f32 %v3922_v29, %v2107_v26  ;;  %6994 = vmatmul.msk.bf16.gmra.mxu0 %vm1304_vm1, %v815_v28  ;;  %v3130_v25 = vrot.slane %v3128_v13, 1  ;;  %v3133_v26 = vrot.slane %v3131_v14, 2  ;;  %v826_v28 = vor.u32 %v824_v17, %v822_v58  ;;  %v8478_v17 = vld [vmem:[%s8201_s5 + $0x90] sm:$0xff] }
  0xea   : > { %6471 = vst.msk [vmem:[%s8314_s9 + $0x20] sm:$0xf] %vm6462_vm5, %v6321_v30  ;;  %v5368_v33 = vpop.f32.mrf.mxu3  ;;  %v830_v30 = vrot.slane %v828_v18, 1  ;;  %v4984_v29 = vsel %vm1530_vm0, %v4981_v50, %v4983_v21  ;;  %v8481_v18 = vld [vmem:[%s8201_s5 + $0xa0] sm:$0xff] }
  0xeb   : > { %v5726_v36 = vadd.f32 %v5365_v16, %v4283_v32  ;;  %v3134_v32 = vor.u32 %v3133_v26, %v3130_v25  ;;  %v840_v25 = vshrl.u32 %v8456_v45, 16  ;;  %v844_v26 = vshll.u32 %v8478_v17, 16 }
  0xed   : > { %vm5875_vm14 = vcmp.gt.f32.partialorder %v5726_v36, 0.0  ;;  %v6024_v39 = vmul.f32 0.2, %v5726_v36  ;;  %7450 = vmatmul.msk.bf16.gmra.mxu2 %vm1304_vm1, %v3117_v34  ;;  %v3135_v42 = vsel %vm2983_vm3, %v3125_v60, %v3134_v32 }
  0xee   : > { %v1570_v44 = vpop.f32.mrf.mxu0 }
  0xef   : > { %v6173_v43 = vsel %vm5875_vm14, %v5726_v36, %v6024_v39  ;;  %v2114_v49 = vpop.f32.mrf.mxu1  ;;  %v2112_v62 = vadd.f32 %v2111_v31, %v1570_v44  ;;  %v831_v36 = vsel %vm699_vm2, %v826_v28, %v830_v30 }
  0xf0   : > { %v6322_v47 = vpack.c.bf16 %v6173_v43, %v6173_v43  ;;  %v3925_v48 = vpop.f32.mrf.mxu2  ;;  %v7988_v43 = vld [vmem:[%s8201_s5 + $0x98] sm:$0xff] }
  0xf1   : > { %v4284_v51 = vadd.f32 %v3925_v48, %v2110_v40  ;;  %v3140_v50 = vshll.u32 %v7988_v43, 16 }
  0xf2   : > { %6472 = vst.msk [vmem:[%s8314_s9 + $0x24] sm:$0xf] %vm6462_vm5, %v6322_v47  ;;  %v5370_v52 = vpop.f32.mrf.mxu3  ;;  %7074 = vmatmul.msk.bf16.gmra.mxu1 %vm1304_vm1, %v8390_v1 }
  0xf3   : > { %v5727_v55 = vadd.f32 %v5368_v33, %v4284_v51 }
  0xf5   : > { %vm5876_vm15 = vcmp.gt.f32.partialorder %v5727_v55, 0.0  ;;  %v6025_v59 = vmul.f32 0.2, %v5727_v55 }
  0xf6   : > { %v1573_v63 = vpop.f32.mrf.mxu0 }
  0xf7   : > { %v6174_v61 = vsel %vm5876_vm15, %v5727_v55, %v6025_v59  ;;  %7832 = vmatmul.msk.bf16.gmra.mxu3 %vm1304_vm1, %v4982_v57  ;;  %v2116_v3 = vpop.f32.mrf.mxu1  ;;  %v2115_v12 = vadd.f32 %v2114_v49, %v1573_v63  ;;  %v3137_v49 = vshrl.u32 %v7988_v43, 16  ;;  %v4985_v57 = vrot.slane %v8459_v46, 2 }
  0xf8   : > { %v6323_v2 = vpack.c.bf16 %v6174_v61, %v6174_v61  ;;  %v3927_v1 = vpop.f32.mrf.mxu2 }
  0xf9   : > { %v4285_v4 = vadd.f32 %v3927_v1, %v2112_v62  ;;  %6995 = vmatmul.msk.bf16.gmra.mxu0 %vm1304_vm1, %v823_v0  ;;  %v3139_v61 = vrot.slane %v3137_v49, 1  ;;  %v3142_v62 = vrot.slane %v3140_v50, 2  ;;  %v834_v0 = vor.u32 %v832_v53, %v830_v30  ;;  %v8500_v53 = vld [vmem:[%s8201_s5 + $0x98] sm:$0xff] }
  0xfa   : > { %6473 = vst.msk [vmem:[%s8314_s9 + $0x28] sm:$0xf] %vm6462_vm5, %v6323_v2  ;;  %v5373_v5 = vpop.f32.mrf.mxu3  ;;  %v838_v2 = vrot.slane %v836_v54, 1  ;;  %v4986_v1 = vsel %vm1530_vm0, %v4983_v21, %v4985_v57  ;;  %v8503_v54 = vld [vmem:[%s8201_s5 + $0xa8] sm:$0xff] }
  0xfb   : > { %v5728_v8 = vadd.f32 %v5370_v52, %v4285_v4  ;;  %v3143_v4 = vor.u32 %v3142_v62, %v3139_v61  ;;  %v848_v61 = vshrl.u32 %v8478_v17, 16  ;;  %v852_v62 = vshll.u32 %v8500_v53, 16 }
  0xfd   : > { %vm5877_vm4 = vcmp.gt.f32.partialorder %v5728_v8, 0.0  ;;  %v6026_v11 = vmul.f32 0.2, %v5728_v8  ;;  %7451 = vmatmul.msk.bf16.gmra.mxu2 %vm1304_vm1, %v3126_v6  ;;  %v3144_v14 = vsel %vm2983_vm3, %v3134_v32, %v3143_v4 }
  0xfe   : > { %v1575_v16 = vpop.f32.mrf.mxu0 }
  0xff   : > { %v6175_v15 = vsel %vm5877_vm4, %v5728_v8, %v6026_v11  ;;  %v2119_v22 = vpop.f32.mrf.mxu1  ;;  %v2117_v34 = vadd.f32 %v2116_v3, %v1575_v16  ;;  %v839_v8 = vsel %vm699_vm2, %v834_v0, %v838_v2 }
 0x100   : > { %v6324_v19 = vpack.c.bf16 %v6175_v15, %v6175_v15  ;;  %v3930_v20 = vpop.f32.mrf.mxu2  ;;  %v7989_v15 = vld [vmem:[%s8201_s5 + $0xa0] sm:$0xff] }
 0x101   : > { %v4286_v23 = vadd.f32 %v3930_v20, %v2115_v12  ;;  %v3149_v21 = vshll.u32 %v7989_v15, 16 }
 0x102   : > { %6474 = vst.msk [vmem:[%s8314_s9 + $0x2c] sm:$0xf] %vm6462_vm5, %v6324_v19  ;;  %v5375_v24 = vpop.f32.mrf.mxu3  ;;  %7075 = vmatmul.msk.bf16.gmra.mxu1 %vm1304_vm1, %v8412_v37 }
 0x103   : > { %v5729_v27 = vadd.f32 %v5373_v5, %v4286_v23 }
 0x105   : > { %vm5878_vm6 = vcmp.gt.f32.partialorder %v5729_v27, 0.0  ;;  %v6027_v31 = vmul.f32 0.2, %v5729_v27 }
 0x106   : > { %v1578_v35 = vpop.f32.mrf.mxu0 }
 0x107   : > { %v6176_v33 = vsel %vm5878_vm6, %v5729_v27, %v6027_v31  ;;  %7833 = vmatmul.msk.bf16.gmra.mxu3 %vm1304_vm1, %v4984_v29  ;;  %v2121_v39 = vpop.f32.mrf.mxu1  ;;  %v2120_v48 = vadd.f32 %v2119_v22, %v1578_v35  ;;  %v3146_v22 = vshrl.u32 %v7989_v15, 16  ;;  %v4987_v29 = vrot.slane %v8481_v18, 2 }
 0x108   : > { %v6325_v38 = vpack.c.bf16 %v6176_v33, %v6176_v33  ;;  %v3932_v37 = vpop.f32.mrf.mxu2 }
 0x109   : > { %v4287_v40 = vadd.f32 %v3932_v37, %v2117_v34  ;;  %6996 = vmatmul.msk.bf16.gmra.mxu0 %vm1304_vm1, %v831_v36  ;;  %v3148_v33 = vrot.slane %v3146_v22, 1  ;;  %v3151_v34 = vrot.slane %v3149_v21, 2  ;;  %v842_v36 = vor.u32 %v840_v25, %v838_v2  ;;  %v8522_v25 = vld [vmem:[%s8201_s5 + $0xa0] sm:$0xff] }
 0x10a   : > { %6475 = vst.msk [vmem:[%s8314_s9 + $0x30] sm:$0xf] %vm6462_vm5, %v6325_v38  ;;  %v5378_v41 = vpop.f32.mrf.mxu3  ;;  %v846_v38 = vrot.slane %v844_v26, 1  ;;  %v4988_v37 = vsel %vm1530_vm0, %v4985_v57, %v4987_v29  ;;  %v8525_v26 = vld [vmem:[%s8201_s5 + $0xb0] sm:$0xff] }
 0x10b   : > { %v5730_v44 = vadd.f32 %v5375_v24, %v4287_v40  ;;  %v3152_v40 = vor.u32 %v3151_v34, %v3148_v33  ;;  %v856_v33 = vshrl.u32 %v8500_v53, 16  ;;  %v860_v34 = vshll.u32 %v8522_v25, 16 }
 0x10d   : > { %vm5879_vm7 = vcmp.gt.f32.partialorder %v5730_v44, 0.0  ;;  %v6028_v47 = vmul.f32 0.2, %v5730_v44  ;;  %7452 = vmatmul.msk.bf16.gmra.mxu2 %vm1304_vm1, %v3135_v42  ;;  %v3153_v50 = vsel %vm2983_vm3, %v3143_v4, %v3152_v40 }
 0x10e   : > { %v1580_v52 = vpop.f32.mrf.mxu0 }
 0x10f   : > { %v6177_v51 = vsel %vm5879_vm7, %v5730_v44, %v6028_v47  ;;  %v2124_v58 = vpop.f32.mrf.mxu1  ;;  %v2122_v6 = vadd.f32 %v2121_v39, %v1580_v52  ;;  %v847_v44 = vsel %vm699_vm2, %v842_v36, %v846_v38 }
 0x110   : > { %v6326_v55 = vpack.c.bf16 %v6177_v51, %v6177_v51  ;;  %v3935_v56 = vpop.f32.mrf.mxu2  ;;  %v7990_v51 = vld [vmem:[%s8201_s5 + $0xa8] sm:$0xff] }
 0x111   : > { %v4288_v59 = vadd.f32 %v3935_v56, %v2120_v48  ;;  %v3158_v57 = vshll.u32 %v7990_v51, 16 }
 0x112   : > { %6476 = vst.msk [vmem:[%s8314_s9 + $0x34] sm:$0xf] %vm6462_vm5, %v6326_v55  ;;  %v5380_v60 = vpop.f32.mrf.mxu3  ;;  %7076 = vmatmul.msk.bf16.gmra.mxu1 %vm1304_vm1, %v8434_v9 }
 0x113   : > { %v5731_v63 = vadd.f32 %v5378_v41, %v4288_v59 }
 0x115   : > { %vm5880_vm8 = vcmp.gt.f32.partialorder %v5731_v63, 0.0  ;;  %v6029_v3 = vmul.f32 0.2, %v5731_v63 }
 0x116   : > { %v1583_v7 = vpop.f32.mrf.mxu0 }
 0x117   : > { %v6178_v5 = vsel %vm5880_vm8, %v5731_v63, %v6029_v3  ;;  %7834 = vmatmul.msk.bf16.gmra.mxu3 %vm1304_vm1, %v4986_v1  ;;  %v2126_v11 = vpop.f32.mrf.mxu1  ;;  %v2125_v20 = vadd.f32 %v2124_v58, %v1583_v7  ;;  %v3155_v58 = vshrl.u32 %v7990_v51, 16  ;;  %v4989_v1 = vrot.slane %v8503_v54, 2 }
 0x118   : > { %v6327_v10 = vpack.c.bf16 %v6178_v5, %v6178_v5  ;;  %v3937_v9 = vpop.f32.mrf.mxu2 }
 0x119   : > { %v4289_v12 = vadd.f32 %v3937_v9, %v2122_v6  ;;  %6997 = vmatmul.msk.bf16.gmra.mxu0 %vm1304_vm1, %v839_v8  ;;  %v3157_v5 = vrot.slane %v3155_v58, 1  ;;  %v3160_v6 = vrot.slane %v3158_v57, 2  ;;  %v850_v8 = vor.u32 %v848_v61, %v846_v38  ;;  %v8544_v61 = vld [vmem:[%s8201_s5 + $0xa8] sm:$0xff] }
 0x11a   : > { %6477 = vst.msk [vmem:[%s8314_s9 + $0x38] sm:$0xf] %vm6462_vm5, %v6327_v10  ;;  %v5383_v13 = vpop.f32.mrf.mxu3  ;;  %v854_v10 = vrot.slane %v852_v62, 1  ;;  %v4990_v9 = vsel %vm1530_vm0, %v4987_v29, %v4989_v1  ;;  %v8547_v62 = vld [vmem:[%s8201_s5 + $0xb8] sm:$0xff] }
 0x11b   : > { %v5732_v16 = vadd.f32 %v5380_v60, %v4289_v12  ;;  %v3161_v12 = vor.u32 %v3160_v6, %v3157_v5  ;;  %v864_v5 = vshrl.u32 %v8522_v25, 16  ;;  %v868_v6 = vshll.u32 %v8544_v61, 16 }
 0x11d   : > { %vm5881_vm9 = vcmp.gt.f32.partialorder %v5732_v16, 0.0  ;;  %v6030_v19 = vmul.f32 0.2, %v5732_v16  ;;  %7453 = vmatmul.msk.bf16.gmra.mxu2 %vm1304_vm1, %v3144_v14  ;;  %v3162_v21 = vsel %vm2983_vm3, %v3152_v40, %v3161_v12 }
 0x11e   : > { %v1585_v24 = vpop.f32.mrf.mxu0 }
 0x11f   : > { %v6179_v23 = vsel %vm5881_vm9, %v5732_v16, %v6030_v19  ;;  %v2129_v30 = vpop.f32.mrf.mxu1  ;;  %v2127_v42 = vadd.f32 %v2126_v11, %v1585_v24  ;;  %v855_v16 = vsel %vm699_vm2, %v850_v8, %v854_v10 }
 0x120   : > { %v6328_v27 = vpack.c.bf16 %v6179_v23, %v6179_v23  ;;  %v3940_v28 = vpop.f32.mrf.mxu2  ;;  %v7991_v23 = vld [vmem:[%s8201_s5 + $0xb0] sm:$0xff] }
 0x121   : > { %v4290_v31 = vadd.f32 %v3940_v28, %v2125_v20  ;;  %v3167_v29 = vshll.u32 %v7991_v23, 16 }
 0x122   : > { %6478 = vst.msk [vmem:[%s8314_s9 + $0x3c] sm:$0xf] %vm6462_vm5, %v6328_v27  ;;  %v5385_v32 = vpop.f32.mrf.mxu3  ;;  %7077 = vmatmul.msk.bf16.gmra.mxu1 %vm1304_vm1, %v8456_v45 }
 0x123   : > { %v5733_v35 = vadd.f32 %v5383_v13, %v4290_v31 }
 0x125   : > { %vm5882_vm10 = vcmp.gt.f32.partialorder %v5733_v35, 0.0  ;;  %v6031_v39 = vmul.f32 0.2, %v5733_v35 }
 0x126   : > { %v1588_v43 = vpop.f32.mrf.mxu0 }
 0x127   : > { %v6180_v41 = vsel %vm5882_vm10, %v5733_v35, %v6031_v39  ;;  %7835 = vmatmul.msk.bf16.gmra.mxu3 %vm1304_vm1, %v4988_v37  ;;  %v2131_v47 = vpop.f32.mrf.mxu1  ;;  %v2130_v56 = vadd.f32 %v2129_v30, %v1588_v43  ;;  %v3164_v30 = vshrl.u32 %v7991_v23, 16  ;;  %v4991_v37 = vrot.slane %v8525_v26, 2 }
 0x128   : > { %v6329_v46 = vpack.c.bf16 %v6180_v41, %v6180_v41  ;;  %v3942_v45 = vpop.f32.mrf.mxu2 }
 0x129   : > { %v4291_v48 = vadd.f32 %v3942_v45, %v2127_v42  ;;  %6998 = vmatmul.msk.bf16.gmra.mxu0 %vm1304_vm1, %v847_v44  ;;  %v3166_v41 = vrot.slane %v3164_v30, 1  ;;  %v3169_v42 = vrot.slane %v3167_v29, 2  ;;  %v858_v44 = vor.u32 %v856_v33, %v854_v10  ;;  %v8566_v33 = vld [vmem:[%s8201_s5 + $0xb0] sm:$0xff] }
 0x12a   : > { %6479 = vst.msk [vmem:[%s8314_s9 + $0x40] sm:$0xf] %vm6462_vm5, %v6329_v46  ;;  %v5388_v49 = vpop.f32.mrf.mxu3  ;;  %v862_v46 = vrot.slane %v860_v34, 1  ;;  %v4992_v45 = vsel %vm1530_vm0, %v4989_v1, %v4991_v37  ;;  %v8569_v34 = vld [vmem:[%s8201_s5 + $0xc0] sm:$0xff] }
 0x12b   : > { %v5734_v52 = vadd.f32 %v5385_v32, %v4291_v48  ;;  %v3170_v48 = vor.u32 %v3169_v42, %v3166_v41  ;;  %v872_v41 = vshrl.u32 %v8544_v61, 16  ;;  %v876_v42 = vshll.u32 %v8566_v33, 16 }
 0x12d   : > { %vm5883_vm11 = vcmp.gt.f32.partialorder %v5734_v52, 0.0  ;;  %v6032_v55 = vmul.f32 0.2, %v5734_v52  ;;  %7454 = vmatmul.msk.bf16.gmra.mxu2 %vm1304_vm1, %v3153_v50  ;;  %v3171_v57 = vsel %vm2983_vm3, %v3161_v12, %v3170_v48 }
 0x12e   : > { %v1590_v60 = vpop.f32.mrf.mxu0 }
 0x12f   : > { %v6181_v59 = vsel %vm5883_vm11, %v5734_v52, %v6032_v55  ;;  %v2134_v2 = vpop.f32.mrf.mxu1  ;;  %v2132_v14 = vadd.f32 %v2131_v47, %v1590_v60  ;;  %v863_v52 = vsel %vm699_vm2, %v858_v44, %v862_v46 }
 0x130   : > { %v6330_v63 = vpack.c.bf16 %v6181_v59, %v6181_v59  ;;  %v3945_v0 = vpop.f32.mrf.mxu2  ;;  %v7992_v59 = vld [vmem:[%s8201_s5 + $0xb8] sm:$0xff] }
 0x131   : > { %v4292_v3 = vadd.f32 %v3945_v0, %v2130_v56  ;;  %v3176_v1 = vshll.u32 %v7992_v59, 16 }
 0x132   : > { %6480 = vst.msk [vmem:[%s8314_s9 + $0x44] sm:$0xf] %vm6462_vm5, %v6330_v63  ;;  %v5390_v4 = vpop.f32.mrf.mxu3  ;;  %7078 = vmatmul.msk.bf16.gmra.mxu1 %vm1304_vm1, %v8478_v17 }
 0x133   : > { %v5735_v7 = vadd.f32 %v5388_v49, %v4292_v3 }
 0x135   : > { %vm5884_vm12 = vcmp.gt.f32.partialorder %v5735_v7, 0.0  ;;  %v6033_v11 = vmul.f32 0.2, %v5735_v7 }
 0x136   : > { %v1593_v15 = vpop.f32.mrf.mxu0 }
 0x137   : > { %v6182_v13 = vsel %vm5884_vm12, %v5735_v7, %v6033_v11  ;;  %7836 = vmatmul.msk.bf16.gmra.mxu3 %vm1304_vm1, %v4990_v9  ;;  %v2136_v19 = vpop.f32.mrf.mxu1  ;;  %v2135_v28 = vadd.f32 %v2134_v2, %v1593_v15  ;;  %v3173_v2 = vshrl.u32 %v7992_v59, 16  ;;  %v4993_v9 = vrot.slane %v8547_v62, 2 }
 0x138   : > { %v6331_v18 = vpack.c.bf16 %v6182_v13, %v6182_v13  ;;  %v3947_v17 = vpop.f32.mrf.mxu2 }
 0x139   : > { %v4293_v20 = vadd.f32 %v3947_v17, %v2132_v14  ;;  %6999 = vmatmul.msk.bf16.gmra.mxu0 %vm1304_vm1, %v855_v16  ;;  %v3175_v13 = vrot.slane %v3173_v2, 1  ;;  %v3178_v14 = vrot.slane %v3176_v1, 2  ;;  %v866_v16 = vor.u32 %v864_v5, %v862_v46  ;;  %v8588_v5 = vld [vmem:[%s8201_s5 + $0xb8] sm:$0xff] }
 0x13a   : > { %6481 = vst.msk [vmem:[%s8314_s9 + $0x48] sm:$0xf] %vm6462_vm5, %v6331_v18  ;;  %v5393_v22 = vpop.f32.mrf.mxu3  ;;  %v870_v18 = vrot.slane %v868_v6, 1  ;;  %v4994_v17 = vsel %vm1530_vm0, %v4991_v37, %v4993_v9  ;;  %v8591_v6 = vld [vmem:[%s8201_s5 + $0xc8] sm:$0xff] }
 0x13b   : > { %v5736_v24 = vadd.f32 %v5390_v4, %v4293_v20  ;;  %v3179_v20 = vor.u32 %v3178_v14, %v3175_v13  ;;  %v880_v13 = vshrl.u32 %v8566_v33, 16  ;;  %v884_v14 = vshll.u32 %v8588_v5, 16 }
 0x13d   : > { %vm5885_vm13 = vcmp.gt.f32.partialorder %v5736_v24, 0.0  ;;  %v6034_v27 = vmul.f32 0.2, %v5736_v24  ;;  %7455 = vmatmul.msk.bf16.gmra.mxu2 %vm1304_vm1, %v3162_v21  ;;  %v3180_v29 = vsel %vm2983_vm3, %v3170_v48, %v3179_v20 }
 0x13e   : > { %v1595_v32 = vpop.f32.mrf.mxu0 }
 0x13f   : > { %v6183_v31 = vsel %vm5885_vm13, %v5736_v24, %v6034_v27  ;;  %v2139_v38 = vpop.f32.mrf.mxu1  ;;  %v2137_v50 = vadd.f32 %v2136_v19, %v1595_v32  ;;  %v871_v24 = vsel %vm699_vm2, %v866_v16, %v870_v18 }
 0x140   : > { %v6332_v35 = vpack.c.bf16 %v6183_v31, %v6183_v31  ;;  %v3950_v36 = vpop.f32.mrf.mxu2  ;;  %v7993_v31 = vld [vmem:[%s8201_s5 + $0xc0] sm:$0xff] }
 0x141   : > { %v4294_v39 = vadd.f32 %v3950_v36, %v2135_v28  ;;  %v3185_v37 = vshll.u32 %v7993_v31, 16 }
 0x142   : > { %6482 = vst.msk [vmem:[%s8314_s9 + $0x4c] sm:$0xf] %vm6462_vm5, %v6332_v35  ;;  %v5395_v40 = vpop.f32.mrf.mxu3  ;;  %7079 = vmatmul.msk.bf16.gmra.mxu1 %vm1304_vm1, %v8500_v53 }
 0x143   : > { %v5737_v43 = vadd.f32 %v5393_v22, %v4294_v39 }
 0x145   : > { %vm5886_vm14 = vcmp.gt.f32.partialorder %v5737_v43, 0.0  ;;  %v6035_v47 = vmul.f32 0.2, %v5737_v43 }
 0x146   : > { %v1598_v51 = vpop.f32.mrf.mxu0 }
 0x147   : > { %v6184_v49 = vsel %vm5886_vm14, %v5737_v43, %v6035_v47  ;;  %7837 = vmatmul.msk.bf16.gmra.mxu3 %vm1304_vm1, %v4992_v45  ;;  %v2141_v55 = vpop.f32.mrf.mxu1  ;;  %v2140_v0 = vadd.f32 %v2139_v38, %v1598_v51  ;;  %v3182_v38 = vshrl.u32 %v7993_v31, 16  ;;  %v4995_v45 = vrot.slane %v8569_v34, 2 }
 0x148   : > { %v6333_v54 = vpack.c.bf16 %v6184_v49, %v6184_v49  ;;  %v3952_v53 = vpop.f32.mrf.mxu2 }
 0x149   : > { %v4295_v56 = vadd.f32 %v3952_v53, %v2137_v50  ;;  %7000 = vmatmul.msk.bf16.gmra.mxu0 %vm1304_vm1, %v863_v52  ;;  %v3184_v49 = vrot.slane %v3182_v38, 1  ;;  %v3187_v50 = vrot.slane %v3185_v37, 2  ;;  %v874_v52 = vor.u32 %v872_v41, %v870_v18  ;;  %v8610_v41 = vld [vmem:[%s8201_s5 + $0xc0] sm:$0xff] }
 0x14a   : > { %6483 = vst.msk [vmem:[%s8314_s9 + $0x50] sm:$0xf] %vm6462_vm5, %v6333_v54  ;;  %v5398_v58 = vpop.f32.mrf.mxu3  ;;  %v878_v54 = vrot.slane %v876_v42, 1  ;;  %v4996_v53 = vsel %vm1530_vm0, %v4993_v9, %v4995_v45  ;;  %v8613_v42 = vld [vmem:[%s8201_s5 + $0xd0] sm:$0xff] }
 0x14b   : > { %v5738_v60 = vadd.f32 %v5395_v40, %v4295_v56  ;;  %v3188_v56 = vor.u32 %v3187_v50, %v3184_v49  ;;  %v888_v49 = vshrl.u32 %v8588_v5, 16  ;;  %v892_v50 = vshll.u32 %v8610_v41, 16 }
 0x14d   : > { %vm5887_vm15 = vcmp.gt.f32.partialorder %v5738_v60, 0.0  ;;  %v6036_v63 = vmul.f32 0.2, %v5738_v60  ;;  %7456 = vmatmul.msk.bf16.gmra.mxu2 %vm1304_vm1, %v3171_v57  ;;  %v3189_v1 = vsel %vm2983_vm3, %v3179_v20, %v3188_v56 }
 0x14e   : > { %v1600_v4 = vpop.f32.mrf.mxu0 }
 0x14f   : > { %v6185_v3 = vsel %vm5887_vm15, %v5738_v60, %v6036_v63  ;;  %v2144_v10 = vpop.f32.mrf.mxu1  ;;  %v2142_v21 = vadd.f32 %v2141_v55, %v1600_v4  ;;  %v879_v60 = vsel %vm699_vm2, %v874_v52, %v878_v54 }
 0x150   : > { %v6334_v7 = vpack.c.bf16 %v6185_v3, %v6185_v3  ;;  %v3955_v8 = vpop.f32.mrf.mxu2  ;;  %v7994_v3 = vld [vmem:[%s8201_s5 + $0xc8] sm:$0xff] }
 0x151   : > { %v4296_v11 = vadd.f32 %v3955_v8, %v2140_v0  ;;  %v3194_v9 = vshll.u32 %v7994_v3, 16 }
 0x152   : > { %6484 = vst.msk [vmem:[%s8314_s9 + $0x54] sm:$0xf] %vm6462_vm5, %v6334_v7  ;;  %v5400_v12 = vpop.f32.mrf.mxu3  ;;  %7080 = vmatmul.msk.bf16.gmra.mxu1 %vm1304_vm1, %v8522_v25 }
 0x153   : > { %v5739_v15 = vadd.f32 %v5398_v58, %v4296_v11 }
 0x155   : > { %vm5888_vm4 = vcmp.gt.f32.partialorder %v5739_v15, 0.0  ;;  %v6037_v19 = vmul.f32 0.2, %v5739_v15 }
 0x156   : > { %v1603_v23 = vpop.f32.mrf.mxu0 }
 0x157   : > { %v6186_v22 = vsel %vm5888_vm4, %v5739_v15, %v6037_v19  ;;  %7838 = vmatmul.msk.bf16.gmra.mxu3 %vm1304_vm1, %v4994_v17  ;;  %v2146_v27 = vpop.f32.mrf.mxu1  ;;  %v2145_v36 = vadd.f32 %v2144_v10, %v1603_v23  ;;  %v3191_v10 = vshrl.u32 %v7994_v3, 16  ;;  %v4997_v17 = vrot.slane %v8591_v6, 2 }
 0x158   : > { %v6335_v26 = vpack.c.bf16 %v6186_v22, %v6186_v22  ;;  %v3957_v25 = vpop.f32.mrf.mxu2 }
 0x159   : > { %v4297_v28 = vadd.f32 %v3957_v25, %v2142_v21  ;;  %7001 = vmatmul.msk.bf16.gmra.mxu0 %vm1304_vm1, %v871_v24  ;;  %v3193_v22 = vrot.slane %v3191_v10, 1  ;;  %v3196_v21 = vrot.slane %v3194_v9, 2  ;;  %v882_v24 = vor.u32 %v880_v13, %v878_v54  ;;  %v8632_v13 = vld [vmem:[%s8201_s5 + $0xc8] sm:$0xff] }
 0x15a   : > { %6485 = vst.msk [vmem:[%s8314_s9 + $0x58] sm:$0xf] %vm6462_vm5, %v6335_v26  ;;  %v5403_v30 = vpop.f32.mrf.mxu3  ;;  %v886_v26 = vrot.slane %v884_v14, 1  ;;  %v4998_v25 = vsel %vm1530_vm0, %v4995_v45, %v4997_v17  ;;  %v8635_v14 = vld [vmem:[%s8201_s5 + $0xd8] sm:$0xff] }
 0x15b   : > { %v5740_v32 = vadd.f32 %v5400_v12, %v4297_v28  ;;  %v3197_v28 = vor.u32 %v3196_v21, %v3193_v22  ;;  %v896_v22 = vshrl.u32 %v8610_v41, 16  ;;  %v900_v21 = vshll.u32 %v8632_v13, 16 }
 0x15d   : > { %vm5889_vm6 = vcmp.gt.f32.partialorder %v5740_v32, 0.0  ;;  %v6038_v35 = vmul.f32 0.2, %v5740_v32  ;;  %7457 = vmatmul.msk.bf16.gmra.mxu2 %vm1304_vm1, %v3180_v29  ;;  %v3198_v37 = vsel %vm2983_vm3, %v3188_v56, %v3197_v28 }
 0x15e   : > { %v1605_v40 = vpop.f32.mrf.mxu0 }
 0x15f   : > { %v6187_v39 = vsel %vm5889_vm6, %v5740_v32, %v6038_v35  ;;  %v2149_v46 = vpop.f32.mrf.mxu1  ;;  %v2147_v57 = vadd.f32 %v2146_v27, %v1605_v40  ;;  %v887_v32 = vsel %vm699_vm2, %v882_v24, %v886_v26 }
 0x160   : > { %v6336_v43 = vpack.c.bf16 %v6187_v39, %v6187_v39  ;;  %v3960_v44 = vpop.f32.mrf.mxu2  ;;  %v7995_v39 = vld [vmem:[%s8201_s5 + $0xd0] sm:$0xff] }
 0x161   : > { %v4298_v47 = vadd.f32 %v3960_v44, %v2145_v36  ;;  %v3203_v45 = vshll.u32 %v7995_v39, 16 }
 0x162   : > { %6486 = vst.msk [vmem:[%s8314_s9 + $0x5c] sm:$0xf] %vm6462_vm5, %v6336_v43  ;;  %v5405_v48 = vpop.f32.mrf.mxu3  ;;  %7081 = vmatmul.msk.bf16.gmra.mxu1 %vm1304_vm1, %v8544_v61 }
 0x163   : > { %v5741_v51 = vadd.f32 %v5403_v30, %v4298_v47 }
 0x165   : > { %vm5890_vm7 = vcmp.gt.f32.partialorder %v5741_v51, 0.0  ;;  %v6039_v55 = vmul.f32 0.2, %v5741_v51 }
 0x166   : > { %v1608_v59 = vpop.f32.mrf.mxu0 }
 0x167   : > { %v6188_v58 = vsel %vm5890_vm7, %v5741_v51, %v6039_v55  ;;  %7839 = vmatmul.msk.bf16.gmra.mxu3 %vm1304_vm1, %v4996_v53  ;;  %v2151_v63 = vpop.f32.mrf.mxu1  ;;  %v2150_v8 = vadd.f32 %v2149_v46, %v1608_v59  ;;  %v3200_v46 = vshrl.u32 %v7995_v39, 16  ;;  %v4999_v53 = vrot.slane %v8613_v42, 2 }
 0x168   : > { %v6337_v62 = vpack.c.bf16 %v6188_v58, %v6188_v58  ;;  %v3962_v61 = vpop.f32.mrf.mxu2 }
 0x169   : > { %v4299_v0 = vadd.f32 %v3962_v61, %v2147_v57  ;;  %7002 = vmatmul.msk.bf16.gmra.mxu0 %vm1304_vm1, %v879_v60  ;;  %v3202_v58 = vrot.slane %v3200_v46, 1  ;;  %v3205_v57 = vrot.slane %v3203_v45, 2  ;;  %v890_v60 = vor.u32 %v888_v49, %v886_v26  ;;  %v8654_v49 = vld [vmem:[%s8201_s5 + $0xd0] sm:$0xff] }
 0x16a   : > { %6487 = vst.msk [vmem:[%s8314_s9 + $0x60] sm:$0xf] %vm6462_vm5, %v6337_v62  ;;  %v5408_v2 = vpop.f32.mrf.mxu3  ;;  %v894_v62 = vrot.slane %v892_v50, 1  ;;  %v5000_v61 = vsel %vm1530_vm0, %v4997_v17, %v4999_v53  ;;  %v8657_v50 = vld [vmem:[%s8201_s5 + $0xe0] sm:$0xff] }
 0x16b   : > { %v5742_v4 = vadd.f32 %v5405_v48, %v4299_v0  ;;  %v3206_v0 = vor.u32 %v3205_v57, %v3202_v58  ;;  %v904_v58 = vshrl.u32 %v8632_v13, 16  ;;  %v908_v57 = vshll.u32 %v8654_v49, 16 }
 0x16d   : > { %vm5891_vm8 = vcmp.gt.f32.partialorder %v5742_v4, 0.0  ;;  %v6040_v7 = vmul.f32 0.2, %v5742_v4  ;;  %7458 = vmatmul.msk.bf16.gmra.mxu2 %vm1304_vm1, %v3189_v1  ;;  %v3207_v9 = vsel %vm2983_vm3, %v3197_v28, %v3206_v0 }
 0x16e   : > { %v1610_v12 = vpop.f32.mrf.mxu0 }
 0x16f   : > { %v6189_v11 = vsel %vm5891_vm8, %v5742_v4, %v6040_v7  ;;  %v2154_v18 = vpop.f32.mrf.mxu1  ;;  %v2152_v29 = vadd.f32 %v2151_v63, %v1610_v12  ;;  %v895_v4 = vsel %vm699_vm2, %v890_v60, %v894_v62 }
 0x170   : > { %v6338_v15 = vpack.c.bf16 %v6189_v11, %v6189_v11  ;;  %v3965_v16 = vpop.f32.mrf.mxu2  ;;  %v7996_v11 = vld [vmem:[%s8201_s5 + $0xd8] sm:$0xff] }
 0x171   : > { %v4300_v19 = vadd.f32 %v3965_v16, %v2150_v8  ;;  %v3212_v17 = vshll.u32 %v7996_v11, 16 }
 0x172   : > { %6488 = vst.msk [vmem:[%s8314_s9 + $0x64] sm:$0xf] %vm6462_vm5, %v6338_v15  ;;  %v5410_v20 = vpop.f32.mrf.mxu3  ;;  %7082 = vmatmul.msk.bf16.gmra.mxu1 %vm1304_vm1, %v8566_v33 }
 0x173   : > { %v5743_v23 = vadd.f32 %v5408_v2, %v4300_v19 }
 0x175   : > { %vm5892_vm9 = vcmp.gt.f32.partialorder %v5743_v23, 0.0  ;;  %v6041_v27 = vmul.f32 0.2, %v5743_v23 }
 0x176   : > { %v1613_v31 = vpop.f32.mrf.mxu0 }
 0x177   : > { %v6190_v30 = vsel %vm5892_vm9, %v5743_v23, %v6041_v27  ;;  %7840 = vmatmul.msk.bf16.gmra.mxu3 %vm1304_vm1, %v4998_v25  ;;  %v2156_v35 = vpop.f32.mrf.mxu1  ;;  %v2155_v44 = vadd.f32 %v2154_v18, %v1613_v31  ;;  %v3209_v18 = vshrl.u32 %v7996_v11, 16  ;;  %v5001_v25 = vrot.slane %v8635_v14, 2 }
 0x178   : > { %v6339_v34 = vpack.c.bf16 %v6190_v30, %v6190_v30  ;;  %v3967_v33 = vpop.f32.mrf.mxu2 }
 0x179   : > { %v4301_v36 = vadd.f32 %v3967_v33, %v2152_v29  ;;  %7003 = vmatmul.msk.bf16.gmra.mxu0 %vm1304_vm1, %v887_v32  ;;  %v3211_v30 = vrot.slane %v3209_v18, 1  ;;  %v3214_v29 = vrot.slane %v3212_v17, 2  ;;  %v898_v32 = vor.u32 %v896_v22, %v894_v62  ;;  %v8676_v22 = vld [vmem:[%s8201_s5 + $0xd8] sm:$0xff] }
 0x17a   : > { %6489 = vst.msk [vmem:[%s8314_s9 + $0x68] sm:$0xf] %vm6462_vm5, %v6339_v34  ;;  %v5413_v38 = vpop.f32.mrf.mxu3  ;;  %v902_v34 = vrot.slane %v900_v21, 1  ;;  %v5002_v33 = vsel %vm1530_vm0, %v4999_v53, %v5001_v25  ;;  %v8679_v21 = vld [vmem:[%s8201_s5 + $0xe8] sm:$0xff] }
 0x17b   : > { %v5744_v40 = vadd.f32 %v5410_v20, %v4301_v36  ;;  %v3215_v36 = vor.u32 %v3214_v29, %v3211_v30  ;;  %v912_v30 = vshrl.u32 %v8654_v49, 16  ;;  %v916_v29 = vshll.u32 %v8676_v22, 16 }
 0x17d   : > { %vm5893_vm10 = vcmp.gt.f32.partialorder %v5744_v40, 0.0  ;;  %v6042_v43 = vmul.f32 0.2, %v5744_v40  ;;  %7459 = vmatmul.msk.bf16.gmra.mxu2 %vm1304_vm1, %v3198_v37  ;;  %v3216_v45 = vsel %vm2983_vm3, %v3206_v0, %v3215_v36 }
 0x17e   : > { %v1615_v48 = vpop.f32.mrf.mxu0 }
 0x17f   : > { %v6191_v47 = vsel %vm5893_vm10, %v5744_v40, %v6042_v43  ;;  %v2159_v54 = vpop.f32.mrf.mxu1  ;;  %v2157_v1 = vadd.f32 %v2156_v35, %v1615_v48  ;;  %v903_v40 = vsel %vm699_vm2, %v898_v32, %v902_v34 }
 0x180   : > { %v6340_v51 = vpack.c.bf16 %v6191_v47, %v6191_v47  ;;  %v3970_v52 = vpop.f32.mrf.mxu2  ;;  %v7997_v47 = vld [vmem:[%s8201_s5 + $0xe0] sm:$0xff] }
 0x181   : > { %v4302_v55 = vadd.f32 %v3970_v52, %v2155_v44  ;;  %v3221_v53 = vshll.u32 %v7997_v47, 16 }
 0x182   : > { %6490 = vst.msk [vmem:[%s8314_s9 + $0x6c] sm:$0xf] %vm6462_vm5, %v6340_v51  ;;  %v5415_v56 = vpop.f32.mrf.mxu3  ;;  %7083 = vmatmul.msk.bf16.gmra.mxu1 %vm1304_vm1, %v8588_v5 }
 0x183   : > { %v5745_v59 = vadd.f32 %v5413_v38, %v4302_v55 }
 0x185   : > { %vm5894_vm11 = vcmp.gt.f32.partialorder %v5745_v59, 0.0  ;;  %v6043_v63 = vmul.f32 0.2, %v5745_v59 }
 0x186   : > { %v1618_v3 = vpop.f32.mrf.mxu0 }
 0x187   : > { %v6192_v2 = vsel %vm5894_vm11, %v5745_v59, %v6043_v63  ;;  %7841 = vmatmul.msk.bf16.gmra.mxu3 %vm1304_vm1, %v5000_v61  ;;  %v2161_v7 = vpop.f32.mrf.mxu1  ;;  %v2160_v16 = vadd.f32 %v2159_v54, %v1618_v3  ;;  %v3218_v54 = vshrl.u32 %v7997_v47, 16  ;;  %v5003_v61 = vrot.slane %v8657_v50, 2 }
 0x188   : > { %v6341_v6 = vpack.c.bf16 %v6192_v2, %v6192_v2  ;;  %v3972_v5 = vpop.f32.mrf.mxu2 }
 0x189   : > { %v4303_v8 = vadd.f32 %v3972_v5, %v2157_v1  ;;  %7004 = vmatmul.msk.bf16.gmra.mxu0 %vm1304_vm1, %v895_v4  ;;  %v3220_v2 = vrot.slane %v3218_v54, 1  ;;  %v3223_v1 = vrot.slane %v3221_v53, 2  ;;  %v906_v4 = vor.u32 %v904_v58, %v902_v34  ;;  %v8698_v58 = vld [vmem:[%s8201_s5 + $0xe0] sm:$0xff] }
 0x18a   : > { %6491 = vst.msk [vmem:[%s8314_s9 + $0x70] sm:$0xf] %vm6462_vm5, %v6341_v6  ;;  %v5418_v10 = vpop.f32.mrf.mxu3  ;;  %v910_v6 = vrot.slane %v908_v57, 1  ;;  %v5004_v5 = vsel %vm1530_vm0, %v5001_v25, %v5003_v61  ;;  %v8701_v57 = vld [vmem:[%s8201_s5 + $0xf0] sm:$0xff] }
 0x18b   : > { %v5746_v12 = vadd.f32 %v5415_v56, %v4303_v8  ;;  %v3224_v8 = vor.u32 %v3223_v1, %v3220_v2  ;;  %v920_v2 = vshrl.u32 %v8676_v22, 16  ;;  %v924_v1 = vshll.u32 %v8698_v58, 16 }
 0x18d   : > { %vm5895_vm12 = vcmp.gt.f32.partialorder %v5746_v12, 0.0  ;;  %v6044_v15 = vmul.f32 0.2, %v5746_v12  ;;  %7460 = vmatmul.msk.bf16.gmra.mxu2 %vm1304_vm1, %v3207_v9  ;;  %v3225_v17 = vsel %vm2983_vm3, %v3215_v36, %v3224_v8 }
 0x18e   : > { %v1620_v20 = vpop.f32.mrf.mxu0 }
 0x18f   : > { %v6193_v19 = vsel %vm5895_vm12, %v5746_v12, %v6044_v15  ;;  %v2164_v26 = vpop.f32.mrf.mxu1  ;;  %v2162_v37 = vadd.f32 %v2161_v7, %v1620_v20  ;;  %v911_v12 = vsel %vm699_vm2, %v906_v4, %v910_v6 }
 0x190   : > { %v6342_v23 = vpack.c.bf16 %v6193_v19, %v6193_v19  ;;  %v3975_v24 = vpop.f32.mrf.mxu2  ;;  %v7998_v19 = vld [vmem:[%s8201_s5 + $0xe8] sm:$0xff] }
 0x191   : > { %v4304_v27 = vadd.f32 %v3975_v24, %v2160_v16  ;;  %v3230_v25 = vshll.u32 %v7998_v19, 16 }
 0x192   : > { %6492 = vst.msk [vmem:[%s8314_s9 + $0x74] sm:$0xf] %vm6462_vm5, %v6342_v23  ;;  %v5420_v28 = vpop.f32.mrf.mxu3  ;;  %7084 = vmatmul.msk.bf16.gmra.mxu1 %vm1304_vm1, %v8610_v41 }
 0x193   : > { %v5747_v31 = vadd.f32 %v5418_v10, %v4304_v27 }
 0x195   : > { %vm5896_vm13 = vcmp.gt.f32.partialorder %v5747_v31, 0.0  ;;  %v6045_v35 = vmul.f32 0.2, %v5747_v31 }
 0x196   : > { %v1623_v39 = vpop.f32.mrf.mxu0 }
 0x197   : > { %v6194_v38 = vsel %vm5896_vm13, %v5747_v31, %v6045_v35  ;;  %7842 = vmatmul.msk.bf16.gmra.mxu3 %vm1304_vm1, %v5002_v33  ;;  %v2166_v43 = vpop.f32.mrf.mxu1  ;;  %v2165_v52 = vadd.f32 %v2164_v26, %v1623_v39  ;;  %v3227_v26 = vshrl.u32 %v7998_v19, 16  ;;  %v5005_v33 = vrot.slane %v8679_v21, 2 }
 0x198   : > { %v6343_v42 = vpack.c.bf16 %v6194_v38, %v6194_v38  ;;  %v3977_v41 = vpop.f32.mrf.mxu2 }
 0x199   : > { %v4305_v44 = vadd.f32 %v3977_v41, %v2162_v37  ;;  %7005 = vmatmul.msk.bf16.gmra.mxu0 %vm1304_vm1, %v903_v40  ;;  %v3229_v38 = vrot.slane %v3227_v26, 1  ;;  %v3232_v37 = vrot.slane %v3230_v25, 2  ;;  %v914_v40 = vor.u32 %v912_v30, %v910_v6  ;;  %v8720_v30 = vld [vmem:[%s8201_s5 + $0xe8] sm:$0xff] }
 0x19a   : > { %6493 = vst.msk [vmem:[%s8314_s9 + $0x78] sm:$0xf] %vm6462_vm5, %v6343_v42  ;;  %v5423_v46 = vpop.f32.mrf.mxu3  ;;  %v918_v42 = vrot.slane %v916_v29, 1  ;;  %v5006_v41 = vsel %vm1530_vm0, %v5003_v61, %v5005_v33  ;;  %v8723_v29 = vld [vmem:[%s8201_s5 + $0xf8] sm:$0xff] }
 0x19b   : > { %v5748_v48 = vadd.f32 %v5420_v28, %v4305_v44  ;;  %v3233_v44 = vor.u32 %v3232_v37, %v3229_v38  ;;  %v928_v38 = vshrl.u32 %v8698_v58, 16  ;;  %v932_v37 = vshll.u32 %v8720_v30, 16 }
 0x19d   : > { %vm5897_vm14 = vcmp.gt.f32.partialorder %v5748_v48, 0.0  ;;  %v6046_v51 = vmul.f32 0.2, %v5748_v48  ;;  %7461 = vmatmul.msk.bf16.gmra.mxu2 %vm1304_vm1, %v3216_v45  ;;  %v3234_v53 = vsel %vm2983_vm3, %v3224_v8, %v3233_v44 }
 0x19e   : > { %v1625_v56 = vpop.f32.mrf.mxu0 }
 0x19f   : > { %v6195_v55 = vsel %vm5897_vm14, %v5748_v48, %v6046_v51  ;;  %v2169_v62 = vpop.f32.mrf.mxu1  ;;  %v2167_v9 = vadd.f32 %v2166_v43, %v1625_v56  ;;  %v919_v48 = vsel %vm699_vm2, %v914_v40, %v918_v42 }
 0x1a0   : > { %v6344_v59 = vpack.c.bf16 %v6195_v55, %v6195_v55  ;;  %v3980_v60 = vpop.f32.mrf.mxu2  ;;  %v7999_v55 = vld [vmem:[%s8201_s5 + $0xf0] sm:$0xff] }
 0x1a1   : > { %v4306_v63 = vadd.f32 %v3980_v60, %v2165_v52  ;;  %v3239_v61 = vshll.u32 %v7999_v55, 16 }
 0x1a2   : > { %6494 = vst.msk [vmem:[%s8314_s9 + $0x7c] sm:$0xf] %vm6462_vm5, %v6344_v59  ;;  %v5425_v0 = vpop.f32.mrf.mxu3  ;;  %7085 = vmatmul.msk.bf16.gmra.mxu1 %vm1304_vm1, %v8632_v13 }
 0x1a3   : > { %v5749_v3 = vadd.f32 %v5423_v46, %v4306_v63 }
 0x1a5   : > { %vm5898_vm15 = vcmp.gt.f32.partialorder %v5749_v3, 0.0  ;;  %v6047_v7 = vmul.f32 0.2, %v5749_v3 }
 0x1a6   : > { %v1628_v11 = vpop.f32.mrf.mxu0 }
 0x1a7   : > { %v6196_v10 = vsel %vm5898_vm15, %v5749_v3, %v6047_v7  ;;  %7843 = vmatmul.msk.bf16.gmra.mxu3 %vm1304_vm1, %v5004_v5  ;;  %v2171_v15 = vpop.f32.mrf.mxu1  ;;  %v2170_v24 = vadd.f32 %v2169_v62, %v1628_v11  ;;  %v3236_v62 = vshrl.u32 %v7999_v55, 16  ;;  %v5007_v5 = vrot.slane %v8701_v57, 2 }
 0x1a8   : > { %v6345_v14 = vpack.c.bf16 %v6196_v10, %v6196_v10  ;;  %v3982_v13 = vpop.f32.mrf.mxu2 }
 0x1a9   : > { %v4307_v16 = vadd.f32 %v3982_v13, %v2167_v9  ;;  %7006 = vmatmul.msk.bf16.gmra.mxu0 %vm1304_vm1, %v911_v12  ;;  %v3238_v10 = vrot.slane %v3236_v62, 1  ;;  %v3241_v9 = vrot.slane %v3239_v61, 2  ;;  %v922_v12 = vor.u32 %v920_v2, %v918_v42  ;;  %v8742_v2 = vld [vmem:[%s8201_s5 + $0xf0] sm:$0xff] }
 0x1aa   : > { %6495 = vst.msk [vmem:[%s8314_s9 + $0x80] sm:$0xf] %vm6462_vm5, %v6345_v14  ;;  %v5428_v18 = vpop.f32.mrf.mxu3  ;;  %v926_v14 = vrot.slane %v924_v1, 1  ;;  %v5008_v13 = vsel %vm1530_vm0, %v5005_v33, %v5007_v5  ;;  %v8745_v1 = vld [vmem:[%s8201_s5 + $0x100] sm:$0xff] }
 0x1ab   : > { %v5750_v20 = vadd.f32 %v5425_v0, %v4307_v16  ;;  %v3242_v16 = vor.u32 %v3241_v9, %v3238_v10  ;;  %v936_v10 = vshrl.u32 %v8720_v30, 16  ;;  %v940_v9 = vshll.u32 %v8742_v2, 16 }
 0x1ad   : > { %vm5899_vm4 = vcmp.gt.f32.partialorder %v5750_v20, 0.0  ;;  %v6048_v23 = vmul.f32 0.2, %v5750_v20  ;;  %7462 = vmatmul.msk.bf16.gmra.mxu2 %vm1304_vm1, %v3225_v17  ;;  %v3243_v25 = vsel %vm2983_vm3, %v3233_v44, %v3242_v16 }
 0x1ae   : > { %v1630_v28 = vpop.f32.mrf.mxu0 }
 0x1af   : > { %v6197_v27 = vsel %vm5899_vm4, %v5750_v20, %v6048_v23  ;;  %v2174_v34 = vpop.f32.mrf.mxu1  ;;  %v2172_v45 = vadd.f32 %v2171_v15, %v1630_v28  ;;  %v927_v20 = vsel %vm699_vm2, %v922_v12, %v926_v14 }
 0x1b0   : > { %v6346_v31 = vpack.c.bf16 %v6197_v27, %v6197_v27  ;;  %v3985_v32 = vpop.f32.mrf.mxu2  ;;  %v8000_v27 = vld [vmem:[%s8201_s5 + $0xf8] sm:$0xff] }
 0x1b1   : > { %v4308_v35 = vadd.f32 %v3985_v32, %v2170_v24  ;;  %v3248_v33 = vshll.u32 %v8000_v27, 16 }
 0x1b2   : > { %6496 = vst.msk [vmem:[%s8314_s9 + $0x84] sm:$0xf] %vm6462_vm5, %v6346_v31  ;;  %v5430_v36 = vpop.f32.mrf.mxu3  ;;  %7086 = vmatmul.msk.bf16.gmra.mxu1 %vm1304_vm1, %v8654_v49 }
 0x1b3   : > { %v5751_v39 = vadd.f32 %v5428_v18, %v4308_v35 }
 0x1b5   : > { %vm5900_vm6 = vcmp.gt.f32.partialorder %v5751_v39, 0.0  ;;  %v6049_v43 = vmul.f32 0.2, %v5751_v39 }
 0x1b6   : > { %v1633_v47 = vpop.f32.mrf.mxu0 }
 0x1b7   : > { %v6198_v46 = vsel %vm5900_vm6, %v5751_v39, %v6049_v43  ;;  %7844 = vmatmul.msk.bf16.gmra.mxu3 %vm1304_vm1, %v5006_v41  ;;  %v2176_v51 = vpop.f32.mrf.mxu1  ;;  %v2175_v60 = vadd.f32 %v2174_v34, %v1633_v47  ;;  %v3245_v34 = vshrl.u32 %v8000_v27, 16  ;;  %v5009_v41 = vrot.slane %v8723_v29, 2 }
 0x1b8   : > { %v6347_v50 = vpack.c.bf16 %v6198_v46, %v6198_v46  ;;  %v3987_v49 = vpop.f32.mrf.mxu2 }
 0x1b9   : > { %v4309_v52 = vadd.f32 %v3987_v49, %v2172_v45  ;;  %7007 = vmatmul.msk.bf16.gmra.mxu0 %vm1304_vm1, %v919_v48  ;;  %v3247_v46 = vrot.slane %v3245_v34, 1  ;;  %v3250_v45 = vrot.slane %v3248_v33, 2  ;;  %v930_v48 = vor.u32 %v928_v38, %v926_v14  ;;  %v8764_v38 = vld [vmem:[%s8201_s5 + $0xf8] sm:$0xff] }
 0x1ba   : > { %6497 = vst.msk [vmem:[%s8314_s9 + $0x88] sm:$0xf] %vm6462_vm5, %v6347_v50  ;;  %v5433_v54 = vpop.f32.mrf.mxu3  ;;  %v934_v50 = vrot.slane %v932_v37, 1  ;;  %v5010_v49 = vsel %vm1530_vm0, %v5007_v5, %v5009_v41  ;;  %v8767_v37 = vld [vmem:[%s8201_s5 + $0x108] sm:$0xff] }
 0x1bb   : > { %v5752_v56 = vadd.f32 %v5430_v36, %v4309_v52  ;;  %v3251_v52 = vor.u32 %v3250_v45, %v3247_v46  ;;  %v944_v46 = vshrl.u32 %v8742_v2, 16  ;;  %v948_v45 = vshll.u32 %v8764_v38, 16 }
 0x1bd   : > { %vm5901_vm7 = vcmp.gt.f32.partialorder %v5752_v56, 0.0  ;;  %v6050_v59 = vmul.f32 0.2, %v5752_v56  ;;  %7463 = vmatmul.msk.bf16.gmra.mxu2 %vm1304_vm1, %v3234_v53  ;;  %v3252_v61 = vsel %vm2983_vm3, %v3242_v16, %v3251_v52 }
 0x1be   : > { %v1635_v0 = vpop.f32.mrf.mxu0 }
 0x1bf   : > { %v6199_v63 = vsel %vm5901_vm7, %v5752_v56, %v6050_v59  ;;  %v2179_v6 = vpop.f32.mrf.mxu1  ;;  %v2177_v17 = vadd.f32 %v2176_v51, %v1635_v0  ;;  %v935_v56 = vsel %vm699_vm2, %v930_v48, %v934_v50 }
 0x1c0   : > { %v6348_v3 = vpack.c.bf16 %v6199_v63, %v6199_v63  ;;  %v3990_v4 = vpop.f32.mrf.mxu2  ;;  %v8001_v63 = vld [vmem:[%s8201_s5 + $0x100] sm:$0xff] }
 0x1c1   : > { %v4310_v7 = vadd.f32 %v3990_v4, %v2175_v60  ;;  %v3257_v5 = vshll.u32 %v8001_v63, 16 }
 0x1c2   : > { %6498 = vst.msk [vmem:[%s8314_s9 + $0x8c] sm:$0xf] %vm6462_vm5, %v6348_v3  ;;  %v5435_v8 = vpop.f32.mrf.mxu3  ;;  %7087 = vmatmul.msk.bf16.gmra.mxu1 %vm1304_vm1, %v8676_v22 }
 0x1c3   : > { %v5753_v11 = vadd.f32 %v5433_v54, %v4310_v7 }
 0x1c5   : > { %vm5902_vm8 = vcmp.gt.f32.partialorder %v5753_v11, 0.0  ;;  %v6051_v15 = vmul.f32 0.2, %v5753_v11 }
 0x1c6   : > { %v1638_v19 = vpop.f32.mrf.mxu0 }
 0x1c7   : > { %v6200_v18 = vsel %vm5902_vm8, %v5753_v11, %v6051_v15  ;;  %7845 = vmatmul.msk.bf16.gmra.mxu3 %vm1304_vm1, %v5008_v13  ;;  %v2181_v23 = vpop.f32.mrf.mxu1  ;;  %v2180_v32 = vadd.f32 %v2179_v6, %v1638_v19  ;;  %v3254_v6 = vshrl.u32 %v8001_v63, 16  ;;  %v5011_v13 = vrot.slane %v8745_v1, 2 }
 0x1c8   : > { %v6349_v21 = vpack.c.bf16 %v6200_v18, %v6200_v18  ;;  %v3992_v22 = vpop.f32.mrf.mxu2 }
 0x1c9   : > { %v4311_v24 = vadd.f32 %v3992_v22, %v2177_v17  ;;  %7008 = vmatmul.msk.bf16.gmra.mxu0 %vm1304_vm1, %v927_v20  ;;  %v3256_v18 = vrot.slane %v3254_v6, 1  ;;  %v3259_v17 = vrot.slane %v3257_v5, 2  ;;  %v938_v20 = vor.u32 %v936_v10, %v934_v50  ;;  %v8786_v10 = vld [vmem:[%s8201_s5 + $0x100] sm:$0xff] }
 0x1ca   : > { %6499 = vst.msk [vmem:[%s8314_s9 + $0x90] sm:$0xf] %vm6462_vm5, %v6349_v21  ;;  %v5438_v26 = vpop.f32.mrf.mxu3  ;;  %v942_v21 = vrot.slane %v940_v9, 1  ;;  %v5012_v22 = vsel %vm1530_vm0, %v5009_v41, %v5011_v13  ;;  %v8789_v9 = vld [vmem:[%s8201_s5 + $0x110] sm:$0xff] }
 0x1cb   : > { %v5754_v28 = vadd.f32 %v5435_v8, %v4311_v24  ;;  %v3260_v24 = vor.u32 %v3259_v17, %v3256_v18  ;;  %v952_v18 = vshrl.u32 %v8764_v38, 16  ;;  %v956_v17 = vshll.u32 %v8786_v10, 16 }
 0x1cd   : > { %vm5903_vm9 = vcmp.gt.f32.partialorder %v5754_v28, 0.0  ;;  %v6052_v31 = vmul.f32 0.2, %v5754_v28  ;;  %7464 = vmatmul.msk.bf16.gmra.mxu2 %vm1304_vm1, %v3243_v25  ;;  %v3261_v33 = vsel %vm2983_vm3, %v3251_v52, %v3260_v24 }
 0x1ce   : > { %v1640_v36 = vpop.f32.mrf.mxu0 }
 0x1cf   : > { %v6201_v35 = vsel %vm5903_vm9, %v5754_v28, %v6052_v31  ;;  %v2184_v42 = vpop.f32.mrf.mxu1  ;;  %v2182_v53 = vadd.f32 %v2181_v23, %v1640_v36  ;;  %v943_v28 = vsel %vm699_vm2, %v938_v20, %v942_v21 }
 0x1d0   : > { %v6350_v39 = vpack.c.bf16 %v6201_v35, %v6201_v35  ;;  %v3995_v40 = vpop.f32.mrf.mxu2  ;;  %v8002_v35 = vld [vmem:[%s8201_s5 + $0x108] sm:$0xff] }
 0x1d1   : > { %v4312_v43 = vadd.f32 %v3995_v40, %v2180_v32  ;;  %v3266_v41 = vshll.u32 %v8002_v35, 16 }
 0x1d2   : > { %6500 = vst.msk [vmem:[%s8314_s9 + $0x94] sm:$0xf] %vm6462_vm5, %v6350_v39  ;;  %v5440_v44 = vpop.f32.mrf.mxu3  ;;  %7088 = vmatmul.msk.bf16.gmra.mxu1 %vm1304_vm1, %v8698_v58 }
 0x1d3   : > { %v5755_v47 = vadd.f32 %v5438_v26, %v4312_v43 }
 0x1d5   : > { %vm5904_vm10 = vcmp.gt.f32.partialorder %v5755_v47, 0.0  ;;  %v6053_v51 = vmul.f32 0.2, %v5755_v47 }
 0x1d6   : > { %v1643_v55 = vpop.f32.mrf.mxu0 }
 0x1d7   : > { %v6202_v54 = vsel %vm5904_vm10, %v5755_v47, %v6053_v51  ;;  %7846 = vmatmul.msk.bf16.gmra.mxu3 %vm1304_vm1, %v5010_v49  ;;  %v2186_v59 = vpop.f32.mrf.mxu1  ;;  %v2185_v4 = vadd.f32 %v2184_v42, %v1643_v55  ;;  %v3263_v42 = vshrl.u32 %v8002_v35, 16  ;;  %v5013_v49 = vrot.slane %v8767_v37, 2 }
 0x1d8   : > { %v6351_v57 = vpack.c.bf16 %v6202_v54, %v6202_v54  ;;  %v3997_v58 = vpop.f32.mrf.mxu2 }
 0x1d9   : > { %v4313_v60 = vadd.f32 %v3997_v58, %v2182_v53  ;;  %7009 = vmatmul.msk.bf16.gmra.mxu0 %vm1304_vm1, %v935_v56  ;;  %v3265_v54 = vrot.slane %v3263_v42, 1  ;;  %v3268_v53 = vrot.slane %v3266_v41, 2  ;;  %v946_v56 = vor.u32 %v944_v46, %v942_v21  ;;  %v8808_v46 = vld [vmem:[%s8201_s5 + $0x108] sm:$0xff] }
 0x1da   : > { %6501 = vst.msk [vmem:[%s8314_s9 + $0x98] sm:$0xf] %vm6462_vm5, %v6351_v57  ;;  %v5443_v62 = vpop.f32.mrf.mxu3  ;;  %v950_v57 = vrot.slane %v948_v45, 1  ;;  %v5014_v58 = vsel %vm1530_vm0, %v5011_v13, %v5013_v49  ;;  %v8811_v45 = vld [vmem:[%s8201_s5 + $0x118] sm:$0xff] }
 0x1db   : > { %v5756_v0 = vadd.f32 %v5440_v44, %v4313_v60  ;;  %v3269_v60 = vor.u32 %v3268_v53, %v3265_v54  ;;  %v960_v54 = vshrl.u32 %v8786_v10, 16  ;;  %v964_v53 = vshll.u32 %v8808_v46, 16 }
 0x1dd   : > { %vm5905_vm11 = vcmp.gt.f32.partialorder %v5756_v0, 0.0  ;;  %v6054_v3 = vmul.f32 0.2, %v5756_v0  ;;  %7465 = vmatmul.msk.bf16.gmra.mxu2 %vm1304_vm1, %v3252_v61  ;;  %v3270_v5 = vsel %vm2983_vm3, %v3260_v24, %v3269_v60 }
 0x1de   : > { %v1645_v8 = vpop.f32.mrf.mxu0 }
 0x1df   : > { %v6203_v7 = vsel %vm5905_vm11, %v5756_v0, %v6054_v3  ;;  %v2189_v14 = vpop.f32.mrf.mxu1  ;;  %v2187_v25 = vadd.f32 %v2186_v59, %v1645_v8  ;;  %v951_v0 = vsel %vm699_vm2, %v946_v56, %v950_v57 }
 0x1e0   : > { %v6352_v11 = vpack.c.bf16 %v6203_v7, %v6203_v7  ;;  %v4000_v12 = vpop.f32.mrf.mxu2  ;;  %v8003_v7 = vld [vmem:[%s8201_s5 + $0x110] sm:$0xff] }
 0x1e1   : > { %v4314_v15 = vadd.f32 %v4000_v12, %v2185_v4  ;;  %v3275_v13 = vshll.u32 %v8003_v7, 16 }
 0x1e2   : > { %6502 = vst.msk [vmem:[%s8314_s9 + $0x9c] sm:$0xf] %vm6462_vm5, %v6352_v11  ;;  %v5445_v16 = vpop.f32.mrf.mxu3  ;;  %7089 = vmatmul.msk.bf16.gmra.mxu1 %vm1304_vm1, %v8720_v30 }
 0x1e3   : > { %v5757_v19 = vadd.f32 %v5443_v62, %v4314_v15 }
 0x1e5   : > { %vm5906_vm12 = vcmp.gt.f32.partialorder %v5757_v19, 0.0  ;;  %v6055_v23 = vmul.f32 0.2, %v5757_v19 }
 0x1e6   : > { %v1648_v27 = vpop.f32.mrf.mxu0 }
 0x1e7   : > { %v6204_v26 = vsel %vm5906_vm12, %v5757_v19, %v6055_v23  ;;  %7847 = vmatmul.msk.bf16.gmra.mxu3 %vm1304_vm1, %v5012_v22  ;;  %v2191_v31 = vpop.f32.mrf.mxu1  ;;  %v2190_v40 = vadd.f32 %v2189_v14, %v1648_v27  ;;  %v3272_v14 = vshrl.u32 %v8003_v7, 16  ;;  %v5015_v22 = vrot.slane %v8789_v9, 2 }
 0x1e8   : > { %v6353_v29 = vpack.c.bf16 %v6204_v26, %v6204_v26  ;;  %v4002_v30 = vpop.f32.mrf.mxu2 }
 0x1e9   : > { %v4315_v32 = vadd.f32 %v4002_v30, %v2187_v25  ;;  %7010 = vmatmul.msk.bf16.gmra.mxu0 %vm1304_vm1, %v943_v28  ;;  %v3274_v26 = vrot.slane %v3272_v14, 1  ;;  %v3277_v25 = vrot.slane %v3275_v13, 2  ;;  %v954_v28 = vor.u32 %v952_v18, %v950_v57  ;;  %v8830_v18 = vld [vmem:[%s8201_s5 + $0x110] sm:$0xff] }
 0x1ea   : > { %6503 = vst.msk [vmem:[%s8314_s9 + $0xa0] sm:$0xf] %vm6462_vm5, %v6353_v29  ;;  %v5448_v34 = vpop.f32.mrf.mxu3  ;;  %v958_v29 = vrot.slane %v956_v17, 1  ;;  %v5016_v30 = vsel %vm1530_vm0, %v5013_v49, %v5015_v22  ;;  %v8833_v17 = vld [vmem:[%s8201_s5 + $0x120] sm:$0xff] }
 0x1eb   : > { %v5758_v36 = vadd.f32 %v5445_v16, %v4315_v32  ;;  %v3278_v32 = vor.u32 %v3277_v25, %v3274_v26  ;;  %v968_v26 = vshrl.u32 %v8808_v46, 16  ;;  %v972_v25 = vshll.u32 %v8830_v18, 16 }
 0x1ed   : > { %vm5907_vm13 = vcmp.gt.f32.partialorder %v5758_v36, 0.0  ;;  %v6056_v39 = vmul.f32 0.2, %v5758_v36  ;;  %7466 = vmatmul.msk.bf16.gmra.mxu2 %vm1304_vm1, %v3261_v33  ;;  %v3279_v41 = vsel %vm2983_vm3, %v3269_v60, %v3278_v32 }
 0x1ee   : > { %v1650_v44 = vpop.f32.mrf.mxu0 }
 0x1ef   : > { %v6205_v43 = vsel %vm5907_vm13, %v5758_v36, %v6056_v39  ;;  %v2194_v50 = vpop.f32.mrf.mxu1  ;;  %v2192_v61 = vadd.f32 %v2191_v31, %v1650_v44  ;;  %v959_v36 = vsel %vm699_vm2, %v954_v28, %v958_v29 }
 0x1f0   : > { %v6354_v47 = vpack.c.bf16 %v6205_v43, %v6205_v43  ;;  %v4005_v48 = vpop.f32.mrf.mxu2  ;;  %v8004_v43 = vld [vmem:[%s8201_s5 + $0x118] sm:$0xff] }
 0x1f1   : > { %v4316_v51 = vadd.f32 %v4005_v48, %v2190_v40  ;;  %v3284_v49 = vshll.u32 %v8004_v43, 16 }
 0x1f2   : > { %6504 = vst.msk [vmem:[%s8314_s9 + $0xa4] sm:$0xf] %vm6462_vm5, %v6354_v47  ;;  %v5450_v52 = vpop.f32.mrf.mxu3  ;;  %7090 = vmatmul.msk.bf16.gmra.mxu1 %vm1304_vm1, %v8742_v2 }
 0x1f3   : > { %v5759_v55 = vadd.f32 %v5448_v34, %v4316_v51 }
 0x1f5   : > { %vm5908_vm14 = vcmp.gt.f32.partialorder %v5759_v55, 0.0  ;;  %v6057_v59 = vmul.f32 0.2, %v5759_v55 }
 0x1f6   : > { %v1653_v63 = vpop.f32.mrf.mxu0 }
 0x1f7   : > { %v6206_v62 = vsel %vm5908_vm14, %v5759_v55, %v6057_v59  ;;  %7848 = vmatmul.msk.bf16.gmra.mxu3 %vm1304_vm1, %v5014_v58  ;;  %v2196_v3 = vpop.f32.mrf.mxu1  ;;  %v2195_v12 = vadd.f32 %v2194_v50, %v1653_v63  ;;  %v3281_v50 = vshrl.u32 %v8004_v43, 16  ;;  %v5017_v58 = vrot.slane %v8811_v45, 2 }
 0x1f8   : > { %v6355_v1 = vpack.c.bf16 %v6206_v62, %v6206_v62  ;;  %v4007_v2 = vpop.f32.mrf.mxu2 }
 0x1f9   : > { %v4317_v4 = vadd.f32 %v4007_v2, %v2192_v61  ;;  %7011 = vmatmul.msk.bf16.gmra.mxu0 %vm1304_vm1, %v951_v0  ;;  %v3283_v62 = vrot.slane %v3281_v50, 1  ;;  %v3286_v61 = vrot.slane %v3284_v49, 2  ;;  %v962_v0 = vor.u32 %v960_v54, %v958_v29  ;;  %v8852_v54 = vld [vmem:[%s8201_s5 + $0x118] sm:$0xff] }
 0x1fa   : > { %6505 = vst.msk [vmem:[%s8314_s9 + $0xa8] sm:$0xf] %vm6462_vm5, %v6355_v1  ;;  %v5453_v6 = vpop.f32.mrf.mxu3  ;;  %v966_v1 = vrot.slane %v964_v53, 1  ;;  %v5018_v2 = vsel %vm1530_vm0, %v5015_v22, %v5017_v58  ;;  %v8855_v53 = vld [vmem:[%s8201_s5 + $0x128] sm:$0xff] }
 0x1fb   : > { %v5760_v8 = vadd.f32 %v5450_v52, %v4317_v4  ;;  %v3287_v4 = vor.u32 %v3286_v61, %v3283_v62  ;;  %v976_v62 = vshrl.u32 %v8830_v18, 16  ;;  %v980_v61 = vshll.u32 %v8852_v54, 16 }
 0x1fd   : > { %vm5909_vm15 = vcmp.gt.f32.partialorder %v5760_v8, 0.0  ;;  %v6058_v11 = vmul.f32 0.2, %v5760_v8  ;;  %7467 = vmatmul.msk.bf16.gmra.mxu2 %vm1304_vm1, %v3270_v5  ;;  %v3288_v13 = vsel %vm2983_vm3, %v3278_v32, %v3287_v4 }
 0x1fe   : > { %v1655_v16 = vpop.f32.mrf.mxu0 }
 0x1ff   : > { %v6207_v15 = vsel %vm5909_vm15, %v5760_v8, %v6058_v11  ;;  %v2199_v21 = vpop.f32.mrf.mxu1  ;;  %v2197_v33 = vadd.f32 %v2196_v3, %v1655_v16  ;;  %v967_v8 = vsel %vm699_vm2, %v962_v0, %v966_v1 }
 0x200   : > { %v6356_v19 = vpack.c.bf16 %v6207_v15, %v6207_v15  ;;  %v4010_v20 = vpop.f32.mrf.mxu2  ;;  %v8005_v15 = vld [vmem:[%s8201_s5 + $0x120] sm:$0xff] }
 0x201   : > { %v4318_v23 = vadd.f32 %v4010_v20, %v2195_v12  ;;  %v3293_v22 = vshll.u32 %v8005_v15, 16 }
 0x202   : > { %6506 = vst.msk [vmem:[%s8314_s9 + $0xac] sm:$0xf] %vm6462_vm5, %v6356_v19  ;;  %v5455_v24 = vpop.f32.mrf.mxu3  ;;  %7091 = vmatmul.msk.bf16.gmra.mxu1 %vm1304_vm1, %v8764_v38 }
 0x203   : > { %v5761_v27 = vadd.f32 %v5453_v6, %v4318_v23 }
 0x205   : > { %vm5910_vm4 = vcmp.gt.f32.partialorder %v5761_v27, 0.0  ;;  %v6059_v31 = vmul.f32 0.2, %v5761_v27 }
 0x206   : > { %v1658_v35 = vpop.f32.mrf.mxu0 }
 0x207   : > { %v6208_v34 = vsel %vm5910_vm4, %v5761_v27, %v6059_v31  ;;  %7849 = vmatmul.msk.bf16.gmra.mxu3 %vm1304_vm1, %v5016_v30  ;;  %v2201_v39 = vpop.f32.mrf.mxu1  ;;  %v2200_v48 = vadd.f32 %v2199_v21, %v1658_v35  ;;  %v3290_v21 = vshrl.u32 %v8005_v15, 16  ;;  %v5019_v30 = vrot.slane %v8833_v17, 2 }
 0x208   : > { %v6357_v37 = vpack.c.bf16 %v6208_v34, %v6208_v34  ;;  %v4012_v38 = vpop.f32.mrf.mxu2 }
 0x209   : > { %v4319_v40 = vadd.f32 %v4012_v38, %v2197_v33  ;;  %7012 = vmatmul.msk.bf16.gmra.mxu0 %vm1304_vm1, %v959_v36  ;;  %v3292_v34 = vrot.slane %v3290_v21, 1  ;;  %v3295_v33 = vrot.slane %v3293_v22, 2  ;;  %v970_v36 = vor.u32 %v968_v26, %v966_v1  ;;  %v8874_v26 = vld [vmem:[%s8201_s5 + $0x120] sm:$0xff] }
 0x20a   : > { %6507 = vst.msk [vmem:[%s8314_s9 + $0xb0] sm:$0xf] %vm6462_vm5, %v6357_v37  ;;  %v5458_v42 = vpop.f32.mrf.mxu3  ;;  %v974_v37 = vrot.slane %v972_v25, 1  ;;  %v5020_v38 = vsel %vm1530_vm0, %v5017_v58, %v5019_v30  ;;  %v8877_v25 = vld [vmem:[%s8201_s5 + $0x130] sm:$0xff] }
 0x20b   : > { %v5762_v44 = vadd.f32 %v5455_v24, %v4319_v40  ;;  %v3296_v40 = vor.u32 %v3295_v33, %v3292_v34  ;;  %v984_v34 = vshrl.u32 %v8852_v54, 16  ;;  %v988_v33 = vshll.u32 %v8874_v26, 16 }
 0x20d   : > { %vm5911_vm6 = vcmp.gt.f32.partialorder %v5762_v44, 0.0  ;;  %v6060_v47 = vmul.f32 0.2, %v5762_v44  ;;  %7468 = vmatmul.msk.bf16.gmra.mxu2 %vm1304_vm1, %v3279_v41  ;;  %v3297_v49 = vsel %vm2983_vm3, %v3287_v4, %v3296_v40 }
 0x20e   : > { %v1660_v52 = vpop.f32.mrf.mxu0 }
 0x20f   : > { %v6209_v51 = vsel %vm5911_vm6, %v5762_v44, %v6060_v47  ;;  %v2204_v57 = vpop.f32.mrf.mxu1  ;;  %v2202_v5 = vadd.f32 %v2201_v39, %v1660_v52  ;;  %v975_v44 = vsel %vm699_vm2, %v970_v36, %v974_v37 }
 0x210   : > { %v6358_v55 = vpack.c.bf16 %v6209_v51, %v6209_v51  ;;  %v4015_v56 = vpop.f32.mrf.mxu2  ;;  %v8006_v51 = vld [vmem:[%s8201_s5 + $0x128] sm:$0xff] }
 0x211   : > { %v4320_v59 = vadd.f32 %v4015_v56, %v2200_v48  ;;  %v3302_v58 = vshll.u32 %v8006_v51, 16 }
 0x212   : > { %6508 = vst.msk [vmem:[%s8314_s9 + $0xb4] sm:$0xf] %vm6462_vm5, %v6358_v55  ;;  %v5460_v60 = vpop.f32.mrf.mxu3  ;;  %7092 = vmatmul.msk.bf16.gmra.mxu1 %vm1304_vm1, %v8786_v10 }
 0x213   : > { %v5763_v63 = vadd.f32 %v5458_v42, %v4320_v59 }
 0x215   : > { %vm5912_vm7 = vcmp.gt.f32.partialorder %v5763_v63, 0.0  ;;  %v6061_v3 = vmul.f32 0.2, %v5763_v63 }
 0x216   : > { %v1663_v7 = vpop.f32.mrf.mxu0 }
 0x217   : > { %v6210_v6 = vsel %vm5912_vm7, %v5763_v63, %v6061_v3  ;;  %7850 = vmatmul.msk.bf16.gmra.mxu3 %vm1304_vm1, %v5018_v2  ;;  %v2206_v11 = vpop.f32.mrf.mxu1  ;;  %v2205_v20 = vadd.f32 %v2204_v57, %v1663_v7  ;;  %v3299_v57 = vshrl.u32 %v8006_v51, 16  ;;  %v5021_v2 = vrot.slane %v8855_v53, 2 }
 0x218   : > { %v6359_v9 = vpack.c.bf16 %v6210_v6, %v6210_v6  ;;  %v4017_v10 = vpop.f32.mrf.mxu2 }
 0x219   : > { %v4321_v12 = vadd.f32 %v4017_v10, %v2202_v5  ;;  %7013 = vmatmul.msk.bf16.gmra.mxu0 %vm1304_vm1, %v967_v8  ;;  %v3301_v6 = vrot.slane %v3299_v57, 1  ;;  %v3304_v5 = vrot.slane %v3302_v58, 2  ;;  %v978_v8 = vor.u32 %v976_v62, %v974_v37  ;;  %v8896_v62 = vld [vmem:[%s8201_s5 + $0x128] sm:$0xff] }
 0x21a   : > { %6509 = vst.msk [vmem:[%s8314_s9 + $0xb8] sm:$0xf] %vm6462_vm5, %v6359_v9  ;;  %v5463_v14 = vpop.f32.mrf.mxu3  ;;  %v982_v9 = vrot.slane %v980_v61, 1  ;;  %v5022_v10 = vsel %vm1530_vm0, %v5019_v30, %v5021_v2  ;;  %v8899_v61 = vld [vmem:[%s8201_s5 + $0x138] sm:$0xff] }
 0x21b   : > { %v5764_v16 = vadd.f32 %v5460_v60, %v4321_v12  ;;  %v3305_v12 = vor.u32 %v3304_v5, %v3301_v6  ;;  %v992_v6 = vshrl.u32 %v8874_v26, 16  ;;  %v996_v5 = vshll.u32 %v8896_v62, 16 }
 0x21d   : > { %vm5913_vm8 = vcmp.gt.f32.partialorder %v5764_v16, 0.0  ;;  %v6062_v19 = vmul.f32 0.2, %v5764_v16  ;;  %7469 = vmatmul.msk.bf16.gmra.mxu2 %vm1304_vm1, %v3288_v13  ;;  %v3306_v22 = vsel %vm2983_vm3, %v3296_v40, %v3305_v12 }
 0x21e   : > { %v1665_v24 = vpop.f32.mrf.mxu0 }
 0x21f   : > { %v6211_v23 = vsel %vm5913_vm8, %v5764_v16, %v6062_v19  ;;  %v2209_v29 = vpop.f32.mrf.mxu1  ;;  %v2207_v41 = vadd.f32 %v2206_v11, %v1665_v24  ;;  %v983_v16 = vsel %vm699_vm2, %v978_v8, %v982_v9 }
 0x220   : > { %v6360_v27 = vpack.c.bf16 %v6211_v23, %v6211_v23  ;;  %v4020_v28 = vpop.f32.mrf.mxu2  ;;  %v8007_v23 = vld [vmem:[%s8201_s5 + $0x130] sm:$0xff] }
 0x221   : > { %v4322_v31 = vadd.f32 %v4020_v28, %v2205_v20  ;;  %v3311_v30 = vshll.u32 %v8007_v23, 16 }
 0x222   : > { %6510 = vst.msk [vmem:[%s8314_s9 + $0xbc] sm:$0xf] %vm6462_vm5, %v6360_v27  ;;  %v5465_v32 = vpop.f32.mrf.mxu3  ;;  %7093 = vmatmul.msk.bf16.gmra.mxu1 %vm1304_vm1, %v8808_v46 }
 0x223   : > { %v5765_v35 = vadd.f32 %v5463_v14, %v4322_v31 }
 0x225   : > { %vm5914_vm9 = vcmp.gt.f32.partialorder %v5765_v35, 0.0  ;;  %v6063_v39 = vmul.f32 0.2, %v5765_v35 }
 0x226   : > { %v1668_v43 = vpop.f32.mrf.mxu0 }
 0x227   : > { %v6212_v42 = vsel %vm5914_vm9, %v5765_v35, %v6063_v39  ;;  %7851 = vmatmul.msk.bf16.gmra.mxu3 %vm1304_vm1, %v5020_v38  ;;  %v2211_v47 = vpop.f32.mrf.mxu1  ;;  %v2210_v56 = vadd.f32 %v2209_v29, %v1668_v43  ;;  %v3308_v29 = vshrl.u32 %v8007_v23, 16  ;;  %v5023_v38 = vrot.slane %v8877_v25, 2 }
 0x228   : > { %v6361_v45 = vpack.c.bf16 %v6212_v42, %v6212_v42  ;;  %v4022_v46 = vpop.f32.mrf.mxu2 }
 0x229   : > { %v4323_v48 = vadd.f32 %v4022_v46, %v2207_v41  ;;  %7014 = vmatmul.msk.bf16.gmra.mxu0 %vm1304_vm1, %v975_v44  ;;  %v3310_v42 = vrot.slane %v3308_v29, 1  ;;  %v3313_v41 = vrot.slane %v3311_v30, 2  ;;  %v986_v44 = vor.u32 %v984_v34, %v982_v9  ;;  %v8918_v34 = vld [vmem:[%s8201_s5 + $0x130] sm:$0xff] }
 0x22a   : > { %6511 = vst.msk [vmem:[%s8314_s9 + $0xc0] sm:$0xf] %vm6462_vm5, %v6361_v45  ;;  %v5468_v50 = vpop.f32.mrf.mxu3  ;;  %v990_v45 = vrot.slane %v988_v33, 1  ;;  %v5024_v46 = vsel %vm1530_vm0, %v5021_v2, %v5023_v38  ;;  %v8921_v33 = vld [vmem:[%s8201_s5 + $0x140] sm:$0xff] }
 0x22b   : > { %v5766_v52 = vadd.f32 %v5465_v32, %v4323_v48  ;;  %v3314_v48 = vor.u32 %v3313_v41, %v3310_v42  ;;  %v1000_v42 = vshrl.u32 %v8896_v62, 16  ;;  %v1004_v41 = vshll.u32 %v8918_v34, 16 }
 0x22d   : > { %vm5915_vm10 = vcmp.gt.f32.partialorder %v5766_v52, 0.0  ;;  %v6064_v55 = vmul.f32 0.2, %v5766_v52  ;;  %7470 = vmatmul.msk.bf16.gmra.mxu2 %vm1304_vm1, %v3297_v49  ;;  %v3315_v58 = vsel %vm2983_vm3, %v3305_v12, %v3314_v48 }
 0x22e   : > { %v1670_v60 = vpop.f32.mrf.mxu0 }
 0x22f   : > { %v6213_v59 = vsel %vm5915_vm10, %v5766_v52, %v6064_v55  ;;  %v2214_v1 = vpop.f32.mrf.mxu1  ;;  %v2212_v13 = vadd.f32 %v2211_v47, %v1670_v60  ;;  %v991_v52 = vsel %vm699_vm2, %v986_v44, %v990_v45 }
 0x230   : > { %v6362_v63 = vpack.c.bf16 %v6213_v59, %v6213_v59  ;;  %v4025_v0 = vpop.f32.mrf.mxu2  ;;  %v8008_v59 = vld [vmem:[%s8201_s5 + $0x138] sm:$0xff] }
 0x231   : > { %v4324_v3 = vadd.f32 %v4025_v0, %v2210_v56  ;;  %v3320_v2 = vshll.u32 %v8008_v59, 16 }
 0x232   : > { %6512 = vst.msk [vmem:[%s8314_s9 + $0xc4] sm:$0xf] %vm6462_vm5, %v6362_v63  ;;  %v5470_v4 = vpop.f32.mrf.mxu3  ;;  %7094 = vmatmul.msk.bf16.gmra.mxu1 %vm1304_vm1, %v8830_v18 }
 0x233   : > { %v5767_v7 = vadd.f32 %v5468_v50, %v4324_v3 }
 0x235   : > { %vm5916_vm11 = vcmp.gt.f32.partialorder %v5767_v7, 0.0  ;;  %v6065_v11 = vmul.f32 0.2, %v5767_v7 }
 0x236   : > { %v1673_v15 = vpop.f32.mrf.mxu0 }
 0x237   : > { %v6214_v14 = vsel %vm5916_vm11, %v5767_v7, %v6065_v11  ;;  %7852 = vmatmul.msk.bf16.gmra.mxu3 %vm1304_vm1, %v5022_v10  ;;  %v2216_v19 = vpop.f32.mrf.mxu1  ;;  %v2215_v28 = vadd.f32 %v2214_v1, %v1673_v15  ;;  %v3317_v1 = vshrl.u32 %v8008_v59, 16  ;;  %v5025_v10 = vrot.slane %v8899_v61, 2 }
 0x238   : > { %v6363_v17 = vpack.c.bf16 %v6214_v14, %v6214_v14  ;;  %v4027_v18 = vpop.f32.mrf.mxu2 }
 0x239   : > { %v4325_v20 = vadd.f32 %v4027_v18, %v2212_v13  ;;  %7015 = vmatmul.msk.bf16.gmra.mxu0 %vm1304_vm1, %v983_v16  ;;  %v3319_v14 = vrot.slane %v3317_v1, 1  ;;  %v3322_v13 = vrot.slane %v3320_v2, 2  ;;  %v994_v16 = vor.u32 %v992_v6, %v990_v45  ;;  %v8940_v6 = vld [vmem:[%s8201_s5 + $0x138] sm:$0xff] }
 0x23a   : > { %6513 = vst.msk [vmem:[%s8314_s9 + $0xc8] sm:$0xf] %vm6462_vm5, %v6363_v17  ;;  %v5473_v21 = vpop.f32.mrf.mxu3  ;;  %v998_v17 = vrot.slane %v996_v5, 1  ;;  %v5026_v18 = vsel %vm1530_vm0, %v5023_v38, %v5025_v10  ;;  %v8943_v5 = vld [vmem:[%s8201_s5 + $0x148] sm:$0xff] }
 0x23b   : > { %v5768_v24 = vadd.f32 %v5470_v4, %v4325_v20  ;;  %v3323_v20 = vor.u32 %v3322_v13, %v3319_v14  ;;  %v1008_v14 = vshrl.u32 %v8918_v34, 16  ;;  %v1012_v13 = vshll.u32 %v8940_v6, 16 }
 0x23d   : > { %vm5917_vm12 = vcmp.gt.f32.partialorder %v5768_v24, 0.0  ;;  %v6066_v27 = vmul.f32 0.2, %v5768_v24  ;;  %7471 = vmatmul.msk.bf16.gmra.mxu2 %vm1304_vm1, %v3306_v22  ;;  %v3324_v30 = vsel %vm2983_vm3, %v3314_v48, %v3323_v20 }
 0x23e   : > { %v1675_v32 = vpop.f32.mrf.mxu0 }
 0x23f   : > { %v6215_v31 = vsel %vm5917_vm12, %v5768_v24, %v6066_v27  ;;  %v2219_v37 = vpop.f32.mrf.mxu1  ;;  %v2217_v49 = vadd.f32 %v2216_v19, %v1675_v32  ;;  %v999_v24 = vsel %vm699_vm2, %v994_v16, %v998_v17 }
 0x240   : > { %v6364_v35 = vpack.c.bf16 %v6215_v31, %v6215_v31  ;;  %v4030_v36 = vpop.f32.mrf.mxu2  ;;  %v8009_v31 = vld [vmem:[%s8201_s5 + $0x140] sm:$0xff] }
 0x241   : > { %v4326_v39 = vadd.f32 %v4030_v36, %v2215_v28  ;;  %v3329_v38 = vshll.u32 %v8009_v31, 16 }
 0x242   : > { %6514 = vst.msk [vmem:[%s8314_s9 + $0xcc] sm:$0xf] %vm6462_vm5, %v6364_v35  ;;  %v5475_v40 = vpop.f32.mrf.mxu3  ;;  %7095 = vmatmul.msk.bf16.gmra.mxu1 %vm1304_vm1, %v8852_v54 }
 0x243   : > { %v5769_v43 = vadd.f32 %v5473_v21, %v4326_v39 }
 0x245   : > { %vm5918_vm13 = vcmp.gt.f32.partialorder %v5769_v43, 0.0  ;;  %v6067_v47 = vmul.f32 0.2, %v5769_v43 }
 0x246   : > { %v1678_v51 = vpop.f32.mrf.mxu0 }
 0x247   : > { %v6216_v50 = vsel %vm5918_vm13, %v5769_v43, %v6067_v47  ;;  %7853 = vmatmul.msk.bf16.gmra.mxu3 %vm1304_vm1, %v5024_v46  ;;  %v2221_v55 = vpop.f32.mrf.mxu1  ;;  %v2220_v0 = vadd.f32 %v2219_v37, %v1678_v51  ;;  %v3326_v37 = vshrl.u32 %v8009_v31, 16  ;;  %v5027_v46 = vrot.slane %v8921_v33, 2 }
 0x248   : > { %v6365_v53 = vpack.c.bf16 %v6216_v50, %v6216_v50  ;;  %v4032_v54 = vpop.f32.mrf.mxu2 }
 0x249   : > { %v4327_v56 = vadd.f32 %v4032_v54, %v2217_v49  ;;  %7016 = vmatmul.msk.bf16.gmra.mxu0 %vm1304_vm1, %v991_v52  ;;  %v3328_v50 = vrot.slane %v3326_v37, 1  ;;  %v3331_v49 = vrot.slane %v3329_v38, 2  ;;  %v1002_v52 = vor.u32 %v1000_v42, %v998_v17  ;;  %v8962_v42 = vld [vmem:[%s8201_s5 + $0x140] sm:$0xff] }
 0x24a   : > { %6515 = vst.msk [vmem:[%s8314_s9 + $0xd0] sm:$0xf] %vm6462_vm5, %v6365_v53  ;;  %v5478_v57 = vpop.f32.mrf.mxu3  ;;  %v1006_v53 = vrot.slane %v1004_v41, 1  ;;  %v5028_v54 = vsel %vm1530_vm0, %v5025_v10, %v5027_v46  ;;  %v8965_v41 = vld [vmem:[%s8201_s5 + $0x150] sm:$0xff] }
 0x24b   : > { %v5770_v60 = vadd.f32 %v5475_v40, %v4327_v56  ;;  %v3332_v56 = vor.u32 %v3331_v49, %v3328_v50  ;;  %v1016_v50 = vshrl.u32 %v8940_v6, 16  ;;  %v1020_v49 = vshll.u32 %v8962_v42, 16 }
 0x24d   : > { %vm5919_vm14 = vcmp.gt.f32.partialorder %v5770_v60, 0.0  ;;  %v6068_v63 = vmul.f32 0.2, %v5770_v60  ;;  %7472 = vmatmul.msk.bf16.gmra.mxu2 %vm1304_vm1, %v3315_v58  ;;  %v3333_v2 = vsel %vm2983_vm3, %v3323_v20, %v3332_v56 }
 0x24e   : > { %v1680_v4 = vpop.f32.mrf.mxu0 }
 0x24f   : > { %v6217_v3 = vsel %vm5919_vm14, %v5770_v60, %v6068_v63  ;;  %v2224_v9 = vpop.f32.mrf.mxu1  ;;  %v2222_v22 = vadd.f32 %v2221_v55, %v1680_v4  ;;  %v1007_v60 = vsel %vm699_vm2, %v1002_v52, %v1006_v53 }
 0x250   : > { %v6366_v7 = vpack.c.bf16 %v6217_v3, %v6217_v3  ;;  %v4035_v8 = vpop.f32.mrf.mxu2  ;;  %v8010_v3 = vld [vmem:[%s8201_s5 + $0x148] sm:$0xff] }
 0x251   : > { %v4328_v11 = vadd.f32 %v4035_v8, %v2220_v0  ;;  %v3338_v10 = vshll.u32 %v8010_v3, 16 }
 0x252   : > { %6516 = vst.msk [vmem:[%s8314_s9 + $0xd4] sm:$0xf] %vm6462_vm5, %v6366_v7  ;;  %v5480_v12 = vpop.f32.mrf.mxu3  ;;  %7096 = vmatmul.msk.bf16.gmra.mxu1 %vm1304_vm1, %v8874_v26 }
 0x253   : > { %v5771_v15 = vadd.f32 %v5478_v57, %v4328_v11 }
 0x255   : > { %vm5920_vm15 = vcmp.gt.f32.partialorder %v5771_v15, 0.0  ;;  %v6069_v19 = vmul.f32 0.2, %v5771_v15 }
 0x256   : > { %v1683_v23 = vpop.f32.mrf.mxu0 }
 0x257   : > { %v6218_v21 = vsel %vm5920_vm15, %v5771_v15, %v6069_v19  ;;  %7854 = vmatmul.msk.bf16.gmra.mxu3 %vm1304_vm1, %v5026_v18  ;;  %v2226_v27 = vpop.f32.mrf.mxu1  ;;  %v2225_v36 = vadd.f32 %v2224_v9, %v1683_v23  ;;  %v3335_v9 = vshrl.u32 %v8010_v3, 16  ;;  %v5029_v18 = vrot.slane %v8943_v5, 2 }
 0x258   : > { %v6367_v25 = vpack.c.bf16 %v6218_v21, %v6218_v21  ;;  %v4037_v26 = vpop.f32.mrf.mxu2 }
 0x259   : > { %v4329_v28 = vadd.f32 %v4037_v26, %v2222_v22  ;;  %7017 = vmatmul.msk.bf16.gmra.mxu0 %vm1304_vm1, %v999_v24  ;;  %v3337_v21 = vrot.slane %v3335_v9, 1  ;;  %v3340_v22 = vrot.slane %v3338_v10, 2  ;;  %v1010_v24 = vor.u32 %v1008_v14, %v1006_v53  ;;  %v8984_v14 = vld [vmem:[%s8201_s5 + $0x148] sm:$0xff] }
 0x25a   : > { %6517 = vst.msk [vmem:[%s8314_s9 + $0xd8] sm:$0xf] %vm6462_vm5, %v6367_v25  ;;  %v5483_v29 = vpop.f32.mrf.mxu3  ;;  %v1014_v25 = vrot.slane %v1012_v13, 1  ;;  %v5030_v26 = vsel %vm1530_vm0, %v5027_v46, %v5029_v18  ;;  %v8987_v13 = vld [vmem:[%s8201_s5 + $0x158] sm:$0xff] }
 0x25b   : > { %v5772_v32 = vadd.f32 %v5480_v12, %v4329_v28  ;;  %v3341_v28 = vor.u32 %v3340_v22, %v3337_v21  ;;  %v1024_v21 = vshrl.u32 %v8962_v42, 16  ;;  %v1028_v22 = vshll.u32 %v8984_v14, 16 }
 0x25d   : > { %vm5921_vm4 = vcmp.gt.f32.partialorder %v5772_v32, 0.0  ;;  %v6070_v35 = vmul.f32 0.2, %v5772_v32  ;;  %7473 = vmatmul.msk.bf16.gmra.mxu2 %vm1304_vm1, %v3324_v30  ;;  %v3342_v38 = vsel %vm2983_vm3, %v3332_v56, %v3341_v28 }
 0x25e   : > { %v1685_v40 = vpop.f32.mrf.mxu0 }
 0x25f   : > { %v6219_v39 = vsel %vm5921_vm4, %v5772_v32, %v6070_v35  ;;  %v2229_v45 = vpop.f32.mrf.mxu1  ;;  %v2227_v58 = vadd.f32 %v2226_v27, %v1685_v40  ;;  %v1015_v32 = vsel %vm699_vm2, %v1010_v24, %v1014_v25 }
 0x260   : > { %v6368_v43 = vpack.c.bf16 %v6219_v39, %v6219_v39  ;;  %v4040_v44 = vpop.f32.mrf.mxu2  ;;  %v8011_v39 = vld [vmem:[%s8201_s5 + $0x150] sm:$0xff] }
 0x261   : > { %v4330_v47 = vadd.f32 %v4040_v44, %v2225_v36  ;;  %v3347_v46 = vshll.u32 %v8011_v39, 16 }
 0x262   : > { %6518 = vst.msk [vmem:[%s8314_s9 + $0xdc] sm:$0xf] %vm6462_vm5, %v6368_v43  ;;  %v5485_v48 = vpop.f32.mrf.mxu3  ;;  %7097 = vmatmul.msk.bf16.gmra.mxu1 %vm1304_vm1, %v8896_v62 }
 0x263   : > { %v5773_v51 = vadd.f32 %v5483_v29, %v4330_v47 }
 0x265   : > { %vm5922_vm6 = vcmp.gt.f32.partialorder %v5773_v51, 0.0  ;;  %v6071_v55 = vmul.f32 0.2, %v5773_v51 }
 0x266   : > { %v1688_v59 = vpop.f32.mrf.mxu0 }
 0x267   : > { %v6220_v57 = vsel %vm5922_vm6, %v5773_v51, %v6071_v55  ;;  %7855 = vmatmul.msk.bf16.gmra.mxu3 %vm1304_vm1, %v5028_v54  ;;  %v2231_v63 = vpop.f32.mrf.mxu1  ;;  %v2230_v8 = vadd.f32 %v2229_v45, %v1688_v59  ;;  %v3344_v45 = vshrl.u32 %v8011_v39, 16  ;;  %v5031_v54 = vrot.slane %v8965_v41, 2 }
 0x268   : > { %v6369_v61 = vpack.c.bf16 %v6220_v57, %v6220_v57  ;;  %v4042_v62 = vpop.f32.mrf.mxu2 }
 0x269   : > { %v4331_v0 = vadd.f32 %v4042_v62, %v2227_v58  ;;  %7018 = vmatmul.msk.bf16.gmra.mxu0 %vm1304_vm1, %v1007_v60  ;;  %v3346_v57 = vrot.slane %v3344_v45, 1  ;;  %v3349_v58 = vrot.slane %v3347_v46, 2  ;;  %v1018_v60 = vor.u32 %v1016_v50, %v1014_v25  ;;  %v9006_v50 = vld [vmem:[%s8201_s5 + $0x150] sm:$0xff] }
 0x26a   : > { %6519 = vst.msk [vmem:[%s8314_s9 + $0xe0] sm:$0xf] %vm6462_vm5, %v6369_v61  ;;  %v5488_v1 = vpop.f32.mrf.mxu3  ;;  %v1022_v61 = vrot.slane %v1020_v49, 1  ;;  %v5032_v62 = vsel %vm1530_vm0, %v5029_v18, %v5031_v54  ;;  %v9009_v49 = vld [vmem:[%s8201_s5 + $0x160] sm:$0xff] }
 0x26b   : > { %v5774_v4 = vadd.f32 %v5485_v48, %v4331_v0  ;;  %v3350_v0 = vor.u32 %v3349_v58, %v3346_v57  ;;  %v1032_v57 = vshrl.u32 %v8984_v14, 16  ;;  %v1036_v58 = vshll.u32 %v9006_v50, 16 }
 0x26d   : > { %vm5923_vm7 = vcmp.gt.f32.partialorder %v5774_v4, 0.0  ;;  %v6072_v7 = vmul.f32 0.2, %v5774_v4  ;;  %7474 = vmatmul.msk.bf16.gmra.mxu2 %vm1304_vm1, %v3333_v2  ;;  %v3351_v10 = vsel %vm2983_vm3, %v3341_v28, %v3350_v0 }
 0x26e   : > { %v1690_v12 = vpop.f32.mrf.mxu0 }
 0x26f   : > { %v6221_v11 = vsel %vm5923_vm7, %v5774_v4, %v6072_v7  ;;  %v2234_v17 = vpop.f32.mrf.mxu1  ;;  %v2232_v30 = vadd.f32 %v2231_v63, %v1690_v12  ;;  %v1023_v4 = vsel %vm699_vm2, %v1018_v60, %v1022_v61 }
 0x270   : > { %v6370_v15 = vpack.c.bf16 %v6221_v11, %v6221_v11  ;;  %v4045_v16 = vpop.f32.mrf.mxu2  ;;  %v8012_v11 = vld [vmem:[%s8201_s5 + $0x158] sm:$0xff] }
 0x271   : > { %v4332_v19 = vadd.f32 %v4045_v16, %v2230_v8  ;;  %v3356_v18 = vshll.u32 %v8012_v11, 16 }
 0x272   : > { %6520 = vst.msk [vmem:[%s8314_s9 + $0xe4] sm:$0xf] %vm6462_vm5, %v6370_v15  ;;  %v5490_v20 = vpop.f32.mrf.mxu3  ;;  %7098 = vmatmul.msk.bf16.gmra.mxu1 %vm1304_vm1, %v8918_v34 }
 0x273   : > { %v5775_v23 = vadd.f32 %v5488_v1, %v4332_v19 }
 0x275   : > { %vm5924_vm8 = vcmp.gt.f32.partialorder %v5775_v23, 0.0  ;;  %v6073_v27 = vmul.f32 0.2, %v5775_v23 }
 0x276   : > { %v1693_v31 = vpop.f32.mrf.mxu0 }
 0x277   : > { %v6222_v29 = vsel %vm5924_vm8, %v5775_v23, %v6073_v27  ;;  %7856 = vmatmul.msk.bf16.gmra.mxu3 %vm1304_vm1, %v5030_v26  ;;  %v2236_v35 = vpop.f32.mrf.mxu1  ;;  %v2235_v44 = vadd.f32 %v2234_v17, %v1693_v31  ;;  %v3353_v17 = vshrl.u32 %v8012_v11, 16  ;;  %v5033_v26 = vrot.slane %v8987_v13, 2 }
 0x278   : > { %v6371_v33 = vpack.c.bf16 %v6222_v29, %v6222_v29  ;;  %v4047_v34 = vpop.f32.mrf.mxu2 }
 0x279   : > { %v4333_v36 = vadd.f32 %v4047_v34, %v2232_v30  ;;  %7019 = vmatmul.msk.bf16.gmra.mxu0 %vm1304_vm1, %v1015_v32  ;;  %v3355_v29 = vrot.slane %v3353_v17, 1  ;;  %v3358_v30 = vrot.slane %v3356_v18, 2  ;;  %v1026_v32 = vor.u32 %v1024_v21, %v1022_v61  ;;  %v9028_v21 = vld [vmem:[%s8201_s5 + $0x158] sm:$0xff] }
 0x27a   : > { %6521 = vst.msk [vmem:[%s8314_s9 + $0xe8] sm:$0xf] %vm6462_vm5, %v6371_v33  ;;  %v5493_v37 = vpop.f32.mrf.mxu3  ;;  %v1030_v33 = vrot.slane %v1028_v22, 1  ;;  %v5034_v34 = vsel %vm1530_vm0, %v5031_v54, %v5033_v26  ;;  %v9031_v22 = vld [vmem:[%s8201_s5 + $0x168] sm:$0xff] }
 0x27b   : > { %v5776_v40 = vadd.f32 %v5490_v20, %v4333_v36  ;;  %v3359_v36 = vor.u32 %v3358_v30, %v3355_v29  ;;  %v1040_v29 = vshrl.u32 %v9006_v50, 16  ;;  %v1044_v30 = vshll.u32 %v9028_v21, 16 }
 0x27d   : > { %vm5925_vm9 = vcmp.gt.f32.partialorder %v5776_v40, 0.0  ;;  %v6074_v43 = vmul.f32 0.2, %v5776_v40  ;;  %7475 = vmatmul.msk.bf16.gmra.mxu2 %vm1304_vm1, %v3342_v38  ;;  %v3360_v46 = vsel %vm2983_vm3, %v3350_v0, %v3359_v36 }
 0x27e   : > { %v1695_v48 = vpop.f32.mrf.mxu0 }
 0x27f   : > { %v6223_v47 = vsel %vm5925_vm9, %v5776_v40, %v6074_v43  ;;  %v2239_v53 = vpop.f32.mrf.mxu1  ;;  %v2237_v2 = vadd.f32 %v2236_v35, %v1695_v48  ;;  %v1031_v40 = vsel %vm699_vm2, %v1026_v32, %v1030_v33 }
 0x280   : > { %v6372_v51 = vpack.c.bf16 %v6223_v47, %v6223_v47  ;;  %v4050_v52 = vpop.f32.mrf.mxu2  ;;  %v8013_v47 = vld [vmem:[%s8201_s5 + $0x160] sm:$0xff] }
 0x281   : > { %v4334_v55 = vadd.f32 %v4050_v52, %v2235_v44  ;;  %v3365_v54 = vshll.u32 %v8013_v47, 16 }
 0x282   : > { %6522 = vst.msk [vmem:[%s8314_s9 + $0xec] sm:$0xf] %vm6462_vm5, %v6372_v51  ;;  %v5495_v56 = vpop.f32.mrf.mxu3  ;;  %7099 = vmatmul.msk.bf16.gmra.mxu1 %vm1304_vm1, %v8940_v6 }
 0x283   : > { %v5777_v59 = vadd.f32 %v5493_v37, %v4334_v55 }
 0x285   : > { %vm5926_vm10 = vcmp.gt.f32.partialorder %v5777_v59, 0.0  ;;  %v6075_v63 = vmul.f32 0.2, %v5777_v59 }
 0x286   : > { %v1698_v3 = vpop.f32.mrf.mxu0 }
 0x287   : > { %v6224_v1 = vsel %vm5926_vm10, %v5777_v59, %v6075_v63  ;;  %7857 = vmatmul.msk.bf16.gmra.mxu3 %vm1304_vm1, %v5032_v62  ;;  %v2241_v7 = vpop.f32.mrf.mxu1  ;;  %v2240_v16 = vadd.f32 %v2239_v53, %v1698_v3  ;;  %v3362_v53 = vshrl.u32 %v8013_v47, 16  ;;  %v5035_v62 = vrot.slane %v9009_v49, 2 }
 0x288   : > { %v6373_v5 = vpack.c.bf16 %v6224_v1, %v6224_v1  ;;  %v4052_v6 = vpop.f32.mrf.mxu2 }
 0x289   : > { %v4335_v8 = vadd.f32 %v4052_v6, %v2237_v2  ;;  %7020 = vmatmul.msk.bf16.gmra.mxu0 %vm1304_vm1, %v1023_v4  ;;  %v3364_v1 = vrot.slane %v3362_v53, 1  ;;  %v3367_v2 = vrot.slane %v3365_v54, 2  ;;  %v1034_v4 = vor.u32 %v1032_v57, %v1030_v33  ;;  %v9050_v57 = vld [vmem:[%s8201_s5 + $0x160] sm:$0xff] }
 0x28a   : > { %6523 = vst.msk [vmem:[%s8314_s9 + $0xf0] sm:$0xf] %vm6462_vm5, %v6373_v5  ;;  %v5498_v9 = vpop.f32.mrf.mxu3  ;;  %v1038_v5 = vrot.slane %v1036_v58, 1  ;;  %v5036_v6 = vsel %vm1530_vm0, %v5033_v26, %v5035_v62  ;;  %v9053_v58 = vld [vmem:[%s8201_s5 + $0x170] sm:$0xff] }
 0x28b   : > { %v5778_v12 = vadd.f32 %v5495_v56, %v4335_v8  ;;  %v3368_v8 = vor.u32 %v3367_v2, %v3364_v1  ;;  %v1048_v1 = vshrl.u32 %v9028_v21, 16  ;;  %v1052_v2 = vshll.u32 %v9050_v57, 16 }
 0x28d   : > { %vm5927_vm11 = vcmp.gt.f32.partialorder %v5778_v12, 0.0  ;;  %v6076_v15 = vmul.f32 0.2, %v5778_v12  ;;  %7476 = vmatmul.msk.bf16.gmra.mxu2 %vm1304_vm1, %v3351_v10  ;;  %v3369_v18 = vsel %vm2983_vm3, %v3359_v36, %v3368_v8 }
 0x28e   : > { %v1700_v20 = vpop.f32.mrf.mxu0 }
 0x28f   : > { %v6225_v19 = vsel %vm5927_vm11, %v5778_v12, %v6076_v15  ;;  %v2244_v25 = vpop.f32.mrf.mxu1  ;;  %v2242_v38 = vadd.f32 %v2241_v7, %v1700_v20  ;;  %v1039_v12 = vsel %vm699_vm2, %v1034_v4, %v1038_v5 }
 0x290   : > { %v6374_v23 = vpack.c.bf16 %v6225_v19, %v6225_v19  ;;  %v4055_v24 = vpop.f32.mrf.mxu2  ;;  %v8014_v19 = vld [vmem:[%s8201_s5 + $0x168] sm:$0xff] }
 0x291   : > { %v4336_v27 = vadd.f32 %v4055_v24, %v2240_v16  ;;  %v3374_v26 = vshll.u32 %v8014_v19, 16 }
 0x292   : > { %6524 = vst.msk [vmem:[%s8314_s9 + $0xf4] sm:$0xf] %vm6462_vm5, %v6374_v23  ;;  %v5500_v28 = vpop.f32.mrf.mxu3  ;;  %7100 = vmatmul.msk.bf16.gmra.mxu1 %vm1304_vm1, %v8962_v42 }
 0x293   : > { %v5779_v31 = vadd.f32 %v5498_v9, %v4336_v27 }
 0x295   : > { %vm5928_vm12 = vcmp.gt.f32.partialorder %v5779_v31, 0.0  ;;  %v6077_v35 = vmul.f32 0.2, %v5779_v31 }
 0x296   : > { %v1703_v39 = vpop.f32.mrf.mxu0 }
 0x297   : > { %v6226_v37 = vsel %vm5928_vm12, %v5779_v31, %v6077_v35  ;;  %7858 = vmatmul.msk.bf16.gmra.mxu3 %vm1304_vm1, %v5034_v34  ;;  %v2246_v43 = vpop.f32.mrf.mxu1  ;;  %v2245_v52 = vadd.f32 %v2244_v25, %v1703_v39  ;;  %v3371_v25 = vshrl.u32 %v8014_v19, 16  ;;  %v5037_v34 = vrot.slane %v9031_v22, 2 }
 0x298   : > { %v6375_v41 = vpack.c.bf16 %v6226_v37, %v6226_v37  ;;  %v4057_v42 = vpop.f32.mrf.mxu2 }
 0x299   : > { %v4337_v44 = vadd.f32 %v4057_v42, %v2242_v38  ;;  %7021 = vmatmul.msk.bf16.gmra.mxu0 %vm1304_vm1, %v1031_v40  ;;  %v3373_v37 = vrot.slane %v3371_v25, 1  ;;  %v3376_v38 = vrot.slane %v3374_v26, 2  ;;  %v1042_v40 = vor.u32 %v1040_v29, %v1038_v5  ;;  %v9072_v29 = vld [vmem:[%s8201_s5 + $0x168] sm:$0xff] }
 0x29a   : > { %6525 = vst.msk [vmem:[%s8314_s9 + $0xf8] sm:$0xf] %vm6462_vm5, %v6375_v41  ;;  %v5503_v45 = vpop.f32.mrf.mxu3  ;;  %v1046_v41 = vrot.slane %v1044_v30, 1  ;;  %v5038_v42 = vsel %vm1530_vm0, %v5035_v62, %v5037_v34  ;;  %v9075_v30 = vld [vmem:[%s8201_s5 + $0x178] sm:$0xff] }
 0x29b   : > { %v5780_v48 = vadd.f32 %v5500_v28, %v4337_v44  ;;  %v3377_v44 = vor.u32 %v3376_v38, %v3373_v37  ;;  %v1056_v37 = vshrl.u32 %v9050_v57, 16  ;;  %v1060_v38 = vshll.u32 %v9072_v29, 16 }
 0x29d   : > { %vm5929_vm13 = vcmp.gt.f32.partialorder %v5780_v48, 0.0  ;;  %v6078_v51 = vmul.f32 0.2, %v5780_v48  ;;  %7477 = vmatmul.msk.bf16.gmra.mxu2 %vm1304_vm1, %v3360_v46  ;;  %v3378_v54 = vsel %vm2983_vm3, %v3368_v8, %v3377_v44 }
 0x29e   : > { %v1705_v56 = vpop.f32.mrf.mxu0 }
 0x29f   : > { %v6227_v55 = vsel %vm5929_vm13, %v5780_v48, %v6078_v51  ;;  %v2249_v61 = vpop.f32.mrf.mxu1  ;;  %v2247_v10 = vadd.f32 %v2246_v43, %v1705_v56  ;;  %v1047_v48 = vsel %vm699_vm2, %v1042_v40, %v1046_v41 }
 0x2a0   : > { %v6376_v59 = vpack.c.bf16 %v6227_v55, %v6227_v55  ;;  %v4060_v60 = vpop.f32.mrf.mxu2  ;;  %v8015_v55 = vld [vmem:[%s8201_s5 + $0x170] sm:$0xff] }
 0x2a1   : > { %v4338_v63 = vadd.f32 %v4060_v60, %v2245_v52  ;;  %v3383_v62 = vshll.u32 %v8015_v55, 16 }
 0x2a2   : > { %6526 = vst.msk [vmem:[%s8314_s9 + $0xfc] sm:$0xf] %vm6462_vm5, %v6376_v59  ;;  %v5505_v0 = vpop.f32.mrf.mxu3  ;;  %7101 = vmatmul.msk.bf16.gmra.mxu1 %vm1304_vm1, %v8984_v14 }
 0x2a3   : > { %v5781_v3 = vadd.f32 %v5503_v45, %v4338_v63 }
 0x2a5   : > { %vm5930_vm14 = vcmp.gt.f32.partialorder %v5781_v3, 0.0  ;;  %v6079_v7 = vmul.f32 0.2, %v5781_v3 }
 0x2a6   : > { %v1708_v11 = vpop.f32.mrf.mxu0 }
 0x2a7   : > { %v6228_v9 = vsel %vm5930_vm14, %v5781_v3, %v6079_v7  ;;  %7859 = vmatmul.msk.bf16.gmra.mxu3 %vm1304_vm1, %v5036_v6  ;;  %v2251_v15 = vpop.f32.mrf.mxu1  ;;  %v2250_v24 = vadd.f32 %v2249_v61, %v1708_v11  ;;  %v3380_v61 = vshrl.u32 %v8015_v55, 16  ;;  %v5039_v6 = vrot.slane %v9053_v58, 2 }
 0x2a8   : > { %v6377_v13 = vpack.c.bf16 %v6228_v9, %v6228_v9  ;;  %v4062_v14 = vpop.f32.mrf.mxu2 }
 0x2a9   : > { %v4339_v16 = vadd.f32 %v4062_v14, %v2247_v10  ;;  %7022 = vmatmul.msk.bf16.gmra.mxu0 %vm1304_vm1, %v1039_v12  ;;  %v3382_v9 = vrot.slane %v3380_v61, 1  ;;  %v3385_v10 = vrot.slane %v3383_v62, 2  ;;  %v1050_v12 = vor.u32 %v1048_v1, %v1046_v41  ;;  %v9094_v1 = vld [vmem:[%s8201_s5 + $0x170] sm:$0xff] }
 0x2aa   : > { %6527 = vst.msk [vmem:[%s8314_s9 + $0x100] sm:$0xf] %vm6462_vm5, %v6377_v13  ;;  %v5508_v17 = vpop.f32.mrf.mxu3  ;;  %v1054_v13 = vrot.slane %v1052_v2, 1  ;;  %v5040_v14 = vsel %vm1530_vm0, %v5037_v34, %v5039_v6  ;;  %v9097_v2 = vld [vmem:[%s8201_s5 + $0x180] sm:$0xff] }
 0x2ab   : > { %v5782_v20 = vadd.f32 %v5505_v0, %v4339_v16  ;;  %v3386_v16 = vor.u32 %v3385_v10, %v3382_v9  ;;  %v1064_v9 = vshrl.u32 %v9072_v29, 16  ;;  %v1068_v10 = vshll.u32 %v9094_v1, 16 }
 0x2ad   : > { %vm5931_vm15 = vcmp.gt.f32.partialorder %v5782_v20, 0.0  ;;  %v6080_v23 = vmul.f32 0.2, %v5782_v20  ;;  %7478 = vmatmul.msk.bf16.gmra.mxu2 %vm1304_vm1, %v3369_v18  ;;  %v3387_v26 = vsel %vm2983_vm3, %v3377_v44, %v3386_v16 }
 0x2ae   : > { %v1710_v28 = vpop.f32.mrf.mxu0 }
 0x2af   : > { %v6229_v27 = vsel %vm5931_vm15, %v5782_v20, %v6080_v23  ;;  %v2254_v33 = vpop.f32.mrf.mxu1  ;;  %v2252_v46 = vadd.f32 %v2251_v15, %v1710_v28  ;;  %v1055_v20 = vsel %vm699_vm2, %v1050_v12, %v1054_v13 }
 0x2b0   : > { %v6378_v31 = vpack.c.bf16 %v6229_v27, %v6229_v27  ;;  %v4065_v32 = vpop.f32.mrf.mxu2  ;;  %v8016_v27 = vld [vmem:[%s8201_s5 + $0x178] sm:$0xff] }
 0x2b1   : > { %v4340_v35 = vadd.f32 %v4065_v32, %v2250_v24  ;;  %v3392_v34 = vshll.u32 %v8016_v27, 16 }
 0x2b2   : > { %6528 = vst.msk [vmem:[%s8314_s9 + $0x104] sm:$0xf] %vm6462_vm5, %v6378_v31  ;;  %v5510_v36 = vpop.f32.mrf.mxu3  ;;  %7102 = vmatmul.msk.bf16.gmra.mxu1 %vm1304_vm1, %v9006_v50 }
 0x2b3   : > { %v5783_v39 = vadd.f32 %v5508_v17, %v4340_v35 }
 0x2b5   : > { %vm5932_vm4 = vcmp.gt.f32.partialorder %v5783_v39, 0.0  ;;  %v6081_v43 = vmul.f32 0.2, %v5783_v39 }
 0x2b6   : > { %v1713_v47 = vpop.f32.mrf.mxu0 }
 0x2b7   : > { %v6230_v45 = vsel %vm5932_vm4, %v5783_v39, %v6081_v43  ;;  %7860 = vmatmul.msk.bf16.gmra.mxu3 %vm1304_vm1, %v5038_v42  ;;  %v2256_v51 = vpop.f32.mrf.mxu1  ;;  %v2255_v60 = vadd.f32 %v2254_v33, %v1713_v47  ;;  %v3389_v33 = vshrl.u32 %v8016_v27, 16  ;;  %v5041_v42 = vrot.slane %v9075_v30, 2 }
 0x2b8   : > { %v6379_v49 = vpack.c.bf16 %v6230_v45, %v6230_v45  ;;  %v4067_v50 = vpop.f32.mrf.mxu2 }
 0x2b9   : > { %v4341_v52 = vadd.f32 %v4067_v50, %v2252_v46  ;;  %7023 = vmatmul.msk.bf16.gmra.mxu0 %vm1304_vm1, %v1047_v48  ;;  %v3391_v45 = vrot.slane %v3389_v33, 1  ;;  %v3394_v46 = vrot.slane %v3392_v34, 2  ;;  %v1058_v48 = vor.u32 %v1056_v37, %v1054_v13  ;;  %v9116_v37 = vld [vmem:[%s8201_s5 + $0x178] sm:$0xff] }
 0x2ba   : > { %6529 = vst.msk [vmem:[%s8314_s9 + $0x108] sm:$0xf] %vm6462_vm5, %v6379_v49  ;;  %v5513_v53 = vpop.f32.mrf.mxu3  ;;  %v1062_v49 = vrot.slane %v1060_v38, 1  ;;  %v5042_v50 = vsel %vm1530_vm0, %v5039_v6, %v5041_v42  ;;  %v9119_v38 = vld [vmem:[%s8201_s5 + $0x188] sm:$0xff] }
 0x2bb   : > { %v5784_v56 = vadd.f32 %v5510_v36, %v4341_v52  ;;  %v3395_v52 = vor.u32 %v3394_v46, %v3391_v45  ;;  %v1072_v45 = vshrl.u32 %v9094_v1, 16  ;;  %v1076_v46 = vshll.u32 %v9116_v37, 16 }
 0x2bd   : > { %vm5933_vm6 = vcmp.gt.f32.partialorder %v5784_v56, 0.0  ;;  %v6082_v59 = vmul.f32 0.2, %v5784_v56  ;;  %7479 = vmatmul.msk.bf16.gmra.mxu2 %vm1304_vm1, %v3378_v54  ;;  %v3396_v62 = vsel %vm2983_vm3, %v3386_v16, %v3395_v52 }
 0x2be   : > { %v1715_v0 = vpop.f32.mrf.mxu0 }
 0x2bf   : > { %v6231_v63 = vsel %vm5933_vm6, %v5784_v56, %v6082_v59  ;;  %v2259_v5 = vpop.f32.mrf.mxu1  ;;  %v2257_v18 = vadd.f32 %v2256_v51, %v1715_v0  ;;  %v1063_v56 = vsel %vm699_vm2, %v1058_v48, %v1062_v49 }
 0x2c0   : > { %v6380_v3 = vpack.c.bf16 %v6231_v63, %v6231_v63  ;;  %v4070_v4 = vpop.f32.mrf.mxu2  ;;  %v8017_v63 = vld [vmem:[%s8201_s5 + $0x180] sm:$0xff] }
 0x2c1   : > { %v4342_v7 = vadd.f32 %v4070_v4, %v2255_v60  ;;  %v3401_v6 = vshll.u32 %v8017_v63, 16 }
 0x2c2   : > { %6530 = vst.msk [vmem:[%s8314_s9 + $0x10c] sm:$0xf] %vm6462_vm5, %v6380_v3  ;;  %v5515_v8 = vpop.f32.mrf.mxu3  ;;  %7103 = vmatmul.msk.bf16.gmra.mxu1 %vm1304_vm1, %v9028_v21 }
 0x2c3   : > { %v5785_v11 = vadd.f32 %v5513_v53, %v4342_v7 }
 0x2c5   : > { %vm5934_vm7 = vcmp.gt.f32.partialorder %v5785_v11, 0.0  ;;  %v6083_v15 = vmul.f32 0.2, %v5785_v11 }
 0x2c6   : > { %v1718_v19 = vpop.f32.mrf.mxu0 }
 0x2c7   : > { %v6232_v17 = vsel %vm5934_vm7, %v5785_v11, %v6083_v15  ;;  %7861 = vmatmul.msk.bf16.gmra.mxu3 %vm1304_vm1, %v5040_v14  ;;  %v2261_v23 = vpop.f32.mrf.mxu1  ;;  %v2260_v32 = vadd.f32 %v2259_v5, %v1718_v19  ;;  %v3398_v5 = vshrl.u32 %v8017_v63, 16  ;;  %v5043_v14 = vrot.slane %v9097_v2, 2 }
 0x2c8   : > { %v6381_v22 = vpack.c.bf16 %v6232_v17, %v6232_v17  ;;  %v4072_v21 = vpop.f32.mrf.mxu2 }
 0x2c9   : > { %v4343_v24 = vadd.f32 %v4072_v21, %v2257_v18  ;;  %7024 = vmatmul.msk.bf16.gmra.mxu0 %vm1304_vm1, %v1055_v20  ;;  %v3400_v17 = vrot.slane %v3398_v5, 1  ;;  %v3403_v18 = vrot.slane %v3401_v6, 2  ;;  %v1066_v20 = vor.u32 %v1064_v9, %v1062_v49  ;;  %v9138_v9 = vld [vmem:[%s8201_s5 + $0x180] sm:$0xff] }
 0x2ca   : > { %6531 = vst.msk [vmem:[%s8314_s9 + $0x110] sm:$0xf] %vm6462_vm5, %v6381_v22  ;;  %v5518_v25 = vpop.f32.mrf.mxu3  ;;  %v1070_v22 = vrot.slane %v1068_v10, 1  ;;  %v5044_v21 = vsel %vm1530_vm0, %v5041_v42, %v5043_v14  ;;  %v9141_v10 = vld [vmem:[%s8201_s5 + $0x190] sm:$0xff] }
 0x2cb   : > { %v5786_v28 = vadd.f32 %v5515_v8, %v4343_v24  ;;  %v3404_v24 = vor.u32 %v3403_v18, %v3400_v17  ;;  %v1080_v17 = vshrl.u32 %v9116_v37, 16  ;;  %v1084_v18 = vshll.u32 %v9138_v9, 16 }
 0x2cd   : > { %vm5935_vm8 = vcmp.gt.f32.partialorder %v5786_v28, 0.0  ;;  %v6084_v31 = vmul.f32 0.2, %v5786_v28  ;;  %7480 = vmatmul.msk.bf16.gmra.mxu2 %vm1304_vm1, %v3387_v26  ;;  %v3405_v34 = vsel %vm2983_vm3, %v3395_v52, %v3404_v24 }
 0x2ce   : > { %v1720_v36 = vpop.f32.mrf.mxu0 }
 0x2cf   : > { %v6233_v35 = vsel %vm5935_vm8, %v5786_v28, %v6084_v31  ;;  %v2264_v41 = vpop.f32.mrf.mxu1  ;;  %v2262_v54 = vadd.f32 %v2261_v23, %v1720_v36  ;;  %v1071_v28 = vsel %vm699_vm2, %v1066_v20, %v1070_v22 }
 0x2d0   : > { %v6382_v39 = vpack.c.bf16 %v6233_v35, %v6233_v35  ;;  %v4075_v40 = vpop.f32.mrf.mxu2  ;;  %v8018_v35 = vld [vmem:[%s8201_s5 + $0x188] sm:$0xff] }
 0x2d1   : > { %v4344_v43 = vadd.f32 %v4075_v40, %v2260_v32  ;;  %v3410_v42 = vshll.u32 %v8018_v35, 16 }
 0x2d2   : > { %6532 = vst.msk [vmem:[%s8314_s9 + $0x114] sm:$0xf] %vm6462_vm5, %v6382_v39  ;;  %v5520_v44 = vpop.f32.mrf.mxu3  ;;  %7104 = vmatmul.msk.bf16.gmra.mxu1 %vm1304_vm1, %v9050_v57 }
 0x2d3   : > { %v5787_v47 = vadd.f32 %v5518_v25, %v4344_v43 }
 0x2d5   : > { %vm5936_vm9 = vcmp.gt.f32.partialorder %v5787_v47, 0.0  ;;  %v6085_v51 = vmul.f32 0.2, %v5787_v47 }
 0x2d6   : > { %v1723_v55 = vpop.f32.mrf.mxu0 }
 0x2d7   : > { %v6234_v53 = vsel %vm5936_vm9, %v5787_v47, %v6085_v51  ;;  %7862 = vmatmul.msk.bf16.gmra.mxu3 %vm1304_vm1, %v5042_v50  ;;  %v2266_v59 = vpop.f32.mrf.mxu1  ;;  %v2265_v4 = vadd.f32 %v2264_v41, %v1723_v55  ;;  %v3407_v41 = vshrl.u32 %v8018_v35, 16  ;;  %v5045_v50 = vrot.slane %v9119_v38, 2 }
 0x2d8   : > { %v6383_v58 = vpack.c.bf16 %v6234_v53, %v6234_v53  ;;  %v4077_v57 = vpop.f32.mrf.mxu2 }
 0x2d9   : > { %v4345_v60 = vadd.f32 %v4077_v57, %v2262_v54  ;;  %7025 = vmatmul.msk.bf16.gmra.mxu0 %vm1304_vm1, %v1063_v56  ;;  %v3409_v53 = vrot.slane %v3407_v41, 1  ;;  %v3412_v54 = vrot.slane %v3410_v42, 2  ;;  %v1074_v56 = vor.u32 %v1072_v45, %v1070_v22  ;;  %v9160_v45 = vld [vmem:[%s8201_s5 + $0x188] sm:$0xff] }
 0x2da   : > { %6533 = vst.msk [vmem:[%s8314_s9 + $0x118] sm:$0xf] %vm6462_vm5, %v6383_v58  ;;  %v5523_v61 = vpop.f32.mrf.mxu3  ;;  %v1078_v58 = vrot.slane %v1076_v46, 1  ;;  %v5046_v57 = vsel %vm1530_vm0, %v5043_v14, %v5045_v50  ;;  %v9163_v46 = vld [vmem:[%s8201_s5 + $0x198] sm:$0xff] }
 0x2db   : > { %v5788_v0 = vadd.f32 %v5520_v44, %v4345_v60  ;;  %v3413_v60 = vor.u32 %v3412_v54, %v3409_v53  ;;  %v1088_v53 = vshrl.u32 %v9138_v9, 16  ;;  %v1092_v54 = vshll.u32 %v9160_v45, 16 }
 0x2dd   : > { %vm5937_vm10 = vcmp.gt.f32.partialorder %v5788_v0, 0.0  ;;  %v6086_v3 = vmul.f32 0.2, %v5788_v0  ;;  %7481 = vmatmul.msk.bf16.gmra.mxu2 %vm1304_vm1, %v3396_v62  ;;  %v3414_v6 = vsel %vm2983_vm3, %v3404_v24, %v3413_v60 }
 0x2de   : > { %v1725_v8 = vpop.f32.mrf.mxu0 }
 0x2df   : > { %v6235_v7 = vsel %vm5937_vm10, %v5788_v0, %v6086_v3  ;;  %v2269_v13 = vpop.f32.mrf.mxu1  ;;  %v2267_v26 = vadd.f32 %v2266_v59, %v1725_v8  ;;  %v1079_v0 = vsel %vm699_vm2, %v1074_v56, %v1078_v58 }
 0x2e0   : > { %v6384_v11 = vpack.c.bf16 %v6235_v7, %v6235_v7  ;;  %v4080_v12 = vpop.f32.mrf.mxu2  ;;  %v8019_v7 = vld [vmem:[%s8201_s5 + $0x190] sm:$0xff] }
 0x2e1   : > { %v4346_v15 = vadd.f32 %v4080_v12, %v2265_v4  ;;  %v3419_v14 = vshll.u32 %v8019_v7, 16 }
 0x2e2   : > { %6534 = vst.msk [vmem:[%s8314_s9 + $0x11c] sm:$0xf] %vm6462_vm5, %v6384_v11  ;;  %v5525_v16 = vpop.f32.mrf.mxu3  ;;  %7105 = vmatmul.msk.bf16.gmra.mxu1 %vm1304_vm1, %v9072_v29 }
 0x2e3   : > { %v5789_v19 = vadd.f32 %v5523_v61, %v4346_v15 }
 0x2e5   : > { %vm5938_vm11 = vcmp.gt.f32.partialorder %v5789_v19, 0.0  ;;  %v6087_v23 = vmul.f32 0.2, %v5789_v19 }
 0x2e6   : > { %v1728_v27 = vpop.f32.mrf.mxu0 }
 0x2e7   : > { %v6236_v25 = vsel %vm5938_vm11, %v5789_v19, %v6087_v23  ;;  %7863 = vmatmul.msk.bf16.gmra.mxu3 %vm1304_vm1, %v5044_v21  ;;  %v2271_v31 = vpop.f32.mrf.mxu1  ;;  %v2270_v40 = vadd.f32 %v2269_v13, %v1728_v27  ;;  %v3416_v13 = vshrl.u32 %v8019_v7, 16  ;;  %v5047_v21 = vrot.slane %v9141_v10, 2 }
 0x2e8   : > { %v6385_v30 = vpack.c.bf16 %v6236_v25, %v6236_v25  ;;  %v4082_v29 = vpop.f32.mrf.mxu2 }
 0x2e9   : > { %v4347_v32 = vadd.f32 %v4082_v29, %v2267_v26  ;;  %7026 = vmatmul.msk.bf16.gmra.mxu0 %vm1304_vm1, %v1071_v28  ;;  %v3418_v25 = vrot.slane %v3416_v13, 1  ;;  %v3421_v26 = vrot.slane %v3419_v14, 2  ;;  %v1082_v28 = vor.u32 %v1080_v17, %v1078_v58  ;;  %v9182_v17 = vld [vmem:[%s8201_s5 + $0x190] sm:$0xff] }
 0x2ea   : > { %6535 = vst.msk [vmem:[%s8314_s9 + $0x120] sm:$0xf] %vm6462_vm5, %v6385_v30  ;;  %v5528_v33 = vpop.f32.mrf.mxu3  ;;  %v1086_v30 = vrot.slane %v1084_v18, 1  ;;  %v5048_v29 = vsel %vm1530_vm0, %v5045_v50, %v5047_v21  ;;  %v9185_v18 = vld [vmem:[%s8201_s5 + $0x1a0] sm:$0xff] }
 0x2eb   : > { %v5790_v36 = vadd.f32 %v5525_v16, %v4347_v32  ;;  %v3422_v32 = vor.u32 %v3421_v26, %v3418_v25  ;;  %v1096_v25 = vshrl.u32 %v9160_v45, 16  ;;  %v1100_v26 = vshll.u32 %v9182_v17, 16 }
 0x2ed   : > { %vm5939_vm12 = vcmp.gt.f32.partialorder %v5790_v36, 0.0  ;;  %v6088_v39 = vmul.f32 0.2, %v5790_v36  ;;  %7482 = vmatmul.msk.bf16.gmra.mxu2 %vm1304_vm1, %v3405_v34  ;;  %v3423_v42 = vsel %vm2983_vm3, %v3413_v60, %v3422_v32 }
 0x2ee   : > { %v1730_v44 = vpop.f32.mrf.mxu0 }
 0x2ef   : > { %v6237_v43 = vsel %vm5939_vm12, %v5790_v36, %v6088_v39  ;;  %v2274_v49 = vpop.f32.mrf.mxu1  ;;  %v2272_v62 = vadd.f32 %v2271_v31, %v1730_v44  ;;  %v1087_v36 = vsel %vm699_vm2, %v1082_v28, %v1086_v30 }
 0x2f0   : > { %v6386_v47 = vpack.c.bf16 %v6237_v43, %v6237_v43  ;;  %v4085_v48 = vpop.f32.mrf.mxu2  ;;  %v8020_v43 = vld [vmem:[%s8201_s5 + $0x198] sm:$0xff] }
 0x2f1   : > { %v4348_v51 = vadd.f32 %v4085_v48, %v2270_v40  ;;  %v3428_v50 = vshll.u32 %v8020_v43, 16 }
 0x2f2   : > { %6536 = vst.msk [vmem:[%s8314_s9 + $0x124] sm:$0xf] %vm6462_vm5, %v6386_v47  ;;  %v5530_v52 = vpop.f32.mrf.mxu3  ;;  %7106 = vmatmul.msk.bf16.gmra.mxu1 %vm1304_vm1, %v9094_v1 }
 0x2f3   : > { %v5791_v55 = vadd.f32 %v5528_v33, %v4348_v51 }
 0x2f5   : > { %vm5940_vm13 = vcmp.gt.f32.partialorder %v5791_v55, 0.0  ;;  %v6089_v59 = vmul.f32 0.2, %v5791_v55 }
 0x2f6   : > { %v1733_v63 = vpop.f32.mrf.mxu0 }
 0x2f7   : > { %v6238_v61 = vsel %vm5940_vm13, %v5791_v55, %v6089_v59  ;;  %7864 = vmatmul.msk.bf16.gmra.mxu3 %vm1304_vm1, %v5046_v57  ;;  %v2276_v3 = vpop.f32.mrf.mxu1  ;;  %v2275_v12 = vadd.f32 %v2274_v49, %v1733_v63  ;;  %v3425_v49 = vshrl.u32 %v8020_v43, 16  ;;  %v5049_v57 = vrot.slane %v9163_v46, 2 }
 0x2f8   : > { %v6387_v2 = vpack.c.bf16 %v6238_v61, %v6238_v61  ;;  %v4087_v1 = vpop.f32.mrf.mxu2 }
 0x2f9   : > { %v4349_v4 = vadd.f32 %v4087_v1, %v2272_v62  ;;  %7027 = vmatmul.msk.bf16.gmra.mxu0 %vm1304_vm1, %v1079_v0  ;;  %v3427_v61 = vrot.slane %v3425_v49, 1  ;;  %v3430_v62 = vrot.slane %v3428_v50, 2  ;;  %v1090_v0 = vor.u32 %v1088_v53, %v1086_v30  ;;  %v9204_v53 = vld [vmem:[%s8201_s5 + $0x198] sm:$0xff] }
 0x2fa   : > { %6537 = vst.msk [vmem:[%s8314_s9 + $0x128] sm:$0xf] %vm6462_vm5, %v6387_v2  ;;  %v5533_v5 = vpop.f32.mrf.mxu3  ;;  %v1094_v2 = vrot.slane %v1092_v54, 1  ;;  %v5050_v1 = vsel %vm1530_vm0, %v5047_v21, %v5049_v57  ;;  %v9207_v54 = vld [vmem:[%s8201_s5 + $0x1a8] sm:$0xff] }
 0x2fb   : > { %v5792_v8 = vadd.f32 %v5530_v52, %v4349_v4  ;;  %v3431_v4 = vor.u32 %v3430_v62, %v3427_v61  ;;  %v1104_v61 = vshrl.u32 %v9182_v17, 16  ;;  %v1108_v62 = vshll.u32 %v9204_v53, 16 }
 0x2fd   : > { %vm5941_vm14 = vcmp.gt.f32.partialorder %v5792_v8, 0.0  ;;  %v6090_v11 = vmul.f32 0.2, %v5792_v8  ;;  %7483 = vmatmul.msk.bf16.gmra.mxu2 %vm1304_vm1, %v3414_v6  ;;  %v3432_v14 = vsel %vm2983_vm3, %v3422_v32, %v3431_v4 }
 0x2fe   : > { %v1735_v16 = vpop.f32.mrf.mxu0 }
 0x2ff   : > { %v6239_v15 = vsel %vm5941_vm14, %v5792_v8, %v6090_v11  ;;  %v2279_v22 = vpop.f32.mrf.mxu1  ;;  %v2277_v34 = vadd.f32 %v2276_v3, %v1735_v16  ;;  %v1095_v8 = vsel %vm699_vm2, %v1090_v0, %v1094_v2 }
 0x300   : > { %v6388_v19 = vpack.c.bf16 %v6239_v15, %v6239_v15  ;;  %v4090_v20 = vpop.f32.mrf.mxu2  ;;  %v8021_v15 = vld [vmem:[%s8201_s5 + $0x1a0] sm:$0xff] }
 0x301   : > { %v4350_v23 = vadd.f32 %v4090_v20, %v2275_v12  ;;  %v3437_v21 = vshll.u32 %v8021_v15, 16 }
 0x302   : > { %6538 = vst.msk [vmem:[%s8314_s9 + $0x12c] sm:$0xf] %vm6462_vm5, %v6388_v19  ;;  %v5535_v24 = vpop.f32.mrf.mxu3  ;;  %7107 = vmatmul.msk.bf16.gmra.mxu1 %vm1304_vm1, %v9116_v37 }
 0x303   : > { %v5793_v27 = vadd.f32 %v5533_v5, %v4350_v23 }
 0x305   : > { %vm5942_vm15 = vcmp.gt.f32.partialorder %v5793_v27, 0.0  ;;  %v6091_v31 = vmul.f32 0.2, %v5793_v27 }
 0x306   : > { %v1738_v35 = vpop.f32.mrf.mxu0 }
 0x307   : > { %v6240_v33 = vsel %vm5942_vm15, %v5793_v27, %v6091_v31  ;;  %7865 = vmatmul.msk.bf16.gmra.mxu3 %vm1304_vm1, %v5048_v29  ;;  %v2281_v39 = vpop.f32.mrf.mxu1  ;;  %v2280_v48 = vadd.f32 %v2279_v22, %v1738_v35  ;;  %v3434_v22 = vshrl.u32 %v8021_v15, 16  ;;  %v5051_v29 = vrot.slane %v9185_v18, 2 }
 0x308   : > { %v6389_v38 = vpack.c.bf16 %v6240_v33, %v6240_v33  ;;  %v4092_v37 = vpop.f32.mrf.mxu2 }
 0x309   : > { %v4351_v40 = vadd.f32 %v4092_v37, %v2277_v34  ;;  %7028 = vmatmul.msk.bf16.gmra.mxu0 %vm1304_vm1, %v1087_v36  ;;  %v3436_v33 = vrot.slane %v3434_v22, 1  ;;  %v3439_v34 = vrot.slane %v3437_v21, 2  ;;  %v1098_v36 = vor.u32 %v1096_v25, %v1094_v2  ;;  %v9226_v25 = vld [vmem:[%s8201_s5 + $0x1a0] sm:$0xff] }
 0x30a   : > { %6539 = vst.msk [vmem:[%s8314_s9 + $0x130] sm:$0xf] %vm6462_vm5, %v6389_v38  ;;  %v5538_v41 = vpop.f32.mrf.mxu3  ;;  %v1102_v38 = vrot.slane %v1100_v26, 1  ;;  %v5052_v37 = vsel %vm1530_vm0, %v5049_v57, %v5051_v29  ;;  %v9229_v26 = vld [vmem:[%s8201_s5 + $0x1b0] sm:$0xff] }
 0x30b   : > { %v5794_v44 = vadd.f32 %v5535_v24, %v4351_v40  ;;  %v3440_v40 = vor.u32 %v3439_v34, %v3436_v33  ;;  %v1112_v33 = vshrl.u32 %v9204_v53, 16  ;;  %v1116_v34 = vshll.u32 %v9226_v25, 16 }
 0x30d   : > { %vm5943_vm4 = vcmp.gt.f32.partialorder %v5794_v44, 0.0  ;;  %v6092_v47 = vmul.f32 0.2, %v5794_v44  ;;  %7484 = vmatmul.msk.bf16.gmra.mxu2 %vm1304_vm1, %v3423_v42  ;;  %v3441_v50 = vsel %vm2983_vm3, %v3431_v4, %v3440_v40 }
 0x30e   : > { %v1740_v52 = vpop.f32.mrf.mxu0 }
 0x30f   : > { %v6241_v51 = vsel %vm5943_vm4, %v5794_v44, %v6092_v47  ;;  %v2284_v58 = vpop.f32.mrf.mxu1  ;;  %v2282_v6 = vadd.f32 %v2281_v39, %v1740_v52  ;;  %v1103_v44 = vsel %vm699_vm2, %v1098_v36, %v1102_v38 }
 0x310   : > { %v6390_v55 = vpack.c.bf16 %v6241_v51, %v6241_v51  ;;  %v4095_v56 = vpop.f32.mrf.mxu2  ;;  %v8022_v51 = vld [vmem:[%s8201_s5 + $0x1a8] sm:$0xff] }
 0x311   : > { %v4352_v59 = vadd.f32 %v4095_v56, %v2280_v48  ;;  %v3446_v57 = vshll.u32 %v8022_v51, 16 }
 0x312   : > { %6540 = vst.msk [vmem:[%s8314_s9 + $0x134] sm:$0xf] %vm6462_vm5, %v6390_v55  ;;  %v5540_v60 = vpop.f32.mrf.mxu3  ;;  %7108 = vmatmul.msk.bf16.gmra.mxu1 %vm1304_vm1, %v9138_v9 }
 0x313   : > { %v5795_v63 = vadd.f32 %v5538_v41, %v4352_v59 }
 0x315   : > { %vm5944_vm6 = vcmp.gt.f32.partialorder %v5795_v63, 0.0  ;;  %v6093_v3 = vmul.f32 0.2, %v5795_v63 }
 0x316   : > { %v1743_v7 = vpop.f32.mrf.mxu0 }
 0x317   : > { %v6242_v5 = vsel %vm5944_vm6, %v5795_v63, %v6093_v3  ;;  %7866 = vmatmul.msk.bf16.gmra.mxu3 %vm1304_vm1, %v5050_v1  ;;  %v2286_v11 = vpop.f32.mrf.mxu1  ;;  %v2285_v20 = vadd.f32 %v2284_v58, %v1743_v7  ;;  %v3443_v58 = vshrl.u32 %v8022_v51, 16  ;;  %v5053_v1 = vrot.slane %v9207_v54, 2 }
 0x318   : > { %v6391_v10 = vpack.c.bf16 %v6242_v5, %v6242_v5  ;;  %v4097_v9 = vpop.f32.mrf.mxu2 }
 0x319   : > { %v4353_v12 = vadd.f32 %v4097_v9, %v2282_v6  ;;  %7029 = vmatmul.msk.bf16.gmra.mxu0 %vm1304_vm1, %v1095_v8  ;;  %v3445_v5 = vrot.slane %v3443_v58, 1  ;;  %v3448_v6 = vrot.slane %v3446_v57, 2  ;;  %v1106_v8 = vor.u32 %v1104_v61, %v1102_v38  ;;  %v9248_v61 = vld [vmem:[%s8201_s5 + $0x1a8] sm:$0xff] }
 0x31a   : > { %6541 = vst.msk [vmem:[%s8314_s9 + $0x138] sm:$0xf] %vm6462_vm5, %v6391_v10  ;;  %v5543_v13 = vpop.f32.mrf.mxu3  ;;  %v1110_v10 = vrot.slane %v1108_v62, 1  ;;  %v5054_v9 = vsel %vm1530_vm0, %v5051_v29, %v5053_v1  ;;  %v9251_v62 = vld [vmem:[%s8201_s5 + $0x1b8] sm:$0xff] }
 0x31b   : > { %v5796_v16 = vadd.f32 %v5540_v60, %v4353_v12  ;;  %v3449_v12 = vor.u32 %v3448_v6, %v3445_v5  ;;  %v1120_v5 = vshrl.u32 %v9226_v25, 16  ;;  %v1124_v6 = vshll.u32 %v9248_v61, 16 }
 0x31d   : > { %vm5945_vm7 = vcmp.gt.f32.partialorder %v5796_v16, 0.0  ;;  %v6094_v19 = vmul.f32 0.2, %v5796_v16  ;;  %7485 = vmatmul.msk.bf16.gmra.mxu2 %vm1304_vm1, %v3432_v14  ;;  %v3450_v21 = vsel %vm2983_vm3, %v3440_v40, %v3449_v12 }
 0x31e   : > { %v1745_v24 = vpop.f32.mrf.mxu0 }
 0x31f   : > { %v6243_v23 = vsel %vm5945_vm7, %v5796_v16, %v6094_v19  ;;  %v2289_v30 = vpop.f32.mrf.mxu1  ;;  %v2287_v42 = vadd.f32 %v2286_v11, %v1745_v24  ;;  %v1111_v16 = vsel %vm699_vm2, %v1106_v8, %v1110_v10 }
 0x320   : > { %v6392_v27 = vpack.c.bf16 %v6243_v23, %v6243_v23  ;;  %v4100_v28 = vpop.f32.mrf.mxu2  ;;  %v8023_v23 = vld [vmem:[%s8201_s5 + $0x1b0] sm:$0xff] }
 0x321   : > { %v4354_v31 = vadd.f32 %v4100_v28, %v2285_v20  ;;  %v3455_v29 = vshll.u32 %v8023_v23, 16 }
 0x322   : > { %6542 = vst.msk [vmem:[%s8314_s9 + $0x13c] sm:$0xf] %vm6462_vm5, %v6392_v27  ;;  %v5545_v32 = vpop.f32.mrf.mxu3  ;;  %7109 = vmatmul.msk.bf16.gmra.mxu1 %vm1304_vm1, %v9160_v45 }
 0x323   : > { %v5797_v35 = vadd.f32 %v5543_v13, %v4354_v31 }
 0x325   : > { %vm5946_vm8 = vcmp.gt.f32.partialorder %v5797_v35, 0.0  ;;  %v6095_v39 = vmul.f32 0.2, %v5797_v35 }
 0x326   : > { %v1748_v43 = vpop.f32.mrf.mxu0 }
 0x327   : > { %v6244_v41 = vsel %vm5946_vm8, %v5797_v35, %v6095_v39  ;;  %7867 = vmatmul.msk.bf16.gmra.mxu3 %vm1304_vm1, %v5052_v37  ;;  %v2291_v47 = vpop.f32.mrf.mxu1  ;;  %v2290_v56 = vadd.f32 %v2289_v30, %v1748_v43  ;;  %v3452_v30 = vshrl.u32 %v8023_v23, 16  ;;  %v5055_v37 = vrot.slane %v9229_v26, 2 }
 0x328   : > { %v6393_v46 = vpack.c.bf16 %v6244_v41, %v6244_v41  ;;  %v4102_v45 = vpop.f32.mrf.mxu2 }
 0x329   : > { %v4355_v48 = vadd.f32 %v4102_v45, %v2287_v42  ;;  %7030 = vmatmul.msk.bf16.gmra.mxu0 %vm1304_vm1, %v1103_v44  ;;  %v3454_v41 = vrot.slane %v3452_v30, 1  ;;  %v3457_v42 = vrot.slane %v3455_v29, 2  ;;  %v1114_v44 = vor.u32 %v1112_v33, %v1110_v10  ;;  %v9270_v33 = vld [vmem:[%s8201_s5 + $0x1b0] sm:$0xff] }
 0x32a   : > { %6543 = vst.msk [vmem:[%s8314_s9 + $0x140] sm:$0xf] %vm6462_vm5, %v6393_v46  ;;  %v5548_v49 = vpop.f32.mrf.mxu3  ;;  %v1118_v46 = vrot.slane %v1116_v34, 1  ;;  %v5056_v45 = vsel %vm1530_vm0, %v5053_v1, %v5055_v37  ;;  %v9273_v34 = vld [vmem:[%s8201_s5 + $0x1c0] sm:$0xff] }
 0x32b   : > { %v5798_v52 = vadd.f32 %v5545_v32, %v4355_v48  ;;  %v3458_v48 = vor.u32 %v3457_v42, %v3454_v41  ;;  %v1128_v41 = vshrl.u32 %v9248_v61, 16  ;;  %v1132_v42 = vshll.u32 %v9270_v33, 16 }
 0x32d   : > { %vm5947_vm9 = vcmp.gt.f32.partialorder %v5798_v52, 0.0  ;;  %v6096_v55 = vmul.f32 0.2, %v5798_v52  ;;  %7486 = vmatmul.msk.bf16.gmra.mxu2 %vm1304_vm1, %v3441_v50  ;;  %v3459_v57 = vsel %vm2983_vm3, %v3449_v12, %v3458_v48 }
 0x32e   : > { %v1750_v60 = vpop.f32.mrf.mxu0 }
 0x32f   : > { %v6245_v59 = vsel %vm5947_vm9, %v5798_v52, %v6096_v55  ;;  %v2294_v2 = vpop.f32.mrf.mxu1  ;;  %v2292_v14 = vadd.f32 %v2291_v47, %v1750_v60  ;;  %v1119_v52 = vsel %vm699_vm2, %v1114_v44, %v1118_v46 }
 0x330   : > { %v6394_v63 = vpack.c.bf16 %v6245_v59, %v6245_v59  ;;  %v4105_v0 = vpop.f32.mrf.mxu2  ;;  %v8024_v59 = vld [vmem:[%s8201_s5 + $0x1b8] sm:$0xff] }
 0x331   : > { %v4356_v3 = vadd.f32 %v4105_v0, %v2290_v56  ;;  %v3464_v1 = vshll.u32 %v8024_v59, 16 }
 0x332   : > { %6544 = vst.msk [vmem:[%s8314_s9 + $0x144] sm:$0xf] %vm6462_vm5, %v6394_v63  ;;  %v5550_v4 = vpop.f32.mrf.mxu3  ;;  %7110 = vmatmul.msk.bf16.gmra.mxu1 %vm1304_vm1, %v9182_v17 }
 0x333   : > { %v5799_v7 = vadd.f32 %v5548_v49, %v4356_v3 }
 0x335   : > { %vm5948_vm10 = vcmp.gt.f32.partialorder %v5799_v7, 0.0  ;;  %v6097_v11 = vmul.f32 0.2, %v5799_v7 }
 0x336   : > { %v1753_v15 = vpop.f32.mrf.mxu0 }
 0x337   : > { %v6246_v13 = vsel %vm5948_vm10, %v5799_v7, %v6097_v11  ;;  %7868 = vmatmul.msk.bf16.gmra.mxu3 %vm1304_vm1, %v5054_v9  ;;  %v2296_v19 = vpop.f32.mrf.mxu1  ;;  %v2295_v28 = vadd.f32 %v2294_v2, %v1753_v15  ;;  %v3461_v2 = vshrl.u32 %v8024_v59, 16  ;;  %v5057_v9 = vrot.slane %v9251_v62, 2 }
 0x338   : > { %v6395_v18 = vpack.c.bf16 %v6246_v13, %v6246_v13  ;;  %v4107_v17 = vpop.f32.mrf.mxu2 }
 0x339   : > { %v4357_v20 = vadd.f32 %v4107_v17, %v2292_v14  ;;  %7031 = vmatmul.msk.bf16.gmra.mxu0 %vm1304_vm1, %v1111_v16  ;;  %v3463_v13 = vrot.slane %v3461_v2, 1  ;;  %v3466_v14 = vrot.slane %v3464_v1, 2  ;;  %v1122_v16 = vor.u32 %v1120_v5, %v1118_v46  ;;  %v9292_v5 = vld [vmem:[%s8201_s5 + $0x1b8] sm:$0xff] }
 0x33a   : > { %6545 = vst.msk [vmem:[%s8314_s9 + $0x148] sm:$0xf] %vm6462_vm5, %v6395_v18  ;;  %v5553_v22 = vpop.f32.mrf.mxu3  ;;  %v1126_v18 = vrot.slane %v1124_v6, 1  ;;  %v5058_v17 = vsel %vm1530_vm0, %v5055_v37, %v5057_v9  ;;  %v9295_v6 = vld [vmem:[%s8201_s5 + $0x1c8] sm:$0xff] }
 0x33b   : > { %v5800_v24 = vadd.f32 %v5550_v4, %v4357_v20  ;;  %v3467_v20 = vor.u32 %v3466_v14, %v3463_v13  ;;  %v1136_v13 = vshrl.u32 %v9270_v33, 16  ;;  %v1140_v14 = vshll.u32 %v9292_v5, 16 }
 0x33d   : > { %vm5949_vm11 = vcmp.gt.f32.partialorder %v5800_v24, 0.0  ;;  %v6098_v27 = vmul.f32 0.2, %v5800_v24  ;;  %7487 = vmatmul.msk.bf16.gmra.mxu2 %vm1304_vm1, %v3450_v21  ;;  %v3468_v29 = vsel %vm2983_vm3, %v3458_v48, %v3467_v20 }
 0x33e   : > { %v1755_v32 = vpop.f32.mrf.mxu0 }
 0x33f   : > { %v6247_v31 = vsel %vm5949_vm11, %v5800_v24, %v6098_v27  ;;  %v2299_v38 = vpop.f32.mrf.mxu1  ;;  %v2297_v50 = vadd.f32 %v2296_v19, %v1755_v32  ;;  %v1127_v24 = vsel %vm699_vm2, %v1122_v16, %v1126_v18 }
 0x340   : > { %v6396_v35 = vpack.c.bf16 %v6247_v31, %v6247_v31  ;;  %v4110_v36 = vpop.f32.mrf.mxu2  ;;  %v8025_v31 = vld [vmem:[%s8201_s5 + $0x1c0] sm:$0xff] }
 0x341   : > { %v4358_v39 = vadd.f32 %v4110_v36, %v2295_v28  ;;  %v3473_v37 = vshll.u32 %v8025_v31, 16 }
 0x342   : > { %6546 = vst.msk [vmem:[%s8314_s9 + $0x14c] sm:$0xf] %vm6462_vm5, %v6396_v35  ;;  %v5555_v40 = vpop.f32.mrf.mxu3  ;;  %7111 = vmatmul.msk.bf16.gmra.mxu1 %vm1304_vm1, %v9204_v53 }
 0x343   : > { %v5801_v43 = vadd.f32 %v5553_v22, %v4358_v39 }
 0x345   : > { %vm5950_vm12 = vcmp.gt.f32.partialorder %v5801_v43, 0.0  ;;  %v6099_v47 = vmul.f32 0.2, %v5801_v43 }
 0x346   : > { %v1758_v51 = vpop.f32.mrf.mxu0 }
 0x347   : > { %v6248_v49 = vsel %vm5950_vm12, %v5801_v43, %v6099_v47  ;;  %7869 = vmatmul.msk.bf16.gmra.mxu3 %vm1304_vm1, %v5056_v45  ;;  %v2301_v55 = vpop.f32.mrf.mxu1  ;;  %v2300_v0 = vadd.f32 %v2299_v38, %v1758_v51  ;;  %v3470_v38 = vshrl.u32 %v8025_v31, 16  ;;  %v5059_v45 = vrot.slane %v9273_v34, 2 }
 0x348   : > { %v6397_v54 = vpack.c.bf16 %v6248_v49, %v6248_v49  ;;  %v4112_v53 = vpop.f32.mrf.mxu2 }
 0x349   : > { %v4359_v56 = vadd.f32 %v4112_v53, %v2297_v50  ;;  %7032 = vmatmul.msk.bf16.gmra.mxu0 %vm1304_vm1, %v1119_v52  ;;  %v3472_v49 = vrot.slane %v3470_v38, 1  ;;  %v3475_v50 = vrot.slane %v3473_v37, 2  ;;  %v1130_v52 = vor.u32 %v1128_v41, %v1126_v18  ;;  %v9314_v41 = vld [vmem:[%s8201_s5 + $0x1c0] sm:$0xff] }
 0x34a   : > { %6547 = vst.msk [vmem:[%s8314_s9 + $0x150] sm:$0xf] %vm6462_vm5, %v6397_v54  ;;  %v5558_v58 = vpop.f32.mrf.mxu3  ;;  %v1134_v54 = vrot.slane %v1132_v42, 1  ;;  %v5060_v53 = vsel %vm1530_vm0, %v5057_v9, %v5059_v45  ;;  %v9317_v42 = vld [vmem:[%s8201_s5 + $0x1d0] sm:$0xff] }
 0x34b   : > { %v5802_v60 = vadd.f32 %v5555_v40, %v4359_v56  ;;  %v3476_v56 = vor.u32 %v3475_v50, %v3472_v49  ;;  %v1144_v49 = vshrl.u32 %v9292_v5, 16  ;;  %v1148_v50 = vshll.u32 %v9314_v41, 16 }
 0x34d   : > { %vm5951_vm13 = vcmp.gt.f32.partialorder %v5802_v60, 0.0  ;;  %v6100_v63 = vmul.f32 0.2, %v5802_v60  ;;  %7488 = vmatmul.msk.bf16.gmra.mxu2 %vm1304_vm1, %v3459_v57  ;;  %v3477_v1 = vsel %vm2983_vm3, %v3467_v20, %v3476_v56 }
 0x34e   : > { %v1760_v4 = vpop.f32.mrf.mxu0 }
 0x34f   : > { %v6249_v3 = vsel %vm5951_vm13, %v5802_v60, %v6100_v63  ;;  %v2304_v10 = vpop.f32.mrf.mxu1  ;;  %v2302_v21 = vadd.f32 %v2301_v55, %v1760_v4  ;;  %v1135_v60 = vsel %vm699_vm2, %v1130_v52, %v1134_v54 }
 0x350   : > { %v6398_v7 = vpack.c.bf16 %v6249_v3, %v6249_v3  ;;  %v4115_v8 = vpop.f32.mrf.mxu2  ;;  %v8026_v3 = vld [vmem:[%s8201_s5 + $0x1c8] sm:$0xff] }
 0x351   : > { %v4360_v11 = vadd.f32 %v4115_v8, %v2300_v0  ;;  %v3482_v9 = vshll.u32 %v8026_v3, 16 }
 0x352   : > { %6548 = vst.msk [vmem:[%s8314_s9 + $0x154] sm:$0xf] %vm6462_vm5, %v6398_v7  ;;  %v5560_v12 = vpop.f32.mrf.mxu3  ;;  %7112 = vmatmul.msk.bf16.gmra.mxu1 %vm1304_vm1, %v9226_v25 }
 0x353   : > { %v5803_v15 = vadd.f32 %v5558_v58, %v4360_v11 }
 0x355   : > { %vm5952_vm14 = vcmp.gt.f32.partialorder %v5803_v15, 0.0  ;;  %v6101_v19 = vmul.f32 0.2, %v5803_v15 }
 0x356   : > { %v1763_v23 = vpop.f32.mrf.mxu0 }
 0x357   : > { %v6250_v22 = vsel %vm5952_vm14, %v5803_v15, %v6101_v19  ;;  %7870 = vmatmul.msk.bf16.gmra.mxu3 %vm1304_vm1, %v5058_v17  ;;  %v2306_v27 = vpop.f32.mrf.mxu1  ;;  %v2305_v36 = vadd.f32 %v2304_v10, %v1763_v23  ;;  %v3479_v10 = vshrl.u32 %v8026_v3, 16  ;;  %v5061_v17 = vrot.slane %v9295_v6, 2 }
 0x358   : > { %v6399_v26 = vpack.c.bf16 %v6250_v22, %v6250_v22  ;;  %v4117_v25 = vpop.f32.mrf.mxu2 }
 0x359   : > { %v4361_v28 = vadd.f32 %v4117_v25, %v2302_v21  ;;  %7033 = vmatmul.msk.bf16.gmra.mxu0 %vm1304_vm1, %v1127_v24  ;;  %v3481_v22 = vrot.slane %v3479_v10, 1  ;;  %v3484_v21 = vrot.slane %v3482_v9, 2  ;;  %v1138_v24 = vor.u32 %v1136_v13, %v1134_v54  ;;  %v9336_v13 = vld [vmem:[%s8201_s5 + $0x1c8] sm:$0xff] }
 0x35a   : > { %6549 = vst.msk [vmem:[%s8314_s9 + $0x158] sm:$0xf] %vm6462_vm5, %v6399_v26  ;;  %v5563_v30 = vpop.f32.mrf.mxu3  ;;  %v1142_v26 = vrot.slane %v1140_v14, 1  ;;  %v5062_v25 = vsel %vm1530_vm0, %v5059_v45, %v5061_v17  ;;  %v9339_v14 = vld [vmem:[%s8201_s5 + $0x1d8] sm:$0xff] }
 0x35b   : > { %v5804_v32 = vadd.f32 %v5560_v12, %v4361_v28  ;;  %v3485_v28 = vor.u32 %v3484_v21, %v3481_v22  ;;  %v1152_v22 = vshrl.u32 %v9314_v41, 16  ;;  %v1156_v21 = vshll.u32 %v9336_v13, 16 }
 0x35d   : > { %vm5953_vm15 = vcmp.gt.f32.partialorder %v5804_v32, 0.0  ;;  %v6102_v35 = vmul.f32 0.2, %v5804_v32  ;;  %7489 = vmatmul.msk.bf16.gmra.mxu2 %vm1304_vm1, %v3468_v29  ;;  %v3486_v37 = vsel %vm2983_vm3, %v3476_v56, %v3485_v28 }
 0x35e   : > { %v1765_v40 = vpop.f32.mrf.mxu0 }
 0x35f   : > { %v6251_v39 = vsel %vm5953_vm15, %v5804_v32, %v6102_v35  ;;  %v2309_v46 = vpop.f32.mrf.mxu1  ;;  %v2307_v57 = vadd.f32 %v2306_v27, %v1765_v40  ;;  %v1143_v32 = vsel %vm699_vm2, %v1138_v24, %v1142_v26 }
 0x360   : > { %v6400_v43 = vpack.c.bf16 %v6251_v39, %v6251_v39  ;;  %v4120_v44 = vpop.f32.mrf.mxu2  ;;  %v8027_v39 = vld [vmem:[%s8201_s5 + $0x1d0] sm:$0xff] }
 0x361   : > { %v4362_v47 = vadd.f32 %v4120_v44, %v2305_v36  ;;  %v3491_v45 = vshll.u32 %v8027_v39, 16 }
 0x362   : > { %6550 = vst.msk [vmem:[%s8314_s9 + $0x15c] sm:$0xf] %vm6462_vm5, %v6400_v43  ;;  %v5565_v48 = vpop.f32.mrf.mxu3  ;;  %7113 = vmatmul.msk.bf16.gmra.mxu1 %vm1304_vm1, %v9248_v61 }
 0x363   : > { %v5805_v51 = vadd.f32 %v5563_v30, %v4362_v47 }
 0x365   : > { %vm5954_vm4 = vcmp.gt.f32.partialorder %v5805_v51, 0.0  ;;  %v6103_v55 = vmul.f32 0.2, %v5805_v51 }
 0x366   : > { %v1768_v59 = vpop.f32.mrf.mxu0 }
 0x367   : > { %v6252_v58 = vsel %vm5954_vm4, %v5805_v51, %v6103_v55  ;;  %7871 = vmatmul.msk.bf16.gmra.mxu3 %vm1304_vm1, %v5060_v53  ;;  %v2311_v63 = vpop.f32.mrf.mxu1  ;;  %v2310_v8 = vadd.f32 %v2309_v46, %v1768_v59  ;;  %v3488_v46 = vshrl.u32 %v8027_v39, 16  ;;  %v5063_v53 = vrot.slane %v9317_v42, 2 }
 0x368   : > { %v6401_v62 = vpack.c.bf16 %v6252_v58, %v6252_v58  ;;  %v4122_v61 = vpop.f32.mrf.mxu2 }
 0x369   : > { %v4363_v0 = vadd.f32 %v4122_v61, %v2307_v57  ;;  %7034 = vmatmul.msk.bf16.gmra.mxu0 %vm1304_vm1, %v1135_v60  ;;  %v3490_v58 = vrot.slane %v3488_v46, 1  ;;  %v3493_v57 = vrot.slane %v3491_v45, 2  ;;  %v1146_v60 = vor.u32 %v1144_v49, %v1142_v26  ;;  %v9358_v49 = vld [vmem:[%s8201_s5 + $0x1d0] sm:$0xff] }
 0x36a   : > { %6551 = vst.msk [vmem:[%s8314_s9 + $0x160] sm:$0xf] %vm6462_vm5, %v6401_v62  ;;  %v5568_v2 = vpop.f32.mrf.mxu3  ;;  %v1150_v62 = vrot.slane %v1148_v50, 1  ;;  %v5064_v61 = vsel %vm1530_vm0, %v5061_v17, %v5063_v53  ;;  %v9361_v50 = vld [vmem:[%s8201_s5 + $0x1e0] sm:$0xff] }
 0x36b   : > { %v5806_v4 = vadd.f32 %v5565_v48, %v4363_v0  ;;  %v3494_v0 = vor.u32 %v3493_v57, %v3490_v58  ;;  %v1160_v58 = vshrl.u32 %v9336_v13, 16  ;;  %v1164_v57 = vshll.u32 %v9358_v49, 16 }
 0x36d   : > { %vm5955_vm6 = vcmp.gt.f32.partialorder %v5806_v4, 0.0  ;;  %v6104_v7 = vmul.f32 0.2, %v5806_v4  ;;  %7490 = vmatmul.msk.bf16.gmra.mxu2 %vm1304_vm1, %v3477_v1  ;;  %v3495_v9 = vsel %vm2983_vm3, %v3485_v28, %v3494_v0 }
 0x36e   : > { %v1770_v12 = vpop.f32.mrf.mxu0 }
 0x36f   : > { %v6253_v11 = vsel %vm5955_vm6, %v5806_v4, %v6104_v7  ;;  %v2314_v18 = vpop.f32.mrf.mxu1  ;;  %v2312_v29 = vadd.f32 %v2311_v63, %v1770_v12  ;;  %v1151_v4 = vsel %vm699_vm2, %v1146_v60, %v1150_v62 }
 0x370   : > { %v6402_v15 = vpack.c.bf16 %v6253_v11, %v6253_v11  ;;  %v4125_v16 = vpop.f32.mrf.mxu2  ;;  %v8028_v11 = vld [vmem:[%s8201_s5 + $0x1d8] sm:$0xff] }
 0x371   : > { %v4364_v19 = vadd.f32 %v4125_v16, %v2310_v8  ;;  %v3500_v17 = vshll.u32 %v8028_v11, 16 }
 0x372   : > { %6552 = vst.msk [vmem:[%s8314_s9 + $0x164] sm:$0xf] %vm6462_vm5, %v6402_v15  ;;  %v5570_v20 = vpop.f32.mrf.mxu3  ;;  %7114 = vmatmul.msk.bf16.gmra.mxu1 %vm1304_vm1, %v9270_v33 }
 0x373   : > { %v5807_v23 = vadd.f32 %v5568_v2, %v4364_v19 }
 0x375   : > { %vm5956_vm7 = vcmp.gt.f32.partialorder %v5807_v23, 0.0  ;;  %v6105_v27 = vmul.f32 0.2, %v5807_v23 }
 0x376   : > { %v1773_v31 = vpop.f32.mrf.mxu0 }
 0x377   : > { %v6254_v30 = vsel %vm5956_vm7, %v5807_v23, %v6105_v27  ;;  %7872 = vmatmul.msk.bf16.gmra.mxu3 %vm1304_vm1, %v5062_v25  ;;  %v2316_v35 = vpop.f32.mrf.mxu1  ;;  %v2315_v44 = vadd.f32 %v2314_v18, %v1773_v31  ;;  %v3497_v18 = vshrl.u32 %v8028_v11, 16  ;;  %v5065_v25 = vrot.slane %v9339_v14, 2 }
 0x378   : > { %v6403_v34 = vpack.c.bf16 %v6254_v30, %v6254_v30  ;;  %v4127_v33 = vpop.f32.mrf.mxu2 }
 0x379   : > { %v4365_v36 = vadd.f32 %v4127_v33, %v2312_v29  ;;  %7035 = vmatmul.msk.bf16.gmra.mxu0 %vm1304_vm1, %v1143_v32  ;;  %v3499_v30 = vrot.slane %v3497_v18, 1  ;;  %v3502_v29 = vrot.slane %v3500_v17, 2  ;;  %v1154_v32 = vor.u32 %v1152_v22, %v1150_v62  ;;  %v9380_v22 = vld [vmem:[%s8201_s5 + $0x1d8] sm:$0xff] }
 0x37a   : > { %6553 = vst.msk [vmem:[%s8314_s9 + $0x168] sm:$0xf] %vm6462_vm5, %v6403_v34  ;;  %v5573_v38 = vpop.f32.mrf.mxu3  ;;  %v1158_v34 = vrot.slane %v1156_v21, 1  ;;  %v5066_v33 = vsel %vm1530_vm0, %v5063_v53, %v5065_v25  ;;  %v9383_v21 = vld [vmem:[%s8201_s5 + $0x1e8] sm:$0xff] }
 0x37b   : > { %v5808_v40 = vadd.f32 %v5570_v20, %v4365_v36  ;;  %v3503_v36 = vor.u32 %v3502_v29, %v3499_v30  ;;  %v1168_v30 = vshrl.u32 %v9358_v49, 16  ;;  %v1172_v29 = vshll.u32 %v9380_v22, 16 }
 0x37d   : > { %vm5957_vm8 = vcmp.gt.f32.partialorder %v5808_v40, 0.0  ;;  %v6106_v43 = vmul.f32 0.2, %v5808_v40  ;;  %7491 = vmatmul.msk.bf16.gmra.mxu2 %vm1304_vm1, %v3486_v37  ;;  %v3504_v45 = vsel %vm2983_vm3, %v3494_v0, %v3503_v36 }
 0x37e   : > { %v1775_v48 = vpop.f32.mrf.mxu0 }
 0x37f   : > { %v6255_v47 = vsel %vm5957_vm8, %v5808_v40, %v6106_v43  ;;  %v2319_v54 = vpop.f32.mrf.mxu1  ;;  %v2317_v1 = vadd.f32 %v2316_v35, %v1775_v48  ;;  %v1159_v40 = vsel %vm699_vm2, %v1154_v32, %v1158_v34 }
 0x380   : > { %v6404_v51 = vpack.c.bf16 %v6255_v47, %v6255_v47  ;;  %v4130_v52 = vpop.f32.mrf.mxu2  ;;  %v8029_v47 = vld [vmem:[%s8201_s5 + $0x1e0] sm:$0xff] }
 0x381   : > { %v4366_v55 = vadd.f32 %v4130_v52, %v2315_v44  ;;  %v3509_v53 = vshll.u32 %v8029_v47, 16 }
 0x382   : > { %6554 = vst.msk [vmem:[%s8314_s9 + $0x16c] sm:$0xf] %vm6462_vm5, %v6404_v51  ;;  %v5575_v56 = vpop.f32.mrf.mxu3  ;;  %7115 = vmatmul.msk.bf16.gmra.mxu1 %vm1304_vm1, %v9292_v5 }
 0x383   : > { %v5809_v59 = vadd.f32 %v5573_v38, %v4366_v55 }
 0x385   : > { %vm5958_vm9 = vcmp.gt.f32.partialorder %v5809_v59, 0.0  ;;  %v6107_v63 = vmul.f32 0.2, %v5809_v59 }
 0x386   : > { %v1778_v3 = vpop.f32.mrf.mxu0 }
 0x387   : > { %v6256_v2 = vsel %vm5958_vm9, %v5809_v59, %v6107_v63  ;;  %7873 = vmatmul.msk.bf16.gmra.mxu3 %vm1304_vm1, %v5064_v61  ;;  %v2321_v7 = vpop.f32.mrf.mxu1  ;;  %v2320_v16 = vadd.f32 %v2319_v54, %v1778_v3  ;;  %v3506_v54 = vshrl.u32 %v8029_v47, 16  ;;  %v5067_v61 = vrot.slane %v9361_v50, 2 }
 0x388   : > { %v6405_v6 = vpack.c.bf16 %v6256_v2, %v6256_v2  ;;  %v4132_v5 = vpop.f32.mrf.mxu2 }
 0x389   : > { %v4367_v8 = vadd.f32 %v4132_v5, %v2317_v1  ;;  %7036 = vmatmul.msk.bf16.gmra.mxu0 %vm1304_vm1, %v1151_v4  ;;  %v3508_v2 = vrot.slane %v3506_v54, 1  ;;  %v3511_v1 = vrot.slane %v3509_v53, 2  ;;  %v1162_v4 = vor.u32 %v1160_v58, %v1158_v34  ;;  %v9402_v58 = vld [vmem:[%s8201_s5 + $0x1e0] sm:$0xff] }
 0x38a   : > { %6555 = vst.msk [vmem:[%s8314_s9 + $0x170] sm:$0xf] %vm6462_vm5, %v6405_v6  ;;  %v5578_v10 = vpop.f32.mrf.mxu3  ;;  %v1166_v6 = vrot.slane %v1164_v57, 1  ;;  %v5068_v5 = vsel %vm1530_vm0, %v5065_v25, %v5067_v61  ;;  %v9405_v57 = vld [vmem:[%s8201_s5 + $0x1f0] sm:$0xff] }
 0x38b   : > { %v5810_v12 = vadd.f32 %v5575_v56, %v4367_v8  ;;  %v3512_v8 = vor.u32 %v3511_v1, %v3508_v2  ;;  %v1176_v2 = vshrl.u32 %v9380_v22, 16  ;;  %v1180_v1 = vshll.u32 %v9402_v58, 16 }
 0x38d   : > { %vm5959_vm10 = vcmp.gt.f32.partialorder %v5810_v12, 0.0  ;;  %v6108_v15 = vmul.f32 0.2, %v5810_v12  ;;  %7492 = vmatmul.msk.bf16.gmra.mxu2 %vm1304_vm1, %v3495_v9  ;;  %v3513_v17 = vsel %vm2983_vm3, %v3503_v36, %v3512_v8 }
 0x38e   : > { %v1780_v20 = vpop.f32.mrf.mxu0 }
 0x38f   : > { %v6257_v19 = vsel %vm5959_vm10, %v5810_v12, %v6108_v15  ;;  %v2324_v26 = vpop.f32.mrf.mxu1  ;;  %v2322_v37 = vadd.f32 %v2321_v7, %v1780_v20  ;;  %v1167_v12 = vsel %vm699_vm2, %v1162_v4, %v1166_v6 }
 0x390   : > { %v6406_v23 = vpack.c.bf16 %v6257_v19, %v6257_v19  ;;  %v4135_v24 = vpop.f32.mrf.mxu2  ;;  %v8030_v19 = vld [vmem:[%s8201_s5 + $0x1e8] sm:$0xff] }
 0x391   : > { %v4368_v27 = vadd.f32 %v4135_v24, %v2320_v16  ;;  %v3518_v25 = vshll.u32 %v8030_v19, 16 }
 0x392   : > { %6556 = vst.msk [vmem:[%s8314_s9 + $0x174] sm:$0xf] %vm6462_vm5, %v6406_v23  ;;  %v5580_v28 = vpop.f32.mrf.mxu3  ;;  %7116 = vmatmul.msk.bf16.gmra.mxu1 %vm1304_vm1, %v9314_v41 }
 0x393   : > { %v5811_v31 = vadd.f32 %v5578_v10, %v4368_v27 }
 0x395   : > { %vm5960_vm11 = vcmp.gt.f32.partialorder %v5811_v31, 0.0  ;;  %v6109_v35 = vmul.f32 0.2, %v5811_v31 }
 0x396   : > { %v1783_v39 = vpop.f32.mrf.mxu0 }
 0x397   : > { %v6258_v38 = vsel %vm5960_vm11, %v5811_v31, %v6109_v35  ;;  %7874 = vmatmul.msk.bf16.gmra.mxu3 %vm1304_vm1, %v5066_v33  ;;  %v2326_v43 = vpop.f32.mrf.mxu1  ;;  %v2325_v52 = vadd.f32 %v2324_v26, %v1783_v39  ;;  %v3515_v26 = vshrl.u32 %v8030_v19, 16  ;;  %v5069_v33 = vrot.slane %v9383_v21, 2 }
 0x398   : > { %v6407_v42 = vpack.c.bf16 %v6258_v38, %v6258_v38  ;;  %v4137_v41 = vpop.f32.mrf.mxu2 }
 0x399   : > { %v4369_v44 = vadd.f32 %v4137_v41, %v2322_v37  ;;  %7037 = vmatmul.msk.bf16.gmra.mxu0 %vm1304_vm1, %v1159_v40  ;;  %v3517_v38 = vrot.slane %v3515_v26, 1  ;;  %v3520_v37 = vrot.slane %v3518_v25, 2  ;;  %v1170_v40 = vor.u32 %v1168_v30, %v1166_v6  ;;  %v9424_v30 = vld [vmem:[%s8201_s5 + $0x1e8] sm:$0xff] }
 0x39a   : > { %6557 = vst.msk [vmem:[%s8314_s9 + $0x178] sm:$0xf] %vm6462_vm5, %v6407_v42  ;;  %v5583_v46 = vpop.f32.mrf.mxu3  ;;  %v1174_v42 = vrot.slane %v1172_v29, 1  ;;  %v5070_v41 = vsel %vm1530_vm0, %v5067_v61, %v5069_v33  ;;  %v9427_v29 = vld [vmem:[%s8201_s5 + $0x1f8] sm:$0xff] }
 0x39b   : > { %v5812_v48 = vadd.f32 %v5580_v28, %v4369_v44  ;;  %v3521_v44 = vor.u32 %v3520_v37, %v3517_v38  ;;  %v1184_v38 = vshrl.u32 %v9402_v58, 16  ;;  %v1188_v37 = vshll.u32 %v9424_v30, 16 }
 0x39d   : > { %vm5961_vm12 = vcmp.gt.f32.partialorder %v5812_v48, 0.0  ;;  %v6110_v51 = vmul.f32 0.2, %v5812_v48  ;;  %7493 = vmatmul.msk.bf16.gmra.mxu2 %vm1304_vm1, %v3504_v45  ;;  %v3522_v53 = vsel %vm2983_vm3, %v3512_v8, %v3521_v44 }
 0x39e   : > { %v1785_v56 = vpop.f32.mrf.mxu0 }
 0x39f   : > { %v6259_v55 = vsel %vm5961_vm12, %v5812_v48, %v6110_v51  ;;  %v2329_v62 = vpop.f32.mrf.mxu1  ;;  %v2327_v9 = vadd.f32 %v2326_v43, %v1785_v56  ;;  %v1175_v48 = vsel %vm699_vm2, %v1170_v40, %v1174_v42 }
 0x3a0   : > { %v6408_v59 = vpack.c.bf16 %v6259_v55, %v6259_v55  ;;  %v4140_v60 = vpop.f32.mrf.mxu2  ;;  %v8031_v55 = vld [vmem:[%s8201_s5 + $0x1f0] sm:$0xff] }
 0x3a1   : > { %v4370_v63 = vadd.f32 %v4140_v60, %v2325_v52  ;;  %v3527_v61 = vshll.u32 %v8031_v55, 16 }
 0x3a2   : > { %6558 = vst.msk [vmem:[%s8314_s9 + $0x17c] sm:$0xf] %vm6462_vm5, %v6408_v59  ;;  %v5585_v0 = vpop.f32.mrf.mxu3  ;;  %7117 = vmatmul.msk.bf16.gmra.mxu1 %vm1304_vm1, %v9336_v13 }
 0x3a3   : > { %v5813_v3 = vadd.f32 %v5583_v46, %v4370_v63 }
 0x3a5   : > { %vm5962_vm13 = vcmp.gt.f32.partialorder %v5813_v3, 0.0  ;;  %v6111_v7 = vmul.f32 0.2, %v5813_v3 }
 0x3a6   : > { %v1788_v11 = vpop.f32.mrf.mxu0 }
 0x3a7   : > { %v6260_v10 = vsel %vm5962_vm13, %v5813_v3, %v6111_v7  ;;  %7875 = vmatmul.msk.bf16.gmra.mxu3 %vm1304_vm1, %v5068_v5  ;;  %v2331_v15 = vpop.f32.mrf.mxu1  ;;  %v2330_v24 = vadd.f32 %v2329_v62, %v1788_v11  ;;  %v3524_v62 = vshrl.u32 %v8031_v55, 16  ;;  %v5071_v5 = vrot.slane %v9405_v57, 2 }
 0x3a8   : > { %v6409_v14 = vpack.c.bf16 %v6260_v10, %v6260_v10  ;;  %v4142_v13 = vpop.f32.mrf.mxu2 }
 0x3a9   : > { %v4371_v16 = vadd.f32 %v4142_v13, %v2327_v9  ;;  %7038 = vmatmul.msk.bf16.gmra.mxu0 %vm1304_vm1, %v1167_v12  ;;  %v3526_v10 = vrot.slane %v3524_v62, 1  ;;  %v3529_v9 = vrot.slane %v3527_v61, 2  ;;  %v1178_v12 = vor.u32 %v1176_v2, %v1174_v42  ;;  %v9446_v2 = vld [vmem:[%s8201_s5 + $0x1f0] sm:$0xff] }
 0x3aa   : > { %6559 = vst.msk [vmem:[%s8314_s9 + $0x180] sm:$0xf] %vm6462_vm5, %v6409_v14  ;;  %v5588_v18 = vpop.f32.mrf.mxu3  ;;  %v1182_v14 = vrot.slane %v1180_v1, 1  ;;  %v5072_v13 = vsel %vm1530_vm0, %v5069_v33, %v5071_v5  ;;  %v9449_v1 = vld [vmem:[%s8201_s5 + $0x200] sm:$0xff] }
 0x3ab   : > { %v5814_v20 = vadd.f32 %v5585_v0, %v4371_v16  ;;  %v3530_v16 = vor.u32 %v3529_v9, %v3526_v10  ;;  %v1192_v10 = vshrl.u32 %v9424_v30, 16  ;;  %v1196_v9 = vshll.u32 %v9446_v2, 16 }
 0x3ad   : > { %vm5963_vm14 = vcmp.gt.f32.partialorder %v5814_v20, 0.0  ;;  %v6112_v23 = vmul.f32 0.2, %v5814_v20  ;;  %7494 = vmatmul.msk.bf16.gmra.mxu2 %vm1304_vm1, %v3513_v17  ;;  %v3531_v25 = vsel %vm2983_vm3, %v3521_v44, %v3530_v16 }
 0x3ae   : > { %v1790_v28 = vpop.f32.mrf.mxu0 }
 0x3af   : > { %v6261_v27 = vsel %vm5963_vm14, %v5814_v20, %v6112_v23  ;;  %v2334_v34 = vpop.f32.mrf.mxu1  ;;  %v2332_v45 = vadd.f32 %v2331_v15, %v1790_v28  ;;  %v1183_v20 = vsel %vm699_vm2, %v1178_v12, %v1182_v14 }
 0x3b0   : > { %v6410_v31 = vpack.c.bf16 %v6261_v27, %v6261_v27  ;;  %v4145_v32 = vpop.f32.mrf.mxu2  ;;  %v8032_v27 = vld [vmem:[%s8201_s5 + $0x1f8] sm:$0xff] }
 0x3b1   : > { %v4372_v35 = vadd.f32 %v4145_v32, %v2330_v24  ;;  %v3536_v33 = vshll.u32 %v8032_v27, 16 }
 0x3b2   : > { %6560 = vst.msk [vmem:[%s8314_s9 + $0x184] sm:$0xf] %vm6462_vm5, %v6410_v31  ;;  %v5590_v36 = vpop.f32.mrf.mxu3  ;;  %7118 = vmatmul.msk.bf16.gmra.mxu1 %vm1304_vm1, %v9358_v49 }
 0x3b3   : > { %v5815_v39 = vadd.f32 %v5588_v18, %v4372_v35 }
 0x3b5   : > { %vm5964_vm15 = vcmp.gt.f32.partialorder %v5815_v39, 0.0  ;;  %v6113_v43 = vmul.f32 0.2, %v5815_v39 }
 0x3b6   : > { %v1793_v47 = vpop.f32.mrf.mxu0 }
 0x3b7   : > { %v6262_v46 = vsel %vm5964_vm15, %v5815_v39, %v6113_v43  ;;  %7876 = vmatmul.msk.bf16.gmra.mxu3 %vm1304_vm1, %v5070_v41  ;;  %v2336_v51 = vpop.f32.mrf.mxu1  ;;  %v2335_v60 = vadd.f32 %v2334_v34, %v1793_v47  ;;  %v3533_v34 = vshrl.u32 %v8032_v27, 16  ;;  %v5073_v41 = vrot.slane %v9427_v29, 2 }
 0x3b8   : > { %v6411_v50 = vpack.c.bf16 %v6262_v46, %v6262_v46  ;;  %v4147_v49 = vpop.f32.mrf.mxu2 }
 0x3b9   : > { %v4373_v52 = vadd.f32 %v4147_v49, %v2332_v45  ;;  %7039 = vmatmul.msk.bf16.gmra.mxu0 %vm1304_vm1, %v1175_v48  ;;  %v3535_v46 = vrot.slane %v3533_v34, 1  ;;  %v3538_v45 = vrot.slane %v3536_v33, 2  ;;  %v1186_v48 = vor.u32 %v1184_v38, %v1182_v14  ;;  %v9468_v38 = vld [vmem:[%s8201_s5 + $0x1f8] sm:$0xff] }
 0x3ba   : > { %6561 = vst.msk [vmem:[%s8314_s9 + $0x188] sm:$0xf] %vm6462_vm5, %v6411_v50  ;;  %v5593_v54 = vpop.f32.mrf.mxu3  ;;  %v1190_v50 = vrot.slane %v1188_v37, 1  ;;  %v5074_v49 = vsel %vm1530_vm0, %v5071_v5, %v5073_v41  ;;  %v9471_v37 = vld [vmem:[%s8201_s5 + $0x208] sm:$0xff] }
 0x3bb   : > { %v5816_v56 = vadd.f32 %v5590_v36, %v4373_v52  ;;  %v3539_v52 = vor.u32 %v3538_v45, %v3535_v46  ;;  %v1200_v46 = vshrl.u32 %v9446_v2, 16  ;;  %v1204_v45 = vshll.u32 %v9468_v38, 16 }
 0x3bd   : > { %vm5965_vm4 = vcmp.gt.f32.partialorder %v5816_v56, 0.0  ;;  %v6114_v59 = vmul.f32 0.2, %v5816_v56  ;;  %7495 = vmatmul.msk.bf16.gmra.mxu2 %vm1304_vm1, %v3522_v53  ;;  %v3540_v61 = vsel %vm2983_vm3, %v3530_v16, %v3539_v52 }
 0x3be   : > { %v1795_v0 = vpop.f32.mrf.mxu0 }
 0x3bf   : > { %v6263_v63 = vsel %vm5965_vm4, %v5816_v56, %v6114_v59  ;;  %v2339_v6 = vpop.f32.mrf.mxu1  ;;  %v2337_v17 = vadd.f32 %v2336_v51, %v1795_v0  ;;  %v1191_v56 = vsel %vm699_vm2, %v1186_v48, %v1190_v50 }
 0x3c0   : > { %v6412_v3 = vpack.c.bf16 %v6263_v63, %v6263_v63  ;;  %v4150_v4 = vpop.f32.mrf.mxu2  ;;  %v8033_v63 = vld [vmem:[%s8201_s5 + $0x200] sm:$0xff] }
 0x3c1   : > { %v4374_v7 = vadd.f32 %v4150_v4, %v2335_v60  ;;  %v3545_v5 = vshll.u32 %v8033_v63, 16 }
 0x3c2   : > { %6562 = vst.msk [vmem:[%s8314_s9 + $0x18c] sm:$0xf] %vm6462_vm5, %v6412_v3  ;;  %v5595_v8 = vpop.f32.mrf.mxu3  ;;  %7119 = vmatmul.msk.bf16.gmra.mxu1 %vm1304_vm1, %v9380_v22 }
 0x3c3   : > { %v5817_v11 = vadd.f32 %v5593_v54, %v4374_v7 }
 0x3c5   : > { %vm5966_vm6 = vcmp.gt.f32.partialorder %v5817_v11, 0.0  ;;  %v6115_v15 = vmul.f32 0.2, %v5817_v11 }
 0x3c6   : > { %v1798_v19 = vpop.f32.mrf.mxu0 }
 0x3c7   : > { %v6264_v18 = vsel %vm5966_vm6, %v5817_v11, %v6115_v15  ;;  %7877 = vmatmul.msk.bf16.gmra.mxu3 %vm1304_vm1, %v5072_v13  ;;  %v2341_v23 = vpop.f32.mrf.mxu1  ;;  %v2340_v32 = vadd.f32 %v2339_v6, %v1798_v19  ;;  %v3542_v6 = vshrl.u32 %v8033_v63, 16  ;;  %v5075_v13 = vrot.slane %v9449_v1, 2 }
 0x3c8   : > { %v6413_v21 = vpack.c.bf16 %v6264_v18, %v6264_v18  ;;  %v4152_v22 = vpop.f32.mrf.mxu2 }
 0x3c9   : > { %v4375_v24 = vadd.f32 %v4152_v22, %v2337_v17  ;;  %7040 = vmatmul.msk.bf16.gmra.mxu0 %vm1304_vm1, %v1183_v20  ;;  %v3544_v18 = vrot.slane %v3542_v6, 1  ;;  %v3547_v17 = vrot.slane %v3545_v5, 2  ;;  %v1194_v20 = vor.u32 %v1192_v10, %v1190_v50  ;;  %v9490_v10 = vld [vmem:[%s8201_s5 + $0x200] sm:$0xff] }
 0x3ca   : > { %6563 = vst.msk [vmem:[%s8314_s9 + $0x190] sm:$0xf] %vm6462_vm5, %v6413_v21  ;;  %v5598_v26 = vpop.f32.mrf.mxu3  ;;  %v1198_v21 = vrot.slane %v1196_v9, 1  ;;  %v5076_v22 = vsel %vm1530_vm0, %v5073_v41, %v5075_v13  ;;  %v9493_v9 = vld [vmem:[%s8201_s5 + $0x210] sm:$0xff] }
 0x3cb   : > { %v5818_v28 = vadd.f32 %v5595_v8, %v4375_v24  ;;  %v3548_v24 = vor.u32 %v3547_v17, %v3544_v18  ;;  %v1208_v18 = vshrl.u32 %v9468_v38, 16  ;;  %v1212_v17 = vshll.u32 %v9490_v10, 16 }
 0x3cd   : > { %vm5967_vm7 = vcmp.gt.f32.partialorder %v5818_v28, 0.0  ;;  %v6116_v31 = vmul.f32 0.2, %v5818_v28  ;;  %7496 = vmatmul.msk.bf16.gmra.mxu2 %vm1304_vm1, %v3531_v25  ;;  %v3549_v33 = vsel %vm2983_vm3, %v3539_v52, %v3548_v24 }
 0x3ce   : > { %v1800_v36 = vpop.f32.mrf.mxu0 }
 0x3cf   : > { %v6265_v35 = vsel %vm5967_vm7, %v5818_v28, %v6116_v31  ;;  %v2344_v42 = vpop.f32.mrf.mxu1  ;;  %v2342_v53 = vadd.f32 %v2341_v23, %v1800_v36  ;;  %v1199_v28 = vsel %vm699_vm2, %v1194_v20, %v1198_v21 }
 0x3d0   : > { %v6414_v39 = vpack.c.bf16 %v6265_v35, %v6265_v35  ;;  %v4155_v40 = vpop.f32.mrf.mxu2  ;;  %v8034_v35 = vld [vmem:[%s8201_s5 + $0x208] sm:$0xff] }
 0x3d1   : > { %v4376_v43 = vadd.f32 %v4155_v40, %v2340_v32  ;;  %v3554_v41 = vshll.u32 %v8034_v35, 16 }
 0x3d2   : > { %6564 = vst.msk [vmem:[%s8314_s9 + $0x194] sm:$0xf] %vm6462_vm5, %v6414_v39  ;;  %v5600_v44 = vpop.f32.mrf.mxu3  ;;  %7120 = vmatmul.msk.bf16.gmra.mxu1 %vm1304_vm1, %v9402_v58 }
 0x3d3   : > { %v5819_v47 = vadd.f32 %v5598_v26, %v4376_v43 }
 0x3d5   : > { %vm5968_vm8 = vcmp.gt.f32.partialorder %v5819_v47, 0.0  ;;  %v6117_v51 = vmul.f32 0.2, %v5819_v47 }
 0x3d6   : > { %v1803_v55 = vpop.f32.mrf.mxu0 }
 0x3d7   : > { %v6266_v54 = vsel %vm5968_vm8, %v5819_v47, %v6117_v51  ;;  %7878 = vmatmul.msk.bf16.gmra.mxu3 %vm1304_vm1, %v5074_v49  ;;  %v2346_v59 = vpop.f32.mrf.mxu1  ;;  %v2345_v4 = vadd.f32 %v2344_v42, %v1803_v55  ;;  %v3551_v42 = vshrl.u32 %v8034_v35, 16  ;;  %v5077_v49 = vrot.slane %v9471_v37, 2 }
 0x3d8   : > { %v6415_v57 = vpack.c.bf16 %v6266_v54, %v6266_v54  ;;  %v4157_v58 = vpop.f32.mrf.mxu2 }
 0x3d9   : > { %v4377_v60 = vadd.f32 %v4157_v58, %v2342_v53  ;;  %7041 = vmatmul.msk.bf16.gmra.mxu0 %vm1304_vm1, %v1191_v56  ;;  %v3553_v54 = vrot.slane %v3551_v42, 1  ;;  %v3556_v53 = vrot.slane %v3554_v41, 2  ;;  %v1202_v56 = vor.u32 %v1200_v46, %v1198_v21  ;;  %v9512_v46 = vld [vmem:[%s8201_s5 + $0x208] sm:$0xff] }
 0x3da   : > { %6565 = vst.msk [vmem:[%s8314_s9 + $0x198] sm:$0xf] %vm6462_vm5, %v6415_v57  ;;  %v5603_v62 = vpop.f32.mrf.mxu3  ;;  %v1206_v57 = vrot.slane %v1204_v45, 1  ;;  %v5078_v58 = vsel %vm1530_vm0, %v5075_v13, %v5077_v49  ;;  %v9515_v45 = vld [vmem:[%s8201_s5 + $0x218] sm:$0xff] }
 0x3db   : > { %v5820_v0 = vadd.f32 %v5600_v44, %v4377_v60  ;;  %v3557_v60 = vor.u32 %v3556_v53, %v3553_v54  ;;  %v1216_v54 = vshrl.u32 %v9490_v10, 16  ;;  %v1220_v53 = vshll.u32 %v9512_v46, 16 }
 0x3dd   : > { %vm5969_vm9 = vcmp.gt.f32.partialorder %v5820_v0, 0.0  ;;  %v6118_v3 = vmul.f32 0.2, %v5820_v0  ;;  %7497 = vmatmul.msk.bf16.gmra.mxu2 %vm1304_vm1, %v3540_v61  ;;  %v3558_v5 = vsel %vm2983_vm3, %v3548_v24, %v3557_v60 }
 0x3de   : > { %v1805_v8 = vpop.f32.mrf.mxu0 }
 0x3df   : > { %v6267_v7 = vsel %vm5969_vm9, %v5820_v0, %v6118_v3  ;;  %v2349_v14 = vpop.f32.mrf.mxu1  ;;  %v2347_v25 = vadd.f32 %v2346_v59, %v1805_v8  ;;  %v1207_v0 = vsel %vm699_vm2, %v1202_v56, %v1206_v57 }
 0x3e0   : > { %v6416_v11 = vpack.c.bf16 %v6267_v7, %v6267_v7  ;;  %v4160_v12 = vpop.f32.mrf.mxu2  ;;  %v8035_v7 = vld [vmem:[%s8201_s5 + $0x210] sm:$0xff] }
 0x3e1   : > { %v4378_v15 = vadd.f32 %v4160_v12, %v2345_v4  ;;  %v3563_v13 = vshll.u32 %v8035_v7, 16 }
 0x3e2   : > { %6566 = vst.msk [vmem:[%s8314_s9 + $0x19c] sm:$0xf] %vm6462_vm5, %v6416_v11  ;;  %v5605_v16 = vpop.f32.mrf.mxu3  ;;  %7121 = vmatmul.msk.bf16.gmra.mxu1 %vm1304_vm1, %v9424_v30 }
 0x3e3   : > { %v5821_v19 = vadd.f32 %v5603_v62, %v4378_v15 }
 0x3e5   : > { %vm5970_vm10 = vcmp.gt.f32.partialorder %v5821_v19, 0.0  ;;  %v6119_v23 = vmul.f32 0.2, %v5821_v19 }
 0x3e6   : > { %v1808_v27 = vpop.f32.mrf.mxu0 }
 0x3e7   : > { %v6268_v26 = vsel %vm5970_vm10, %v5821_v19, %v6119_v23  ;;  %7879 = vmatmul.msk.bf16.gmra.mxu3 %vm1304_vm1, %v5076_v22  ;;  %v2351_v31 = vpop.f32.mrf.mxu1  ;;  %v2350_v40 = vadd.f32 %v2349_v14, %v1808_v27  ;;  %v3560_v14 = vshrl.u32 %v8035_v7, 16  ;;  %v5079_v22 = vrot.slane %v9493_v9, 2 }
 0x3e8   : > { %v6417_v29 = vpack.c.bf16 %v6268_v26, %v6268_v26  ;;  %v4162_v30 = vpop.f32.mrf.mxu2 }
 0x3e9   : > { %v4379_v32 = vadd.f32 %v4162_v30, %v2347_v25  ;;  %7042 = vmatmul.msk.bf16.gmra.mxu0 %vm1304_vm1, %v1199_v28  ;;  %v3562_v26 = vrot.slane %v3560_v14, 1  ;;  %v3565_v25 = vrot.slane %v3563_v13, 2  ;;  %v1210_v28 = vor.u32 %v1208_v18, %v1206_v57  ;;  %v9534_v18 = vld [vmem:[%s8201_s5 + $0x210] sm:$0xff] }
 0x3ea   : > { %6567 = vst.msk [vmem:[%s8314_s9 + $0x1a0] sm:$0xf] %vm6462_vm5, %v6417_v29  ;;  %v5608_v34 = vpop.f32.mrf.mxu3  ;;  %v1214_v29 = vrot.slane %v1212_v17, 1  ;;  %v5080_v30 = vsel %vm1530_vm0, %v5077_v49, %v5079_v22  ;;  %v9537_v17 = vld [vmem:[%s8201_s5 + $0x220] sm:$0xff] }
 0x3eb   : > { %v5822_v36 = vadd.f32 %v5605_v16, %v4379_v32  ;;  %v3566_v32 = vor.u32 %v3565_v25, %v3562_v26  ;;  %v1224_v26 = vshrl.u32 %v9512_v46, 16  ;;  %v1228_v25 = vshll.u32 %v9534_v18, 16 }
 0x3ed   : > { %vm5971_vm11 = vcmp.gt.f32.partialorder %v5822_v36, 0.0  ;;  %v6120_v39 = vmul.f32 0.2, %v5822_v36  ;;  %7498 = vmatmul.msk.bf16.gmra.mxu2 %vm1304_vm1, %v3549_v33  ;;  %v3567_v41 = vsel %vm2983_vm3, %v3557_v60, %v3566_v32 }
 0x3ee   : > { %v1810_v44 = vpop.f32.mrf.mxu0 }
 0x3ef   : > { %v6269_v43 = vsel %vm5971_vm11, %v5822_v36, %v6120_v39  ;;  %v2354_v50 = vpop.f32.mrf.mxu1  ;;  %v2352_v61 = vadd.f32 %v2351_v31, %v1810_v44  ;;  %v1215_v36 = vsel %vm699_vm2, %v1210_v28, %v1214_v29 }
 0x3f0   : > { %v6418_v47 = vpack.c.bf16 %v6269_v43, %v6269_v43  ;;  %v4165_v48 = vpop.f32.mrf.mxu2  ;;  %v8036_v43 = vld [vmem:[%s8201_s5 + $0x218] sm:$0xff] }
 0x3f1   : > { %v4380_v51 = vadd.f32 %v4165_v48, %v2350_v40  ;;  %v3572_v49 = vshll.u32 %v8036_v43, 16 }
 0x3f2   : > { %6568 = vst.msk [vmem:[%s8314_s9 + $0x1a4] sm:$0xf] %vm6462_vm5, %v6418_v47  ;;  %v5610_v52 = vpop.f32.mrf.mxu3  ;;  %7122 = vmatmul.msk.bf16.gmra.mxu1 %vm1304_vm1, %v9446_v2 }
 0x3f3   : > { %v5823_v55 = vadd.f32 %v5608_v34, %v4380_v51 }
 0x3f5   : > { %vm5972_vm12 = vcmp.gt.f32.partialorder %v5823_v55, 0.0  ;;  %v6121_v59 = vmul.f32 0.2, %v5823_v55 }
 0x3f6   : > { %v1813_v63 = vpop.f32.mrf.mxu0 }
 0x3f7   : > { %v6270_v62 = vsel %vm5972_vm12, %v5823_v55, %v6121_v59  ;;  %7880 = vmatmul.msk.bf16.gmra.mxu3 %vm1304_vm1, %v5078_v58  ;;  %v2356_v3 = vpop.f32.mrf.mxu1  ;;  %v2355_v12 = vadd.f32 %v2354_v50, %v1813_v63  ;;  %v3569_v50 = vshrl.u32 %v8036_v43, 16  ;;  %v5081_v58 = vrot.slane %v9515_v45, 2 }
 0x3f8   : > { %v6419_v1 = vpack.c.bf16 %v6270_v62, %v6270_v62  ;;  %v4167_v2 = vpop.f32.mrf.mxu2 }
 0x3f9   : > { %v4381_v4 = vadd.f32 %v4167_v2, %v2352_v61  ;;  %7043 = vmatmul.msk.bf16.gmra.mxu0 %vm1304_vm1, %v1207_v0  ;;  %v3571_v62 = vrot.slane %v3569_v50, 1  ;;  %v3574_v61 = vrot.slane %v3572_v49, 2  ;;  %v1218_v0 = vor.u32 %v1216_v54, %v1214_v29  ;;  %v9556_v54 = vld [vmem:[%s8201_s5 + $0x218] sm:$0xff] }
 0x3fa   : > { %6569 = vst.msk [vmem:[%s8314_s9 + $0x1a8] sm:$0xf] %vm6462_vm5, %v6419_v1  ;;  %v5613_v6 = vpop.f32.mrf.mxu3  ;;  %v1222_v1 = vrot.slane %v1220_v53, 1  ;;  %v5082_v2 = vsel %vm1530_vm0, %v5079_v22, %v5081_v58  ;;  %v9559_v53 = vld [vmem:[%s8201_s5 + $0x228] sm:$0xff] }
 0x3fb   : > { %v5824_v8 = vadd.f32 %v5610_v52, %v4381_v4  ;;  %v3575_v4 = vor.u32 %v3574_v61, %v3571_v62  ;;  %v1232_v62 = vshrl.u32 %v9534_v18, 16  ;;  %v1236_v61 = vshll.u32 %v9556_v54, 16 }
 0x3fd   : > { %vm5973_vm13 = vcmp.gt.f32.partialorder %v5824_v8, 0.0  ;;  %v6122_v11 = vmul.f32 0.2, %v5824_v8  ;;  %7499 = vmatmul.msk.bf16.gmra.mxu2 %vm1304_vm1, %v3558_v5  ;;  %v3576_v13 = vsel %vm2983_vm3, %v3566_v32, %v3575_v4 }
 0x3fe   : > { %v1815_v16 = vpop.f32.mrf.mxu0 }
 0x3ff   : > { %v6271_v15 = vsel %vm5973_vm13, %v5824_v8, %v6122_v11  ;;  %v2359_v21 = vpop.f32.mrf.mxu1  ;;  %v2357_v33 = vadd.f32 %v2356_v3, %v1815_v16  ;;  %v1223_v8 = vsel %vm699_vm2, %v1218_v0, %v1222_v1 }
 0x400   : > { %v6420_v19 = vpack.c.bf16 %v6271_v15, %v6271_v15  ;;  %v4170_v20 = vpop.f32.mrf.mxu2  ;;  %v8037_v15 = vld [vmem:[%s8201_s5 + $0x220] sm:$0xff] }
 0x401   : > { %v4382_v23 = vadd.f32 %v4170_v20, %v2355_v12  ;;  %v3581_v22 = vshll.u32 %v8037_v15, 16 }
 0x402   : > { %6570 = vst.msk [vmem:[%s8314_s9 + $0x1ac] sm:$0xf] %vm6462_vm5, %v6420_v19  ;;  %v5615_v24 = vpop.f32.mrf.mxu3  ;;  %7123 = vmatmul.msk.bf16.gmra.mxu1 %vm1304_vm1, %v9468_v38 }
 0x403   : > { %v5825_v27 = vadd.f32 %v5613_v6, %v4382_v23 }
 0x405   : > { %vm5974_vm14 = vcmp.gt.f32.partialorder %v5825_v27, 0.0  ;;  %v6123_v31 = vmul.f32 0.2, %v5825_v27 }
 0x406   : > { %v1818_v35 = vpop.f32.mrf.mxu0 }
 0x407   : > { %v6272_v34 = vsel %vm5974_vm14, %v5825_v27, %v6123_v31  ;;  %7881 = vmatmul.msk.bf16.gmra.mxu3 %vm1304_vm1, %v5080_v30  ;;  %v2361_v39 = vpop.f32.mrf.mxu1  ;;  %v2360_v48 = vadd.f32 %v2359_v21, %v1818_v35  ;;  %v3578_v21 = vshrl.u32 %v8037_v15, 16  ;;  %v5083_v30 = vrot.slane %v9537_v17, 2 }
 0x408   : > { %v6421_v37 = vpack.c.bf16 %v6272_v34, %v6272_v34  ;;  %v4172_v38 = vpop.f32.mrf.mxu2 }
 0x409   : > { %v4383_v40 = vadd.f32 %v4172_v38, %v2357_v33  ;;  %7044 = vmatmul.msk.bf16.gmra.mxu0 %vm1304_vm1, %v1215_v36  ;;  %v3580_v34 = vrot.slane %v3578_v21, 1  ;;  %v3583_v33 = vrot.slane %v3581_v22, 2  ;;  %v1226_v36 = vor.u32 %v1224_v26, %v1222_v1  ;;  %v9578_v26 = vld [vmem:[%s8201_s5 + $0x220] sm:$0xff] }
 0x40a   : > { %6571 = vst.msk [vmem:[%s8314_s9 + $0x1b0] sm:$0xf] %vm6462_vm5, %v6421_v37  ;;  %v5618_v42 = vpop.f32.mrf.mxu3  ;;  %v1230_v37 = vrot.slane %v1228_v25, 1  ;;  %v5084_v38 = vsel %vm1530_vm0, %v5081_v58, %v5083_v30  ;;  %v9581_v25 = vld [vmem:[%s8201_s5 + $0x230] sm:$0xff] }
 0x40b   : > { %v5826_v44 = vadd.f32 %v5615_v24, %v4383_v40  ;;  %v3584_v40 = vor.u32 %v3583_v33, %v3580_v34  ;;  %v1240_v34 = vshrl.u32 %v9556_v54, 16  ;;  %v1244_v33 = vshll.u32 %v9578_v26, 16 }
 0x40d   : > { %vm5975_vm15 = vcmp.gt.f32.partialorder %v5826_v44, 0.0  ;;  %v6124_v47 = vmul.f32 0.2, %v5826_v44  ;;  %7500 = vmatmul.msk.bf16.gmra.mxu2 %vm1304_vm1, %v3567_v41  ;;  %v3585_v49 = vsel %vm2983_vm3, %v3575_v4, %v3584_v40 }
 0x40e   : > { %v1820_v52 = vpop.f32.mrf.mxu0 }
 0x40f   : > { %v6273_v51 = vsel %vm5975_vm15, %v5826_v44, %v6124_v47  ;;  %v2364_v57 = vpop.f32.mrf.mxu1  ;;  %v2362_v5 = vadd.f32 %v2361_v39, %v1820_v52  ;;  %v1231_v44 = vsel %vm699_vm2, %v1226_v36, %v1230_v37 }
 0x410   : > { %v6422_v55 = vpack.c.bf16 %v6273_v51, %v6273_v51  ;;  %v4175_v56 = vpop.f32.mrf.mxu2  ;;  %v8038_v51 = vld [vmem:[%s8201_s5 + $0x228] sm:$0xff] }
 0x411   : > { %v4384_v59 = vadd.f32 %v4175_v56, %v2360_v48  ;;  %v3590_v58 = vshll.u32 %v8038_v51, 16 }
 0x412   : > { %6572 = vst.msk [vmem:[%s8314_s9 + $0x1b4] sm:$0xf] %vm6462_vm5, %v6422_v55  ;;  %v5620_v60 = vpop.f32.mrf.mxu3  ;;  %7124 = vmatmul.msk.bf16.gmra.mxu1 %vm1304_vm1, %v9490_v10 }
 0x413   : > { %v5827_v63 = vadd.f32 %v5618_v42, %v4384_v59 }
 0x415   : > { %vm5976_vm4 = vcmp.gt.f32.partialorder %v5827_v63, 0.0  ;;  %v6125_v3 = vmul.f32 0.2, %v5827_v63 }
 0x416   : > { %v1823_v7 = vpop.f32.mrf.mxu0 }
 0x417   : > { %v6274_v6 = vsel %vm5976_vm4, %v5827_v63, %v6125_v3  ;;  %7882 = vmatmul.msk.bf16.gmra.mxu3 %vm1304_vm1, %v5082_v2  ;;  %v2366_v11 = vpop.f32.mrf.mxu1  ;;  %v2365_v20 = vadd.f32 %v2364_v57, %v1823_v7  ;;  %v3587_v57 = vshrl.u32 %v8038_v51, 16  ;;  %v5085_v2 = vrot.slane %v9559_v53, 2 }
 0x418   : > { %v6423_v9 = vpack.c.bf16 %v6274_v6, %v6274_v6  ;;  %v4177_v10 = vpop.f32.mrf.mxu2 }
 0x419   : > { %v4385_v12 = vadd.f32 %v4177_v10, %v2362_v5  ;;  %7045 = vmatmul.msk.bf16.gmra.mxu0 %vm1304_vm1, %v1223_v8  ;;  %v3589_v6 = vrot.slane %v3587_v57, 1  ;;  %v3592_v5 = vrot.slane %v3590_v58, 2  ;;  %v1234_v8 = vor.u32 %v1232_v62, %v1230_v37  ;;  %v9600_v62 = vld [vmem:[%s8201_s5 + $0x228] sm:$0xff] }
 0x41a   : > { %6573 = vst.msk [vmem:[%s8314_s9 + $0x1b8] sm:$0xf] %vm6462_vm5, %v6423_v9  ;;  %v5623_v14 = vpop.f32.mrf.mxu3  ;;  %v1238_v9 = vrot.slane %v1236_v61, 1  ;;  %v5086_v10 = vsel %vm1530_vm0, %v5083_v30, %v5085_v2  ;;  %v9603_v61 = vld [vmem:[%s8201_s5 + $0x238] sm:$0xff] }
 0x41b   : > { %v5828_v16 = vadd.f32 %v5620_v60, %v4385_v12  ;;  %v3593_v12 = vor.u32 %v3592_v5, %v3589_v6  ;;  %v1248_v6 = vshrl.u32 %v9578_v26, 16  ;;  %v1252_v5 = vshll.u32 %v9600_v62, 16 }
 0x41d   : > { %vm5977_vm6 = vcmp.gt.f32.partialorder %v5828_v16, 0.0  ;;  %v6126_v19 = vmul.f32 0.2, %v5828_v16  ;;  %7501 = vmatmul.msk.bf16.gmra.mxu2 %vm1304_vm1, %v3576_v13  ;;  %v3594_v22 = vsel %vm2983_vm3, %v3584_v40, %v3593_v12 }
 0x41e   : > { %v1825_v24 = vpop.f32.mrf.mxu0 }
 0x41f   : > { %v6275_v23 = vsel %vm5977_vm6, %v5828_v16, %v6126_v19  ;;  %v2369_v29 = vpop.f32.mrf.mxu1  ;;  %v2367_v41 = vadd.f32 %v2366_v11, %v1825_v24  ;;  %v1239_v16 = vsel %vm699_vm2, %v1234_v8, %v1238_v9 }
 0x420   : > { %v6424_v27 = vpack.c.bf16 %v6275_v23, %v6275_v23  ;;  %v4180_v28 = vpop.f32.mrf.mxu2  ;;  %v8039_v23 = vld [vmem:[%s8201_s5 + $0x230] sm:$0xff] }
 0x421   : > { %v4386_v31 = vadd.f32 %v4180_v28, %v2365_v20  ;;  %v3599_v30 = vshll.u32 %v8039_v23, 16 }
 0x422   : > { %6574 = vst.msk [vmem:[%s8314_s9 + $0x1bc] sm:$0xf] %vm6462_vm5, %v6424_v27  ;;  %v5625_v32 = vpop.f32.mrf.mxu3  ;;  %7125 = vmatmul.msk.bf16.gmra.mxu1 %vm1304_vm1, %v9512_v46 }
 0x423   : > { %v5829_v35 = vadd.f32 %v5623_v14, %v4386_v31 }
 0x425   : > { %vm5978_vm7 = vcmp.gt.f32.partialorder %v5829_v35, 0.0  ;;  %v6127_v39 = vmul.f32 0.2, %v5829_v35 }
 0x426   : > { %v1828_v43 = vpop.f32.mrf.mxu0 }
 0x427   : > { %v6276_v42 = vsel %vm5978_vm7, %v5829_v35, %v6127_v39  ;;  %7883 = vmatmul.msk.bf16.gmra.mxu3 %vm1304_vm1, %v5084_v38  ;;  %v2371_v47 = vpop.f32.mrf.mxu1  ;;  %v2370_v56 = vadd.f32 %v2369_v29, %v1828_v43  ;;  %v3596_v29 = vshrl.u32 %v8039_v23, 16  ;;  %v5087_v38 = vrot.slane %v9581_v25, 2 }
 0x428   : > { %v6425_v45 = vpack.c.bf16 %v6276_v42, %v6276_v42  ;;  %v4182_v46 = vpop.f32.mrf.mxu2 }
 0x429   : > { %v4387_v48 = vadd.f32 %v4182_v46, %v2367_v41  ;;  %7046 = vmatmul.msk.bf16.gmra.mxu0 %vm1304_vm1, %v1231_v44  ;;  %v3598_v42 = vrot.slane %v3596_v29, 1  ;;  %v3601_v41 = vrot.slane %v3599_v30, 2  ;;  %v1242_v44 = vor.u32 %v1240_v34, %v1238_v9  ;;  %v9622_v34 = vld [vmem:[%s8201_s5 + $0x230] sm:$0xff] }
 0x42a   : > { %6575 = vst.msk [vmem:[%s8314_s9 + $0x1c0] sm:$0xf] %vm6462_vm5, %v6425_v45  ;;  %v5628_v50 = vpop.f32.mrf.mxu3  ;;  %v1246_v45 = vrot.slane %v1244_v33, 1  ;;  %v5088_v46 = vsel %vm1530_vm0, %v5085_v2, %v5087_v38  ;;  %v9625_v33 = vld [vmem:[%s8201_s5 + $0x240] sm:$0xff] }
 0x42b   : > { %v5830_v52 = vadd.f32 %v5625_v32, %v4387_v48  ;;  %v3602_v48 = vor.u32 %v3601_v41, %v3598_v42  ;;  %v1256_v42 = vshrl.u32 %v9600_v62, 16  ;;  %v1260_v41 = vshll.u32 %v9622_v34, 16 }
 0x42d   : > { %vm5979_vm8 = vcmp.gt.f32.partialorder %v5830_v52, 0.0  ;;  %v6128_v55 = vmul.f32 0.2, %v5830_v52  ;;  %7502 = vmatmul.msk.bf16.gmra.mxu2 %vm1304_vm1, %v3585_v49  ;;  %v3603_v58 = vsel %vm2983_vm3, %v3593_v12, %v3602_v48 }
 0x42e   : > { %v1830_v60 = vpop.f32.mrf.mxu0 }
 0x42f   : > { %v6277_v59 = vsel %vm5979_vm8, %v5830_v52, %v6128_v55  ;;  %v2374_v1 = vpop.f32.mrf.mxu1  ;;  %v2372_v13 = vadd.f32 %v2371_v47, %v1830_v60  ;;  %v1247_v52 = vsel %vm699_vm2, %v1242_v44, %v1246_v45 }
 0x430   : > { %v6426_v63 = vpack.c.bf16 %v6277_v59, %v6277_v59  ;;  %v4185_v0 = vpop.f32.mrf.mxu2  ;;  %v8040_v59 = vld [vmem:[%s8201_s5 + $0x238] sm:$0xff] }
 0x431   : > { %v4388_v3 = vadd.f32 %v4185_v0, %v2370_v56  ;;  %v3608_v2 = vshll.u32 %v8040_v59, 16 }
 0x432   : > { %6576 = vst.msk [vmem:[%s8314_s9 + $0x1c4] sm:$0xf] %vm6462_vm5, %v6426_v63  ;;  %v5630_v4 = vpop.f32.mrf.mxu3  ;;  %7126 = vmatmul.msk.bf16.gmra.mxu1 %vm1304_vm1, %v9534_v18 }
 0x433   : > { %v5831_v7 = vadd.f32 %v5628_v50, %v4388_v3 }
 0x435   : > { %vm5980_vm9 = vcmp.gt.f32.partialorder %v5831_v7, 0.0  ;;  %v6129_v11 = vmul.f32 0.2, %v5831_v7 }
 0x436   : > { %v1833_v15 = vpop.f32.mrf.mxu0 }
 0x437   : > { %v6278_v14 = vsel %vm5980_vm9, %v5831_v7, %v6129_v11  ;;  %7884 = vmatmul.msk.bf16.gmra.mxu3 %vm1304_vm1, %v5086_v10  ;;  %v2376_v19 = vpop.f32.mrf.mxu1  ;;  %v2375_v28 = vadd.f32 %v2374_v1, %v1833_v15  ;;  %v3605_v1 = vshrl.u32 %v8040_v59, 16  ;;  %v5089_v10 = vrot.slane %v9603_v61, 2 }
 0x438   : > { %v6427_v17 = vpack.c.bf16 %v6278_v14, %v6278_v14  ;;  %v4187_v18 = vpop.f32.mrf.mxu2 }
 0x439   : > { %v4389_v20 = vadd.f32 %v4187_v18, %v2372_v13  ;;  %7047 = vmatmul.msk.bf16.gmra.mxu0 %vm1304_vm1, %v1239_v16  ;;  %v3607_v14 = vrot.slane %v3605_v1, 1  ;;  %v3610_v13 = vrot.slane %v3608_v2, 2  ;;  %v1250_v16 = vor.u32 %v1248_v6, %v1246_v45  ;;  %v9644_v6 = vld [vmem:[%s8201_s5 + $0x238] sm:$0xff] }
 0x43a   : > { %6577 = vst.msk [vmem:[%s8314_s9 + $0x1c8] sm:$0xf] %vm6462_vm5, %v6427_v17  ;;  %v5633_v21 = vpop.f32.mrf.mxu3  ;;  %v1254_v17 = vrot.slane %v1252_v5, 1  ;;  %v5090_v18 = vsel %vm1530_vm0, %v5087_v38, %v5089_v10  ;;  %v9647_v5 = vld [vmem:[%s8201_s5 + $0x248] sm:$0xff] }
 0x43b   : > { %v5832_v24 = vadd.f32 %v5630_v4, %v4389_v20  ;;  %v3611_v20 = vor.u32 %v3610_v13, %v3607_v14  ;;  %v1264_v14 = vshrl.u32 %v9622_v34, 16  ;;  %v1268_v13 = vshll.u32 %v9644_v6, 16 }
 0x43d   : > { %vm5981_vm10 = vcmp.gt.f32.partialorder %v5832_v24, 0.0  ;;  %v6130_v27 = vmul.f32 0.2, %v5832_v24  ;;  %7503 = vmatmul.msk.bf16.gmra.mxu2 %vm1304_vm1, %v3594_v22  ;;  %v3612_v30 = vsel %vm2983_vm3, %v3602_v48, %v3611_v20 }
 0x43e   : > { %v1835_v32 = vpop.f32.mrf.mxu0 }
 0x43f   : > { %v6279_v31 = vsel %vm5981_vm10, %v5832_v24, %v6130_v27  ;;  %v2379_v37 = vpop.f32.mrf.mxu1  ;;  %v2377_v49 = vadd.f32 %v2376_v19, %v1835_v32  ;;  %v1255_v24 = vsel %vm699_vm2, %v1250_v16, %v1254_v17 }
 0x440   : > { %v6428_v35 = vpack.c.bf16 %v6279_v31, %v6279_v31  ;;  %v4190_v36 = vpop.f32.mrf.mxu2  ;;  %v8041_v31 = vld [vmem:[%s8201_s5 + $0x240] sm:$0xff] }
 0x441   : > { %v4390_v39 = vadd.f32 %v4190_v36, %v2375_v28  ;;  %v3617_v38 = vshll.u32 %v8041_v31, 16 }
 0x442   : > { %6578 = vst.msk [vmem:[%s8314_s9 + $0x1cc] sm:$0xf] %vm6462_vm5, %v6428_v35  ;;  %v5635_v40 = vpop.f32.mrf.mxu3  ;;  %7127 = vmatmul.msk.bf16.gmra.mxu1 %vm1304_vm1, %v9556_v54 }
 0x443   : > { %v5833_v43 = vadd.f32 %v5633_v21, %v4390_v39 }
 0x445   : > { %vm5982_vm11 = vcmp.gt.f32.partialorder %v5833_v43, 0.0  ;;  %v6131_v47 = vmul.f32 0.2, %v5833_v43 }
 0x446   : > { %v1838_v51 = vpop.f32.mrf.mxu0 }
 0x447   : > { %v6280_v50 = vsel %vm5982_vm11, %v5833_v43, %v6131_v47  ;;  %7885 = vmatmul.msk.bf16.gmra.mxu3 %vm1304_vm1, %v5088_v46  ;;  %v2381_v55 = vpop.f32.mrf.mxu1  ;;  %v2380_v0 = vadd.f32 %v2379_v37, %v1838_v51  ;;  %v3614_v37 = vshrl.u32 %v8041_v31, 16  ;;  %v5091_v46 = vrot.slane %v9625_v33, 2 }
 0x448   : > { %v6429_v53 = vpack.c.bf16 %v6280_v50, %v6280_v50  ;;  %v4192_v54 = vpop.f32.mrf.mxu2 }
 0x449   : > { %v4391_v56 = vadd.f32 %v4192_v54, %v2377_v49  ;;  %7048 = vmatmul.msk.bf16.gmra.mxu0 %vm1304_vm1, %v1247_v52  ;;  %v3616_v50 = vrot.slane %v3614_v37, 1  ;;  %v3619_v49 = vrot.slane %v3617_v38, 2  ;;  %v1258_v52 = vor.u32 %v1256_v42, %v1254_v17  ;;  %v9666_v42 = vld [vmem:[%s8201_s5 + $0x240] sm:$0xff] }
 0x44a   : > { %6579 = vst.msk [vmem:[%s8314_s9 + $0x1d0] sm:$0xf] %vm6462_vm5, %v6429_v53  ;;  %v5638_v57 = vpop.f32.mrf.mxu3  ;;  %v1262_v53 = vrot.slane %v1260_v41, 1  ;;  %v5092_v54 = vsel %vm1530_vm0, %v5089_v10, %v5091_v46  ;;  %v9669_v41 = vld [vmem:[%s8201_s5 + $0x250] sm:$0xff] }
 0x44b   : > { %v5834_v60 = vadd.f32 %v5635_v40, %v4391_v56  ;;  %v3620_v56 = vor.u32 %v3619_v49, %v3616_v50  ;;  %v1272_v50 = vshrl.u32 %v9644_v6, 16  ;;  %v1276_v49 = vshll.u32 %v9666_v42, 16 }
 0x44d   : > { %vm5983_vm12 = vcmp.gt.f32.partialorder %v5834_v60, 0.0  ;;  %v6132_v63 = vmul.f32 0.2, %v5834_v60  ;;  %7504 = vmatmul.msk.bf16.gmra.mxu2 %vm1304_vm1, %v3603_v58  ;;  %v3621_v2 = vsel %vm2983_vm3, %v3611_v20, %v3620_v56 }
 0x44e   : > { %v1840_v4 = vpop.f32.mrf.mxu0 }
 0x44f   : > { %v6281_v3 = vsel %vm5983_vm12, %v5834_v60, %v6132_v63  ;;  %v2384_v9 = vpop.f32.mrf.mxu1  ;;  %v2382_v22 = vadd.f32 %v2381_v55, %v1840_v4  ;;  %v1263_v60 = vsel %vm699_vm2, %v1258_v52, %v1262_v53 }
 0x450   : > { %v6430_v7 = vpack.c.bf16 %v6281_v3, %v6281_v3  ;;  %v4195_v8 = vpop.f32.mrf.mxu2  ;;  %v8042_v3 = vld [vmem:[%s8201_s5 + $0x248] sm:$0xff] }
 0x451   : > { %v4392_v11 = vadd.f32 %v4195_v8, %v2380_v0  ;;  %v3626_v10 = vshll.u32 %v8042_v3, 16 }
 0x452   : > { %6580 = vst.msk [vmem:[%s8314_s9 + $0x1d4] sm:$0xf] %vm6462_vm5, %v6430_v7  ;;  %v5640_v12 = vpop.f32.mrf.mxu3  ;;  %7128 = vmatmul.msk.bf16.gmra.mxu1 %vm1304_vm1, %v9578_v26 }
 0x453   : > { %v5835_v15 = vadd.f32 %v5638_v57, %v4392_v11 }
 0x455   : > { %vm5984_vm13 = vcmp.gt.f32.partialorder %v5835_v15, 0.0  ;;  %v6133_v19 = vmul.f32 0.2, %v5835_v15 }
 0x456   : > { %v1843_v23 = vpop.f32.mrf.mxu0 }
 0x457   : > { %v6282_v21 = vsel %vm5984_vm13, %v5835_v15, %v6133_v19  ;;  %7886 = vmatmul.msk.bf16.gmra.mxu3 %vm1304_vm1, %v5090_v18  ;;  %v2386_v27 = vpop.f32.mrf.mxu1  ;;  %v2385_v36 = vadd.f32 %v2384_v9, %v1843_v23  ;;  %v3623_v9 = vshrl.u32 %v8042_v3, 16  ;;  %v5093_v18 = vrot.slane %v9647_v5, 2 }
 0x458   : > { %v6431_v25 = vpack.c.bf16 %v6282_v21, %v6282_v21  ;;  %v4197_v26 = vpop.f32.mrf.mxu2 }
 0x459   : > { %v4393_v28 = vadd.f32 %v4197_v26, %v2382_v22  ;;  %7049 = vmatmul.msk.bf16.gmra.mxu0 %vm1304_vm1, %v1255_v24  ;;  %v3625_v21 = vrot.slane %v3623_v9, 1  ;;  %v3628_v22 = vrot.slane %v3626_v10, 2  ;;  %v1266_v24 = vor.u32 %v1264_v14, %v1262_v53  ;;  %v9691_v14 = vld [vmem:[%s8201_s5 + $0x248] sm:$0xff] }
 0x45a   : > { %6581 = vst.msk [vmem:[%s8314_s9 + $0x1d8] sm:$0xf] %vm6462_vm5, %v6431_v25  ;;  %v5643_v29 = vpop.f32.mrf.mxu3  ;;  %v1270_v25 = vrot.slane %v1268_v13, 1  ;;  %v5094_v26 = vsel %vm1530_vm0, %v5091_v46, %v5093_v18  ;;  %v9694_v13 = vld [vmem:[%s8201_s5 + $0x258] sm:$0xff] }
 0x45b   : > { %v5836_v32 = vadd.f32 %v5640_v12, %v4393_v28  ;;  %v3629_v28 = vor.u32 %v3628_v22, %v3625_v21  ;;  %v1280_v21 = vshrl.u32 %v9666_v42, 16  ;;  %v1284_v22 = vshll.u32 %v9691_v14, 16 }
 0x45d   : > { %vm5985_vm14 = vcmp.gt.f32.partialorder %v5836_v32, 0.0  ;;  %v6134_v35 = vmul.f32 0.2, %v5836_v32  ;;  %7505 = vmatmul.msk.bf16.gmra.mxu2 %vm1304_vm1, %v3612_v30  ;;  %v3630_v38 = vsel %vm2983_vm3, %v3620_v56, %v3629_v28 }
 0x45e   : > { %v1845_v40 = vpop.f32.mrf.mxu0 }
 0x45f   : > { %v6283_v39 = vsel %vm5985_vm14, %v5836_v32, %v6134_v35  ;;  %v2389_v45 = vpop.f32.mrf.mxu1  ;;  %v2387_v58 = vadd.f32 %v2386_v27, %v1845_v40  ;;  %v1271_v32 = vsel %vm699_vm2, %v1266_v24, %v1270_v25 }
 0x460   : > { %v6432_v43 = vpack.c.bf16 %v6283_v39, %v6283_v39  ;;  %v4200_v44 = vpop.f32.mrf.mxu2  ;;  %v8043_v39 = vld [vmem:[%s8201_s5 + $0x250] sm:$0xff] }
 0x461   : > { %v4394_v47 = vadd.f32 %v4200_v44, %v2385_v36  ;;  %v3635_v46 = vshll.u32 %v8043_v39, 16 }
 0x462   : > { %6582 = vst.msk [vmem:[%s8314_s9 + $0x1dc] sm:$0xf] %vm6462_vm5, %v6432_v43  ;;  %v5645_v48 = vpop.f32.mrf.mxu3  ;;  %7129 = vmatmul.msk.bf16.gmra.mxu1 %vm1304_vm1, %v9600_v62 }
 0x463   : > { %v5837_v51 = vadd.f32 %v5643_v29, %v4394_v47 }
 0x465   : > { %vm5986_vm15 = vcmp.gt.f32.partialorder %v5837_v51, 0.0  ;;  %v6135_v55 = vmul.f32 0.2, %v5837_v51 }
 0x466   : > { %v1848_v59 = vpop.f32.mrf.mxu0 }
 0x467   : > { %v6284_v57 = vsel %vm5986_vm15, %v5837_v51, %v6135_v55  ;;  %7887 = vmatmul.msk.bf16.gmra.mxu3 %vm1304_vm1, %v5092_v54  ;;  %v2391_v63 = vpop.f32.mrf.mxu1  ;;  %v2390_v8 = vadd.f32 %v2389_v45, %v1848_v59  ;;  %v3632_v45 = vshrl.u32 %v8043_v39, 16  ;;  %v5095_v54 = vrot.slane %v9669_v41, 2 }
 0x468   : > { %v6433_v61 = vpack.c.bf16 %v6284_v57, %v6284_v57  ;;  %v4202_v62 = vpop.f32.mrf.mxu2 }
 0x469   : > { %v4395_v0 = vadd.f32 %v4202_v62, %v2387_v58  ;;  %7050 = vmatmul.msk.bf16.gmra.mxu0 %vm1304_vm1, %v1263_v60  ;;  %v3634_v57 = vrot.slane %v3632_v45, 1  ;;  %v3637_v58 = vrot.slane %v3635_v46, 2  ;;  %v1274_v60 = vor.u32 %v1272_v50, %v1270_v25  ;;  %v7812_v50 = vld [vmem:[%s8201_s5 + $0x260] sm:$0xf] }
 0x46a   : > { %6583 = vst.msk [vmem:[%s8314_s9 + $0x1e0] sm:$0xf] %vm6462_vm5, %v6433_v61  ;;  %v5648_v1 = vpop.f32.mrf.mxu3  ;;  %v1278_v61 = vrot.slane %v1276_v49, 1  ;;  %v5096_v62 = vsel %vm1530_vm0, %v5093_v18, %v5095_v54  ;;  %v8120_v49 = vld [vmem:[%s8201_s5 + $0x260] sm:$0x10] }
 0x46b   : > { %v5838_v4 = vadd.f32 %v5645_v48, %v4395_v0  ;;  %v9680_v0 = vor.u32 %v3637_v58, %v3634_v57 }
 0x46d   : > { %vm5987_vm4 = vcmp.gt.f32.partialorder %v5838_v4, 0.0  ;;  %v6136_v7 = vmul.f32 0.2, %v5838_v4  ;;  %7506 = vmatmul.msk.bf16.gmra.mxu2 %vm1304_vm1, %v3621_v2  ;;  %v3639_v10 = vsel %vm2983_vm3, %v3629_v28, %v9680_v0 }
 0x46e   : > { %v1850_v12 = vpop.f32.mrf.mxu0 }
 0x46f   : > { %v6285_v11 = vsel %vm5987_vm4, %v5838_v4, %v6136_v7  ;;  %v2394_v17 = vpop.f32.mrf.mxu1  ;;  %v2392_v30 = vadd.f32 %v2391_v63, %v1850_v12  ;;  %v1279_v4 = vsel %vm699_vm2, %v1274_v60, %v1278_v61 }
 0x470   : > { %v6434_v15 = vpack.c.bf16 %v6285_v11, %v6285_v11  ;;  %v4205_v16 = vpop.f32.mrf.mxu2  ;;  %v8044_v11 = vld [vmem:[%s8201_s5 + $0x258] sm:$0xff] }
 0x471   : > { %v4396_v19 = vadd.f32 %v4205_v16, %v2390_v8  ;;  %v3644_v18 = vshll.u32 %v8044_v11, 16 }
 0x472   : > { %6584 = vst.msk [vmem:[%s8314_s9 + $0x1e4] sm:$0xf] %vm6462_vm5, %v6434_v15  ;;  %v5650_v20 = vpop.f32.mrf.mxu3  ;;  %7130 = vmatmul.msk.bf16.gmra.mxu1 %vm1304_vm1, %v9622_v34 }
 0x473   : > { %v5839_v23 = vadd.f32 %v5648_v1, %v4396_v19 }
 0x475   : > { %vm5988_vm6 = vcmp.gt.f32.partialorder %v5839_v23, 0.0  ;;  %v6137_v27 = vmul.f32 0.2, %v5839_v23 }
 0x476   : > { %v1853_v31 = vpop.f32.mrf.mxu0 }
 0x477   : > { %v6286_v29 = vsel %vm5988_vm6, %v5839_v23, %v6137_v27  ;;  %7888 = vmatmul.msk.bf16.gmra.mxu3 %vm1304_vm1, %v5094_v26  ;;  %v2396_v35 = vpop.f32.mrf.mxu1  ;;  %v2395_v44 = vadd.f32 %v2394_v17, %v1853_v31  ;;  %v3641_v17 = vshrl.u32 %v8044_v11, 16  ;;  %v5097_v26 = vrot.slane %v9694_v13, 2 }
 0x478   : > { %v6435_v33 = vpack.c.bf16 %v6286_v29, %v6286_v29  ;;  %v4207_v34 = vpop.f32.mrf.mxu2 }
 0x479   : > { %v4397_v36 = vadd.f32 %v4207_v34, %v2392_v30  ;;  %7051 = vmatmul.msk.bf16.gmra.mxu0 %vm1304_vm1, %v1271_v32  ;;  %v3643_v29 = vrot.slane %v3641_v17, 1  ;;  %v3646_v30 = vrot.slane %v3644_v18, 2  ;;  %v1282_v32 = vor.u32 %v1280_v21, %v1278_v61  ;;  %v2606_v34 = vld [vmem:[%s8201_s5 + $0x260] sm:$0xf] }
 0x47a   : > { %6585 = vst.msk [vmem:[%s8314_s9 + $0x1e8] sm:$0xf] %vm6462_vm5, %v6435_v33  ;;  %v5653_v37 = vpop.f32.mrf.mxu3  ;;  %v1286_v33 = vrot.slane %v1284_v22, 1  ;;  %v2907_v39 = vunpack.c.l.b16 %v2606_v34 }
 0x47b   : > { %v5840_v40 = vadd.f32 %v5650_v20, %v4397_v36  ;;  %v320_v36 = vld [vmem:[%s8201_s5 + $0x250] sm:$0x7] }
 0x47d   : > { %vm5989_vm7 = vcmp.gt.f32.partialorder %v5840_v40, 0.0  ;;  %v6138_v43 = vmul.f32 0.2, %v5840_v40  ;;  %7507 = vmatmul.msk.bf16.gmra.mxu2 %vm1304_vm1, %v3630_v38  ;;  %v3647_v38 = vor.u32 %v3646_v30, %v3643_v29 }
 0x47e   : > { %v1855_v48 = vpop.f32.mrf.mxu0 }
 0x47f   : > { %v6287_v47 = vsel %vm5989_vm7, %v5840_v40, %v6138_v43  ;;  %v2399_v53 = vpop.f32.mrf.mxu1  ;;  %v2397_v2 = vadd.f32 %v2396_v35, %v1855_v48  ;;  %v5098_v35 = vsel %vm1530_vm0, %v5095_v54, %v5097_v26 }
 0x480   : > { %v6436_v51 = vpack.c.bf16 %v6287_v47, %v6287_v47  ;;  %v4210_v52 = vpop.f32.mrf.mxu2 }
 0x481   : > { %v4398_v55 = vadd.f32 %v4210_v52, %v2395_v44  ;;  %v623_v44 = vunpack.c.l.b16 %v320_v36  ;;  %v3648_v52 = vsel %vm2983_vm3, %v9680_v0, %v3647_v38 }
 0x482   : > { %6586 = vst.msk [vmem:[%s8314_s9 + $0x1ec] sm:$0xf] %vm6462_vm5, %v6436_v51  ;;  %v5655_v56 = vpop.f32.mrf.mxu3  ;;  %7131 = vmatmul.msk.bf16.gmra.mxu1 %vm1304_vm1, %v9644_v6 }
 0x483   : > { %v5841_v59 = vadd.f32 %v5653_v37, %v4398_v55  ;;  %v698_v55 = vpack.c.b16 %v623_v44, %v623_v44 }
 0x485   : > { %vm5990_vm8 = vcmp.gt.f32.partialorder %v5841_v59, 0.0  ;;  %v6139_v63 = vmul.f32 0.2, %v5841_v59 }
 0x486   : > { %v1858_v3 = vpop.f32.mrf.mxu0 }
 0x487   : > { %v6288_v1 = vsel %vm5990_vm8, %v5841_v59, %v6139_v63  ;;  %7889 = vmatmul.msk.bf16.gmra.mxu3 %vm1304_vm1, %v5096_v62  ;;  %v2401_v7 = vpop.f32.mrf.mxu1  ;;  %v2400_v16 = vadd.f32 %v2399_v53, %v1858_v3  ;;  %v2982_v53 = vpack.c.b16 %v2907_v39, %v2907_v39  ;;  %v1288_v63 = vshrl.u32 %v9691_v14, 16 }
 0x488   : > { %v6437_v6 = vpack.c.bf16 %v6288_v1, %v6288_v1  ;;  %v4212_v5 = vpop.f32.mrf.mxu2  ;;  %v1292_v1 = vshll.u32 %v698_v55, 16 }
 0x489   : > { %v4399_v8 = vadd.f32 %v4212_v5, %v2397_v2  ;;  %7052 = vmatmul.msk.bf16.gmra.mxu0 %vm1304_vm1, %v1279_v4  ;;  %v3650_v59 = vshrl.u32 %v2982_v53, 16  ;;  %v3653_v60 = vshll.u32 %v2982_v53, 16 }
 0x48a   : > { %6587 = vst.msk [vmem:[%s8314_s9 + $0x1f0] sm:$0xf] %vm6462_vm5, %v6437_v6  ;;  %v5658_v9 = vpop.f32.mrf.mxu3  ;;  %v1294_v11 = vrot.slane %v1292_v1, 1 }
 0x48b   : > { %v5842_v12 = vadd.f32 %v5655_v56, %v4399_v8  ;;  %v7813_v56 = vor.u32 %v8120_v49, %v7812_v50  ;;  %v3655_v8 = vrot.slane %v3653_v60, 2 }
 0x48d   : > { %vm5991_vm9 = vcmp.gt.f32.partialorder %v5842_v12, 0.0  ;;  %v6140_v15 = vmul.f32 0.2, %v5842_v12  ;;  %7508 = vmatmul.msk.bf16.gmra.mxu2 %vm1304_vm1, %v3639_v10  ;;  %v5099_v4 = vrot.slane %v7813_v56, 2  ;;  %v1290_v10 = vor.u32 %v1288_v63, %v1286_v33 }
 0x48e   : > { %v1860_v20 = vpop.f32.mrf.mxu0 }
 0x48f   : > { %v6289_v19 = vsel %vm5991_vm9, %v5842_v12, %v6140_v15  ;;  %v2404_v25 = vpop.f32.mrf.mxu1  ;;  %v2402_v41 = vadd.f32 %v2401_v7, %v1860_v20  ;;  %v3652_v7 = vrot.slane %v3650_v59, 1  ;;  %v5100_v12 = vsel %vm1530_vm0, %v5097_v26, %v5099_v4 }
 0x490   : > { %v6438_v23 = vpack.c.bf16 %v6289_v19, %v6289_v19  ;;  %v4215_v24 = vpop.f32.mrf.mxu2  ;;  %v1295_v19 = vsel %vm699_vm2, %v1290_v10, %v1294_v11 }
 0x491   : > { %v4400_v27 = vadd.f32 %v4215_v24, %v2400_v16  ;;  %v3656_v15 = vor.u32 %v3655_v8, %v3652_v7 }
 0x492   : > { %6588 = vst.msk [vmem:[%s8314_s9 + $0x1f4] sm:$0xf] %vm6462_vm5, %v6438_v23  ;;  %v5660_v28 = vpop.f32.mrf.mxu3  ;;  %7132 = vmatmul.msk.bf16.gmra.mxu1 %vm1304_vm1, %v9666_v42  ;;  %v1287_v42 = vsel %vm699_vm2, %v1282_v32, %v1286_v33 }
 0x493   : > { %v5843_v31 = vadd.f32 %v5658_v9, %v4400_v27  ;;  %v3657_v24 = vsel %vm2983_vm3, %v3647_v38, %v3656_v15 }
 0x495   : > { %vm5992_vm10 = vcmp.gt.f32.partialorder %v5843_v31, 0.0  ;;  %v6141_v37 = vmul.f32 0.2, %v5843_v31 }
 0x496   : > { %v1863_v43 = vpop.f32.mrf.mxu0 }
 0x497   : > { %v6290_v40 = vsel %vm5992_vm10, %v5843_v31, %v6141_v37  ;;  %7890 = vmatmul.msk.bf16.gmra.mxu3 %vm1304_vm1, %v5098_v35  ;;  %v2406_v47 = vpop.f32.mrf.mxu1  ;;  %v2405_v58 = vadd.f32 %v2404_v25, %v1863_v43  ;;  %v1296_v35 = vshrl.u32 %v698_v55, 16 }
 0x498   : > { %v6439_v45 = vpack.c.bf16 %v6290_v40, %v6290_v40  ;;  %v4217_v46 = vpop.f32.mrf.mxu2 }
 0x499   : > { %v4401_v48 = vadd.f32 %v4217_v46, %v2402_v41  ;;  %7053 = vmatmul.msk.bf16.gmra.mxu0 %vm1304_vm1, %v1287_v42  ;;  %v1298_v38 = vor.u32 %v1296_v35, %v1294_v11 }
 0x49a   : > { %6589 = vst.msk [vmem:[%s8314_s9 + $0x1f8] sm:$0xf] %vm6462_vm5, %v6439_v45  ;;  %v5663_v51 = vpop.f32.mrf.mxu3 }
 0x49b   : > { %v5844_v54 = vadd.f32 %v5660_v28, %v4401_v48 }
 0x49d   : > { %vm5993_vm11 = vcmp.gt.f32.partialorder %v5844_v54, 0.0  ;;  %v6142_v57 = vmul.f32 0.2, %v5844_v54  ;;  %7509 = vmatmul.msk.bf16.gmra.mxu2 %vm1304_vm1, %v3648_v52 }
 0x49e   : > { %v1865_v62 = vpop.f32.mrf.mxu0 }
 0x49f   : > { %v6291_v61 = vsel %vm5993_vm11, %v5844_v54, %v6142_v57  ;;  %v2409_v0 = vpop.f32.mrf.mxu1  ;;  %v2407_v17 = vadd.f32 %v2406_v47, %v1865_v62 }
 0x4a0   : > { %v6440_v2 = vpack.c.bf16 %v6291_v61, %v6291_v61  ;;  %v4220_v3 = vpop.f32.mrf.mxu2 }
 0x4a1   : > { %v4402_v6 = vadd.f32 %v4220_v3, %v2405_v58 }
 0x4a2   : > { %6590 = vst.msk [vmem:[%s8314_s9 + $0x1fc] sm:$0xf] %vm6462_vm5, %v6440_v2  ;;  %v5665_v5 = vpop.f32.mrf.mxu3  ;;  %7133 = vmatmul.msk.bf16.gmra.mxu1 %vm1304_vm1, %v9691_v14 }
 0x4a3   : > { %v5845_v9 = vadd.f32 %v5663_v51, %v4402_v6 }
 0x4a5   : > { %vm5994_vm12 = vcmp.gt.f32.partialorder %v5845_v9, 0.0  ;;  %v6143_v13 = vmul.f32 0.2, %v5845_v9 }
 0x4a6   : > { %v1868_v18 = vpop.f32.mrf.mxu0 }
 0x4a7   : > { %v6292_v16 = vsel %vm5994_vm12, %v5845_v9, %v6143_v13  ;;  %7891 = vmatmul.msk.bf16.gmra.mxu3 %vm1304_vm1, %v5100_v12  ;;  %v2411_v22 = vpop.f32.mrf.mxu1  ;;  %v2410_v27 = vadd.f32 %v2409_v0, %v1868_v18 }
 0x4a8   : > { %v6441_v20 = vpack.c.bf16 %v6292_v16, %v6292_v16  ;;  %v4222_v21 = vpop.f32.mrf.mxu2 }
 0x4a9   : > { %v4403_v23 = vadd.f32 %v4222_v21, %v2407_v17  ;;  %7054 = vmatmul.msk.bf16.gmra.mxu0 %vm1304_vm1, %v1295_v19 }
 0x4aa   : > { %6591 = vst.msk [vmem:[%s8314_s9 + $0x200] sm:$0xf] %vm6462_vm5, %v6441_v20  ;;  %v5668_v14 = vpop.f32.mrf.mxu3 }
 0x4ab   : > { %v5846_v25 = vadd.f32 %v5665_v5, %v4403_v23 }
 0x4ad   : > { %vm5995_vm0 = vcmp.gt.f32.partialorder %v5846_v25, 0.0  ;;  %v6144_v26 = vmul.f32 0.2, %v5846_v25  ;;  %7510 = vmatmul.msk.bf16.gmra.mxu2 %vm1304_vm1, %v3657_v24 }
 0x4ae   : > { %v1870_v29 = vpop.f32.mrf.mxu0 }
 0x4af   : > { %v6293_v28 = vsel %vm5995_vm0, %v5846_v25, %v6144_v26  ;;  %v2414_v32 = vpop.f32.mrf.mxu1  ;;  %v2412_v40 = vadd.f32 %v2411_v22, %v1870_v29 }
 0x4b0   : > { %v6442_v30 = vpack.c.bf16 %v6293_v28, %v6293_v28  ;;  %v4225_v31 = vpop.f32.mrf.mxu2 }
 0x4b1   : > { %v4404_v33 = vadd.f32 %v4225_v31, %v2410_v27 }
 0x4b2   : > { %6592 = vst.msk [vmem:[%s8314_s9 + $0x204] sm:$0xf] %vm6462_vm5, %v6442_v30  ;;  %v5670_v34 = vpop.f32.mrf.mxu3  ;;  %7134 = vmatmul.msk.bf16.gmra.mxu1 %vm1304_vm1, %v698_v55 }
 0x4b3   : > { %v5847_v36 = vadd.f32 %v5668_v14, %v4404_v33 }
 0x4b5   : > { %vm5996_vm2 = vcmp.gt.f32.partialorder %v5847_v36, 0.0  ;;  %v6145_v37 = vmul.f32 0.2, %v5847_v36 }
 0x4b6   : > { %v1873_v41 = vpop.f32.mrf.mxu0 }
 0x4b7   : > { %v6294_v39 = vsel %vm5996_vm2, %v5847_v36, %v6145_v37  ;;  %7892 = vmatmul.msk.bf16.gmra.mxu3 %vm1304_vm1, %v5099_v4  ;;  %v2416_v44 = vpop.f32.mrf.mxu1  ;;  %v2415_v50 = vadd.f32 %v2414_v32, %v1873_v41 }
 0x4b8   : > { %v6443_v43 = vpack.c.bf16 %v6294_v39, %v6294_v39  ;;  %v4227_v42 = vpop.f32.mrf.mxu2 }
 0x4b9   : > { %v4405_v45 = vadd.f32 %v4227_v42, %v2412_v40  ;;  %7055 = vmatmul.msk.bf16.gmra.mxu0 %vm1304_vm1, %v1298_v38 }
 0x4ba   : > { %6593 = vst.msk [vmem:[%s8314_s9 + $0x208] sm:$0xf] %vm6462_vm5, %v6443_v43  ;;  %v5673_v46 = vpop.f32.mrf.mxu3 }
 0x4bb   : > { %v5848_v47 = vadd.f32 %v5670_v34, %v4405_v45 }
 0x4bd   : > { %vm5997_vm3 = vcmp.gt.f32.partialorder %v5848_v47, 0.0  ;;  %v6146_v48 = vmul.f32 0.2, %v5848_v47  ;;  %7511 = vmatmul.msk.bf16.gmra.mxu2 %vm1304_vm1, %v3656_v15 }
 0x4be   : > { %v1875_v51 = vpop.f32.mrf.mxu0 }
 0x4bf   : > { %v6295_v49 = vsel %vm5997_vm3, %v5848_v47, %v6146_v48  ;;  %v2419_v54 = vpop.f32.mrf.mxu1  ;;  %v2417_v60 = vadd.f32 %v2416_v44, %v1875_v51 }
 0x4c0   : > { %v6444_v52 = vpack.c.bf16 %v6295_v49, %v6295_v49  ;;  %v4230_v53 = vpop.f32.mrf.mxu2 }
 0x4c1   : > { %v4406_v55 = vadd.f32 %v4230_v53, %v2415_v50 }
 0x4c2   : > { %6594 = vst.msk [vmem:[%s8314_s9 + $0x20c] sm:$0xf] %vm6462_vm5, %v6444_v52  ;;  %v5675_v56 = vpop.f32.mrf.mxu3 }
 0x4c3   : > { %v5849_v57 = vadd.f32 %v5673_v46, %v4406_v55 }
 0x4c5   : > { %vm5998_vm13 = vcmp.gt.f32.partialorder %v5849_v57, 0.0  ;;  %v6147_v58 = vmul.f32 0.2, %v5849_v57 }
 0x4c6   : > { %v1878_v61 = vpop.f32.mrf.mxu0 }
 0x4c7   : > { %v6296_v59 = vsel %vm5998_vm13, %v5849_v57, %v6147_v58  ;;  %v2421_v1 = vpop.f32.mrf.mxu1  ;;  %v2420_v6 = vadd.f32 %v2419_v54, %v1878_v61 }
 0x4c8   : > { %v6445_v62 = vpack.c.bf16 %v6296_v59, %v6296_v59  ;;  %v4232_v63 = vpop.f32.mrf.mxu2 }
 0x4c9   : > { %v4407_v2 = vadd.f32 %v4232_v63, %v2417_v60 }
 0x4ca   : > { %6595 = vst.msk [vmem:[%s8314_s9 + $0x210] sm:$0xf] %vm6462_vm5, %v6445_v62  ;;  %v5678_v3 = vpop.f32.mrf.mxu3 }
 0x4cb   : > { %v5850_v0 = vadd.f32 %v5675_v56, %v4407_v2 }
 0x4cd   : > { %vm5999_vm1 = vcmp.gt.f32.partialorder %v5850_v0, 0.0  ;;  %v6148_v4 = vmul.f32 0.2, %v5850_v0 }
 0x4ce   : > { %v1880_v7 = vpop.f32.mrf.mxu0 }
 0x4cf   : > { %v6297_v5 = vsel %vm5999_vm1, %v5850_v0, %v6148_v4  ;;  %v2424_v10 = vpop.f32.mrf.mxu1  ;;  %v2422_v17 = vadd.f32 %v2421_v1, %v1880_v7  ;;  %vm6611_vm1 = vcmask 59392  }
 0x4d0   : > { %v6446_v8 = vpack.c.bf16 %v6297_v5, %v6297_v5  ;;  %v4235_v9 = vpop.f32.mrf.mxu2 }
 0x4d1   : > { %v4408_v11 = vadd.f32 %v4235_v9, %v2420_v6 }
 0x4d2   : > { %6596 = vst.msk [vmem:[%s8314_s9 + $0x214] sm:$0xf] %vm6462_vm5, %v6446_v8  ;;  %v5680_v12 = vpop.f32.mrf.mxu3 }
 0x4d3   : > { %v5851_v13 = vadd.f32 %v5678_v3, %v4408_v11 }
 0x4d5   : > { %vm6000_vm14 = vcmp.gt.f32.partialorder %v5851_v13, 0.0  ;;  %v6149_v15 = vmul.f32 0.2, %v5851_v13 }
 0x4d6   : > { %v1883_v18 = vpop.f32.mrf.mxu0 }
 0x4d7   : > { %v6298_v16 = vsel %vm6000_vm14, %v5851_v13, %v6149_v15  ;;  %v2426_v21 = vpop.f32.mrf.mxu1  ;;  %v2425_v25 = vadd.f32 %v2424_v10, %v1883_v18  ;;  %vm6612_vm14 = vsmask.f32 2304 }
 0x4d8   : > { %v6447_v19 = vpack.c.bf16 %v6298_v16, %v6298_v16  ;;  %v4237_v20 = vpop.f32.mrf.mxu2 }
 0x4d9   : > { %v4409_v22 = vadd.f32 %v4237_v20, %v2422_v17 }
 0x4da   : > { %6597 = vst.msk [vmem:[%s8314_s9 + $0x218] sm:$0xf] %vm6462_vm5, %v6447_v19  ;;  %v5683_v23 = vpop.f32.mrf.mxu3 }
 0x4db   : > { %v5852_v14 = vadd.f32 %v5680_v12, %v4409_v22 }
 0x4dd   : > { %vm6001_vm15 = vcmp.gt.f32.partialorder %v5852_v14, 0.0  ;;  %v6150_v24 = vmul.f32 0.2, %v5852_v14 }
 0x4de   : > { %v1885_v27 = vpop.f32.mrf.mxu0 }
 0x4df   : > { %v6299_v26 = vsel %vm6001_vm15, %v5852_v14, %v6150_v24  ;;  %v2429_v30 = vpop.f32.mrf.mxu1  ;;  %v2427_v36 = vadd.f32 %v2426_v21, %v1885_v27 }
 0x4e0   : > { %v6448_v28 = vpack.c.bf16 %v6299_v26, %v6299_v26  ;;  %v4240_v29 = vpop.f32.mrf.mxu2 }
 0x4e1   : > { %v4410_v31 = vadd.f32 %v4240_v29, %v2425_v25 }
 0x4e2   : > { %6598 = vst.msk [vmem:[%s8314_s9 + $0x21c] sm:$0xf] %vm6462_vm5, %v6448_v28  ;;  %v5685_v32 = vpop.f32.mrf.mxu3 }
 0x4e3   : > { %v5853_v33 = vadd.f32 %v5683_v23, %v4410_v31 }
 0x4e5   : > { %vm6002_vm4 = vcmp.gt.f32.partialorder %v5853_v33, 0.0  ;;  %v6151_v34 = vmul.f32 0.2, %v5853_v33 }
 0x4e6   : > { %v1888_v37 = vpop.f32.mrf.mxu0 }
 0x4e7   : > { %v6300_v35 = vsel %vm6002_vm4, %v5853_v33, %v6151_v34  ;;  %v2431_v40 = vpop.f32.mrf.mxu1  ;;  %v2430_v45 = vadd.f32 %v2429_v30, %v1888_v37  ;;  %vm6613_vm4 = vmand %vm6611_vm1, %vm6612_vm14 }
 0x4e8   : > { %v6449_v38 = vpack.c.bf16 %v6300_v35, %v6300_v35  ;;  %v4242_v39 = vpop.f32.mrf.mxu2 }
 0x4e9   : > { %v4411_v41 = vadd.f32 %v4242_v39, %v2427_v36 }
 0x4ea   : > { %6599 = vst.msk [vmem:[%s8314_s9 + $0x220] sm:$0xf] %vm6462_vm5, %v6449_v38  ;;  %v5688_v43 = vpop.f32.mrf.mxu3 }
 0x4eb   : > { %v5854_v42 = vadd.f32 %v5685_v32, %v4411_v41 }
 0x4ed   : > { %vm6003_vm6 = vcmp.gt.f32.partialorder %v5854_v42, 0.0  ;;  %v6152_v44 = vmul.f32 0.2, %v5854_v42 }
 0x4ee   : > { %v1890_v47 = vpop.f32.mrf.mxu0 }
 0x4ef   : > { %v6301_v46 = vsel %vm6003_vm6, %v5854_v42, %v6152_v44  ;;  %v2434_v49 = vpop.f32.mrf.mxu1  ;;  %v2432_v56 = vadd.f32 %v2431_v40, %v1890_v47 }
 0x4f0   : > { %v6450_v48 = vpack.c.bf16 %v6301_v46, %v6301_v46  ;;  %v4245_v50 = vpop.f32.mrf.mxu2 }
 0x4f1   : > { %v4412_v51 = vadd.f32 %v4245_v50, %v2430_v45 }
 0x4f2   : > { %6600 = vst.msk [vmem:[%s8314_s9 + $0x224] sm:$0xf] %vm6462_vm5, %v6450_v48  ;;  %v5690_v52 = vpop.f32.mrf.mxu3 }
 0x4f3   : > { %v5855_v53 = vadd.f32 %v5688_v43, %v4412_v51 }
 0x4f5   : > { %vm6004_vm7 = vcmp.gt.f32.partialorder %v5855_v53, 0.0  ;;  %v6153_v54 = vmul.f32 0.2, %v5855_v53 }
 0x4f6   : > { %v1893_v57 = vpop.f32.mrf.mxu0 }
 0x4f7   : > { %v6302_v55 = vsel %vm6004_vm7, %v5855_v53, %v6153_v54  ;;  %v2436_v60 = vpop.f32.mrf.mxu1  ;;  %v2435_v2 = vadd.f32 %v2434_v49, %v1893_v57 }
 0x4f8   : > { %v6451_v58 = vpack.c.bf16 %v6302_v55, %v6302_v55  ;;  %v4247_v59 = vpop.f32.mrf.mxu2 }
 0x4f9   : > { %v4413_v61 = vadd.f32 %v4247_v59, %v2432_v56 }
 0x4fa   : > { %6601 = vst.msk [vmem:[%s8314_s9 + $0x228] sm:$0xf] %vm6462_vm5, %v6451_v58  ;;  %v5693_v62 = vpop.f32.mrf.mxu3 }
 0x4fb   : > { %v5856_v63 = vadd.f32 %v5690_v52, %v4413_v61 }
 0x4fd   : > { %vm6005_vm8 = vcmp.gt.f32.partialorder %v5856_v63, 0.0  ;;  %v6154_v1 = vmul.f32 0.2, %v5856_v63 }
 0x4fe   : > { %v1895_v0 = vpop.f32.mrf.mxu0 }
 0x4ff   : > { %v6303_v3 = vsel %vm6005_vm8, %v5856_v63, %v6154_v1  ;;  %v2439_v5 = vpop.f32.mrf.mxu1  ;;  %v2437_v12 = vadd.f32 %v2436_v60, %v1895_v0 }
 0x500   : > { %v6452_v4 = vpack.c.bf16 %v6303_v3, %v6303_v3  ;;  %v4250_v6 = vpop.f32.mrf.mxu2 }
 0x501   : > { %v4414_v7 = vadd.f32 %v4250_v6, %v2435_v2 }
 0x502   : > { %6602 = vst.msk [vmem:[%s8314_s9 + $0x22c] sm:$0xf] %vm6462_vm5, %v6452_v4  ;;  %v5695_v8 = vpop.f32.mrf.mxu3 }
 0x503   : > { %v5857_v9 = vadd.f32 %v5693_v62, %v4414_v7 }
 0x505   : > { %vm6006_vm9 = vcmp.gt.f32.partialorder %v5857_v9, 0.0  ;;  %v6155_v10 = vmul.f32 0.2, %v5857_v9 }
 0x506   : > { %v1898_v13 = vpop.f32.mrf.mxu0 }
 0x507   : > { %v6304_v11 = vsel %vm6006_vm9, %v5857_v9, %v6155_v10  ;;  %v2441_v17 = vpop.f32.mrf.mxu1  ;;  %v2440_v22 = vadd.f32 %v2439_v5, %v1898_v13 }
 0x508   : > { %v6453_v15 = vpack.c.bf16 %v6304_v11, %v6304_v11  ;;  %v4252_v16 = vpop.f32.mrf.mxu2 }
 0x509   : > { %v4415_v18 = vadd.f32 %v4252_v16, %v2437_v12 }
 0x50a   : > { %6603 = vst.msk [vmem:[%s8314_s9 + $0x230] sm:$0xf] %vm6462_vm5, %v6453_v15  ;;  %v5698_v19 = vpop.f32.mrf.mxu3 }
 0x50b   : > { %v5858_v20 = vadd.f32 %v5695_v8, %v4415_v18 }
 0x50d   : > { %vm6007_vm10 = vcmp.gt.f32.partialorder %v5858_v20, 0.0  ;;  %v6156_v21 = vmul.f32 0.2, %v5858_v20 }
 0x50e   : > { %v1900_v14 = vpop.f32.mrf.mxu0 }
 0x50f   : > { %v6305_v23 = vsel %vm6007_vm10, %v5858_v20, %v6156_v21  ;;  %v2444_v26 = vpop.f32.mrf.mxu1  ;;  %v2442_v32 = vadd.f32 %v2441_v17, %v1900_v14 }
 0x510   : > { %v6454_v24 = vpack.c.bf16 %v6305_v23, %v6305_v23  ;;  %v4255_v25 = vpop.f32.mrf.mxu2 }
 0x511   : > { %v4416_v27 = vadd.f32 %v4255_v25, %v2440_v22 }
 0x512   : > { %6604 = vst.msk [vmem:[%s8314_s9 + $0x234] sm:$0xf] %vm6462_vm5, %v6454_v24  ;;  %v5700_v28 = vpop.f32.mrf.mxu3 }
 0x513   : > { %v5859_v29 = vadd.f32 %v5698_v19, %v4416_v27  ;;  %v6614_v27 = vld [vmem:[%s8314_s9 + $0x250] sm:$0x7] }
 0x515   : > { %vm6008_vm11 = vcmp.gt.f32.partialorder %v5859_v29, 0.0  ;;  %v6157_v30 = vmul.f32 0.2, %v5859_v29 }
 0x516   : > { %v1903_v33 = vpop.f32.mrf.mxu0 }
 0x517   : > { %v6306_v31 = vsel %vm6008_vm11, %v5859_v29, %v6157_v30  ;;  %v2446_v36 = vpop.f32.mrf.mxu1  ;;  %v2445_v41 = vadd.f32 %v2444_v26, %v1903_v33 }
 0x518   : > { %v6455_v34 = vpack.c.bf16 %v6306_v31, %v6306_v31  ;;  %v4257_v35 = vpop.f32.mrf.mxu2 }
 0x519   : > { %v4417_v37 = vadd.f32 %v4257_v35, %v2442_v32 }
 0x51a   : > { %6605 = vst.msk [vmem:[%s8314_s9 + $0x238] sm:$0xf] %vm6462_vm5, %v6455_v34  ;;  %v5703_v38 = vpop.f32.mrf.mxu3 }
 0x51b   : > { %v5860_v39 = vadd.f32 %v5700_v28, %v4417_v37 }
 0x51d   : > { %vm6009_vm12 = vcmp.gt.f32.partialorder %v5860_v39, 0.0  ;;  %v6158_v40 = vmul.f32 0.2, %v5860_v39 }
 0x51e   : > { %v1905_v42 = vpop.f32.mrf.mxu0 }
 0x51f   : > { %v6307_v43 = vsel %vm6009_vm12, %v5860_v39, %v6158_v40  ;;  %v2449_v46 = vpop.f32.mrf.mxu1  ;;  %v2447_v52 = vadd.f32 %v2446_v36, %v1905_v42 }
 0x520   : > { %v6456_v44 = vpack.c.bf16 %v6307_v43, %v6307_v43  ;;  %v4260_v45 = vpop.f32.mrf.mxu2 }
 0x521   : > { %v4418_v47 = vadd.f32 %v4260_v45, %v2445_v41 }
 0x522   : > { %6606 = vst.msk [vmem:[%s8314_s9 + $0x23c] sm:$0xf] %vm6462_vm5, %v6456_v44  ;;  %v5705_v48 = vpop.f32.mrf.mxu3 }
 0x523   : > { %v5861_v50 = vadd.f32 %v5703_v38, %v4418_v47 }
 0x525   : > { %vm6010_vm0 = vcmp.gt.f32.partialorder %v5861_v50, 0.0  ;;  %v6159_v49 = vmul.f32 0.2, %v5861_v50 }
 0x526   : > { %v1908_v53 = vpop.f32.mrf.mxu0 }
 0x527   : > { %v6308_v51 = vsel %vm6010_vm0, %v5861_v50, %v6159_v49  ;;  %v2451_v56 = vpop.f32.mrf.mxu1  ;;  %v2450_v61 = vadd.f32 %v2449_v46, %v1908_v53 }
 0x528   : > { %v6457_v54 = vpack.c.bf16 %v6308_v51, %v6308_v51  ;;  %v4262_v55 = vpop.f32.mrf.mxu2 }
 0x529   : > { %v4419_v57 = vadd.f32 %v4262_v55, %v2447_v52 }
 0x52a   : > { %6607 = vst.msk [vmem:[%s8314_s9 + $0x240] sm:$0xf] %vm6462_vm5, %v6457_v54  ;;  %v5708_v58 = vpop.f32.mrf.mxu3 }
 0x52b   : > { %v5862_v59 = vadd.f32 %v5705_v48, %v4419_v57 }
 0x52d   : > { %vm6011_vm2 = vcmp.gt.f32.partialorder %v5862_v59, 0.0  ;;  %v6160_v60 = vmul.f32 0.2, %v5862_v59 }
 0x52e   : > { %v1910_v63 = vpop.f32.mrf.mxu0 }
 0x52f   : > { %v6309_v62 = vsel %vm6011_vm2, %v5862_v59, %v6160_v60  ;;  %v2454_v3 = vpop.f32.mrf.mxu1  ;;  %v2452_v8 = vadd.f32 %v2451_v56, %v1910_v63 }
 0x530   : > { %v6458_v1 = vpack.c.bf16 %v6309_v62, %v6309_v62  ;;  %v4265_v2 = vpop.f32.mrf.mxu2 }
 0x531   : > { %v4420_v0 = vadd.f32 %v4265_v2, %v2450_v61 }
 0x532   : > { %6608 = vst.msk [vmem:[%s8314_s9 + $0x244] sm:$0xf] %vm6462_vm5, %v6458_v1  ;;  %v5710_v4 = vpop.f32.mrf.mxu3 }
 0x533   : > { %v5863_v6 = vadd.f32 %v5708_v58, %v4420_v0 }
 0x535   : > { %vm6012_vm3 = vcmp.gt.f32.partialorder %v5863_v6, 0.0  ;;  %v6161_v5 = vmul.f32 0.2, %v5863_v6 }
 0x536   : > { %v1913_v9 = vpop.f32.mrf.mxu0 }
 0x537   : > { %v6310_v7 = vsel %vm6012_vm3, %v5863_v6, %v6161_v5  ;;  %v2456_v12 = vpop.f32.mrf.mxu1  ;;  %v2455_v18 = vadd.f32 %v2454_v3, %v1913_v9 }
 0x538   : > { %v6459_v10 = vpack.c.bf16 %v6310_v7, %v6310_v7  ;;  %v4267_v11 = vpop.f32.mrf.mxu2 }
 0x539   : > { %v4421_v13 = vadd.f32 %v4267_v11, %v2452_v8 }
 0x53a   : > { %6609 = vst.msk [vmem:[%s8314_s9 + $0x248] sm:$0xf] %vm6462_vm5, %v6459_v10  ;;  %v5713_v15 = vpop.f32.mrf.mxu3 }
 0x53b   : > { %v5864_v16 = vadd.f32 %v5710_v4, %v4421_v13 }
 0x53d   : > { %vm6013_vm13 = vcmp.gt.f32.partialorder %v5864_v16, 0.0  ;;  %v6162_v17 = vmul.f32 0.2, %v5864_v16 }
 0x53e   : > { %v1915_v20 = vpop.f32.mrf.mxu0 }
 0x53f   : > { %v6311_v19 = vsel %vm6013_vm13, %v5864_v16, %v6162_v17 }
 0x540   : > { %v6460_v21 = vpack.c.bf16 %v6311_v19, %v6311_v19  ;;  %v4270_v22 = vpop.f32.mrf.mxu2 }
 0x541   : > { %v4422_v23 = vadd.f32 %v4270_v22, %v2455_v18 }
 0x542   : > { %6610 = vst.msk [vmem:[%s8314_s9 + $0x24c] sm:$0xf] %vm6462_vm5, %v6460_v21  ;;  %v5715_v14 = vpop.f32.mrf.mxu3 }
 0x543   : > { %v5865_v24 = vadd.f32 %v5713_v15, %v4422_v23 }
 0x545   : > { %vm6014_vm15 = vcmp.gt.f32.partialorder %v5865_v24, 0.0  ;;  %v6163_v25 = vmul.f32 0.2, %v5865_v24 }
 0x547   : > { %v6312_v26 = vsel %vm6014_vm15, %v5865_v24, %v6163_v25 }
 0x548   : > { %v6461_v28 = vpack.c.bf16 %v6312_v26, %v6312_v26  ;;  %v4272_v29 = vpop.f32.mrf.mxu2 }
 0x54a   : > { %v6615_v30 = vsel %vm6613_vm4, %v6461_v28, %v6614_v27 }
 0x54b   : > { %6616 = vst [vmem:[%s8314_s9 + $0x250] sm:$0x7] %v6615_v30 }
 0x54c PF: > { %s13_s12 = sadd.s32 1, %s8138_s12  }
 0x54d   : > { %p10_p4 = scmp.ge.s32.totalorder %s13_s12, 4  }
 0x54f   :  { %12 = sbr.rel (!%p10_p4) target bundleno = 1 (0x1), region = 65 }

// kernel: discriminator_forward.6
= control target key start
LH: loop header
LB: loop body
LE: loop exit
PB: predicated region body
PF: predicated region fallthrough
CT: control target
= control target key end

     0   :  { %s2737_s12 = smov 0   ;;  %s3797_s0 = inlined_call_operand.vmem [shape: bf16[2,289,32], index: 0, kind: input, shape index: {}]   ;;  %s3798_s1 = inlined_call_operand.vmem [shape: bf16[4,32,16], index: 1, kind: input, shape index: {}]   ;;  %s3799_s2 = inlined_call_operand.vmem [shape: f32[271,1], index: 2, kind: input, shape index: {}]   ;;  %s3800_s3 = inlined_call_operand.vmem [shape: bf16[2,271,16], index: 3, kind: output, shape index: {}]  }
   0x1 LB: > { %s2308_s13 = sadd.s32 4294967295, %s2714_s12   ;;  %p2312_p0 = scmp.ge.s32.totalorder %s2714_s12, 1  ;;  %s2714_s12 = sphi %s2737_s12, %s13_s12  }
   0x2   : > { %p137_p1 = scmp.lt.s32.totalorder %s2714_s12, 3 }
   0x4   : > { %p138_p2 = pnand %p2312_p0, %p137_p1 }
   0x6   : > { %141 = sbr.rel (%p138_p2) target bundleno = 522 (0x20a), region = 32 }
   0xb   : > { %v2651_v0 = vld [vmem:[%s3798_s1 + $0x8] sm:$0xff]  ;;  %v2691_v1 = vld [vmem:[%s3798_s1 + $0x38] sm:$0xff]  ;;  %p161_p3 = scmp.lt.s32.totalorder %s2308_s13, 1  ;;  %v2650_v4 = vld [vmem:[%s3798_s1] sm:$0xff]  ;;  %v2716_v9 = vmov 0   ;;  %vm448_vm0 = vcmask 261120  }
   0xc   : > { %v2653_v2 = vld [vmem:[%s3798_s1 + $0x18] sm:$0xff]  ;;  %v2672_v3 = vld [vmem:[%s3798_s1 + $0x28] sm:$0xff]  ;;  %646 = vmatpush.bf16.msra.mxu1 %v2651_v0  ;;  %1417 = vmatpush.bf16.msra.mxu3 %v2691_v1  ;;  %v2690_v5 = vld [vmem:[%s3798_s1 + $0x30] sm:$0xff]  ;;  %vm1312_vm1 = vcmask 1046528   ;;  %vm300_vm2 = vsmask.f32 7424 }
   0xd   : > { %s3845_s13 = smov (!%p161_p3, %s2308_s13), 1  ;;  %v1539_v6 = vld [vmem:[%s3799_s2] sm:$0xff]  ;;  %506 = vmatpush.bf16.msra.mxu0 %v2653_v2  ;;  %1062 = vmatpush.bf16.msra.mxu2 %v2672_v3  ;;  %v2652_v7 = vld [vmem:[%s3798_s1 + $0x10] sm:$0xff]  ;;  %v1540_v32 = vld [vmem:[%s3799_s2 + $0x8] sm:$0xff]  ;;  %vm1777_vm3 = vcmask 130048   ;;  %vm1843_vm4 = vcmask 129024  }
   0xe   : > { %v2671_v8 = vld [vmem:[%s3798_s1 + $0x20] sm:$0xff]  ;;  %s2692_s5 = smul.u32 148, %s3845_s13  ;;  %2703 = vset.pattern.permute.xlu0 %v2716_v9  ;;  %2704 = vset.pattern.permute.xlu1 %v2716_v9  ;;  %v1541_v38 = vld [vmem:[%s3799_s2 + $0x10] sm:$0xff]  ;;  %v1542_v51 = vld [vmem:[%s3799_s2 + $0x18] sm:$0xff] }
   0xf   : > { %1575 = vperm.xlu0 %2703, %v1539_v6   ;;  %2705 = vset.pattern.permute.xlu2 %v2716_v9  ;;  %v1545_v6 = vld [vmem:[%s3799_s2 + $0x30] sm:$0xff] }
  0x10   : > { %647 = vmatpush.bf16.msra.mxu1 %v2650_v4  ;;  %1418 = vmatpush.bf16.msra.mxu3 %v2690_v5  ;;  %s2778_s8 = scalar_lea.vmem %s3797_s0, %s2692_s5 }
  0x11   : > { %v2633_v10 = vld [vmem:[%s2778_s8] sm:$0xff]  ;;  %v2540_v11 = vld [vmem:[%s2778_s8 + $0x8] sm:$0xe]  ;;  %v2673_v12 = vld [vmem:[%s2778_s8 + $0x8] sm:$0xf0]  ;;  %507 = vmatpush.bf16.msra.mxu0 %v2652_v7  ;;  %1063 = vmatpush.bf16.msra.mxu2 %v2671_v8 }
  0x12   : > { %v2674_v13 = vld [vmem:[%s2778_s8 + $0x10] sm:$0xff]  ;;  %v2541_v14 = vor.u32 %v2673_v12, %v2540_v11  ;;  %v2634_v15 = vld [vmem:[%s2778_s8 + $0x8] sm:$0xff]  ;;  %v304_v17 = vshll.u32 %v2633_v10, 16  ;;  %v302_v18 = vshrl.u32 %v2633_v10, 16  ;;  %v2675_v37 = vld [vmem:[%s2778_s8 + $0x18] sm:$0xff]  ;;  %1585 = vperm.xlu1 %2704, %v1541_v38  }
  0x13   : > { %v2654_v16 = vld [vmem:[%s2778_s8 + $0x8] sm:$0xff]  ;;  %2420 = vmatmul.msk.bf16.vlgmr.msra.gmra.mxu1 %vm448_vm0, %v2633_v10  ;;  %v2655_v19 = vld [vmem:[%s2778_s8 + $0x10] sm:$0xff]  ;;  %v1314_v21 = vrot.slane %v2674_v13, 1  ;;  %v309_v22 = vshll.u32 %v2634_v15, 16  ;;  %v2656_v39 = vld [vmem:[%s2778_s8 + $0x18] sm:$0xff]  ;;  %v313_v40 = vshrl.u32 %v2634_v15, 16 }
  0x14   : > { %v1313_v20 = vrot.slane %v2541_v14, 1  ;;  %v306_v23 = vrot.slane %v304_v17, 1  ;;  %v859_v24 = vshrl.u32 %v2654_v16, 16  ;;  %v861_v25 = vshll.u32 %v2654_v16, 16  ;;  %v2635_v36 = vld [vmem:[%s2778_s8 + $0x10] sm:$0xff]  ;;  %v2636_v53 = vld [vmem:[%s2778_s8 + $0x18] sm:$0xff] }
  0x15   : > { %v866_v26 = vshll.u32 %v2655_v19, 16  ;;  %v311_v28 = vrot.slane %v309_v22, 1  ;;  %v317_v41 = vshll.u32 %v2635_v36, 16  ;;  %v1316_v42 = vrot.slane %v2675_v37, 1  ;;  %v2676_v54 = vld [vmem:[%s2778_s8 + $0x20] sm:$0xff]  ;;  %v2677_v5 = vld [vmem:[%s2778_s8 + $0x28] sm:$0xff] }
  0x16   : > { %v1315_v27 = vsel %vm1312_vm1, %v1313_v20, %v1314_v21  ;;  %v307_v29 = vor.u32 %v306_v23, %v302_v18  ;;  %v863_v30 = vrot.slane %v861_v25, 1  ;;  %v870_v43 = vshrl.u32 %v2655_v19, 16  ;;  %v2657_v55 = vld [vmem:[%s2778_s8 + $0x20] sm:$0xff]  ;;  %v2658_v7 = vld [vmem:[%s2778_s8 + $0x28] sm:$0xff]  ;;  %v1546_v20 = vld [vmem:[%s3799_s2 + $0x38] sm:$0xff] }
  0x17   : > { %2614 = vmatmul.msk.bf16.vlgmr.msra.gmra.mxu3 %vm448_vm0, %v1315_v27  ;;  %v868_v31 = vrot.slane %v866_v26, 1  ;;  %1580 = vperm.xlu0 %2703, %v1540_v32   ;;  %v874_v44 = vshll.u32 %v2656_v39, 16  ;;  %v315_v45 = vor.u32 %v313_v40, %v311_v28  ;;  %v319_v46 = vrot.slane %v317_v41, 1  ;;  %v2637_v4 = vld [vmem:[%s2778_s8 + $0x20] sm:$0xff]  ;;  %v2638_v22 = vld [vmem:[%s2778_s8 + $0x28] sm:$0xff]  ;;  %v2678_v23 = vld [vmem:[%s2778_s8 + $0x30] sm:$0xff] }
  0x18   : > { %v312_v33 = vsel %vm300_vm2, %v307_v29, %v311_v28  ;;  %v864_v34 = vor.u32 %v863_v30, %v859_v24  ;;  %v1317_v47 = vsel %vm1312_vm1, %v1314_v21, %v1316_v42  ;;  %v321_v56 = vshrl.u32 %v2635_v36, 16  ;;  %v1543_v19 = vld [vmem:[%s3799_s2 + $0x20] sm:$0xff]  ;;  %v2659_v24 = vld [vmem:[%s2778_s8 + $0x30] sm:$0xff]  ;;  %v1544_v25 = vld [vmem:[%s3799_s2 + $0x28] sm:$0xff] }
  0x19   : > { %2395 = vmatmul.msk.bf16.vlgmr.msra.gmra.mxu0 %vm448_vm0, %v312_v33  ;;  %v872_v48 = vor.u32 %v870_v43, %v868_v31  ;;  %v876_v49 = vrot.slane %v874_v44, 1  ;;  %v320_v50 = vsel %vm300_vm2, %v315_v45, %v319_v46  ;;  %v325_v57 = vshll.u32 %v2636_v53, 16  ;;  %1595 = vperm.xlu2 %2705, %v1543_v19   ;;  %v1548_v37 = vld [vmem:[%s3799_s2 + $0x48] sm:$0xff]  ;;  %v2679_v40 = vld [vmem:[%s2778_s8 + $0x38] sm:$0xff]  ;;  %v1549_v41 = vld [vmem:[%s3799_s2 + $0x50] sm:$0xff] }
  0x1a   : > { %v869_v35 = vsel %vm300_vm2, %v864_v34, %v868_v31  ;;  %1590 = vperm.xlu1 %2704, %v1542_v51   ;;  %v1318_v58 = vrot.slane %v2676_v54, 1  ;;  %v878_v59 = vshrl.u32 %v2656_v39, 16  ;;  %v882_v60 = vshll.u32 %v2657_v55, 16  ;;  %v2639_v39 = vld [vmem:[%s2778_s8 + $0x30] sm:$0xff]  ;;  %v1547_v54 = vld [vmem:[%s3799_s2 + $0x40] sm:$0xff] }
  0x1b   : > { %2517 = vmatmul.msk.bf16.vlgmr.msra.gmra.mxu2 %vm448_vm0, %v869_v35  ;;  %v877_v52 = vsel %vm300_vm2, %v872_v48, %v876_v49  ;;  %v323_v61 = vor.u32 %v321_v56, %v319_v46  ;;  %v327_v62 = vrot.slane %v325_v57, 1  ;;  %v329_v8 = vshrl.u32 %v2636_v53, 16  ;;  %v2640_v56 = vld [vmem:[%s2778_s8 + $0x38] sm:$0xff]  ;;  %v2680_v57 = vld [vmem:[%s2778_s8 + $0x40] sm:$0xff] }
  0x1c   : > { %v1319_v63 = vsel %vm1312_vm1, %v1316_v42, %v1318_v58  ;;  %v880_v0 = vor.u32 %v878_v59, %v876_v49  ;;  %v884_v1 = vrot.slane %v882_v60, 1  ;;  %v333_v9 = vshll.u32 %v2637_v4, 16  ;;  %v2660_v42 = vld [vmem:[%s2778_s8 + $0x38] sm:$0xff]  ;;  %v2661_v59 = vld [vmem:[%s2778_s8 + $0x40] sm:$0xff] }
  0x1d   : > { %v328_v2 = vsel %vm300_vm2, %v323_v61, %v327_v62  ;;  %v1320_v10 = vrot.slane %v2677_v5, 1  ;;  %v886_v11 = vshrl.u32 %v2657_v55, 16  ;;  %v890_v12 = vshll.u32 %v2658_v7, 16 }
  0x1e   : > { %v885_v3 = vsel %vm300_vm2, %v880_v0, %v884_v1  ;;  %v331_v13 = vor.u32 %v329_v8, %v327_v62  ;;  %v335_v14 = vrot.slane %v333_v9, 1  ;;  %v337_v26 = vshrl.u32 %v2637_v4, 16  ;;  %v2641_v9 = vld [vmem:[%s2778_s8 + $0x40] sm:$0xff] }
  0x1f   : > { %1605 = vperm.xlu0 %2703, %v1545_v6   ;;  %v888_v16 = vor.u32 %v886_v11, %v884_v1  ;;  %v892_v17 = vrot.slane %v890_v12, 1  ;;  %v341_v27 = vshll.u32 %v2638_v22, 16  ;;  %v1322_v28 = vrot.slane %v2678_v23, 1  ;;  %v2662_v11 = vld [vmem:[%s2778_s8 + $0x48] sm:$0xff] }
  0x20   : > { %v336_v18 = vsel %vm300_vm2, %v331_v13, %v335_v14  ;;  %v894_v29 = vshrl.u32 %v2658_v7, 16  ;;  %v898_v30 = vshll.u32 %v2659_v24, 16  ;;  %v339_v31 = vor.u32 %v337_v26, %v335_v14  ;;  %v1552_v7 = vld [vmem:[%s3799_s2 + $0x68] sm:$0xff] }
  0x21   : > { %v893_v21 = vsel %vm300_vm2, %v888_v16, %v892_v17  ;;  %1600 = vperm.xlu2 %2705, %v1544_v25   ;;  %v343_v32 = vrot.slane %v341_v27, 1  ;;  %v1323_v33 = vsel %vm1312_vm1, %v1320_v10, %v1322_v28  ;;  %v345_v43 = vshrl.u32 %v2638_v22, 16  ;;  %v2642_v26 = vld [vmem:[%s2778_s8 + $0x48] sm:$0xff]  ;;  %v2682_v27 = vld [vmem:[%s2778_s8 + $0x50] sm:$0xff] }
  0x22   : > { %1610 = vperm.xlu1 %2704, %v1546_v20   ;;  %v896_v34 = vor.u32 %v894_v29, %v892_v17  ;;  %v900_v35 = vrot.slane %v898_v30, 1  ;;  %v349_v44 = vshll.u32 %v2639_v39, 16  ;;  %v1324_v45 = vrot.slane %v2679_v40, 1 }
  0x23   : > { %2421 = vmatmul.msk.bf16.gmra.mxu1 %vm448_vm0, %v2634_v15  ;;  %v1321_v15 = vsel %vm1312_vm1, %v1318_v58, %v1320_v10  ;;  %v902_v46 = vshrl.u32 %v2659_v24, 16  ;;  %v347_v48 = vor.u32 %v345_v43, %v343_v32  ;;  %v1551_v58 = vld [vmem:[%s3799_s2 + $0x60] sm:$0xff]  ;;  %v353_v60 = vshrl.u32 %v2639_v39, 16  ;;  %v2681_v10 = vld [vmem:[%s2778_s8 + $0x48] sm:$0xff]  ;;  %v1554_v24 = vld [vmem:[%s3799_s2 + $0x78] sm:$0xff] }
  0x24   : > { %v901_v38 = vsel %vm300_vm2, %v896_v34, %v900_v35  ;;  %v351_v49 = vrot.slane %v349_v44, 1  ;;  %v357_v61 = vshll.u32 %v2640_v56, 16  ;;  %v1326_v62 = vrot.slane %v2680_v57, 1 }
  0x25   : > { %v904_v51 = vor.u32 %v902_v46, %v900_v35  ;;  %v914_v0 = vshll.u32 %v2661_v59, 16  ;;  %v361_v12 = vshrl.u32 %v2640_v56, 16  ;;  %v365_v13 = vshll.u32 %v2641_v9, 16  ;;  %v1557_v46 = vld [vmem:[%s3799_s2 + $0x90] sm:$0xff] }
  0x26   : > { %v355_v1 = vor.u32 %v353_v60, %v351_v49  ;;  %v1328_v14 = vrot.slane %v2681_v10, 1  ;;  %v918_v16 = vshrl.u32 %v2661_v59, 16  ;;  %v922_v17 = vshll.u32 %v2662_v11, 16  ;;  %v1560_v60 = vld [vmem:[%s3799_s2 + $0xa8] sm:$0xff] }
  0x27   : > { %2615 = vmatmul.msk.bf16.gmra.mxu3 %vm448_vm0, %v1317_v47  ;;  %1620 = vperm.xlu0 %2703, %v1548_v37   ;;  %v906_v47 = vshll.u32 %v2660_v42, 16  ;;  %v916_v5 = vrot.slane %v914_v0, 1  ;;  %v367_v19 = vrot.slane %v365_v13, 1  ;;  %v369_v29 = vshrl.u32 %v2641_v9, 16  ;;  %v1563_v13 = vld [vmem:[%s3799_s2 + $0xc0] sm:$0xff] }
  0x28   : > { %v1329_v20 = vsel %vm1312_vm1, %v1326_v62, %v1328_v14  ;;  %v373_v30 = vshll.u32 %v2642_v26, 16  ;;  %v926_v34 = vshrl.u32 %v2662_v11, 16 }
  0x29   : > { %2396 = vmatmul.msk.bf16.gmra.mxu0 %vm448_vm0, %v320_v50  ;;  %v1325_v50 = vsel %vm1312_vm1, %v1322_v28, %v1324_v45  ;;  %1615 = vperm.xlu2 %2705, %v1547_v54   ;;  %v2663_v28 = vld [vmem:[%s2778_s8 + $0x50] sm:$0xff]  ;;  %v377_v54 = vshrl.u32 %v2642_v26, 16 }
  0x2a   : > { %1625 = vperm.xlu1 %2704, %v1549_v41   ;;  %v930_v35 = vshll.u32 %v2663_v28, 16  ;;  %v375_v37 = vrot.slane %v373_v30, 1  ;;  %v1566_v30 = vld [vmem:[%s3799_s2 + $0xd8] sm:$0xff] }
  0x2b   : > { %2518 = vmatmul.msk.bf16.gmra.mxu2 %vm448_vm0, %v877_v52  ;;  %v908_v52 = vrot.slane %v906_v47, 1 }
  0x2c   : > { %v932_v40 = vrot.slane %v930_v35, 1 }
  0x2d   : > { %v909_v55 = vsel %vm300_vm2, %v904_v51, %v908_v52  ;;  %v2932_v51 = vld [vmem:[%s2778_s8 + $0x58] sm:$0xff] }
  0x2f   : > { %1635 = vperm.xlu0 %2703, %v1551_v58  }
  0x32   : > { %1640 = vperm.xlu1 %2704, %v1552_v7  }
  0x33   : > { %2422 = vmatmul.msk.bf16.gmra.mxu1 %vm448_vm0, %v2635_v36  ;;  %v344_v36 = vsel %vm300_vm2, %v339_v31, %v343_v32  ;;  %v1330_v32 = vrot.slane %v2682_v27, 1 }
  0x37   : > { %2616 = vmatmul.msk.bf16.gmra.mxu3 %vm448_vm0, %v1319_v63  ;;  %v910_v63 = vshrl.u32 %v2660_v42, 16  ;;  %1650 = vperm.xlu0 %2703, %v1554_v24  }
  0x39   : > { %2397 = vmatmul.msk.bf16.gmra.mxu0 %vm448_vm0, %v328_v2  ;;  %v359_v2 = vrot.slane %v357_v61, 1  ;;  %v934_v61 = vshrl.u32 %v2663_v28, 16 }
  0x3b   : > { %2519 = vmatmul.msk.bf16.gmra.mxu2 %vm448_vm0, %v885_v3  ;;  %v1327_v3 = vsel %vm1312_vm1, %v1324_v45, %v1326_v62  ;;  %v360_v6 = vsel %vm300_vm2, %v355_v1, %v359_v2  ;;  %v1553_v45 = vld [vmem:[%s3799_s2 + $0x70] sm:$0xff]  ;;  %v938_v62 = vshll.u32 %v2932_v51, 16  ;;  %v379_v1 = vor.u32 %v377_v54, %v375_v37  ;;  %v2666_v54 = vld [vmem:[%s2778_s8 + $0x68] sm:$0xff] }
  0x3f   : > { %1665 = vperm.xlu0 %2703, %v1557_v46  }
  0x43   : > { %2423 = vmatmul.msk.bf16.gmra.mxu1 %vm448_vm0, %v2636_v53  ;;  %v352_v53 = vsel %vm300_vm2, %v347_v48, %v351_v49  ;;  %v2925_v49 = vld [vmem:[%s2778_s8 + $0x50] sm:$0xff] }
  0x47   : > { %2617 = vmatmul.msk.bf16.gmra.mxu3 %vm448_vm0, %v1321_v15  ;;  %v1550_v15 = vld [vmem:[%s3799_s2 + $0x58] sm:$0xff]  ;;  %1680 = vperm.xlu0 %2703, %v1560_v60  }
  0x48   : > { %1630 = vperm.xlu2 %2705, %v1550_v15  }
  0x49   : > { %2398 = vmatmul.msk.bf16.gmra.mxu0 %vm448_vm0, %v336_v18  ;;  %v363_v18 = vor.u32 %v361_v12, %v359_v2 }
  0x4b   : > { %2520 = vmatmul.msk.bf16.gmra.mxu2 %vm448_vm0, %v893_v21  ;;  %v920_v21 = vor.u32 %v918_v16, %v916_v5  ;;  %v368_v23 = vsel %vm300_vm2, %v363_v18, %v367_v19  ;;  %v2961_v18 = vld [vmem:[%s2778_s8 + $0x60] sm:$0xff] }
  0x4c   : > { %v1334_v28 = vrot.slane %v2961_v18, 1 }
  0x4f   : > { %1695 = vperm.xlu0 %2703, %v1563_v13  }
  0x50   : > { %1645 = vperm.xlu2 %2705, %v1553_v45  }
  0x53   : > { %2424 = vmatmul.msk.bf16.gmra.mxu1 %vm448_vm0, %v2637_v4  ;;  %v912_v4 = vor.u32 %v910_v63, %v908_v52 }
  0x55   : > { %v917_v8 = vsel %vm300_vm2, %v912_v4, %v916_v5  ;;  %v1558_v4 = vld [vmem:[%s3799_s2 + $0x98] sm:$0xff]  ;;  %v936_v5 = vor.u32 %v934_v61, %v932_v40 }
  0x57   : > { %2618 = vmatmul.msk.bf16.gmra.mxu3 %vm448_vm0, %v1323_v33  ;;  %v1555_v33 = vld [vmem:[%s3799_s2 + $0x80] sm:$0xff]  ;;  %1710 = vperm.xlu0 %2703, %v1566_v30  }
  0x58   : > { %1655 = vperm.xlu1 %2704, %v1555_v33  }
  0x59   : > { %2399 = vmatmul.msk.bf16.gmra.mxu0 %vm448_vm0, %v344_v36  ;;  %v371_v36 = vor.u32 %v369_v29, %v367_v19  ;;  %v1561_v19 = vld [vmem:[%s3799_s2 + $0xb0] sm:$0xff]  ;;  %v1556_v29 = vld [vmem:[%s3799_s2 + $0x88] sm:$0xff] }
  0x5a   : > { %1660 = vperm.xlu2 %2705, %v1556_v29  }
  0x5b   : > { %2521 = vmatmul.msk.bf16.gmra.mxu2 %vm448_vm0, %v901_v38  ;;  %v1331_v38 = vsel %vm1312_vm1, %v1328_v14, %v1330_v32  ;;  %v376_v42 = vsel %vm300_vm2, %v371_v36, %v375_v37 }
  0x60   : > { %1670 = vperm.xlu1 %2704, %v1558_v4  }
  0x63   : > { %2425 = vmatmul.msk.bf16.gmra.mxu1 %vm448_vm0, %v2638_v22  ;;  %v924_v22 = vrot.slane %v922_v17, 1  ;;  %v2957_v17 = vld [vmem:[%s2778_s8 + $0x58] sm:$0xff] }
  0x64   : > { %v389_v24 = vshll.u32 %v2957_v17, 16 }
  0x65   : > { %v925_v25 = vsel %vm300_vm2, %v920_v21, %v924_v22 }
  0x66   : > { %v391_v36 = vrot.slane %v389_v24, 1  ;;  %v2686_v24 = vld [vmem:[%s2778_s8 + $0x70] sm:$0xff] }
  0x67   : > { %2619 = vmatmul.msk.bf16.gmra.mxu3 %vm448_vm0, %v1325_v50  ;;  %v2929_v50 = vld [vmem:[%s2778_s8 + $0x58] sm:$0xff] }
  0x68   : > { %v1332_v59 = vrot.slane %v2929_v50, 1  ;;  %1685 = vperm.xlu1 %2704, %v1561_v19  }
  0x69   : > { %2400 = vmatmul.msk.bf16.gmra.mxu0 %vm448_vm0, %v352_v53 }
  0x6a   : > { %v1335_v37 = vsel %vm1312_vm1, %v1332_v59, %v1334_v28 }
  0x6b   : > { %2522 = vmatmul.msk.bf16.gmra.mxu2 %vm448_vm0, %v909_v55  ;;  %v381_v55 = vshll.u32 %v2925_v49, 16 }
  0x6d   : > { %v383_v2 = vrot.slane %v381_v55, 1  ;;  %v1559_v55 = vld [vmem:[%s3799_s2 + $0xa0] sm:$0xff] }
  0x6e   : > { %1675 = vperm.xlu2 %2705, %v1559_v55  }
  0x73   : > { %2426 = vmatmul.msk.bf16.gmra.mxu1 %vm448_vm0, %v2639_v39  ;;  %v928_v39 = vor.u32 %v926_v34, %v924_v22 }
  0x75   : > { %v933_v47 = vsel %vm300_vm2, %v928_v39, %v932_v40 }
  0x77   : > { %2620 = vmatmul.msk.bf16.gmra.mxu3 %vm448_vm0, %v1327_v3  ;;  %v1333_v3 = vsel %vm1312_vm1, %v1330_v32, %v1332_v59 }
  0x79   : > { %2401 = vmatmul.msk.bf16.gmra.mxu0 %vm448_vm0, %v360_v6  ;;  %v940_v6 = vrot.slane %v938_v62, 1 }
  0x7b   : > { %2523 = vmatmul.msk.bf16.gmra.mxu2 %vm448_vm0, %v917_v8  ;;  %v941_v14 = vsel %vm300_vm2, %v936_v5, %v940_v6 }
  0x83   : > { %2427 = vmatmul.msk.bf16.gmra.mxu1 %vm448_vm0, %v2640_v56 }
  0x87   : > { %2621 = vmatmul.msk.bf16.gmra.mxu3 %vm448_vm0, %v1329_v20  ;;  %v2967_v20 = vld [vmem:[%s2778_s8 + $0x60] sm:$0xff] }
  0x88   : > { %v946_v32 = vshll.u32 %v2967_v20, 16 }
  0x89   : > { %2402 = vmatmul.msk.bf16.gmra.mxu0 %vm448_vm0, %v368_v23  ;;  %v385_v23 = vshrl.u32 %v2925_v49, 16 }
  0x8a   : > { %v948_v40 = vrot.slane %v946_v32, 1 }
  0x8b   : > { %2524 = vmatmul.msk.bf16.gmra.mxu2 %vm448_vm0, %v925_v25  ;;  %v387_v35 = vor.u32 %v385_v23, %v383_v2  ;;  %v2646_v23 = vld [vmem:[%s2778_s8 + $0x68] sm:$0xff] }
  0x8c   : > { %v405_v30 = vshll.u32 %v2646_v23, 16 }
  0x90   : > { %v649_v31 = vpop.f32.mrf.mxu1 }
  0x93   : > { %2428 = vmatmul.msk.bf16.gmra.mxu1 %vm448_vm0, %v2641_v9  ;;  %v384_v9 = vsel %vm300_vm2, %v379_v1, %v383_v2  ;;  %v1572_v1 = vld [vmem:[%s3799_s2 + $0x108] sm:$0x7f]  ;;  %v950_v2 = vshrl.u32 %v2967_v20, 16 }
  0x96   : > { %v509_v41 = vpop.f32.mrf.mxu0 }
  0x97   : > { %2622 = vmatmul.msk.bf16.gmra.mxu3 %vm448_vm0, %v1331_v38  ;;  %v650_v43 = vadd.f32 %v649_v31, %v509_v41  ;;  %v942_v31 = vshrl.u32 %v2932_v51, 16  ;;  %v1564_v38 = vld [vmem:[%s3799_s2 + $0xc8] sm:$0xff]  ;;  %v2998_v51 = vld [vmem:[%s2778_s8 + $0x60] sm:$0xff] }
  0x98   : > { %v651_v44 = vpop.f32.mrf.mxu1  ;;  %1700 = vperm.xlu1 %2704, %v1564_v38   ;;  %v397_v59 = vshll.u32 %v2998_v51, 16  ;;  %v401_v29 = vshrl.u32 %v2998_v51, 16 }
  0x99   : > { %2403 = vmatmul.msk.bf16.gmra.mxu0 %vm448_vm0, %v376_v42  ;;  %v944_v39 = vor.u32 %v942_v31, %v940_v6 }
  0x9a   : > { %v1420_v48 = vpop.f32.mrf.mxu3 }
  0x9b   : > { %2525 = vmatmul.msk.bf16.gmra.mxu2 %vm448_vm0, %v933_v47  ;;  %v1569_v47 = vld [vmem:[%s3799_s2 + $0xf0] sm:$0xff] }
  0x9c   : > { %1725 = vperm.xlu0 %2703, %v1569_v47  }
  0x9e   : > { %v1065_v52 = vpop.f32.mrf.mxu2  ;;  %v511_v53 = vpop.f32.mrf.mxu0 }
  0x9f   : > { %v1150_v56 = vadd.f32 %v1065_v52, %v650_v43  ;;  %v652_v57 = vadd.f32 %v651_v44, %v511_v53  ;;  %v392_v43 = vsel %vm300_vm2, %v387_v35, %v391_v36  ;;  %v3002_v52 = vld [vmem:[%s2778_s8 + $0x68] sm:$0xff]  ;;  %v1567_v53 = vld [vmem:[%s3799_s2 + $0xe0] sm:$0xff]  ;;  %v1338_v35 = vrot.slane %v2686_v24, 1 }
  0xa0   : > { %v654_v58 = vpop.f32.mrf.mxu1  ;;  %1715 = vperm.xlu1 %2704, %v1567_v53  }
  0xa1   : > { %v2940_v63 = vadd.f32 %v1420_v48, %v1150_v56  ;;  %v949_v48 = vsel %vm300_vm2, %v944_v39, %v948_v40 }
  0xa2   : > { %v1422_v0 = vpop.f32.mrf.mxu3 }
  0xa3   : > { %3814 = vst [vmem:[#allocation2_spill] sm:$0xff] %v2940_v63  ;;  %2429 = vmatmul.msk.bf16.gmra.mxu1 %vm448_vm0, %v2642_v26 }
  0xa4   : > { %1740 = vperm.xlu0 %2703, %v1572_v1  }
  0xa6   : > { %v1067_v7 = vpop.f32.mrf.mxu2  ;;  %v514_v8 = vpop.f32.mrf.mxu0 }
  0xa7   : > { %2623 = vmatmul.msk.bf16.gmra.mxu3 %vm448_vm0, %v1333_v3  ;;  %v1151_v10 = vadd.f32 %v1067_v7, %v652_v57  ;;  %v655_v11 = vadd.f32 %v654_v58, %v514_v8  ;;  %v393_v58 = vshrl.u32 %v2957_v17, 16  ;;  %v954_v3 = vshll.u32 %v2666_v54, 16 }
  0xa8   : > { %v656_v12 = vpop.f32.mrf.mxu1  ;;  %v399_v7 = vrot.slane %v397_v59, 1  ;;  %v1571_v59 = vld [vmem:[%s3799_s2 + $0x100] sm:$0xff] }
  0xa9   : > { %v2953_v15 = vadd.f32 %v1422_v0, %v1151_v10  ;;  %2404 = vmatmul.msk.bf16.gmra.mxu0 %vm448_vm0, %v384_v9  ;;  %v1336_v0 = vrot.slane %v3002_v52, 1  ;;  %v395_v6 = vor.u32 %v393_v58, %v391_v36  ;;  %v1570_v9 = vld [vmem:[%s3799_s2 + $0xf8] sm:$0xff]  ;;  %v952_v10 = vor.u32 %v950_v2, %v948_v40 }
  0xaa   : > { %v1425_v16 = vpop.f32.mrf.mxu3  ;;  %1730 = vperm.xlu1 %2704, %v1570_v9   ;;  %v958_v36 = vshrl.u32 %v2666_v54, 16  ;;  %v403_v40 = vor.u32 %v401_v29, %v399_v7  ;;  %v2668_v58 = vld [vmem:[%s2778_s8 + $0x78] sm:$0xff] }
  0xab   : > { %3815 = vst [vmem:[#allocation3_spill] sm:$0xff] %v2953_v15  ;;  %2526 = vmatmul.msk.bf16.gmra.mxu2 %vm448_vm0, %v941_v14  ;;  %v1337_v8 = vsel %vm1312_vm1, %v1334_v28, %v1336_v0 }
  0xae   : > { %v1070_v21 = vpop.f32.mrf.mxu2  ;;  %v516_v22 = vpop.f32.mrf.mxu0 }
  0xaf   : > { %v1152_v25 = vadd.f32 %v1070_v21, %v655_v11  ;;  %v657_v26 = vadd.f32 %v656_v12, %v516_v22  ;;  %v956_v11 = vrot.slane %v954_v3, 1  ;;  %v1562_v12 = vld [vmem:[%s3799_s2 + $0xb8] sm:$0xff] }
  0xb0   : > { %v659_v27 = vpop.f32.mrf.mxu1  ;;  %1690 = vperm.xlu2 %2705, %v1562_v12  }
  0xb1   : > { %v2980_v33 = vadd.f32 %v1425_v16, %v1152_v25  ;;  %v400_v16 = vsel %vm300_vm2, %v395_v6, %v399_v7  ;;  %v957_v20 = vsel %vm300_vm2, %v952_v10, %v956_v11  ;;  %v2667_v25 = vld [vmem:[%s2778_s8 + $0x70] sm:$0xff]  ;;  %v970_v7 = vshll.u32 %v2668_v58, 16 }
  0xb2   : > { %v1427_v34 = vpop.f32.mrf.mxu3  ;;  %v966_v6 = vshrl.u32 %v2667_v25, 16 }
  0xb3   : > { %3816 = vst [vmem:[#allocation4_spill] sm:$0xff] %v2980_v33  ;;  %2430 = vmatmul.msk.bf16.gmra.mxu1 %vm448_vm0, %v2925_v49 }
  0xb6   : > { %v1072_v41 = vpop.f32.mrf.mxu2  ;;  %v519_v42 = vpop.f32.mrf.mxu0 }
  0xb7   : > { %2624 = vmatmul.msk.bf16.gmra.mxu3 %vm448_vm0, %v1335_v37  ;;  %v1153_v44 = vadd.f32 %v1072_v41, %v657_v26  ;;  %v660_v45 = vadd.f32 %v659_v27, %v519_v42  ;;  %v1565_v26 = vld [vmem:[%s3799_s2 + $0xd0] sm:$0xff]  ;;  %v962_v37 = vshll.u32 %v2667_v25, 16  ;;  %v407_v41 = vrot.slane %v405_v30, 1 }
  0xb8   : > { %v661_v46 = vpop.f32.mrf.mxu1  ;;  %1705 = vperm.xlu2 %2705, %v1565_v26   ;;  %v1339_v42 = vsel %vm1312_vm1, %v1336_v0, %v1338_v35  ;;  %v2648_v26 = vld [vmem:[%s2778_s8 + $0x78] sm:$0xff] }
  0xb9   : > { %v2994_v49 = vadd.f32 %v1427_v34, %v1153_v44  ;;  %2405 = vmatmul.msk.bf16.gmra.mxu0 %vm448_vm0, %v392_v43  ;;  %v960_v43 = vor.u32 %v958_v36, %v956_v11  ;;  %v964_v44 = vrot.slane %v962_v37, 1 }
  0xba   : > { %v1430_v50 = vpop.f32.mrf.mxu3 }
  0xbb   : > { %3817 = vst [vmem:[#allocation5_spill] sm:$0xff] %v2994_v49  ;;  %2527 = vmatmul.msk.bf16.gmra.mxu2 %vm448_vm0, %v949_v48  ;;  %v408_v48 = vsel %vm300_vm2, %v403_v40, %v407_v41  ;;  %v965_v53 = vsel %vm300_vm2, %v960_v43, %v964_v44 }
  0xbe   : > { %v1075_v56 = vpop.f32.mrf.mxu2  ;;  %v521_v57 = vpop.f32.mrf.mxu0 }
  0xbf   : > { %v1154_v60 = vadd.f32 %v1075_v56, %v660_v45  ;;  %v662_v61 = vadd.f32 %v661_v46, %v521_v57  ;;  %v1568_v45 = vld [vmem:[%s3799_s2 + $0xe8] sm:$0xff]  ;;  %v2647_v56 = vld [vmem:[%s2778_s8 + $0x70] sm:$0xff]  ;;  %v2687_v57 = vld [vmem:[%s2778_s8 + $0x78] sm:$0xff] }
  0xc0   : > { %v664_v62 = vpop.f32.mrf.mxu1  ;;  %1720 = vperm.xlu2 %2705, %v1568_v45   ;;  %v413_v0 = vshll.u32 %v2647_v56, 16 }
  0xc1   : > { %v3018_v4 = vadd.f32 %v1430_v50, %v1154_v60 }
  0xc2   : > { %v1432_v5 = vpop.f32.mrf.mxu3  ;;  %v415_v11 = vrot.slane %v413_v0, 1 }
  0xc3   : > { %3818 = vst [vmem:[#allocation6_spill] sm:$0xff] %v3018_v4  ;;  %2431 = vmatmul.msk.bf16.gmra.mxu1 %vm448_vm0, %v2957_v17 }
  0xc6   : > { %v1077_v13 = vpop.f32.mrf.mxu2  ;;  %v524_v14 = vpop.f32.mrf.mxu0 }
  0xc7   : > { %2625 = vmatmul.msk.bf16.gmra.mxu3 %vm448_vm0, %v1337_v8  ;;  %v1155_v17 = vadd.f32 %v1077_v13, %v662_v61  ;;  %v665_v18 = vadd.f32 %v664_v62, %v524_v14  ;;  %v409_v62 = vshrl.u32 %v2646_v23, 16  ;;  %v968_v13 = vor.u32 %v966_v6, %v964_v44 }
  0xc8   : > { %v666_v19 = vpop.f32.mrf.mxu1  ;;  %1735 = vperm.xlu2 %2705, %v1571_v59   ;;  %v972_v14 = vrot.slane %v970_v7, 1  ;;  %v2649_v59 = vld [vmem:[%s2778_s8 + $0x80] sm:$0xff] }
  0xc9   : > { %v3032_v21 = vadd.f32 %v1432_v5, %v1155_v17  ;;  %2406 = vmatmul.msk.bf16.gmra.mxu0 %vm448_vm0, %v400_v16  ;;  %v1340_v5 = vrot.slane %v2687_v57, 1  ;;  %v411_v10 = vor.u32 %v409_v62, %v407_v41 }
  0xca   : > { %v1435_v22 = vpop.f32.mrf.mxu3 }
  0xcb   : > { %3819 = vst [vmem:[#allocation7_spill] sm:$0xff] %v3032_v21  ;;  %2528 = vmatmul.msk.bf16.gmra.mxu2 %vm448_vm0, %v957_v20  ;;  %v1341_v12 = vsel %vm1312_vm1, %v1338_v35, %v1340_v5 }
  0xce   : > { %v1080_v27 = vpop.f32.mrf.mxu2  ;;  %v526_v28 = vpop.f32.mrf.mxu0 }
  0xcf   : > { %v1156_v31 = vadd.f32 %v1080_v27, %v665_v18  ;;  %v667_v32 = vadd.f32 %v666_v19, %v526_v28  ;;  %v416_v18 = vsel %vm300_vm2, %v411_v10, %v415_v11  ;;  %v2688_v27 = vld [vmem:[%s2778_s8 + $0x80] sm:$0xff] }
  0xd0   : > { %v669_v34 = vpop.f32.mrf.mxu1  ;;  %v2669_v28 = vld [vmem:[%s2778_s8 + $0x80] sm:$0xff]  ;;  %v1342_v37 = vrot.slane %v2688_v27, 1 }
  0xd1   : > { %v3043_v38 = vadd.f32 %v1435_v22, %v1156_v31  ;;  %v417_v31 = vshrl.u32 %v2647_v56, 16  ;;  %v978_v40 = vshll.u32 %v2669_v28, 16 }
  0xd2   : > { %v1437_v39 = vpop.f32.mrf.mxu3  ;;  %v1343_v45 = vsel %vm1312_vm1, %v1340_v5, %v1342_v37 }
  0xd3   : > { %2432 = vmatmul.msk.bf16.gmra.mxu1 %vm448_vm0, %v2998_v51  ;;  %v419_v43 = vor.u32 %v417_v31, %v415_v11 }
  0xd6   : > { %v1082_v46 = vpop.f32.mrf.mxu2  ;;  %v529_v47 = vpop.f32.mrf.mxu0 }
  0xd7   : > { %2626 = vmatmul.msk.bf16.gmra.mxu3 %vm448_vm0, %v1339_v42  ;;  %v1157_v50 = vadd.f32 %v1082_v46, %v667_v32  ;;  %v670_v51 = vadd.f32 %v669_v34, %v529_v47  ;;  %v421_v32 = vshll.u32 %v2648_v26, 16  ;;  %v980_v47 = vrot.slane %v978_v40, 1 }
  0xd8   : > { %v671_v52 = vpop.f32.mrf.mxu1 }
  0xd9   : > { %v3054_v54 = vadd.f32 %v1437_v39, %v1157_v50  ;;  %2407 = vmatmul.msk.bf16.gmra.mxu0 %vm448_vm0, %v408_v48  ;;  %v974_v39 = vshrl.u32 %v2668_v58, 16  ;;  %v423_v44 = vrot.slane %v421_v32, 1 }
  0xda   : > { %v1440_v55 = vpop.f32.mrf.mxu3 }
  0xdb   : > { %2529 = vmatmul.msk.bf16.gmra.mxu2 %vm448_vm0, %v965_v53  ;;  %v976_v46 = vor.u32 %v974_v39, %v972_v14 }
  0xde   : > { %v1085_v60 = vpop.f32.mrf.mxu2  ;;  %v531_v61 = vpop.f32.mrf.mxu0 }
  0xdf   : > { %v1158_v1 = vadd.f32 %v1085_v60, %v670_v51  ;;  %v672_v2 = vadd.f32 %v671_v52, %v531_v61  ;;  %v424_v51 = vsel %vm300_vm2, %v419_v43, %v423_v44  ;;  %v2689_v60 = vld [vmem:[%s2778_s8 + $0x88] sm:$0xff] }
  0xe0   : > { %v674_v3 = vpop.f32.mrf.mxu1  ;;  %v2670_v61 = vld [vmem:[%s2778_s8 + $0x88] sm:$0xff]  ;;  %v1344_v7 = vrot.slane %v2689_v60, 1 }
  0xe1   : > { %v3064_v8 = vadd.f32 %v1440_v55, %v1158_v1  ;;  %v425_v1 = vshrl.u32 %v2648_v26, 16  ;;  %v986_v10 = vshll.u32 %v2670_v61, 16 }
  0xe2   : > { %v1442_v9 = vpop.f32.mrf.mxu3 }
  0xe3   : > { %2433 = vmatmul.msk.bf16.gmra.mxu1 %vm448_vm0, %v2646_v23  ;;  %v973_v23 = vsel %vm300_vm2, %v968_v13, %v972_v14  ;;  %v427_v13 = vor.u32 %v425_v1, %v423_v44  ;;  %v433_v44 = vshrl.u32 %v2649_v59, 16 }
  0xe6   : > { %v1087_v16 = vpop.f32.mrf.mxu2  ;;  %v534_v17 = vpop.f32.mrf.mxu0 }
  0xe7   : > { %2627 = vmatmul.msk.bf16.gmra.mxu3 %vm448_vm0, %v1341_v12  ;;  %v1159_v19 = vadd.f32 %v1087_v16, %v672_v2  ;;  %v675_v20 = vadd.f32 %v674_v3, %v534_v17  ;;  %v429_v2 = vshll.u32 %v2649_v59, 16  ;;  %v1345_v16 = vsel %vm1312_vm1, %v1342_v37, %v1344_v7 }
  0xe8   : > { %v676_v22 = vpop.f32.mrf.mxu1 }
  0xe9   : > { %v3071_v24 = vadd.f32 %v1442_v9, %v1159_v19  ;;  %2408 = vmatmul.msk.bf16.gmra.mxu0 %vm448_vm0, %v416_v18  ;;  %v982_v9 = vshrl.u32 %v2669_v28, 16  ;;  %v431_v14 = vrot.slane %v429_v2, 1  ;;  %v988_v18 = vrot.slane %v986_v10, 1  ;;  %v1218_v19 = vld [vmem:[%s2778_s8 + $0x90] sm:$0x1]  ;;  %s2693_s8 = smul.u32 136, %s3845_s13 }
  0xea   : > { %v1445_v25 = vpop.f32.mrf.mxu3 }
  0xeb   : > { %2530 = vmatmul.msk.bf16.gmra.mxu2 %vm448_vm0, %v973_v23  ;;  %v984_v17 = vor.u32 %v982_v9, %v980_v47  ;;  %v432_v23 = vsel %vm300_vm2, %v427_v13, %v431_v14  ;;  %s3597_s30 = scalar_lea.vmem %s3800_s3, %s2693_s8 }
  0xee   : > { %v1090_v29 = vpop.f32.mrf.mxu2  ;;  %v536_v30 = vpop.f32.mrf.mxu0 }
  0xef   : > { %v1160_v34 = vadd.f32 %v1090_v29, %v675_v20  ;;  %v677_v35 = vadd.f32 %v676_v22, %v536_v30  ;;  %v1293_v29 = vunpack.c.l.b16 %v1218_v19  ;;  %v989_v30 = vsel %vm300_vm2, %v984_v17, %v988_v18 }
  0xf0   : > { %v679_v36 = vpop.f32.mrf.mxu1 }
  0xf1   : > { %v3078_v41 = vadd.f32 %v1445_v25, %v1160_v34  ;;  %v1311_v32 = vpack.c.b16 %v1293_v29, %v1293_v29 }
  0xf2   : > { %v1447_v42 = vpop.f32.mrf.mxu3 }
  0xf3   : > { %3820 = vst [vmem:[#allocation8_spill] sm:$0xff] %v3078_v41  ;;  %2434 = vmatmul.msk.bf16.gmra.mxu1 %vm448_vm0, %v2647_v56  ;;  %v981_v56 = vsel %vm300_vm2, %v976_v46, %v980_v47  ;;  %v1346_v40 = vrot.slane %v1311_v32, 1  ;;  %v990_v46 = vshrl.u32 %v2670_v61, 16  ;;  %v435_v47 = vor.u32 %v433_v44, %v431_v14 }
  0xf6   : > { %v1092_v48 = vpop.f32.mrf.mxu2  ;;  %v539_v50 = vpop.f32.mrf.mxu0 }
  0xf7   : > { %2628 = vmatmul.msk.bf16.gmra.mxu3 %vm448_vm0, %v1343_v45  ;;  %v1161_v52 = vadd.f32 %v1092_v48, %v677_v35  ;;  %v680_v53 = vadd.f32 %v679_v36, %v539_v50  ;;  %v1347_v45 = vsel %vm1312_vm1, %v1344_v7, %v1346_v40  ;;  %v1576_v40 = vpop.permute.xlu0 %1575 }
  0xf8   : > { %v681_v55 = vpop.f32.mrf.mxu1 }
  0xf9   : > { %v3085_v57 = vadd.f32 %v1447_v42, %v1161_v52  ;;  %2409 = vmatmul.msk.bf16.gmra.mxu0 %vm448_vm0, %v424_v51 }
  0xfa   : > { %v1450_v58 = vpop.f32.mrf.mxu3 }
  0xfb   : > { %3821 = vst [vmem:[#allocation9_spill] sm:$0xff] %v3085_v57  ;;  %2531 = vmatmul.msk.bf16.gmra.mxu2 %vm448_vm0, %v981_v56 }
  0xfe   : > { %v1095_v62 = vpop.f32.mrf.mxu2  ;;  %v541_v0 = vpop.f32.mrf.mxu0 }
  0xff   : > { %v1162_v3 = vadd.f32 %v1095_v62, %v680_v53  ;;  %v682_v5 = vadd.f32 %v681_v55, %v541_v0  ;;  %v992_v53 = vor.u32 %v990_v46, %v988_v18 }
 0x100   : > { %v684_v6 = vpop.f32.mrf.mxu1 }
 0x101   : > { %v3092_v11 = vadd.f32 %v1450_v58, %v1162_v3 }
 0x102   : > { %v1452_v12 = vpop.f32.mrf.mxu3 }
 0x103   : > { %3822 = vst [vmem:[#allocation10_spill] sm:$0xff] %v3092_v11  ;;  %2435 = vmatmul.msk.bf16.gmra.mxu1 %vm448_vm0, %v2648_v26 }
 0x106   : > { %v1097_v20 = vpop.f32.mrf.mxu2  ;;  %v544_v22 = vpop.f32.mrf.mxu0 }
 0x107   : > { %2629 = vmatmul.msk.bf16.gmra.mxu3 %vm448_vm0, %v1345_v16  ;;  %v1163_v25 = vadd.f32 %v1097_v20, %v682_v5  ;;  %v685_v27 = vadd.f32 %v684_v6, %v544_v22 }
 0x108   : > { %v686_v28 = vpop.f32.mrf.mxu1 }
 0x109   : > { %v3100_v26 = vadd.f32 %v1452_v12, %v1163_v25  ;;  %2410 = vmatmul.msk.bf16.gmra.mxu0 %vm448_vm0, %v432_v23 }
 0x10a   : > { %v1455_v31 = vpop.f32.mrf.mxu3 }
 0x10b   : > { %3823 = vst [vmem:[#allocation11_spill] sm:$0xff] %v3100_v26  ;;  %2532 = vmatmul.msk.bf16.gmra.mxu2 %vm448_vm0, %v989_v30 }
 0x10e   : > { %v1100_v34 = vpop.f32.mrf.mxu2  ;;  %v546_v35 = vpop.f32.mrf.mxu0 }
 0x10f   : > { %v1164_v36 = vadd.f32 %v1100_v34, %v685_v27  ;;  %v687_v37 = vadd.f32 %v686_v28, %v546_v35 }
 0x110   : > { %v689_v39 = vpop.f32.mrf.mxu1 }
 0x111   : > { %v3104_v42 = vadd.f32 %v1455_v31, %v1164_v36 }
 0x112   : > { %v1457_v43 = vpop.f32.mrf.mxu3 }
 0x113   : > { %3824 = vst [vmem:[#allocation12_spill] sm:$0xff] %v3104_v42  ;;  %2436 = vmatmul.msk.bf16.gmra.mxu1 %vm448_vm0, %v2649_v59 }
 0x116   : > { %v1102_v48 = vpop.f32.mrf.mxu2  ;;  %v549_v50 = vpop.f32.mrf.mxu0 }
 0x117   : > { %2630 = vmatmul.msk.bf16.gmra.mxu3 %vm448_vm0, %v1347_v45  ;;  %v1165_v51 = vadd.f32 %v1102_v48, %v687_v37  ;;  %v690_v52 = vadd.f32 %v689_v39, %v549_v50  ;;  %v1596_v50 = vpop.permute.xlu2 %1595 }
 0x118   : > { %v691_v55 = vpop.f32.mrf.mxu1 }
 0x119   : > { %v3109_v56 = vadd.f32 %v1457_v43, %v1165_v51  ;;  %2411 = vmatmul.msk.bf16.gmra.mxu0 %vm448_vm0, %v435_v47  ;;  %v1586_v43 = vpop.permute.xlu1 %1585 }
 0x11a   : > { %v1460_v58 = vpop.f32.mrf.mxu3 }
 0x11b   : > { %3825 = vst [vmem:[#allocation13_spill] sm:$0xff] %v3109_v56  ;;  %2533 = vmatmul.msk.bf16.gmra.mxu2 %vm448_vm0, %v992_v53 }
 0x11e   : > { %v1105_v59 = vpop.f32.mrf.mxu2  ;;  %v551_v60 = vpop.f32.mrf.mxu0 }
 0x11f   : > { %v1166_v62 = vadd.f32 %v1105_v59, %v690_v52  ;;  %v692_v61 = vadd.f32 %v691_v55, %v551_v60  ;;  %v1581_v60 = vpop.permute.xlu0 %1580 }
 0x120   : > { %v694_v0 = vpop.f32.mrf.mxu1 }
 0x121   : > { %v3113_v1 = vadd.f32 %v1460_v58, %v1166_v62  ;;  %v1591_v62 = vpop.permute.xlu1 %1590 }
 0x122   : > { %v1462_v2 = vpop.f32.mrf.mxu3 }
 0x123   : > { %3826 = vst [vmem:[#allocation14_spill] sm:$0xff] %v3113_v1 }
 0x126   : > { %v1107_v3 = vpop.f32.mrf.mxu2  ;;  %v554_v5 = vpop.f32.mrf.mxu0 }
 0x127   : > { %v1167_v6 = vadd.f32 %v1107_v3, %v692_v61  ;;  %v695_v7 = vadd.f32 %v694_v0, %v554_v5 }
 0x128   : > { %v696_v9 = vpop.f32.mrf.mxu1 }
 0x129   : > { %v3115_v10 = vadd.f32 %v1462_v2, %v1167_v6  ;;  %v1601_v2 = vpop.permute.xlu2 %1600 }
 0x12a   : > { %v1465_v12 = vpop.f32.mrf.mxu3 }
 0x12e   : > { %v1110_v13 = vpop.f32.mrf.mxu2  ;;  %v556_v14 = vpop.f32.mrf.mxu0 }
 0x12f   : > { %v1168_v16 = vadd.f32 %v1110_v13, %v695_v7  ;;  %v697_v17 = vadd.f32 %v696_v9, %v556_v14  ;;  %v1606_v7 = vpop.permute.xlu0 %1605  ;;  %v1611_v9 = vpop.permute.xlu1 %1610  ;;  %v1853_v14 = vmul.f32 %v2953_v15, %v2953_v15 }
 0x130   : > { %v699_v18 = vpop.f32.mrf.mxu1 }
 0x131   : > { %v3117_v19 = vadd.f32 %v1465_v12, %v1168_v16  ;;  %v3143_v13 = vpop.permute.xlu2 %1615 }
 0x132   : > { %v1467_v20 = vpop.f32.mrf.mxu3 }
 0x136   : > { %v1112_v22 = vpop.f32.mrf.mxu2  ;;  %v559_v23 = vpop.f32.mrf.mxu0 }
 0x137   : > { %v1169_v25 = vadd.f32 %v1112_v22, %v697_v17  ;;  %v700_v27 = vadd.f32 %v699_v18, %v559_v23  ;;  %v1852_v18 = vmul.f32 %v2940_v63, %v2940_v63  ;;  %v1744_v22 = vmul.f32 %v1581_v60, %v2953_v15 }
 0x138   : > { %v701_v28 = vpop.f32.mrf.mxu1  ;;  %v1854_v23 = vmul.f32 %v2980_v33, %v2980_v33 }
 0x139   : > { %v3119_v29 = vadd.f32 %v1467_v20, %v1169_v25  ;;  %v3158_v25 = vpop.permute.xlu0 %1620 }
 0x13a   : > { %v1470_v30 = vpop.f32.mrf.mxu3 }
 0x13e   : > { %v1115_v31 = vpop.f32.mrf.mxu2  ;;  %v561_v32 = vpop.f32.mrf.mxu0 }
 0x13f   : > { %v1170_v34 = vadd.f32 %v1115_v31, %v700_v27  ;;  %v702_v35 = vadd.f32 %v701_v28, %v561_v32  ;;  %v3160_v27 = vpop.permute.xlu1 %1625  ;;  %v1743_v28 = vmul.f32 %v1576_v40, %v2940_v63  ;;  %v1745_v32 = vmul.f32 %v1586_v43, %v2980_v33 }
 0x140   : > { %v704_v36 = vpop.f32.mrf.mxu1 }
 0x141   : > { %v3121_v37 = vadd.f32 %v1470_v30, %v1170_v34  ;;  %v1887_v30 = vmul.f32 %v1853_v14, %v1581_v60  ;;  %v1855_v34 = vmul.f32 %v2994_v49, %v2994_v49  ;;  %v1747_v60 = vmul.f32 %v1596_v50, %v3018_v4 }
 0x142   : > { %v1472_v39 = vpop.f32.mrf.mxu3 }
 0x146   : > { %v1117_v44 = vpop.f32.mrf.mxu2  ;;  %v564_v45 = vpop.f32.mrf.mxu0 }
 0x147   : > { %v1171_v46 = vadd.f32 %v1117_v44, %v702_v35  ;;  %v705_v47 = vadd.f32 %v704_v36, %v564_v45  ;;  %v1886_v35 = vmul.f32 %v1852_v18, %v1576_v40  ;;  %v3168_v36 = vpop.permute.xlu2 %1630  ;;  %v1888_v44 = vmul.f32 %v1854_v23, %v1586_v43 }
 0x148   : > { %v3123_v48 = vpop.f32.mrf.mxu1  ;;  %v1746_v45 = vmul.f32 %v1591_v62, %v2994_v49  ;;  %v1857_v40 = vmul.f32 %v3032_v21, %v3032_v21  ;;  %v1858_v23 = vmul.f32 %v3043_v38, %v3043_v38  ;;  %v3194_v49 = vpop.permute.xlu1 %1640 }
 0x149   : > { %v3125_v51 = vadd.f32 %v1472_v39, %v1171_v46  ;;  %v1779_v39 = vsel %vm1777_vm3, %v1744_v22, 0.0  ;;  %v1856_v46 = vmul.f32 %v3018_v4, %v3018_v4  ;;  %v1920_v18 = vsel %vm1777_vm3, %v1886_v35, 0.0  ;;  %v3192_v4 = vpop.permute.xlu0 %1635 }
 0x14a   : > { %v1475_v52 = vpop.f32.mrf.mxu3  ;;  %v1859_v35 = vmul.f32 %v3054_v54, %v3054_v54  ;;  %v1891_v63 = vmul.f32 %v1857_v40, %v1601_v2 }
 0x14e   : > { %v1120_v53 = vpop.f32.mrf.mxu2  ;;  %v3127_v55 = vpop.f32.mrf.mxu0 }
 0x14f   : > { %v1172_v58 = vadd.f32 %v1120_v53, %v705_v47  ;;  %v1778_v47 = vsel %vm1777_vm3, %v1743_v28, 0.0  ;;  %v1781_v53 = vsel %vm1777_vm3, %v1745_v32, 0.0  ;;  %v1890_v32 = vmul.f32 %v1856_v46, %v1596_v50 }
 0x150   : > { %v3129_v59 = vpop.f32.mrf.mxu1  ;;  %v1780_v22 = vadd.f32 %v1779_v39, %v1778_v47  ;;  %v1749_v50 = vmul.f32 %v1606_v7, %v3043_v38 }
 0x151   : > { %v3131_v61 = vadd.f32 %v1475_v52, %v1172_v58  ;;  %v1921_v52 = vsel %vm1777_vm3, %v1887_v30, 0.0  ;;  %v1889_v58 = vmul.f32 %v1855_v34, %v1591_v62  ;;  %v1923_v30 = vsel %vm1777_vm3, %v1888_v44, 0.0 }
 0x152   : > { %v3133_v0 = vpop.f32.mrf.mxu3  ;;  %v1783_v62 = vsel %vm1777_vm3, %v1746_v45, 0.0  ;;  %v1748_v34 = vmul.f32 %v1601_v2, %v3032_v21  ;;  %v1922_v33 = vadd.f32 %v1921_v52, %v1920_v18  ;;  %v1782_v15 = vadd.f32 %v1781_v53, %v1780_v22 }
 0x153   : > { %v1925_v47 = vsel %vm1777_vm3, %v1889_v58, 0.0  ;;  %v1785_v44 = vsel %vm1777_vm3, %v1747_v60, 0.0  ;;  %v1892_v21 = vmul.f32 %v1858_v23, %v1606_v7  ;;  %v1927_v52 = vsel %vm1777_vm3, %v1890_v32, 0.0 }
 0x154   : > { %v1924_v45 = vadd.f32 %v1923_v30, %v1922_v33  ;;  %v1784_v46 = vadd.f32 %v1783_v62, %v1782_v15  ;;  %v1787_v53 = vsel %vm1777_vm3, %v1748_v34, 0.0  ;;  %v1750_v18 = vmul.f32 %v1611_v9, %v3054_v54 }
 0x155   : > { %v1860_v22 = vmul.f32 %v3064_v8, %v3064_v8  ;;  %v1893_v60 = vmul.f32 %v1859_v35, %v1611_v9  ;;  %v1929_v2 = vsel %vm1777_vm3, %v1891_v63, 0.0  ;;  %v1789_v33 = vsel %vm1777_vm3, %v1749_v50, 0.0 }
 0x156   : > { %v3135_v3 = vpop.f32.mrf.mxu2  ;;  %v3137_v5 = vpop.f32.mrf.mxu0  ;;  %v1926_v58 = vadd.f32 %v1925_v47, %v1924_v45  ;;  %v1751_v15 = vmul.f32 %v3143_v13, %v3064_v8  ;;  %v1861_v7 = vmul.f32 %v3071_v24, %v3071_v24  ;;  %v1931_v32 = vsel %vm1777_vm3, %v1892_v21, 0.0 }
 0x157   : > { %v1791_v9 = vsel %vm1777_vm3, %v1750_v18, 0.0  ;;  %v1894_v63 = vmul.f32 %v1860_v22, %v3143_v13  ;;  %v1752_v34 = vmul.f32 %v3158_v25, %v3071_v24  ;;  %v1862_v35 = vmul.f32 %v3078_v41, %v3078_v41  ;;  %v1651_v47 = vpop.permute.xlu0 %1650 }
 0x158   : > { %v3139_v6 = vpop.f32.mrf.mxu1  ;;  %v1928_v30 = vadd.f32 %v1927_v52, %v1926_v58  ;;  %v1793_v52 = vsel %vm1777_vm3, %v1751_v15, 0.0  ;;  %v1895_v13 = vmul.f32 %v1861_v7, %v3158_v25  ;;  %v1863_v18 = vmul.f32 %v3085_v57, %v3085_v57 }
 0x159   : > { %v1896_v15 = vmul.f32 %v1862_v35, %v3160_v27  ;;  %v1754_v25 = vmul.f32 %v3168_v36, %v3085_v57 }
 0x15a   : > { %v3141_v12 = vpop.f32.mrf.mxu3  ;;  %v1930_v50 = vadd.f32 %v1929_v2, %v1928_v30  ;;  %v1864_v2 = vmul.f32 %v3092_v11, %v3092_v11  ;;  %v1795_v30 = vsel %vm1777_vm3, %v1752_v34, 0.0 }
 0x15c   : > { %v1932_v22 = vadd.f32 %v1931_v32, %v1930_v50  ;;  %v1937_v32 = vsel %vm1777_vm3, %v1895_v13, 0.0  ;;  %v1897_v50 = vmul.f32 %v1863_v18, %v3168_v36  ;;  %v1756_v13 = vmul.f32 %v3194_v49, %v3100_v26 }
 0x15d   : > { %v1866_v36 = vmul.f32 %v3104_v42, %v3104_v42 }
 0x15e   : > { %v3147_v16 = vpop.f32.mrf.mxu2  ;;  %v3149_v17 = vpop.f32.mrf.mxu0 }
 0x160   : > { %v3153_v20 = vpop.f32.mrf.mxu1 }
 0x162   : > { %v3163_v31 = vpop.f32.mrf.mxu3 }
 0x163   : > { %3827 = vst [vmem:[#allocation15_spill] sm:$0xff] %v3163_v31  ;;  %v3203_v31 = vpop.permute.xlu2 %1645 }
 0x166   : > { %v3180_v14 = vpop.f32.mrf.mxu2  ;;  %v3182_v43 = vpop.f32.mrf.mxu0 }
 0x168   : > { %v3187_v28 = vpop.f32.mrf.mxu1 }
 0x16a   : > { %v3198_v39 = vpop.f32.mrf.mxu3 }
 0x16b   : > { %3828 = vst [vmem:[#allocation16_spill] sm:$0xff] %v3198_v39  ;;  %v1786_v39 = vadd.f32 %v1785_v44, %v1784_v46  ;;  %v3227_v44 = vpop.permute.xlu1 %1655  ;;  %v1933_v46 = vsel %vm1777_vm3, %v1893_v60, 0.0  ;;  %v1661_v60 = vpop.permute.xlu2 %1660 }
 0x16c   : > { %v1934_v7 = vadd.f32 %v1933_v46, %v1932_v22  ;;  %v1898_v46 = vmul.f32 %v1864_v2, %v3192_v4  ;;  %v1799_v22 = vsel %vm1777_vm3, %v1754_v25, 0.0 }
 0x16d   : > { %v1788_v62 = vadd.f32 %v1787_v53, %v1786_v39  ;;  %v1753_v53 = vmul.f32 %v3160_v27, %v3078_v41  ;;  %v1865_v41 = vmul.f32 %v3100_v26, %v3100_v26 }
 0x16e   : > { %v3216_v40 = vpop.f32.mrf.mxu2  ;;  %v3218_v23 = vpop.f32.mrf.mxu0 }
 0x16f   : > { %v1790_v45 = vadd.f32 %v1789_v33, %v1788_v62  ;;  %v1935_v33 = vsel %vm1777_vm3, %v1894_v63, 0.0  ;;  %v1755_v63 = vmul.f32 %v3192_v4, %v3092_v11  ;;  %v1899_v11 = vmul.f32 %v1865_v41, %v3194_v49 }
 0x170   : > { %v3232_v21 = vpop.f32.mrf.mxu1  ;;  %v1936_v35 = vadd.f32 %v1935_v33, %v1934_v7  ;;  %v1941_v4 = vsel %vm1777_vm3, %v1897_v50, 0.0  ;;  %v1803_v41 = vsel %vm1777_vm3, %v1756_v13, 0.0  ;;  %v1758_v50 = vmul.f32 %v1651_v47, %v3109_v56 }
 0x171   : > { %v1792_v58 = vadd.f32 %v1791_v9, %v1790_v45  ;;  %v1797_v9 = vsel %vm1777_vm3, %v1753_v53, 0.0  ;;  %v1666_v53 = vpop.permute.xlu0 %1665  ;;  %v1801_v2 = vsel %vm1777_vm3, %v1755_v63, 0.0  ;;  %v1868_v63 = vmul.f32 %v3113_v1, %v3113_v1 }
 0x172   : > { %v3230_v39 = vpop.f32.mrf.mxu3  ;;  %v1938_v18 = vadd.f32 %v1937_v32, %v1936_v35  ;;  %v1869_v13 = vmul.f32 %v3115_v10, %v3115_v10 }
 0x173   : > { %v1794_v62 = vadd.f32 %v1793_v52, %v1792_v58  ;;  %v1939_v52 = vsel %vm1777_vm3, %v1896_v15, 0.0  ;;  %v1671_v57 = vpop.permute.xlu1 %1670  ;;  %v1867_v15 = vmul.f32 %v3109_v56, %v3109_v56  ;;  %v3275_v32 = vpop.permute.xlu2 %1675 }
 0x174   : > { %v1940_v25 = vadd.f32 %v1939_v52, %v1938_v18  ;;  %v1945_v52 = vsel %vm1777_vm3, %v1899_v11, 0.0  ;;  %v1759_v18 = vmul.f32 %v3227_v44, %v3113_v1 }
 0x175   : > { %v1796_v45 = vadd.f32 %v1795_v30, %v1794_v62  ;;  %v1757_v30 = vmul.f32 %v3203_v31, %v3104_v42  ;;  %v1943_v62 = vsel %vm1777_vm3, %v1898_v46, 0.0  ;;  %v1901_v46 = vmul.f32 %v1867_v15, %v1651_v47 }
 0x176   : > { %v3254_v34 = vpop.f32.mrf.mxu2  ;;  %v3256_v27 = vpop.f32.mrf.mxu0  ;;  %v1942_v35 = vadd.f32 %v1941_v4, %v1940_v25  ;;  %v1870_v4 = vmul.f32 %v3117_v19, %v3117_v19  ;;  %v1902_v47 = vmul.f32 %v1868_v63, %v3227_v44 }
 0x177   : > { %v1798_v58 = vadd.f32 %v1797_v9, %v1796_v45  ;;  %v1900_v9 = vmul.f32 %v1866_v36, %v3203_v31  ;;  %v1949_v1 = vsel %vm1777_vm3, %v1901_v46, 0.0 }
 0x178   : > { %v3277_v49 = vpop.f32.mrf.mxu1  ;;  %v1944_v36 = vadd.f32 %v1943_v62, %v1942_v35  ;;  %v1809_v62 = vsel %vm1777_vm3, %v1759_v18, 0.0  ;;  %v1761_v35 = vmul.f32 %v1666_v53, %v3117_v19  ;;  %v1904_v26 = vmul.f32 %v1870_v4, %v1666_v53 }
 0x179   : > { %v1800_v7 = vadd.f32 %v1799_v22, %v1798_v58  ;;  %v1805_v22 = vsel %vm1777_vm3, %v1757_v30, 0.0  ;;  %v1947_v11 = vsel %vm1777_vm3, %v1900_v9, 0.0  ;;  %v1760_v30 = vmul.f32 %v1661_v60, %v3115_v10 }
 0x17a   : > { %v3266_v33 = vpop.f32.mrf.mxu3  ;;  %v1946_v15 = vadd.f32 %v1945_v52, %v1944_v36  ;;  %v1951_v63 = vsel %vm1777_vm3, %v1902_v47, 0.0  ;;  %v1871_v52 = vmul.f32 %v3119_v29, %v3119_v29  ;;  %v1813_v36 = vsel %vm1777_vm3, %v1761_v35, 0.0 }
 0x17b   : > { %v1802_v45 = vadd.f32 %v1801_v2, %v1800_v7  ;;  %v1807_v2 = vsel %vm1777_vm3, %v1758_v50, 0.0  ;;  %v1762_v50 = vmul.f32 %v1671_v57, %v3119_v29  ;;  %v1686_v44 = vpop.permute.xlu1 %1685  ;;  %v1691_v18 = vpop.permute.xlu2 %1690  ;;  %v707_v53 = vadd.f32 %v3123_v48, %v3127_v55 }
 0x17c   : > { %v1948_v42 = vadd.f32 %v1947_v11, %v1946_v15  ;;  %v710_v4 = vadd.f32 %v3129_v59, %v3137_v5  ;;  %v1955_v15 = vsel %vm1777_vm3, %v1904_v26, 0.0  ;;  %v1873_v59 = vmul.f32 %v3125_v51, %v3125_v51 }
 0x17d   : > { %v1804_v56 = vadd.f32 %v1803_v41, %v1802_v45  ;;  %v1903_v41 = vmul.f32 %v1869_v13, %v1661_v60  ;;  %v1681_v45 = vpop.permute.xlu0 %1680  ;;  %v1173_v48 = vadd.f32 %v3135_v3, %v707_v53  ;;  %v715_v26 = vadd.f32 %v3153_v20, %v3182_v43 }
 0x17e   : > { %v3290_v58 = vpop.f32.mrf.mxu2  ;;  %v3292_v31 = vpop.f32.mrf.mxu0  ;;  %v1174_v5 = vadd.f32 %v3147_v16, %v710_v4  ;;  %v1764_v20 = vmul.f32 %v1681_v45, %v3125_v51  ;;  %v1907_v43 = vmul.f32 %v1873_v59, %v1681_v45  ;;  %v1765_v45 = vmul.f32 %v1686_v44, %v3131_v61 }
 0x17f   : > { %v1806_v25 = vadd.f32 %v1805_v22, %v1804_v56  ;;  %v1811_v56 = vsel %vm1777_vm3, %v1760_v30, 0.0  ;;  %v1950_v22 = vadd.f32 %v1949_v1, %v1948_v42  ;;  %v1953_v13 = vsel %vm1777_vm3, %v1903_v41, 0.0 }
 0x180   : > { %v724_v60 = vpop.f32.mrf.mxu1  ;;  %v1815_v42 = vsel %vm1777_vm3, %v1762_v50, 0.0  ;;  %v1905_v1 = vmul.f32 %v1871_v52, %v1671_v57  ;;  %v712_v50 = vadd.f32 %v3139_v6, %v3149_v17  ;;  %v3343_v6 = vadd.f32 %v3141_v12, %v1174_v5 }
 0x181   : > { %v1808_v9 = vadd.f32 %v1807_v2, %v1806_v25  ;;  %v1952_v47 = vadd.f32 %v1951_v63, %v1950_v22  ;;  %v1763_v25 = vmul.f32 %v3275_v32, %v3121_v37  ;;  %v3336_v22 = vadd.f32 %v3133_v0, %v1173_v48 }
 0x182   : > { %v3300_v7 = vpop.f32.mrf.mxu3  ;;  %v1957_v63 = vsel %vm1777_vm3, %v1905_v1, 0.0  ;;  %v1176_v17 = vadd.f32 %v3216_v40, %v715_v26  ;;  %v720_v0 = vadd.f32 %v3232_v21, %v3256_v27  ;;  %v3829_v27 = vld [vmem:[#allocation15_spill] sm:$0xff]  ;;  %v1876_v1 = vmul.f32 %v3343_v6, %v3343_v6 }
 0x183   : > { %v1810_v46 = vadd.f32 %v1809_v62, %v1808_v9  ;;  %v1872_v62 = vmul.f32 %v3121_v37, %v3121_v37  ;;  %v1954_v55 = vadd.f32 %v1953_v13, %v1952_v47  ;;  %v1701_v16 = vpop.permute.xlu1 %1700  ;;  %v1175_v13 = vadd.f32 %v3180_v14, %v712_v50  ;;  %v1706_v14 = vpop.permute.xlu2 %1705 }
 0x184   : > { %v1875_v12 = vmul.f32 %v3336_v22, %v3336_v22  ;;  %v1178_v48 = vadd.f32 %v3290_v58, %v720_v0  ;;  %v1766_v59 = vmul.f32 %v1691_v18, %v3336_v22 }
 0x185   : > { %v1812_v30 = vadd.f32 %v1811_v56, %v1810_v46  ;;  %v1956_v57 = vadd.f32 %v1955_v15, %v1954_v55  ;;  %v1696_v3 = vpop.permute.xlu0 %1695  ;;  %v1817_v56 = vsel %vm1777_vm3, %v1763_v25, 0.0  ;;  %v1906_v52 = vmul.f32 %v1872_v62, %v3275_v32  ;;  %v3830_v25 = vld [vmem:[#allocation16_spill] sm:$0xff] }
 0x186   : > { %v1137_v11 = vpop.f32.mrf.mxu2  ;;  %v584_v2 = vpop.f32.mrf.mxu0  ;;  %v1874_v46 = vmul.f32 %v3131_v61, %v3131_v61  ;;  %v717_v32 = vadd.f32 %v3187_v28, %v3218_v23  ;;  %v1819_v28 = vsel %vm1777_vm3, %v1764_v20, 0.0  ;;  %v1961_v23 = vsel %vm1777_vm3, %v1907_v43, 0.0 }
 0x187   : > { %v1814_v41 = vadd.f32 %v1813_v36, %v1812_v30  ;;  %v1958_v4 = vadd.f32 %v1957_v63, %v1956_v57  ;;  %v1959_v30 = vsel %vm1777_vm3, %v1906_v52, 0.0  ;;  %v3363_v62 = vadd.f32 %v3830_v25, %v1176_v17 }
 0x188   : > { %v1177_v40 = vadd.f32 %v3254_v34, %v717_v32  ;;  %v726_v15 = vpop.f32.mrf.mxu1  ;;  %v1908_v21 = vmul.f32 %v1874_v46, %v1686_v44  ;;  %v722_v34 = vadd.f32 %v3277_v49, %v3292_v31  ;;  %v725_v44 = vadd.f32 %v724_v60, %v584_v2 }
 0x189   : > { %v1816_v9 = vadd.f32 %v1815_v42, %v1814_v41  ;;  %v3358_v42 = vadd.f32 %v3829_v27, %v1175_v13  ;;  %v1960_v55 = vadd.f32 %v1959_v30, %v1958_v4  ;;  %v1821_v41 = vsel %vm1777_vm3, %v1765_v45, 0.0 }
 0x18a   : > { %v3328_v35 = vpop.f32.mrf.mxu3  ;;  %v1909_v26 = vmul.f32 %v1875_v12, %v1691_v18  ;;  %v3371_v57 = vadd.f32 %v3230_v39, %v1177_v40  ;;  %v1767_v58 = vmul.f32 %v1696_v3, %v3343_v6  ;;  %v1910_v20 = vmul.f32 %v1876_v1, %v1696_v3 }
 0x18b   : > { %v1818_v47 = vadd.f32 %v1817_v56, %v1816_v9  ;;  %v1179_v9 = vadd.f32 %v1137_v11, %v722_v34  ;;  %v1962_v63 = vadd.f32 %v1961_v23, %v1960_v55  ;;  %v1963_v56 = vsel %vm1777_vm3, %v1908_v21, 0.0  ;;  %v1716_v13 = vpop.permute.xlu1 %1715  ;;  %v1721_v12 = vpop.permute.xlu2 %1720 }
 0x18c   : > { %v1877_v49 = vmul.f32 %v3358_v42, %v3358_v42  ;;  %v1878_v60 = vmul.f32 %v3363_v62, %v3363_v62  ;;  %v3380_v18 = vadd.f32 %v3266_v33, %v1178_v48  ;;  %v1823_v11 = vsel %vm1777_vm3, %v1766_v59, 0.0 }
 0x18d   : > { %v1820_v5 = vadd.f32 %v1819_v28, %v1818_v47  ;;  %v1711_v31 = vpop.permute.xlu0 %1710  ;;  %v1768_v2 = vmul.f32 %v1701_v16, %v3358_v42  ;;  %v1964_v17 = vadd.f32 %v1963_v56, %v1962_v63  ;;  %v1965_v32 = vsel %vm1777_vm3, %v1909_v26, 0.0 }
 0x18e   : > { %v1140_v36 = vpop.f32.mrf.mxu2  ;;  %v586_v53 = vpop.f32.mrf.mxu0  ;;  %v1879_v3 = vmul.f32 %v3371_v57, %v3371_v57  ;;  %v3388_v0 = vadd.f32 %v3300_v7, %v1179_v9  ;;  %v1825_v33 = vsel %vm1777_vm3, %v1767_v58, 0.0  ;;  %v1911_v45 = vmul.f32 %v1877_v49, %v1701_v16 }
 0x18f   : > { %v1822_v52 = vadd.f32 %v1821_v41, %v1820_v5  ;;  %v1180_v43 = vadd.f32 %v1140_v36, %v725_v44  ;;  %v727_v46 = vadd.f32 %v726_v15, %v586_v53  ;;  %v1769_v47 = vmul.f32 %v1706_v14, %v3363_v62 }
 0x190   : > { %v1967_v53 = vsel %vm1777_vm3, %v1910_v20, 0.0  ;;  %v1912_v40 = vmul.f32 %v1878_v60, %v1706_v14  ;;  %v1880_v15 = vmul.f32 %v3380_v18, %v3380_v18  ;;  %v729_v28 = vpop.f32.mrf.mxu1  ;;  %v1827_v23 = vsel %vm1777_vm3, %v1768_v2, 0.0 }
 0x191   : > { %v1824_v36 = vadd.f32 %v1823_v11, %v1822_v52  ;;  %v1770_v7 = vmul.f32 %v1711_v31, %v3371_v57  ;;  %v3398_v21 = vadd.f32 %v3328_v35, %v1180_v43  ;;  %v1966_v27 = vadd.f32 %v1965_v32, %v1964_v17 }
 0x192   : > { %v1497_v50 = vpop.f32.mrf.mxu3  ;;  %v1913_v25 = vmul.f32 %v1879_v3, %v1711_v31  ;;  %v1881_v48 = vmul.f32 %v3388_v0, %v3388_v0  ;;  %v1969_v14 = vsel %vm1777_vm3, %v1911_v45, 0.0  ;;  %v1829_v34 = vsel %vm1777_vm3, %v1769_v47, 0.0 }
 0x193   : > { %v1826_v1 = vadd.f32 %v1825_v33, %v1824_v36  ;;  %v1771_v55 = vmul.f32 %v1716_v13, %v3380_v18  ;;  %v1968_v59 = vadd.f32 %v1967_v53, %v1966_v27  ;;  %v1971_v35 = vsel %vm1777_vm3, %v1912_v40, 0.0 }
 0x194   : > { %v1914_v5 = vmul.f32 %v1880_v15, %v1716_v13  ;;  %v1831_v63 = vsel %vm1777_vm3, %v1770_v7, 0.0  ;;  %v1772_v56 = vmul.f32 %v1721_v12, %v3388_v0  ;;  %v1882_v58 = vmul.f32 %v3398_v21, %v3398_v21 }
 0x195   : > { %v1828_v44 = vadd.f32 %v1827_v23, %v1826_v1  ;;  %v1726_v31 = vpop.permute.xlu0 %1725  ;;  %v1970_v52 = vadd.f32 %v1969_v14, %v1968_v59  ;;  %v1915_v60 = vmul.f32 %v1881_v48, %v1721_v12 }
 0x196   : > { %v1142_v39 = vpop.f32.mrf.mxu2  ;;  %v589_v4 = vpop.f32.mrf.mxu0  ;;  %v1773_v11 = vmul.f32 %v1726_v31, %v3398_v21  ;;  %v1975_v32 = vsel %vm1777_vm3, %v1914_v5, 0.0  ;;  %v1916_v33 = vmul.f32 %v1882_v58, %v1726_v31 }
 0x197   : > { %v1181_v30 = vadd.f32 %v1142_v39, %v727_v46  ;;  %v730_v16 = vadd.f32 %v729_v28, %v589_v4  ;;  %v1830_v20 = vadd.f32 %v1829_v34, %v1828_v44  ;;  %v1833_v39 = vsel %vm1777_vm3, %v1771_v55, 0.0  ;;  %v1731_v46 = vpop.permute.xlu1 %1730 }
 0x198   : > { %v1972_v13 = vadd.f32 %v1971_v35, %v1970_v52  ;;  %v1835_v4 = vsel %vm1777_vm3, %v1772_v56, 0.0  ;;  %v1977_v53 = vsel %vm1777_vm3, %v1915_v60, 0.0  ;;  %v731_v40 = vpop.f32.mrf.mxu1  ;;  %v1837_v15 = vsel %vm1777_vm3, %v1773_v11, 0.0 }
 0x199   : > { %v3405_v41 = vadd.f32 %v1497_v50, %v1181_v30  ;;  %v1973_v50 = vsel %vm1777_vm3, %v1913_v25, 0.0  ;;  %v1832_v17 = vadd.f32 %v1831_v63, %v1830_v20  ;;  %v1736_v30 = vpop.permute.xlu2 %1735  ;;  %v1979_v25 = vsel %vm1777_vm3, %v1916_v33, 0.0 }
 0x19a   : > { %v1500_v26 = vpop.f32.mrf.mxu3  ;;  %v1974_v12 = vadd.f32 %v1973_v50, %v1972_v13 }
 0x19b   : > { %v1883_v2 = vmul.f32 %v3405_v41, %v3405_v41  ;;  %v1774_v45 = vmul.f32 %v1731_v46, %v3405_v41  ;;  %v1834_v36 = vadd.f32 %v1833_v39, %v1832_v17 }
 0x19d   : > { %v1917_v28 = vmul.f32 %v1883_v2, %v1731_v46  ;;  %v1836_v27 = vadd.f32 %v1835_v4, %v1834_v36  ;;  %v1839_v48 = vsel %vm1777_vm3, %v1774_v45, 0.0 }
 0x19e   : > { %v1145_v9 = vpop.f32.mrf.mxu2  ;;  %v591_v3 = vpop.f32.mrf.mxu0 }
 0x19f   : > { %v1182_v49 = vadd.f32 %v1145_v9, %v730_v16  ;;  %v732_v7 = vadd.f32 %v731_v40, %v591_v3  ;;  %v1976_v16 = vadd.f32 %v1975_v32, %v1974_v12  ;;  %v1838_v59 = vadd.f32 %v1837_v15, %v1836_v27  ;;  %v1741_v9 = vpop.permute.xlu0 %1740 }
 0x1a0   : > { %v1981_v35 = vsel %vm1777_vm3, %v1917_v28, 0.0 }
 0x1a1   : > { %v3417_v43 = vadd.f32 %v1500_v26, %v1182_v49  ;;  %v1978_v55 = vadd.f32 %v1977_v53, %v1976_v16  ;;  %v1840_v56 = vadd.f32 %v1839_v48, %v1838_v59 }
 0x1a2   : > { %v1502_v44 = vpop.f32.mrf.mxu3 }
 0x1a3   : > { %v1884_v47 = vmul.f32 %v3417_v43, %v3417_v43  ;;  %v1775_v23 = vmul.f32 %v1736_v30, %v3417_v43  ;;  %v1980_v63 = vadd.f32 %v1979_v25, %v1978_v55 }
 0x1a5   : > { %v1918_v14 = vmul.f32 %v1884_v47, %v1736_v30  ;;  %v1841_v5 = vsel %vm1777_vm3, %v1775_v23, 0.0  ;;  %v1982_v52 = vadd.f32 %v1981_v35, %v1980_v63 }
 0x1a6   : > { %v1147_v1 = vpop.f32.mrf.mxu2  ;;  %v1842_v20 = vadd.f32 %v1841_v5, %v1840_v56 }
 0x1a7   : > { %v1183_v34 = vadd.f32 %v1147_v1, %v732_v7  ;;  %v1983_v58 = vsel %vm1777_vm3, %v1918_v14, 0.0 }
 0x1a8   : > { %v1984_v39 = vadd.f32 %v1983_v58, %v1982_v52 }
 0x1a9   : > { %v1538_v26 = vadd.f32 %v1502_v44, %v1183_v34 }
 0x1ab   : > { %v1776_v49 = vmul.f32 %v1741_v9, %v1538_v26  ;;  %v1885_v31 = vmul.f32 %v1538_v26, %v1538_v26 }
 0x1ad   : > { %v1844_v50 = vsel %vm1843_vm4, %v1776_v49, 0.0  ;;  %v1919_v60 = vmul.f32 %v1885_v31, %v1741_v9  ;;  %v3833_v31 = vld [vmem:[#allocation4_spill] sm:$0xff] }
 0x1ae   : > { %v1845_v11 = vadd.f32 %v1844_v50, %v1842_v20  ;;  %v3834_v20 = vld [vmem:[#allocation5_spill] sm:$0xff] }
 0x1af   : > { %v1985_v2 = vsel %vm1843_vm4, %v1919_v60, 0.0  ;;  %v3835_v60 = vld [vmem:[#allocation6_spill] sm:$0xff]  ;;  %vm2213_vm4 = vcmask 125952  }
 0x1b0   : > { %v1846_v46 = vrot.slane %v1845_v11, 4  ;;  %v1986_v13 = vadd.f32 %v1985_v2, %v1984_v39 }
 0x1b2   : > { %v1847_v17 = vadd.f32 %v1846_v46, %v1845_v11  ;;  %v1987_v32 = vrot.slane %v1986_v13, 4  ;;  %v3836_v11 = vld [vmem:[#allocation7_spill] sm:$0xff] }
 0x1b4   : > { %v1848_v3 = vrot.slane %v1847_v17, 2  ;;  %v1988_v4 = vadd.f32 %v1987_v32, %v1986_v13 }
 0x1b6   : > { %v1849_v33 = vadd.f32 %v1848_v3, %v1847_v17  ;;  %v1989_v45 = vrot.slane %v1988_v4, 2  ;;  %v3837_v3 = vld [vmem:[#allocation8_spill] sm:$0xff] }
 0x1b8   : > { %v1850_v47 = vrot.slane %v1849_v33, 1  ;;  %v1990_v30 = vadd.f32 %v1989_v45, %v1988_v4 }
 0x1ba   : > { %v1851_v12 = vadd.f32 %v1850_v47, %v1849_v33  ;;  %v1991_v36 = vrot.slane %v1990_v30, 1  ;;  %v3838_v33 = vld [vmem:[#allocation9_spill] sm:$0xff]  ;;  %v3839_v47 = vld [vmem:[#allocation10_spill] sm:$0xff] }
 0x1bc   : > { %v1992_v53 = vadd.f32 %v1991_v36, %v1990_v30  ;;  %v3432_v40 = vmul.f32 0.00390625, %v1851_v12 }
 0x1be   : > { %v1994_v15 = vmul.f32 0.00390625, %v1992_v53  ;;  %v1995_v28 = vmul.f32 %v3432_v40, %v3432_v40  ;;  %v2027_v59 = vsub.f32 %v3388_v0, %v3432_v40  ;;  %v2028_v44 = vsub.f32 %v3398_v21, %v3432_v40 }
 0x1bf   : > { %v2029_v35 = vsub.f32 %v3405_v41, %v3432_v40  ;;  %v2030_v5 = vsub.f32 %v3417_v43, %v3432_v40  ;;  %v2031_v9 = vsub.f32 %v1538_v26, %v3432_v40  ;;  %v3831_v41 = vld [vmem:[#allocation2_spill] sm:$0xff]  ;;  %v3832_v26 = vld [vmem:[#allocation3_spill] sm:$0xff]  ;;  %v2000_v52 = vsub.f32 %v3833_v31, %v3432_v40 }
 0x1c0   : > { %v1996_v23 = vsub.f32 %v1994_v15, %v1995_v28  ;;  %v1998_v43 = vsub.f32 %v3831_v41, %v3432_v40  ;;  %v1999_v49 = vsub.f32 %v3832_v26, %v3432_v40  ;;  %v2001_v50 = vsub.f32 %v3834_v20, %v3432_v40 }
 0x1c1   : > { %v2002_v39 = vsub.f32 %v3835_v60, %v3432_v40  ;;  %v2003_v2 = vsub.f32 %v3836_v11, %v3432_v40  ;;  %v2004_v46 = vsub.f32 %v3043_v38, %v3432_v40  ;;  %v2005_v13 = vsub.f32 %v3054_v54, %v3432_v40  ;;  %v3840_v38 = vld [vmem:[#allocation11_spill] sm:$0xff]  ;;  %v3841_v54 = vld [vmem:[#allocation12_spill] sm:$0xff] }
 0x1c2   : > { %v1997_v7 = vmax.f32 %v1996_v23, 0.0  ;;  %v2006_v17 = vsub.f32 %v3064_v8, %v3432_v40  ;;  %v2007_v32 = vsub.f32 %v3071_v24, %v3432_v40  ;;  %v2008_v4 = vsub.f32 %v3837_v3, %v3432_v40  ;;  %v3842_v8 = vld [vmem:[#allocation13_spill] sm:$0xff]  ;;  %v3843_v24 = vld [vmem:[#allocation14_spill] sm:$0xff] }
 0x1c3   : > { %v2009_v45 = vsub.f32 %v3838_v33, %v3432_v40  ;;  %v2010_v30 = vsub.f32 %v3839_v47, %v3432_v40  ;;  %v2011_v12 = vsub.f32 %v3840_v38, %v3432_v40  ;;  %v2012_v36 = vsub.f32 %v3841_v54, %v3432_v40 }
 0x1c4   : > { %v2032_v16 = vadd.f32 1e-05, %v1997_v7  ;;  %v2013_v53 = vsub.f32 %v3842_v8, %v3432_v40  ;;  %v2014_v15 = vsub.f32 %v3843_v24, %v3432_v40  ;;  %v2015_v28 = vsub.f32 %v3115_v10, %v3432_v40 }
 0x1c5   : > { %v2016_v23 = vsub.f32 %v3117_v19, %v3432_v40  ;;  %v2017_v7 = vsub.f32 %v3119_v29, %v3432_v40  ;;  %v2022_v10 = vsub.f32 %v3343_v6, %v3432_v40  ;;  %v2023_v19 = vsub.f32 %v3358_v42, %v3432_v40 }
 0x1c6   : > { %2706 = vrsqrt.f32 %v2032_v16  ;;  %vm2039_vm6 = vweird.f32 %v2032_v16  ;;  %v2024_v29 = vsub.f32 %v3363_v62, %v3432_v40 }
 0x1cc   : > { %v2707_v27 = vpop.eup %2706 }
 0x1cd   : > { %v2034_v1 = vmul.f32 %v2707_v27, %v2032_v16  ;;  %vm2040_vm5 = vweird.f32 %v2707_v27  ;;  %v2018_v16 = vsub.f32 %v3121_v37, %v3432_v40  ;;  %v2025_v37 = vsub.f32 %v3371_v57, %v3432_v40 }
 0x1ce   : > { %vm2041_vm7 = vmor %vm2039_vm6, %vm2040_vm5 }
 0x1cf   : > { %v2035_v25 = vmul.f32 %v2707_v27, %v2034_v1  ;;  %v2020_v1 = vsub.f32 %v3131_v61, %v3432_v40 }
 0x1d1   : > { %v2036_v48 = vmul.f32 0.5, %v2035_v25  ;;  %v2021_v25 = vsub.f32 %v3336_v22, %v3432_v40 }
 0x1d3   : > { %v2037_v14 = vsub.f32 1.5, %v2036_v48 }
 0x1d5   : > { %v2038_v34 = vmul.f32 %v2707_v27, %v2037_v14 }
 0x1d7   : > { %v3436_v55 = vsel %vm2041_vm7, %v2707_v27, %v2038_v34  ;;  %v2019_v27 = vsub.f32 %v3125_v51, %v3432_v40  ;;  %v2026_v51 = vsub.f32 %v3380_v18, %v3432_v40 }
 0x1d8   : > { %v3448_v63 = vmul.f32 %v3436_v55, %v2027_v59  ;;  %v3451_v56 = vmul.f32 %v3436_v55, %v2028_v44  ;;  %v3454_v58 = vmul.f32 %v3436_v55, %v2029_v35  ;;  %v3457_v0 = vmul.f32 %v3436_v55, %v2030_v5 }
 0x1d9   : > { %v3460_v21 = vmul.f32 %v3436_v55, %v2031_v9  ;;  %v2043_v61 = vmul.f32 %v3436_v55, %v1998_v43  ;;  %v2044_v48 = vmul.f32 %v3436_v55, %v1999_v49  ;;  %v2045_v22 = vmul.f32 %v3436_v55, %v2000_v52 }
 0x1da   : > { %v2046_v6 = vmul.f32 %v3436_v55, %v2001_v50  ;;  %v2047_v14 = vmul.f32 %v3436_v55, %v2002_v39  ;;  %v2048_v42 = vmul.f32 %v3436_v55, %v2003_v2  ;;  %v2049_v62 = vmul.f32 %v3436_v55, %v2004_v46 }
 0x1db   : > { %v2050_v34 = vmul.f32 %v3436_v55, %v2005_v13  ;;  %v3529_v57 = vmul.f32 %v3436_v55, %v2006_v17  ;;  %v3532_v18 = vmul.f32 %v3436_v55, %v2007_v32  ;;  %v3535_v40 = vmul.f32 %v3436_v55, %v2008_v4 }
 0x1dc   : > { %v3538_v59 = vmul.f32 %v3436_v55, %v2009_v45  ;;  %v3541_v44 = vmul.f32 %v3436_v55, %v2010_v30  ;;  %v3544_v35 = vmul.f32 %v3436_v55, %v2011_v12  ;;  %v3547_v5 = vmul.f32 %v3436_v55, %v2012_v36 }
 0x1dd   : > { %v3550_v9 = vmul.f32 %v3436_v55, %v2013_v53  ;;  %v3553_v41 = vmul.f32 %v3436_v55, %v2014_v15  ;;  %v3556_v43 = vmul.f32 %v3436_v55, %v2015_v28  ;;  %v3559_v26 = vmul.f32 %v3436_v55, %v2016_v23 }
 0x1de   : > { %v3562_v49 = vmul.f32 %v3436_v55, %v2017_v7  ;;  %v3565_v31 = vmul.f32 %v3436_v55, %v2018_v16  ;;  %v3568_v52 = vmul.f32 %v3436_v55, %v2019_v27  ;;  %v3571_v20 = vmul.f32 %v3436_v55, %v2020_v1 }
 0x1df   : > { %v2111_v50 = vmul.f32 0.2, %v2043_v61  ;;  %v3574_v60 = vmul.f32 %v3436_v55, %v2021_v25  ;;  %v3577_v39 = vmul.f32 %v3436_v55, %v2022_v10  ;;  %vm2077_vm8 = vcmp.gt.f32.partialorder %v2043_v61, 0.0 }
 0x1e0   : > { %v2112_v11 = vmul.f32 0.2, %v2044_v48  ;;  %v3580_v2 = vmul.f32 %v3436_v55, %v2023_v19  ;;  %v3583_v46 = vmul.f32 %v3436_v55, %v2024_v29  ;;  %vm2078_vm9 = vcmp.gt.f32.partialorder %v2044_v48, 0.0 }
 0x1e1   : > { %v2113_v13 = vmul.f32 0.2, %v2045_v22  ;;  %v3586_v17 = vmul.f32 %v3436_v55, %v2025_v37  ;;  %v3589_v32 = vmul.f32 %v3436_v55, %v2026_v51  ;;  %vm2079_vm10 = vcmp.gt.f32.partialorder %v2045_v22, 0.0 }
 0x1e2   : > { %v2114_v3 = vmul.f32 0.2, %v2046_v6  ;;  %vm2080_vm11 = vcmp.gt.f32.partialorder %v2046_v6, 0.0  ;;  %vm2081_vm12 = vcmp.gt.f32.partialorder %v2047_v14, 0.0  ;;  %v2115_v4 = vmul.f32 0.2, %v2047_v14 }
 0x1e3   : > { %v2145_v33 = vsel %vm2077_vm8, %v2043_v61, %v2111_v50  ;;  %vm2082_vm13 = vcmp.gt.f32.partialorder %v2048_v42, 0.0  ;;  %vm2083_vm14 = vcmp.gt.f32.partialorder %v2049_v62, 0.0  ;;  %v2116_v45 = vmul.f32 0.2, %v2048_v42 }
 0x1e4   : > { %v2146_v47 = vsel %vm2078_vm9, %v2044_v48, %v2112_v11  ;;  %vm2084_vm15 = vcmp.gt.f32.partialorder %v2050_v34, 0.0  ;;  %vm2085_vm0 = vcmp.gt.f32.partialorder %v3529_v57, 0.0  ;;  %v2117_v30 = vmul.f32 0.2, %v2049_v62 }
 0x1e5   : > { %v2147_v38 = vsel %vm2079_vm10, %v2045_v22, %v2113_v13  ;;  %vm2086_vm1 = vcmp.gt.f32.partialorder %v3532_v18, 0.0  ;;  %v2118_v55 = vmul.f32 0.2, %v2050_v34  ;;  %v2148_v12 = vsel %vm2080_vm11, %v2046_v6, %v2114_v3 }
 0x1e6   : > { %v2179_v54 = vpack.c.bf16 %v2145_v33, %v2145_v33  ;;  %vm2087_vm2 = vcmp.gt.f32.partialorder %v3535_v40, 0.0  ;;  %v2119_v36 = vmul.f32 0.2, %v3529_v57  ;;  %v2149_v8 = vsel %vm2081_vm12, %v2047_v14, %v2115_v4 }
 0x1e7   : > { %v2180_v53 = vpack.c.bf16 %v2146_v47, %v2146_v47  ;;  %vm2088_vm3 = vcmp.gt.f32.partialorder %v3538_v59, 0.0  ;;  %v2120_v24 = vmul.f32 0.2, %v3532_v18  ;;  %v2150_v15 = vsel %vm2082_vm13, %v2048_v42, %v2116_v45 }
 0x1e8   : > { %v2181_v28 = vpack.c.bf16 %v2147_v38, %v2147_v38  ;;  %v2121_v23 = vmul.f32 0.2, %v3535_v40  ;;  %v2151_v7 = vsel %vm2083_vm14, %v2049_v62, %v2117_v30  ;;  %v2182_v16 = vpack.c.bf16 %v2148_v12, %v2148_v12  ;;  %2214 = vst.msk [vmem:[%s3597_s30] sm:$0xf] %vm2213_vm4, %v2179_v54 }
 0x1e9   : > { %vm2089_vm5 = vcmp.gt.f32.partialorder %v3541_v44, 0.0  ;;  %v2122_v27 = vmul.f32 0.2, %v3538_v59  ;;  %v2152_v1 = vsel %vm2084_vm15, %v2050_v34, %v2118_v55  ;;  %v2183_v25 = vpack.c.bf16 %v2149_v8, %v2149_v8  ;;  %2215 = vst.msk [vmem:[%s3597_s30 + $0x4] sm:$0xf] %vm2213_vm4, %v2180_v53 }
 0x1ea   : > { %vm2090_vm6 = vcmp.gt.f32.partialorder %v3544_v35, 0.0  ;;  %v2123_v10 = vmul.f32 0.2, %v3541_v44  ;;  %v2153_v19 = vsel %vm2085_vm0, %v3529_v57, %v2119_v36  ;;  %v2184_v29 = vpack.c.bf16 %v2150_v15, %v2150_v15  ;;  %2216 = vst.msk [vmem:[%s3597_s30 + $0x8] sm:$0xf] %vm2213_vm4, %v2181_v28 }
 0x1eb   : > { %vm2091_vm7 = vcmp.gt.f32.partialorder %v3547_v5, 0.0  ;;  %v2124_v37 = vmul.f32 0.2, %v3544_v35  ;;  %v2154_v51 = vsel %vm2086_vm1, %v3532_v18, %v2120_v24  ;;  %v2185_v61 = vpack.c.bf16 %v2151_v7, %v2151_v7  ;;  %2217 = vst.msk [vmem:[%s3597_s30 + $0xc] sm:$0xf] %vm2213_vm4, %v2182_v16 }
 0x1ec   : > { %vm2092_vm8 = vcmp.gt.f32.partialorder %v3550_v9, 0.0  ;;  %v2125_v48 = vmul.f32 0.2, %v3547_v5  ;;  %v2155_v22 = vsel %vm2087_vm2, %v3535_v40, %v2121_v23  ;;  %v2186_v6 = vpack.c.bf16 %v2152_v1, %v2152_v1  ;;  %2218 = vst.msk [vmem:[%s3597_s30 + $0x10] sm:$0xf] %vm2213_vm4, %v2183_v25 }
 0x1ed   : > { %vm2093_vm9 = vcmp.gt.f32.partialorder %v3553_v41, 0.0  ;;  %v2126_v14 = vmul.f32 0.2, %v3550_v9  ;;  %v2156_v42 = vsel %vm2088_vm3, %v3538_v59, %v2122_v27  ;;  %v2187_v62 = vpack.c.bf16 %v2153_v19, %v2153_v19  ;;  %2219 = vst.msk [vmem:[%s3597_s30 + $0x14] sm:$0xf] %vm2213_vm4, %v2184_v29 }
 0x1ee   : > { %vm2094_vm10 = vcmp.gt.f32.partialorder %v3556_v43, 0.0  ;;  %v2127_v34 = vmul.f32 0.2, %v3553_v41  ;;  %v2157_v57 = vsel %vm2089_vm5, %v3541_v44, %v2123_v10  ;;  %v2188_v18 = vpack.c.bf16 %v2154_v51, %v2154_v51  ;;  %2220 = vst.msk [vmem:[%s3597_s30 + $0x18] sm:$0xf] %vm2213_vm4, %v2185_v61 }
 0x1ef   : > { %vm2095_vm11 = vcmp.gt.f32.partialorder %v3559_v26, 0.0  ;;  %v2128_v40 = vmul.f32 0.2, %v3556_v43  ;;  %v2158_v59 = vsel %vm2090_vm6, %v3544_v35, %v2124_v37  ;;  %v2189_v50 = vpack.c.bf16 %v2155_v22, %v2155_v22  ;;  %2221 = vst.msk [vmem:[%s3597_s30 + $0x1c] sm:$0xf] %vm2213_vm4, %v2186_v6 }
 0x1f0   : > { %vm2096_vm12 = vcmp.gt.f32.partialorder %v3562_v49, 0.0  ;;  %v2129_v44 = vmul.f32 0.2, %v3559_v26  ;;  %v2159_v11 = vsel %vm2091_vm7, %v3547_v5, %v2125_v48  ;;  %v2190_v13 = vpack.c.bf16 %v2156_v42, %v2156_v42  ;;  %2222 = vst.msk [vmem:[%s3597_s30 + $0x20] sm:$0xf] %vm2213_vm4, %v2187_v62 }
 0x1f1   : > { %vm2097_vm13 = vcmp.gt.f32.partialorder %v3565_v31, 0.0  ;;  %v2130_v35 = vmul.f32 0.2, %v3562_v49  ;;  %v2160_v3 = vsel %vm2092_vm8, %v3550_v9, %v2126_v14  ;;  %v2191_v4 = vpack.c.bf16 %v2157_v57, %v2157_v57  ;;  %2223 = vst.msk [vmem:[%s3597_s30 + $0x24] sm:$0xf] %vm2213_vm4, %v2188_v18 }
 0x1f2   : > { %vm2098_vm14 = vcmp.gt.f32.partialorder %v3568_v52, 0.0  ;;  %v2131_v5 = vmul.f32 0.2, %v3565_v31  ;;  %v2161_v33 = vsel %vm2093_vm9, %v3553_v41, %v2127_v34  ;;  %v2192_v45 = vpack.c.bf16 %v2158_v59, %v2158_v59  ;;  %2224 = vst.msk [vmem:[%s3597_s30 + $0x28] sm:$0xf] %vm2213_vm4, %v2189_v50 }
 0x1f3   : > { %vm2099_vm15 = vcmp.gt.f32.partialorder %v3571_v20, 0.0  ;;  %v2132_v9 = vmul.f32 0.2, %v3568_v52  ;;  %v2162_v47 = vsel %vm2094_vm10, %v3556_v43, %v2128_v40  ;;  %v2193_v30 = vpack.c.bf16 %v2159_v11, %v2159_v11  ;;  %2225 = vst.msk [vmem:[%s3597_s30 + $0x2c] sm:$0xf] %vm2213_vm4, %v2190_v13 }
 0x1f4   : > { %vm2100_vm0 = vcmp.gt.f32.partialorder %v3574_v60, 0.0  ;;  %v2133_v41 = vmul.f32 0.2, %v3571_v20  ;;  %v2163_v38 = vsel %vm2095_vm11, %v3559_v26, %v2129_v44  ;;  %v2194_v55 = vpack.c.bf16 %v2160_v3, %v2160_v3  ;;  %2226 = vst.msk [vmem:[%s3597_s30 + $0x30] sm:$0xf] %vm2213_vm4, %v2191_v4 }
 0x1f5   : > { %vm2101_vm1 = vcmp.gt.f32.partialorder %v3577_v39, 0.0  ;;  %v2134_v43 = vmul.f32 0.2, %v3574_v60  ;;  %v2164_v12 = vsel %vm2096_vm12, %v3562_v49, %v2130_v35  ;;  %v2195_v54 = vpack.c.bf16 %v2161_v33, %v2161_v33  ;;  %2227 = vst.msk [vmem:[%s3597_s30 + $0x34] sm:$0xf] %vm2213_vm4, %v2192_v45 }
 0x1f6   : > { %vm2102_vm2 = vcmp.gt.f32.partialorder %v3580_v2, 0.0  ;;  %v2135_v26 = vmul.f32 0.2, %v3577_v39  ;;  %v2165_v36 = vsel %vm2097_vm13, %v3565_v31, %v2131_v5  ;;  %v2196_v8 = vpack.c.bf16 %v2162_v47, %v2162_v47  ;;  %2228 = vst.msk [vmem:[%s3597_s30 + $0x38] sm:$0xf] %vm2213_vm4, %v2193_v30 }
 0x1f7   : > { %vm2103_vm3 = vcmp.gt.f32.partialorder %v3583_v46, 0.0  ;;  %v2136_v49 = vmul.f32 0.2, %v3580_v2  ;;  %v2166_v53 = vsel %vm2098_vm14, %v3568_v52, %v2132_v9  ;;  %v2197_v24 = vpack.c.bf16 %v2163_v38, %v2163_v38  ;;  %2229 = vst.msk [vmem:[%s3597_s30 + $0x3c] sm:$0xf] %vm2213_vm4, %v2194_v55 }
 0x1f8   : > { %vm2104_vm5 = vcmp.gt.f32.partialorder %v3586_v17, 0.0  ;;  %v2137_v31 = vmul.f32 0.2, %v3583_v46  ;;  %v2167_v15 = vsel %vm2099_vm15, %v3571_v20, %v2133_v41  ;;  %v2198_v28 = vpack.c.bf16 %v2164_v12, %v2164_v12  ;;  %2230 = vst.msk [vmem:[%s3597_s30 + $0x40] sm:$0xf] %vm2213_vm4, %v2195_v54 }
 0x1f9   : > { %vm2105_vm6 = vcmp.gt.f32.partialorder %v3589_v32, 0.0  ;;  %v2138_v52 = vmul.f32 0.2, %v3586_v17  ;;  %v2168_v23 = vsel %vm2100_vm0, %v3574_v60, %v2134_v43  ;;  %v2199_v7 = vpack.c.bf16 %v2165_v36, %v2165_v36  ;;  %2231 = vst.msk [vmem:[%s3597_s30 + $0x44] sm:$0xf] %vm2213_vm4, %v2196_v8 }
 0x1fa   : > { %vm2106_vm7 = vcmp.gt.f32.partialorder %v3448_v63, 0.0  ;;  %v2139_v20 = vmul.f32 0.2, %v3589_v32  ;;  %v2169_v16 = vsel %vm2101_vm1, %v3577_v39, %v2135_v26  ;;  %v2200_v27 = vpack.c.bf16 %v2166_v53, %v2166_v53  ;;  %2232 = vst.msk [vmem:[%s3597_s30 + $0x48] sm:$0xf] %vm2213_vm4, %v2197_v24 }
 0x1fb   : > { %vm2107_vm8 = vcmp.gt.f32.partialorder %v3451_v56, 0.0  ;;  %v2140_v60 = vmul.f32 0.2, %v3448_v63  ;;  %v2170_v1 = vsel %vm2102_vm2, %v3580_v2, %v2136_v49  ;;  %v2201_v25 = vpack.c.bf16 %v2167_v15, %v2167_v15  ;;  %2233 = vst.msk [vmem:[%s3597_s30 + $0x4c] sm:$0xf] %vm2213_vm4, %v2198_v28 }
 0x1fc   : > { %v2141_v10 = vmul.f32 0.2, %v3451_v56  ;;  %v2144_v39 = vmul.f32 0.2, %v3460_v21  ;;  %v2171_v19 = vsel %vm2103_vm3, %v3583_v46, %v2137_v31  ;;  %v2202_v29 = vpack.c.bf16 %v2168_v23, %v2168_v23  ;;  %2234 = vst.msk [vmem:[%s3597_s30 + $0x50] sm:$0xf] %vm2213_vm4, %v2199_v7 }
 0x1fd   : > { %vm2110_vm9 = vcmp.gt.f32.partialorder %v3460_v21, 0.0  ;;  %v2142_v2 = vmul.f32 0.2, %v3454_v58  ;;  %v2172_v37 = vsel %vm2104_vm5, %v3586_v17, %v2138_v52  ;;  %v2203_v51 = vpack.c.bf16 %v2169_v16, %v2169_v16  ;;  %2235 = vst.msk [vmem:[%s3597_s30 + $0x54] sm:$0xf] %vm2213_vm4, %v2200_v27 }
 0x1fe   : > { %vm2108_vm10 = vcmp.gt.f32.partialorder %v3454_v58, 0.0  ;;  %v2143_v46 = vmul.f32 0.2, %v3457_v0  ;;  %v2173_v61 = vsel %vm2105_vm6, %v3589_v32, %v2139_v20  ;;  %v2204_v48 = vpack.c.bf16 %v2170_v1, %v2170_v1  ;;  %2236 = vst.msk [vmem:[%s3597_s30 + $0x58] sm:$0xf] %vm2213_vm4, %v2201_v25 }
 0x1ff   : > { %vm2109_vm11 = vcmp.gt.f32.partialorder %v3457_v0, 0.0  ;;  %v2174_v17 = vsel %vm2106_vm7, %v3448_v63, %v2140_v60  ;;  %v2205_v22 = vpack.c.bf16 %v2171_v19, %v2171_v19  ;;  %v2175_v6 = vsel %vm2107_vm8, %v3451_v56, %v2141_v10  ;;  %2237 = vst.msk [vmem:[%s3597_s30 + $0x5c] sm:$0xf] %vm2213_vm4, %v2202_v29 }
 0x200   : > { %v2178_v32 = vsel %vm2110_vm9, %v3460_v21, %v2144_v39  ;;  %v2206_v14 = vpack.c.bf16 %v2172_v37, %v2172_v37  ;;  %v2176_v42 = vsel %vm2108_vm10, %v3454_v58, %v2142_v2  ;;  %v2207_v63 = vpack.c.bf16 %v2173_v61, %v2173_v61  ;;  %2238 = vst.msk [vmem:[%s3597_s30 + $0x60] sm:$0xf] %vm2213_vm4, %v2203_v51  ;;  %v2250_v58 = vld [vmem:[%s3597_s30 + $0x84] sm:$0xf] }
 0x201   : > { %vm2248_vm12 = vsmask.f32 3328  ;;  %v2177_v62 = vsel %vm2109_vm11, %v3457_v0, %v2143_v46  ;;  %v2208_v56 = vpack.c.bf16 %v2174_v17, %v2174_v17  ;;  %2239 = vst.msk [vmem:[%s3597_s30 + $0x64] sm:$0xf] %vm2213_vm4, %v2204_v48  ;;  %v2209_v21 = vpack.c.bf16 %v2175_v6, %v2175_v6 }
 0x202   : > { %v2212_v34 = vpack.c.bf16 %v2178_v32, %v2178_v32  ;;  %2240 = vst.msk [vmem:[%s3597_s30 + $0x68] sm:$0xf] %vm2213_vm4, %v2205_v22  ;;  %v2210_v57 = vpack.c.bf16 %v2176_v42, %v2176_v42  ;;  %vm2249_vm13 = vmand %vm2213_vm4, %vm2248_vm12  ;;  %v2211_v18 = vpack.c.bf16 %v2177_v62, %v2177_v62 }
 0x203   : > { %2241 = vst.msk [vmem:[%s3597_s30 + $0x6c] sm:$0xf] %vm2213_vm4, %v2206_v14 }
 0x204   : > { %2242 = vst.msk [vmem:[%s3597_s30 + $0x70] sm:$0xf] %vm2213_vm4, %v2207_v63  ;;  %v2251_v0 = vsel %vm2249_vm13, %v2212_v34, %v2250_v58 }
 0x205   : > { %2243 = vst.msk [vmem:[%s3597_s30 + $0x74] sm:$0xf] %vm2213_vm4, %v2208_v56 }
 0x206   : > { %2244 = vst.msk [vmem:[%s3597_s30 + $0x78] sm:$0xf] %vm2213_vm4, %v2209_v21 }
 0x207   : > { %2245 = vst.msk [vmem:[%s3597_s30 + $0x7c] sm:$0xf] %vm2213_vm4, %v2210_v57 }
 0x208   : > { %2246 = vst.msk [vmem:[%s3597_s30 + $0x80] sm:$0xf] %vm2213_vm4, %v2211_v18 }
 0x209   : > { %2252 = vst [vmem:[%s3597_s30 + $0x84] sm:$0xf] %v2251_v0 }
 0x20a PF: > { %s13_s12 = sadd.s32 1, %s2714_s12  }
 0x20b   : > { %p10_p4 = scmp.ge.s32.totalorder %s13_s12, 4  }
 0x20d   :  { %12 = sbr.rel (!%p10_p4) target bundleno = 1 (0x1), region = 65 }

// kernel: discriminator_forward.7
= control target key start
LH: loop header
LB: loop body
LE: loop exit
PB: predicated region body
PF: predicated region fallthrough
CT: control target
= control target key end

     0   :  { %s1017_s12 = smov 0   ;;  %s1203_s0 = inlined_call_operand.vmem [shape: bf16[2,64,64], index: 0, kind: input, shape index: {}]   ;;  %s1204_s1 = inlined_call_operand.vmem [shape: bf16[4,64,32], index: 1, kind: input, shape index: {}]   ;;  %s1205_s2 = inlined_call_operand.vmem [shape: f32[55,1], index: 2, kind: input, shape index: {}]   ;;  %s1206_s3 = inlined_call_operand.vmem [shape: bf16[2,55,32], index: 3, kind: output, shape index: {}]  }
   0x1 LB: > { %s812_s13 = sadd.s32 4294967295, %s994_s12   ;;  %p816_p0 = scmp.ge.s32.totalorder %s994_s12, 1  ;;  %s994_s12 = sphi %s1017_s12, %s13_s12  }
   0x2   : > { %p137_p1 = scmp.lt.s32.totalorder %s994_s12, 3 }
   0x4   : > { %p138_p2 = pnand %p816_p0, %p137_p1 }
   0x5   : > { %p161_p3 = scmp.lt.s32.totalorder (!%p138_p2), %s812_s13, 1 }
   0x6   : > { %141 = sbr.rel (%p138_p2) target bundleno = 273 (0x111), region = 32 }
   0xb   : > { %v961_v0 = vld [vmem:[%s1204_s1 + $0x38] sm:$0xff]  ;;  %v960_v4 = vld [vmem:[%s1204_s1 + $0x30] sm:$0xff]  ;;  %s1208_s13 = smov (!%p161_p3, %s812_s13), 1  ;;  %v996_v8 = vmov 0   ;;  %v959_v9 = vld [vmem:[%s1204_s1 + $0x28] sm:$0xff]  ;;  %vm270_vm1 = vcmask 523264  }
   0xc   : > { %v957_v1 = vld [vmem:[%s1204_s1 + $0x18] sm:$0xff]  ;;  %287 = vmatpush.bf16.msra.mxu0 %v961_v0  ;;  %v956_v5 = vld [vmem:[%s1204_s1 + $0x10] sm:$0xff]  ;;  %s950_s30 = sshll.u32 %s1208_s13, 5  ;;  %983 = vset.pattern.permute.xlu0 %v996_v8  ;;  %v955_v10 = vld [vmem:[%s1204_s1 + $0x8] sm:$0xff]  ;;  %vm214_vm0 = vsmask.f32 7424 }
   0xd   : > { %v968_v2 = vld [vmem:[%s1204_s1 + $0x58] sm:$0xff]  ;;  %347 = vmatpush.bf16.msra.mxu1 %v957_v1  ;;  %v967_v6 = vld [vmem:[%s1204_s1 + $0x50] sm:$0xff]  ;;  %984 = vset.pattern.permute.xlu1 %v996_v8  ;;  %s1061_s10 = scalar_lea.vmem %s1203_s0, %s950_s30  ;;  %v583_v11 = vld [vmem:[%s1205_s2] sm:$0xff]  ;;  %vm632_vm2 = vcmask 261120   ;;  %vm644_vm3 = vcmask 260096   ;;  %vm744_vm7 = vcmask 257024  }
   0xe   : > { %v972_v3 = vld [vmem:[%s1204_s1 + $0x78] sm:$0xff]  ;;  %445 = vmatpush.bf16.msra.mxu2 %v968_v2  ;;  %v971_v7 = vld [vmem:[%s1204_s1 + $0x70] sm:$0xff]  ;;  %985 = vset.pattern.permute.xlu2 %v996_v8  ;;  %v951_v12 = vld [vmem:[%s1061_s10] sm:$0xff]  ;;  %s973_s14 = smul.u32 28, %s1208_s13  ;;  %vm752_vm8 = vsmask.f32 3328 }
   0xf   : > { %552 = vmatpush.bf16.msra.mxu3 %v972_v3  ;;  %v952_v13 = vld [vmem:[%s1061_s10 + $0x8] sm:$0xff]  ;;  %v216_v18 = vshrl.u32 %v951_v12, 16  ;;  %v218_v19 = vshll.u32 %v951_v12, 16  ;;  %592 = vperm.xlu0 %983, %v583_v11   ;;  %v958_v24 = vld [vmem:[%s1204_s1 + $0x20] sm:$0xff]  ;;  %v953_v37 = vld [vmem:[%s1061_s10 + $0x10] sm:$0xff] }
  0x10   : > { %288 = vmatpush.bf16.msra.mxu0 %v960_v4  ;;  %v962_v14 = vld [vmem:[%s1061_s10 + $0x4] sm:$0xff]  ;;  %v963_v17 = vld [vmem:[%s1061_s10 + $0xc] sm:$0xff]  ;;  %v223_v20 = vshll.u32 %v952_v13, 16  ;;  %v964_v39 = vld [vmem:[%s1061_s10 + $0x14] sm:$0xff]  ;;  %v227_v40 = vshrl.u32 %v952_v13, 16  ;;  %v231_v41 = vshll.u32 %v953_v37, 16  ;;  %s170_s17 = scalar_lea.vmem %s1206_s3, %s973_s14 }
  0x11   : > { %348 = vmatpush.bf16.msra.mxu1 %v956_v5  ;;  %v966_v15 = vld [vmem:[%s1204_s1 + $0x48] sm:$0xff]  ;;  %v487_v21 = vshll.u32 %v962_v14, 16  ;;  %v485_v22 = vshrl.u32 %v962_v14, 16  ;;  %v491_v23 = vshll.u32 %v963_v17, 16  ;;  %v954_v25 = vld [vmem:[%s1204_s1] sm:$0xff]  ;;  %v220_v26 = vrot.slane %v218_v19, 1 }
  0x12   : > { %446 = vmatpush.bf16.msra.mxu2 %v967_v6  ;;  %v970_v16 = vld [vmem:[%s1204_s1 + $0x68] sm:$0xff]  ;;  %v225_v27 = vrot.slane %v223_v20, 1  ;;  %v965_v29 = vld [vmem:[%s1204_s1 + $0x40] sm:$0xff]  ;;  %v585_v38 = vld [vmem:[%s1205_s2 + $0x10] sm:$0xff]  ;;  %v495_v42 = vshrl.u32 %v963_v17, 16  ;;  %v498_v43 = vshll.u32 %v964_v39, 16 }
  0x13   : > { %553 = vmatpush.bf16.msra.mxu3 %v971_v7  ;;  %v489_v28 = vrot.slane %v487_v21, 1  ;;  %v969_v30 = vld [vmem:[%s1204_s1 + $0x60] sm:$0xff]  ;;  %v493_v31 = vrot.slane %v491_v23, 1  ;;  %v221_v32 = vor.u32 %v220_v26, %v216_v18  ;;  %v584_v34 = vld [vmem:[%s1205_s2 + $0x8] sm:$0xff]  ;;  %602 = vperm.xlu1 %984, %v585_v38   ;;  %v586_v44 = vld [vmem:[%s1205_s2 + $0x18] sm:$0xff]  ;;  %v233_v46 = vrot.slane %v231_v41, 1 }
  0x14   : > { %289 = vmatpush.bf16.msra.mxu0 %v959_v9  ;;  %v229_v45 = vor.u32 %v227_v40, %v225_v27  ;;  %v500_v48 = vrot.slane %v498_v43, 1  ;;  %v178_v49 = vld [vmem:[%s1061_s10 + $0x18] sm:$0xff]   ;;  %v589_v55 = vld [vmem:[%s1205_s2 + $0x30] sm:$0x7f]  ;;  %v587_v56 = vld [vmem:[%s1205_s2 + $0x20] sm:$0xff]  ;;  %v235_v58 = vshrl.u32 %v953_v37, 16 }
  0x15   : > { %349 = vmatpush.bf16.msra.mxu1 %v955_v10  ;;  %v490_v33 = vor.u32 %v489_v28, %v485_v22  ;;  %v226_v35 = vsel %vm214_vm0, %v221_v32, %v225_v27  ;;  %v497_v47 = vor.u32 %v495_v42, %v493_v31  ;;  %v209_v51 = vunpack.c.l.b16 %v178_v49  ;;  %612 = vperm.xlu2 %985, %v587_v56   ;;  %v588_v62 = vld [vmem:[%s1205_s2 + $0x28] sm:$0xff] }
  0x16   : > { %447 = vmatpush.bf16.msra.mxu2 %v966_v15  ;;  %v234_v50 = vsel %vm214_vm0, %v229_v45, %v233_v46  ;;  %v400_v53 = vunpack.c.h.b16 %v178_v49  ;;  %v502_v60 = vshrl.u32 %v964_v39, 16  ;;  %v237_v63 = vor.u32 %v235_v58, %v233_v46 }
  0x17   : > { %554 = vmatpush.bf16.msra.mxu3 %v970_v16  ;;  %v494_v36 = vsel %vm214_vm0, %v490_v33, %v493_v31  ;;  %597 = vperm.xlu0 %983, %v584_v34   ;;  %v501_v52 = vsel %vm214_vm0, %v497_v47, %v500_v48  ;;  %v213_v54 = vpack.c.b16 %v209_v51, %v209_v51 }
  0x18   : > { %290 = vmatpush.bf16.msra.mxu0 %v958_v24  ;;  %v404_v57 = vpack.c.b16 %v400_v53, %v400_v53  ;;  %v504_v1 = vor.u32 %v502_v60, %v500_v48 }
  0x19   : > { %350 = vmatpush.bf16.msra.mxu1 %v954_v25  ;;  %v239_v59 = vshll.u32 %v213_v54, 16  ;;  %v243_v5 = vshrl.u32 %v213_v54, 16 }
  0x1a   : > { %448 = vmatpush.bf16.msra.mxu2 %v965_v29  ;;  %v505_v61 = vshll.u32 %v404_v57, 16  ;;  %v509_v6 = vshrl.u32 %v404_v57, 16 }
  0x1b   : > { %555 = vmatpush.bf16.msra.mxu3 %v969_v30  ;;  %856 = vmatmul.msk.bf16.vlgmr.msra.gmra.mxu0 %vm270_vm1, %v226_v35  ;;  %v241_v0 = vrot.slane %v239_v59, 1 }
  0x1c   : > { %876 = vmatmul.msk.bf16.vlgmr.msra.gmra.mxu1 %vm270_vm1, %v951_v12  ;;  %607 = vperm.xlu1 %984, %v586_v44   ;;  %v507_v2 = vrot.slane %v505_v61, 1 }
  0x1d   : > { %916 = vmatmul.msk.bf16.vlgmr.msra.gmra.mxu2 %vm270_vm1, %v962_v14  ;;  %617 = vperm.xlu2 %985, %v588_v62   ;;  %v242_v3 = vsel %vm214_vm0, %v237_v63, %v241_v0  ;;  %v245_v7 = vor.u32 %v243_v5, %v241_v0 }
  0x1e   : > { %944 = vmatmul.msk.bf16.vlgmr.msra.gmra.mxu3 %vm270_vm1, %v494_v36  ;;  %v508_v4 = vsel %vm214_vm0, %v504_v1, %v507_v2  ;;  %v511_v8 = vor.u32 %v509_v6, %v507_v2  ;;  %vm753_vm0 = vmand %vm744_vm7, %vm752_vm8 }
  0x1f   : > { %622 = vperm.xlu0 %983, %v589_v55  }
  0x2b   : > { %857 = vmatmul.msk.bf16.gmra.mxu0 %vm270_vm1, %v234_v50 }
  0x2c   : > { %877 = vmatmul.msk.bf16.gmra.mxu1 %vm270_vm1, %v952_v13 }
  0x2d   : > { %917 = vmatmul.msk.bf16.gmra.mxu2 %vm270_vm1, %v963_v17 }
  0x2e   : > { %945 = vmatmul.msk.bf16.gmra.mxu3 %vm270_vm1, %v501_v52 }
  0x3b   : > { %858 = vmatmul.msk.bf16.gmra.mxu0 %vm270_vm1, %v242_v3 }
  0x3c   : > { %878 = vmatmul.msk.bf16.gmra.mxu1 %vm270_vm1, %v953_v37 }
  0x3d   : > { %918 = vmatmul.msk.bf16.gmra.mxu2 %vm270_vm1, %v964_v39 }
  0x3e   : > { %946 = vmatmul.msk.bf16.gmra.mxu3 %vm270_vm1, %v508_v4 }
  0x4b   : > { %859 = vmatmul.msk.bf16.gmra.mxu0 %vm270_vm1, %v245_v7 }
  0x4c   : > { %879 = vmatmul.msk.bf16.gmra.mxu1 %vm270_vm1, %v213_v54 }
  0x4d   : > { %919 = vmatmul.msk.bf16.gmra.mxu2 %vm270_vm1, %v404_v57 }
  0x4e   : > { %947 = vmatmul.msk.bf16.gmra.mxu3 %vm270_vm1, %v511_v8 }
  0x6f   : > { %v613_v48 = vpop.permute.xlu2 %612 }
  0x81   : > { %v593_v23 = vpop.permute.xlu0 %592 }
  0x85   : > { %v603_v32 = vpop.permute.xlu1 %602 }
  0x89   : > { %v598_v44 = vpop.permute.xlu0 %597 }
  0x8e   : > { %v608_v53 = vpop.permute.xlu1 %607 }
  0x98   : > { %v292_v9 = vpop.f32.mrf.mxu0 }
  0x99   : > { %v352_v10 = vpop.f32.mrf.mxu1 }
  0x9a   : > { %v353_v28 = vadd.f32 %v352_v10, %v292_v9 }
  0xa0   : > { %v450_v11 = vpop.f32.mrf.mxu2  ;;  %v294_v13 = vpop.f32.mrf.mxu0 }
  0xa1   : > { %v557_v12 = vpop.f32.mrf.mxu3  ;;  %v354_v14 = vpop.f32.mrf.mxu1  ;;  %v469_v33 = vadd.f32 %v450_v11, %v353_v28 }
  0xa2   : > { %v355_v29 = vadd.f32 %v354_v14, %v294_v13 }
  0xa3   : > { %v1133_v43 = vadd.f32 %v557_v12, %v469_v33 }
  0xa5   : > { %v653_v50 = vmul.f32 %v1133_v43, %v1133_v43  ;;  %v625_v56 = vmul.f32 %v593_v23, %v1133_v43 }
  0xa7   : > { %v660_v1 = vmul.f32 %v653_v50, %v593_v23  ;;  %v633_v7 = vsel %vm632_vm2, %v625_v56, 0.0 }
  0xa8   : > { %v452_v15 = vpop.f32.mrf.mxu2  ;;  %v297_v17 = vpop.f32.mrf.mxu0 }
  0xa9   : > { %v559_v16 = vpop.f32.mrf.mxu3  ;;  %v357_v18 = vpop.f32.mrf.mxu1  ;;  %v470_v31 = vadd.f32 %v452_v15, %v355_v29  ;;  %v667_v14 = vsel %vm632_vm2, %v660_v1, 0.0 }
  0xaa   : > { %v358_v30 = vadd.f32 %v357_v18, %v297_v17 }
  0xab   : > { %v1131_v37 = vadd.f32 %v559_v16, %v470_v31  ;;  %v618_v16 = vpop.permute.xlu2 %617 }
  0xad   : > { %v654_v47 = vmul.f32 %v1131_v37, %v1131_v37  ;;  %v626_v51 = vmul.f32 %v598_v44, %v1131_v37 }
  0xaf   : > { %v661_v57 = vmul.f32 %v654_v47, %v598_v44  ;;  %v634_v2 = vsel %vm632_vm2, %v626_v51, 0.0 }
  0xb0   : > { %v455_v19 = vpop.f32.mrf.mxu2  ;;  %v299_v21 = vpop.f32.mrf.mxu0  ;;  %v635_v15 = vadd.f32 %v634_v2, %v633_v7 }
  0xb1   : > { %v562_v20 = vpop.f32.mrf.mxu3  ;;  %v359_v22 = vpop.f32.mrf.mxu1  ;;  %v471_v34 = vadd.f32 %v455_v19, %v358_v30  ;;  %v668_v8 = vsel %vm632_vm2, %v661_v57, 0.0 }
  0xb2   : > { %v360_v35 = vadd.f32 %v359_v22, %v299_v21  ;;  %v669_v21 = vadd.f32 %v668_v8, %v667_v14 }
  0xb3   : > { %v1135_v45 = vadd.f32 %v562_v20, %v471_v34 }
  0xb5   : > { %v655_v52 = vmul.f32 %v1135_v45, %v1135_v45  ;;  %v627_v58 = vmul.f32 %v603_v32, %v1135_v45 }
  0xb7   : > { %v662_v3 = vmul.f32 %v655_v52, %v603_v32  ;;  %v636_v9 = vsel %vm632_vm2, %v627_v58, 0.0 }
  0xb8   : > { %v457_v24 = vpop.f32.mrf.mxu2  ;;  %v302_v26 = vpop.f32.mrf.mxu0  ;;  %v637_v22 = vadd.f32 %v636_v9, %v635_v15 }
  0xb9   : > { %v564_v25 = vpop.f32.mrf.mxu3  ;;  %v362_v27 = vpop.f32.mrf.mxu1  ;;  %v472_v40 = vadd.f32 %v457_v24, %v360_v35  ;;  %v670_v17 = vsel %vm632_vm2, %v662_v3, 0.0 }
  0xba   : > { %v363_v36 = vadd.f32 %v362_v27, %v302_v26  ;;  %v671_v31 = vadd.f32 %v670_v17, %v669_v21 }
  0xbb   : > { %v1139_v49 = vadd.f32 %v564_v25, %v472_v40 }
  0xbd   : > { %v656_v61 = vmul.f32 %v1139_v49, %v1139_v49  ;;  %v628_v4 = vmul.f32 %v608_v53, %v1139_v49 }
  0xbf   : > { %v663_v10 = vmul.f32 %v656_v61, %v608_v53  ;;  %v638_v18 = vsel %vm632_vm2, %v628_v4, 0.0 }
  0xc0   : > { %v460_v38 = vpop.f32.mrf.mxu2  ;;  %v304_v41 = vpop.f32.mrf.mxu0  ;;  %v639_v32 = vadd.f32 %v638_v18, %v637_v22 }
  0xc1   : > { %v567_v39 = vpop.f32.mrf.mxu3  ;;  %v364_v42 = vpop.f32.mrf.mxu1  ;;  %v473_v46 = vadd.f32 %v460_v38, %v363_v36  ;;  %v672_v25 = vsel %vm632_vm2, %v663_v10, 0.0 }
  0xc2   : > { %v365_v55 = vadd.f32 %v364_v42, %v304_v41  ;;  %v673_v36 = vadd.f32 %v672_v25, %v671_v31 }
  0xc3   : > { %v1146_v54 = vadd.f32 %v567_v39, %v473_v46  ;;  %v623_v39 = vpop.permute.xlu0 %622 }
  0xc5   : > { %v657_v5 = vmul.f32 %v1146_v54, %v1146_v54  ;;  %v629_v11 = vmul.f32 %v613_v48, %v1146_v54 }
  0xc7   : > { %v664_v19 = vmul.f32 %v657_v5, %v613_v48  ;;  %v640_v26 = vsel %vm632_vm2, %v629_v11, 0.0 }
  0xc8   : > { %v462_v59 = vpop.f32.mrf.mxu2  ;;  %v307_v63 = vpop.f32.mrf.mxu0  ;;  %v641_v38 = vadd.f32 %v640_v26, %v639_v32 }
  0xc9   : > { %v569_v60 = vpop.f32.mrf.mxu3  ;;  %v474_v62 = vadd.f32 %v462_v59, %v365_v55  ;;  %v367_v0 = vpop.f32.mrf.mxu1  ;;  %v674_v33 = vsel %vm632_vm2, %v664_v19, 0.0 }
  0xca   : > { %v368_v13 = vadd.f32 %v367_v0, %v307_v63  ;;  %v675_v44 = vadd.f32 %v674_v33, %v673_v36 }
  0xcb   : > { %v1156_v6 = vadd.f32 %v569_v60, %v474_v62 }
  0xcd   : > { %v658_v12 = vmul.f32 %v1156_v6, %v1156_v6  ;;  %v630_v20 = vmul.f32 %v618_v16, %v1156_v6 }
  0xcf   : > { %v665_v27 = vmul.f32 %v658_v12, %v618_v16  ;;  %v642_v34 = vsel %vm632_vm2, %v630_v20, 0.0 }
  0xd0   : > { %v465_v23 = vpop.f32.mrf.mxu2  ;;  %v309_v29 = vpop.f32.mrf.mxu0  ;;  %v643_v46 = vadd.f32 %v642_v34, %v641_v38 }
  0xd1   : > { %v572_v24 = vpop.f32.mrf.mxu3  ;;  %v475_v28 = vadd.f32 %v465_v23, %v368_v13  ;;  %v369_v30 = vpop.f32.mrf.mxu1  ;;  %v676_v40 = vsel %vm632_vm2, %v665_v27, 0.0 }
  0xd2   : > { %v677_v50 = vadd.f32 %v676_v40, %v675_v44 }
  0xd3   : > { %v1172_v35 = vadd.f32 %v572_v24, %v475_v28 }
  0xd5   : > { %v631_v41 = vmul.f32 %v623_v39, %v1172_v35  ;;  %v659_v42 = vmul.f32 %v1172_v35, %v1172_v35 }
  0xd7   : > { %v645_v47 = vsel %vm644_vm3, %v631_v41, 0.0  ;;  %v666_v48 = vmul.f32 %v659_v42, %v623_v39 }
  0xd8   : > { %v646_v51 = vadd.f32 %v645_v47, %v643_v46  ;;  %v467_v52 = vpop.f32.mrf.mxu2 }
  0xd9   : > { %v574_v53 = vpop.f32.mrf.mxu3  ;;  %v678_v55 = vsel %vm644_vm3, %v666_v48, 0.0 }
  0xda   : > { %v647_v56 = vrot.slane %v646_v51, 4  ;;  %v679_v57 = vadd.f32 %v678_v55, %v677_v50  ;;  %v754_v50 = vld [vmem:[%s170_s17 + $0x18] sm:$0xf] }
  0xdc   : > { %v648_v58 = vadd.f32 %v647_v56, %v646_v51  ;;  %v680_v59 = vrot.slane %v679_v57, 4 }
  0xde   : > { %v649_v60 = vrot.slane %v648_v58, 2  ;;  %v681_v61 = vadd.f32 %v680_v59, %v679_v57 }
  0xe0   : > { %v650_v62 = vadd.f32 %v649_v60, %v648_v58  ;;  %v682_v63 = vrot.slane %v681_v61, 2 }
  0xe2   : > { %v651_v0 = vrot.slane %v650_v62, 1  ;;  %v683_v1 = vadd.f32 %v682_v63, %v681_v61 }
  0xe4   : > { %v652_v2 = vadd.f32 %v651_v0, %v650_v62  ;;  %v684_v3 = vrot.slane %v683_v1, 1 }
  0xe6   : > { %v685_v4 = vadd.f32 %v684_v3, %v683_v1  ;;  %v686_v5 = vmul.f32 0.020408163, %v652_v2 }
  0xe8   : > { %v687_v7 = vmul.f32 0.020408163, %v685_v4  ;;  %v688_v8 = vmul.f32 %v686_v5, %v686_v5  ;;  %v691_v17 = vsub.f32 %v1133_v43, %v686_v5  ;;  %v692_v19 = vsub.f32 %v1131_v37, %v686_v5 }
  0xe9   : > { %v693_v20 = vsub.f32 %v1135_v45, %v686_v5  ;;  %v694_v21 = vsub.f32 %v1139_v49, %v686_v5  ;;  %v695_v22 = vsub.f32 %v1146_v54, %v686_v5  ;;  %v696_v23 = vsub.f32 %v1156_v6, %v686_v5 }
  0xea   : > { %v689_v9 = vsub.f32 %v687_v7, %v688_v8  ;;  %v697_v24 = vsub.f32 %v1172_v35, %v686_v5 }
  0xec   : > { %v690_v10 = vmax.f32 %v689_v9, 0.0 }
  0xee   : > { %v698_v11 = vadd.f32 1e-05, %v690_v10 }
  0xf0   : > { %986 = vrsqrt.f32 %v698_v11  ;;  %vm705_vm5 = vweird.f32 %v698_v11 }
  0xf6   : > { %v987_v12 = vpop.eup %986 }
  0xf7   : > { %v700_v13 = vmul.f32 %v987_v12, %v698_v11  ;;  %vm706_vm4 = vweird.f32 %v987_v12 }
  0xf8   : > { %vm707_vm6 = vmor %vm705_vm5, %vm706_vm4 }
  0xf9   : > { %v701_v14 = vmul.f32 %v987_v12, %v700_v13 }
  0xfb   : > { %v702_v15 = vmul.f32 0.5, %v701_v14 }
  0xfd   : > { %v703_v16 = vsub.f32 1.5, %v702_v15 }
  0xff   : > { %v704_v18 = vmul.f32 %v987_v12, %v703_v16 }
 0x101   : > { %v708_v25 = vsel %vm707_vm6, %v987_v12, %v704_v18 }
 0x102   : > { %v709_v26 = vmul.f32 %v708_v25, %v691_v17  ;;  %v710_v43 = vmul.f32 %v708_v25, %v692_v19  ;;  %v711_v27 = vmul.f32 %v708_v25, %v693_v20  ;;  %v712_v28 = vmul.f32 %v708_v25, %v694_v21 }
 0x103   : > { %v713_v29 = vmul.f32 %v708_v25, %v695_v22  ;;  %v714_v37 = vmul.f32 %v708_v25, %v696_v23  ;;  %v715_v30 = vmul.f32 %v708_v25, %v697_v24 }
 0x104   : > { %vm716_vm9 = vcmp.gt.f32.partialorder %v709_v26, 0.0  ;;  %vm717_vm10 = vcmp.gt.f32.partialorder %v710_v43, 0.0  ;;  %vm718_vm11 = vcmp.gt.f32.partialorder %v711_v27, 0.0  ;;  %vm719_vm12 = vcmp.gt.f32.partialorder %v712_v28, 0.0 }
 0x105   : > { %vm720_vm13 = vcmp.gt.f32.partialorder %v713_v29, 0.0  ;;  %vm721_vm14 = vcmp.gt.f32.partialorder %v714_v37, 0.0  ;;  %vm722_vm15 = vcmp.gt.f32.partialorder %v715_v30, 0.0  ;;  %v723_v45 = vmul.f32 0.2, %v709_v26 }
 0x106   : > { %v724_v49 = vmul.f32 0.2, %v710_v43  ;;  %v725_v54 = vmul.f32 0.2, %v711_v27  ;;  %v726_v6 = vmul.f32 0.2, %v712_v28 }
 0x107   : > { %v727_v31 = vmul.f32 0.2, %v713_v29  ;;  %v728_v32 = vmul.f32 0.2, %v714_v37  ;;  %v729_v33 = vmul.f32 0.2, %v715_v30  ;;  %v730_v34 = vsel %vm716_vm9, %v709_v26, %v723_v45 }
 0x108   : > { %v731_v35 = vsel %vm717_vm10, %v710_v43, %v724_v49  ;;  %v732_v36 = vsel %vm718_vm11, %v711_v27, %v725_v54  ;;  %v733_v38 = vsel %vm719_vm12, %v712_v28, %v726_v6  ;;  %v737_v39 = vpack.c.bf16 %v730_v34, %v730_v34 }
 0x109   : > { %v734_v40 = vsel %vm720_vm13, %v713_v29, %v727_v31  ;;  %v735_v41 = vsel %vm721_vm14, %v714_v37, %v728_v32  ;;  %v736_v42 = vsel %vm722_vm15, %v715_v30, %v729_v33  ;;  %v738_v44 = vpack.c.bf16 %v731_v35, %v731_v35 }
 0x10a   : > { %v739_v46 = vpack.c.bf16 %v732_v36, %v732_v36  ;;  %v740_v47 = vpack.c.bf16 %v733_v38, %v733_v38  ;;  %v741_v48 = vpack.c.bf16 %v734_v40, %v734_v40  ;;  %745 = vst.msk [vmem:[%s170_s17] sm:$0xf] %vm744_vm7, %v737_v39  ;;  %v742_v51 = vpack.c.bf16 %v735_v41, %v735_v41 }
 0x10b   : > { %v743_v52 = vpack.c.bf16 %v736_v42, %v736_v42  ;;  %746 = vst.msk [vmem:[%s170_s17 + $0x4] sm:$0xf] %vm744_vm7, %v738_v44 }
 0x10c   : > { %747 = vst.msk [vmem:[%s170_s17 + $0x8] sm:$0xf] %vm744_vm7, %v739_v46 }
 0x10d   : > { %748 = vst.msk [vmem:[%s170_s17 + $0xc] sm:$0xf] %vm744_vm7, %v740_v47  ;;  %v755_v53 = vsel %vm753_vm0, %v743_v52, %v754_v50 }
 0x10e   : > { %749 = vst.msk [vmem:[%s170_s17 + $0x10] sm:$0xf] %vm744_vm7, %v741_v48 }
 0x10f   : > { %750 = vst.msk [vmem:[%s170_s17 + $0x14] sm:$0xf] %vm744_vm7, %v742_v51 }
 0x110   : > { %756 = vst [vmem:[%s170_s17 + $0x18] sm:$0xf] %v755_v53 }
 0x111 PF: > { %s13_s12 = sadd.s32 1, %s994_s12  }
 0x112   : > { %p10_p4 = scmp.ge.s32.totalorder %s13_s12, 4  }
 0x114   :  { %12 = sbr.rel (!%p10_p4) target bundleno = 1 (0x1), region = 65 }

// kernel: discriminator_forward.8
= control target key start
LH: loop header
LB: loop body
LE: loop exit
PB: predicated region body
PF: predicated region fallthrough
CT: control target
= control target key end

     0   :  { %s1638_s12 = smov 0   ;;  %s1893_s0 = inlined_call_operand.vmem [shape: bf16[2,55,32], index: 0, kind: input, shape index: {}]   ;;  %s1894_s1 = inlined_call_operand.vmem [shape: bf16[16,32,64], index: 1, kind: input, shape index: {}]   ;;  %s1895_s2 = inlined_call_operand.vmem [shape: f32[28,1], index: 2, kind: input, shape index: {}]   ;;  %s1896_s3 = inlined_call_operand.vmem [shape: bf16[2,28,64], index: 3, kind: output, shape index: {}]  }
   0x1 LB: > { %s1307_s13 = sadd.s32 4294967295, %s1615_s12   ;;  %p1311_p0 = scmp.ge.s32.totalorder %s1615_s12, 1  ;;  %s1615_s12 = sphi %s1638_s12, %s13_s12  }
   0x2   : > { %p137_p1 = scmp.lt.s32.totalorder %s1615_s12, 3 }
   0x4   : > { %p138_p2 = pnand %p1311_p0, %p137_p1 }
   0x5   : > { %p161_p3 = scmp.lt.s32.totalorder (!%p138_p2), %s1307_s13, 1 }
   0x6   : > { %141 = sbr.rel (%p138_p2) target bundleno = 339 (0x153), region = 32 }
   0xb   : > { %v1539_v0 = vld [vmem:[%s1894_s1 + $0x8] sm:$0xff]  ;;  %v1541_v2 = vld [vmem:[%s1894_s1 + $0x18] sm:$0xff]  ;;  %v1538_v4 = vld [vmem:[%s1894_s1] sm:$0xff]  ;;  %s1898_s13 = smov (!%p161_p3, %s1307_s13), 1  ;;  %vm224_vm0 = vcmask 261120   ;;  %vm298_vm1 = vcmask 1046528  }
   0xc   : > { %v1543_v1 = vld [vmem:[%s1894_s1 + $0x28] sm:$0xff]  ;;  %v1545_v3 = vld [vmem:[%s1894_s1 + $0x38] sm:$0xff]  ;;  %276 = vmatpush.bf16.msra.mxu1 %v1539_v0  ;;  %v1542_v5 = vld [vmem:[%s1894_s1 + $0x20] sm:$0xff]  ;;  %237 = vmatpush.bf16.msra.mxu0 %v1541_v2  ;;  %s1595_s30 = smul.u32 28, %s1898_s13  ;;  %vm196_vm2 = vsmask.f32 7424 }
   0xd   : > { %326 = vmatpush.bf16.msra.mxu2 %v1543_v1  ;;  %394 = vmatpush.bf16.msra.mxu3 %v1545_v3  ;;  %v1540_v6 = vld [vmem:[%s1894_s1 + $0x10] sm:$0xff]  ;;  %v1551_v8 = vld [vmem:[%s1894_s1 + $0x68] sm:$0xff]  ;;  %v1553_v10 = vld [vmem:[%s1894_s1 + $0x78] sm:$0xff]  ;;  %vm352_vm3 = vsmask.f32 6400  ;;  %vm1171_vm4 = vcmask 523264  }
   0xe   : > { %v1544_v7 = vld [vmem:[%s1894_s1 + $0x30] sm:$0xff]  ;;  %v1547_v9 = vld [vmem:[%s1894_s1 + $0x48] sm:$0xff]  ;;  %s1685_s14 = scalar_lea.vmem %s1893_s0, %s1595_s30  ;;  %v1549_v11 = vld [vmem:[%s1894_s1 + $0x58] sm:$0xff]  ;;  %vm1177_vm5 = vcmask 519168   ;;  %vm1250_vm13 = vcmask 517120  }
   0xf   : > { %v1550_v12 = vld [vmem:[%s1894_s1 + $0x60] sm:$0xff]  ;;  %v174_v16 = vld [vmem:[%s1685_s14 + $0x8] sm:$0xff]   ;;  %v1552_v24 = vld [vmem:[%s1894_s1 + $0x70] sm:$0xff] }
  0x10   : > { %277 = vmatpush.bf16.msra.mxu1 %v1538_v4  ;;  %v1546_v13 = vld [vmem:[%s1894_s1 + $0x40] sm:$0xff]  ;;  %238 = vmatpush.bf16.msra.mxu0 %v1540_v6  ;;  %v180_v19 = vld [vmem:[%s1685_s14 + $0xc] sm:$0x7]  ;;  %v192_v20 = vunpack.c.l.b16 %v174_v16  ;;  %v1548_v26 = vld [vmem:[%s1894_s1 + $0x50] sm:$0xff]  ;;  %v362_v32 = vshrl.u32 %v174_v16, 16  ;;  %v365_v33 = vshll.u32 %v174_v16, 16 }
  0x11   : > { %327 = vmatpush.bf16.msra.mxu2 %v1542_v5  ;;  %v1571_v14 = vld [vmem:[%s1685_s14] sm:$0xff]   ;;  %395 = vmatpush.bf16.msra.mxu3 %v1544_v7  ;;  %v193_v22 = vunpack.c.l.b16 %v180_v19  ;;  %v175_v40 = vld [vmem:[%s1685_s14 + $0xc] sm:$0x3]  ;;  %v471_v52 = vld [vmem:[%s1685_s14 + $0x10] sm:$0x7] }
  0x12   : > { %v1586_v15 = vld [vmem:[%s1685_s14] sm:$0xf0]  ;;  %v198_v17 = vshrl.u32 %v1571_v14, 16  ;;  %v200_v18 = vshll.u32 %v1571_v14, 16  ;;  %v1587_v21 = vld [vmem:[%s1685_s14] sm:$0xe]  ;;  %v251_v48 = vunpack.c.l.b16 %v175_v40  ;;  %v478_v60 = vunpack.c.l.b16 %v471_v52 }
  0x13   : > { %1337 = vmatmul.msk.bf16.vlgmr.msra.gmra.mxu1 %vm224_vm0, %v1571_v14  ;;  %v1588_v23 = vor.u32 %v1587_v21, %v1586_v15  ;;  %v195_v27 = vpack.c.b16 %v193_v22, %v192_v20  ;;  %v364_v38 = vrot.slane %v362_v32, 1  ;;  %v367_v39 = vrot.slane %v365_v33, 2  ;;  %v411_v44 = vld [vmem:[%s1685_s14 + $0x4] sm:$0xf]  ;;  %v1712_v45 = vld [vmem:[%s1685_s14 + $0x8] sm:$0xff]   ;;  %v1561_v55 = vld [vmem:[%s1894_s1 + $0xb8] sm:$0xff] }
  0x14   : > { %454 = vmatpush.bf16.msrb.mxu0 %v1547_v9  ;;  %v202_v25 = vrot.slane %v200_v18, 1  ;;  %518 = vmatpush.bf16.msrb.mxu1 %v1549_v11  ;;  %v1576_v50 = vunpack.c.l.b16 %v1712_v45  ;;  %v424_v51 = vunpack.c.l.b16 %v411_v44  ;;  %v1559_v53 = vld [vmem:[%s1894_s1 + $0xa8] sm:$0xff]  ;;  %v1557_v56 = vld [vmem:[%s1894_s1 + $0x98] sm:$0xff]  ;;  %v252_v57 = vpack.c.b16 %v251_v48, %v192_v20  ;;  %v535_v61 = vld [vmem:[%s1685_s14 + $0x4] sm:$0xe] }
  0x15   : > { %571 = vmatpush.bf16.msrb.mxu2 %v1551_v8  ;;  %638 = vmatpush.bf16.msrb.mxu3 %v1553_v10  ;;  %v299_v28 = vrot.slane %v1588_v23, 1  ;;  %v354_v29 = vshrl.u32 %v1588_v23, 16  ;;  %v357_v30 = vshll.u32 %v1588_v23, 16  ;;  %v300_v34 = vrot.slane %v195_v27, 1  ;;  %v1555_v54 = vld [vmem:[%s1894_s1 + $0x88] sm:$0xff]  ;;  %v1739_v62 = vld [vmem:[%s1685_s14 + $0x10] sm:$0xff]  }
  0x16   : > { %v203_v31 = vor.u32 %v202_v25, %v198_v17  ;;  %v205_v35 = vshll.u32 %v195_v27, 16  ;;  %v368_v46 = vor.u32 %v367_v39, %v364_v38  ;;  %v1734_v58 = vunpack.c.h.b16 %v1712_v45  ;;  %v1560_v14 = vld [vmem:[%s1894_s1 + $0xb0] sm:$0xff]  ;;  %v1592_v48 = vld [vmem:[%s1685_s14 + $0x8] sm:$0xe] }
  0x17   : > { %v356_v36 = vrot.slane %v354_v29, 1  ;;  %v359_v37 = vrot.slane %v357_v30, 2  ;;  %v301_v41 = vsel %vm298_vm1, %v299_v28, %v300_v34  ;;  %v428_v59 = vpack.c.b16 %v1576_v50, %v424_v51  ;;  %v1556_v15 = vld [vmem:[%s1894_s1 + $0x90] sm:$0xff] }
  0x18   : > { %455 = vmatpush.bf16.msrb.mxu0 %v1546_v13  ;;  %519 = vmatpush.bf16.msrb.mxu1 %v1548_v26  ;;  %v207_v42 = vrot.slane %v205_v35, 1  ;;  %v209_v63 = vshrl.u32 %v195_v27, 16  ;;  %v1742_v0 = vpack.c.b16 %v478_v60, %v1734_v58  ;;  %v542_v2 = vunpack.c.l.b16 %v535_v61  ;;  %v1554_v13 = vld [vmem:[%s1894_s1 + $0x80] sm:$0xff]  ;;  %v1771_v32 = vld [vmem:[%s1685_s14 + $0xc] sm:$0xff]   ;;  %v715_v33 = vld [vmem:[%s1685_s14 + $0x14] sm:$0x7] }
  0x19   : > { %572 = vmatpush.bf16.msrb.mxu2 %v1550_v12  ;;  %639 = vmatpush.bf16.msrb.mxu3 %v1552_v24  ;;  %v360_v43 = vor.u32 %v359_v37, %v356_v36  ;;  %v482_v1 = vshll.u32 %v428_v59, 16  ;;  %v595_v3 = vunpack.c.l.b16 %v1739_v62  ;;  %v480_v5 = vshrl.u32 %v428_v59, 16  ;;  %v1558_v12 = vld [vmem:[%s1894_s1 + $0xa0] sm:$0xff]  ;;  %v1563_v35 = vld [vmem:[%s1894_s1 + $0xc8] sm:$0xff]  ;;  %v1569_v36 = vld [vmem:[%s1894_s1 + $0xf8] sm:$0xff] }
  0x1a   : > { %1351 = vmatmul.msk.bf16.vlgmr.msra.gmra.mxu2 %vm224_vm0, %v301_v41  ;;  %v208_v47 = vsel %vm196_vm2, %v203_v31, %v207_v42  ;;  %v211_v4 = vor.u32 %v209_v63, %v207_v42  ;;  %v487_v7 = vshll.u32 %v1742_v0, 16  ;;  %v543_v8 = vpack.c.b16 %v1576_v50, %v542_v2  ;;  %v1565_v37 = vld [vmem:[%s1894_s1 + $0xd8] sm:$0xff]  ;;  %v414_v41 = vld [vmem:[%s1685_s14 + $0x10] sm:$0x3] }
  0x1b   : > { %1327 = vmatmul.msk.bf16.vlgmr.msra.gmra.mxu0 %vm224_vm0, %v208_v47  ;;  %v369_v49 = vsel %vm352_vm3, %v360_v43, %v368_v46  ;;  %v484_v6 = vrot.slane %v482_v1, 1  ;;  %v596_v9 = vpack.c.b16 %v595_v3, %v1734_v58  ;;  %v545_v26 = vrot.slane %v1742_v0, 1  ;;  %v1591_v47 = vld [vmem:[%s1685_s14 + $0x8] sm:$0xf0]  ;;  %v1564_v60 = vld [vmem:[%s1894_s1 + $0xd0] sm:$0xff] }
  0x1c   : > { %1365 = vmatmul.msk.bf16.vlgmr.msra.gmra.mxu3 %vm224_vm0, %v369_v49  ;;  %698 = vmatpush.bf16.msra.mxu0 %v1555_v54  ;;  %v489_v11 = vrot.slane %v487_v7, 1  ;;  %v598_v16 = vshrl.u32 %v543_v8, 16  ;;  %v601_v17 = vshll.u32 %v543_v8, 16  ;;  %v544_v25 = vrot.slane %v543_v8, 1 }
  0x1d   : > { %815 = vmatpush.bf16.msra.mxu2 %v1559_v53  ;;  %882 = vmatpush.bf16.msra.mxu3 %v1561_v55  ;;  %v485_v10 = vor.u32 %v484_v6, %v480_v5  ;;  %v606_v18 = vshrl.u32 %v596_v9, 16  ;;  %v609_v19 = vshll.u32 %v596_v9, 16  ;;  %v491_v31 = vshrl.u32 %v1742_v0, 16 }
  0x1e   : > { %762 = vmatpush.bf16.msra.mxu1 %v1557_v56  ;;  %v600_v21 = vrot.slane %v598_v16, 1  ;;  %v603_v22 = vrot.slane %v601_v17, 2  ;;  %v546_v29 = vsel %vm298_vm1, %v544_v25, %v545_v26  ;;  %v1788_v39 = vunpack.c.h.b16 %v1771_v32  ;;  %v959_v16 = vld [vmem:[%s1685_s14 + $0x18] sm:$0x7] }
  0x1f   : > { %v490_v20 = vsel %vm196_vm2, %v485_v10, %v489_v11  ;;  %v608_v23 = vrot.slane %v606_v18, 1  ;;  %v611_v24 = vrot.slane %v609_v19, 2  ;;  %v493_v38 = vor.u32 %v491_v31, %v489_v11  ;;  %v1594_v11 = vld [vmem:[%s1685_s14 + $0x10] sm:$0xff]  }
  0x20   : > { %699 = vmatpush.bf16.msra.mxu0 %v1554_v13  ;;  %v604_v27 = vor.u32 %v603_v22, %v600_v21  ;;  %v722_v40 = vunpack.c.l.b16 %v715_v33  ;;  %v427_v42 = vunpack.c.l.b16 %v414_v41  ;;  %v726_v44 = vshll.u32 %v1712_v45, 16  ;;  %v658_v21 = vld [vmem:[%s1685_s14 + $0x14] sm:$0x3]  ;;  %v1023_v22 = vld [vmem:[%s1685_s14 + $0xc] sm:$0xe] }
  0x21   : > { %816 = vmatpush.bf16.msra.mxu2 %v1558_v12  ;;  %883 = vmatpush.bf16.msra.mxu3 %v1560_v14  ;;  %v612_v28 = vor.u32 %v611_v24, %v608_v23  ;;  %v724_v50 = vshrl.u32 %v1712_v45, 16  ;;  %v1593_v53 = vor.u32 %v1592_v48, %v1591_v47  ;;  %v1584_v14 = vunpack.c.l.b16 %v1594_v11  ;;  %v1076_v23 = vld [vmem:[%s1685_s14 + $0x18] sm:$0xf] }
  0x22   : > { %763 = vmatpush.bf16.msra.mxu1 %v1556_v15  ;;  %v1793_v43 = vpack.c.b16 %v722_v40, %v1788_v39  ;;  %v429_v49 = vpack.c.b16 %v427_v42, %v1734_v58  ;;  %v728_v51 = vrot.slane %v726_v44, 1  ;;  %v1562_v58 = vld [vmem:[%s1894_s1 + $0xc0] sm:$0xff]  ;;  %v912_v15 = vunpack.c.l.b16 %v1771_v32 }
  0x23   : > { %1338 = vmatmul.msk.bf16.gmra.mxu1 %vm224_vm0, %v252_v57  ;;  %v613_v30 = vsel %vm352_vm3, %v604_v27, %v612_v28  ;;  %v1566_v57 = vld [vmem:[%s1894_s1 + $0xe0] sm:$0xff]  ;;  %v842_v61 = vshrl.u32 %v1593_v53, 16  ;;  %v788_v6 = vrot.slane %v1593_v53, 1  ;;  %v1585_v18 = vunpack.c.h.b16 %v1594_v11 }
  0x24   : > { %v731_v52 = vshll.u32 %v1793_v43, 16  ;;  %v729_v55 = vor.u32 %v728_v51, %v724_v50  ;;  %v789_v7 = vrot.slane %v1793_v43, 1  ;;  %v735_v13 = vshrl.u32 %v1793_v43, 16  ;;  %v1145_v43 = vld [vmem:[%s1895_s2 + $0x10] sm:$0xff]  ;;  %v1144_v51 = vld [vmem:[%s1895_s2 + $0x8] sm:$0xff] }
  0x25   : > { %v844_v2 = vrot.slane %v842_v61, 1  ;;  %v916_v19 = vpack.c.b16 %v1584_v14, %v912_v15  ;;  %v671_v24 = vunpack.c.l.b16 %v658_v21  ;;  %v1030_v27 = vunpack.c.l.b16 %v1023_v22 }
  0x26   : > { %v733_v56 = vrot.slane %v731_v52, 1  ;;  %v790_v10 = vsel %vm298_vm1, %v788_v6, %v789_v7  ;;  %v1617_v41 = vmov 0  }
  0x27   : > { %v1031_v32 = vpack.c.b16 %v1584_v14, %v1030_v27  ;;  %1605 = vset.pattern.permute.xlu0 %v1617_v41  ;;  %1606 = vset.pattern.permute.xlu1 %v1617_v41 }
  0x28   : > { %v734_v1 = vsel %vm196_vm2, %v729_v55, %v733_v56  ;;  %v737_v17 = vor.u32 %v735_v13, %v733_v56  ;;  %1159 = vperm.xlu1 %1606, %v1145_v43  }
  0x2a   : > { %1352 = vmatmul.msk.bf16.gmra.mxu2 %vm224_vm0, %v300_v34  ;;  %v1567_v34 = vld [vmem:[%s1894_s1 + $0xe8] sm:$0xff] }
  0x2b   : > { %1328 = vmatmul.msk.bf16.gmra.mxu0 %vm224_vm0, %v211_v4 }
  0x2c   : > { %1366 = vmatmul.msk.bf16.gmra.mxu3 %vm224_vm0, %v368_v46  ;;  %v839_v46 = vunpack.c.h.b16 %v1739_v62  ;;  %v845_v62 = vshll.u32 %v1593_v53, 16 }
  0x2e   : > { %v840_v54 = vpack.c.b16 %v839_v46, %v1788_v39  ;;  %v847_v3 = vrot.slane %v845_v62, 2 }
  0x30   : > { %v850_v63 = vshrl.u32 %v840_v54, 16  ;;  %v853_v0 = vshll.u32 %v840_v54, 16  ;;  %v848_v8 = vor.u32 %v847_v3, %v844_v2 }
  0x32   : > { %v852_v4 = vrot.slane %v850_v63, 1  ;;  %v855_v5 = vrot.slane %v853_v0, 2 }
  0x33   : > { %1393 = vmatmul.msk.bf16.vlgmr.msrb.gmra.mxu1 %vm224_vm0, %v490_v20  ;;  %v966_v20 = vunpack.c.l.b16 %v959_v16 }
  0x34   : > { %1006 = vmatpush.bf16.msrb.mxu1 %v1565_v37  ;;  %v856_v9 = vor.u32 %v855_v5, %v852_v4  ;;  %v1086_v37 = vshrl.u32 %v1031_v32, 16 }
  0x35   : > { %v967_v25 = vpack.c.b16 %v966_v20, %v1585_v18 }
  0x36   : > { %v857_v12 = vsel %vm352_vm3, %v848_v8, %v856_v9  ;;  %v1088_v44 = vrot.slane %v1086_v37, 1 }
  0x37   : > { %v975_v31 = vshll.u32 %v967_v25, 16  ;;  %v1033_v50 = vrot.slane %v967_v25, 1  ;;  %v979_v56 = vshrl.u32 %v967_v25, 16 }
  0x38   : > { %1007 = vmatpush.bf16.msrb.mxu1 %v1564_v60 }
  0x3a   : > { %1407 = vmatmul.msk.bf16.vlgmr.msrb.gmra.mxu2 %vm224_vm0, %v546_v29  ;;  %v968_v29 = vshrl.u32 %v916_v19, 16 }
  0x3b   : > { %1379 = vmatmul.msk.bf16.vlgmr.msrb.gmra.mxu0 %vm224_vm0, %v428_v59  ;;  %1059 = vmatpush.bf16.msrb.mxu2 %v1567_v34  ;;  %v1568_v59 = vld [vmem:[%s1894_s1 + $0xf0] sm:$0xff] }
  0x3c   : > { %1421 = vmatmul.msk.bf16.vlgmr.msrb.gmra.mxu3 %vm224_vm0, %v613_v30  ;;  %942 = vmatpush.bf16.msrb.mxu0 %v1563_v35  ;;  %v977_v35 = vrot.slane %v975_v31, 1 }
  0x3d   : > { %1126 = vmatpush.bf16.msrb.mxu3 %v1569_v36  ;;  %v1143_v36 = vld [vmem:[%s1895_s2] sm:$0xff] }
  0x3e   : > { %1149 = vperm.xlu0 %1605, %v1143_v36  }
  0x3f   : > { %1060 = vmatpush.bf16.msrb.mxu2 %v1566_v57  ;;  %v1146_v57 = vld [vmem:[%s1895_s2 + $0x18] sm:$0xf] }
  0x40   : > { %943 = vmatpush.bf16.msrb.mxu0 %v1562_v58  ;;  %v981_v58 = vor.u32 %v979_v56, %v977_v35  ;;  %1164 = vperm.xlu1 %1606, %v1146_v57  }
  0x41   : > { %1127 = vmatpush.bf16.msrb.mxu3 %v1568_v59  ;;  %v902_v59 = vld [vmem:[%s1685_s14 + $0x18] sm:$0x3]  ;;  %s1537_s14 = sshll.u32 %s1898_s13, 4 }
  0x42   : > { %v915_v60 = vunpack.c.l.b16 %v902_v59  ;;  %s170_s19 = scalar_lea.vmem %s1896_s3, %s1537_s14 }
  0x43   : > { %1394 = vmatmul.msk.bf16.gmra.mxu1 %vm224_vm0, %v493_v38  ;;  %v1089_v38 = vshll.u32 %v1031_v32, 16 }
  0x44   : > { %v917_v61 = vpack.c.b16 %v915_v60, %v1585_v18 }
  0x45   : > { %v1091_v46 = vrot.slane %v1089_v38, 2 }
  0x46   : > { %1154 = vperm.xlu0 %1605, %v1144_v51  }
  0x47   : > { %v1092_v52 = vor.u32 %v1091_v46, %v1088_v44 }
  0x4a   : > { %1408 = vmatmul.msk.bf16.gmra.mxu2 %vm224_vm0, %v545_v26  ;;  %v970_v26 = vshll.u32 %v916_v19, 16 }
  0x4b   : > { %1380 = vmatmul.msk.bf16.gmra.mxu0 %vm224_vm0, %v429_v49  ;;  %v1032_v49 = vrot.slane %v1031_v32, 1 }
  0x4c   : > { %1422 = vmatmul.msk.bf16.gmra.mxu3 %vm224_vm0, %v612_v28  ;;  %v673_v28 = vpack.c.b16 %v671_v24, %v1788_v39  ;;  %v972_v30 = vrot.slane %v970_v26, 1 }
  0x4d   : > { %v1034_v54 = vsel %vm298_vm1, %v1032_v49, %v1033_v50 }
  0x4e   : > { %v973_v34 = vor.u32 %v972_v30, %v968_v29 }
  0x50   : > { %v978_v42 = vsel %vm196_vm2, %v973_v34, %v977_v35 }
  0x53   : > { %1449 = vmatmul.msk.bf16.vlgmr.msra.gmra.mxu1 %vm224_vm0, %v734_v1 }
  0x5a   : > { %1463 = vmatmul.msk.bf16.vlgmr.msra.gmra.mxu2 %vm224_vm0, %v790_v10 }
  0x5b   : > { %1435 = vmatmul.msk.bf16.vlgmr.msra.gmra.mxu0 %vm224_vm0, %v1712_v45  ;;  %v1083_v45 = vunpack.c.l.b16 %v1076_v23 }
  0x5c   : > { %1477 = vmatmul.msk.bf16.vlgmr.msra.gmra.mxu3 %vm224_vm0, %v857_v12 }
  0x5d   : > { %v1084_v33 = vpack.c.b16 %v1083_v45, %v1585_v18 }
  0x5f   : > { %v1094_v39 = vshrl.u32 %v1084_v33, 16  ;;  %v1097_v40 = vshll.u32 %v1084_v33, 16 }
  0x61   : > { %v1096_v47 = vrot.slane %v1094_v39, 1  ;;  %v1099_v48 = vrot.slane %v1097_v40, 2 }
  0x63   : > { %1450 = vmatmul.msk.bf16.gmra.mxu1 %vm224_vm0, %v737_v17  ;;  %v1100_v53 = vor.u32 %v1099_v48, %v1096_v47 }
  0x65   : > { %v1101_v55 = vsel %vm352_vm3, %v1092_v52, %v1100_v53 }
  0x6a   : > { %1464 = vmatmul.msk.bf16.gmra.mxu2 %vm224_vm0, %v789_v7 }
  0x6b   : > { %1436 = vmatmul.msk.bf16.gmra.mxu0 %vm224_vm0, %v673_v28 }
  0x6c   : > { %1478 = vmatmul.msk.bf16.gmra.mxu3 %vm224_vm0, %v856_v9 }
  0x73   : > { %1505 = vmatmul.msk.bf16.vlgmr.msrb.gmra.mxu1 %vm224_vm0, %v978_v42 }
  0x7a   : > { %1519 = vmatmul.msk.bf16.vlgmr.msrb.gmra.mxu2 %vm224_vm0, %v1034_v54 }
  0x7b   : > { %1491 = vmatmul.msk.bf16.vlgmr.msrb.gmra.mxu0 %vm224_vm0, %v916_v19 }
  0x7c   : > { %1533 = vmatmul.msk.bf16.vlgmr.msrb.gmra.mxu3 %vm224_vm0, %v1101_v55 }
  0x83   : > { %1506 = vmatmul.msk.bf16.gmra.mxu1 %vm224_vm0, %v981_v58 }
  0x8a   : > { %1520 = vmatmul.msk.bf16.gmra.mxu2 %vm224_vm0, %v1033_v50 }
  0x8b   : > { %1492 = vmatmul.msk.bf16.gmra.mxu0 %vm224_vm0, %v917_v61 }
  0x8c   : > { %1534 = vmatmul.msk.bf16.gmra.mxu3 %vm224_vm0, %v1100_v53 }
  0x90   : > { %v279_v62 = vpop.f32.mrf.mxu1 }
  0x98   : > { %v281_v63 = vpop.f32.mrf.mxu1  ;;  %v240_v0 = vpop.f32.mrf.mxu0 }
  0x99   : > { %v280_v1 = vadd.f32 %v279_v62, %v240_v0 }
  0x9d   : > { %v329_v2 = vpop.f32.mrf.mxu2 }
  0x9e   : > { %v339_v3 = vadd.f32 %v329_v2, %v280_v1 }
  0x9f   : > { %v397_v4 = vpop.f32.mrf.mxu3 }
  0xa0   : > { %v284_v5 = vpop.f32.mrf.mxu1  ;;  %v242_v6 = vpop.f32.mrf.mxu0  ;;  %v407_v7 = vadd.f32 %v397_v4, %v339_v3 }
  0xa1   : > { %v282_v8 = vadd.f32 %v281_v63, %v242_v6 }
  0xa5   : > { %v331_v9 = vpop.f32.mrf.mxu2 }
  0xa6   : > { %v340_v10 = vadd.f32 %v331_v9, %v282_v8 }
  0xa7   : > { %v399_v11 = vpop.f32.mrf.mxu3 }
  0xa8   : > { %v286_v12 = vpop.f32.mrf.mxu1  ;;  %v245_v13 = vpop.f32.mrf.mxu0  ;;  %v408_v14 = vadd.f32 %v399_v11, %v340_v10 }
  0xa9   : > { %v285_v15 = vadd.f32 %v284_v5, %v245_v13 }
  0xad   : > { %v334_v16 = vpop.f32.mrf.mxu2 }
  0xae   : > { %v341_v17 = vadd.f32 %v334_v16, %v285_v15 }
  0xaf   : > { %v402_v18 = vpop.f32.mrf.mxu3 }
  0xb0   : > { %v521_v19 = vpop.f32.mrf.mxu1  ;;  %v247_v20 = vpop.f32.mrf.mxu0  ;;  %v409_v21 = vadd.f32 %v402_v18, %v341_v17 }
  0xb1   : > { %v287_v22 = vadd.f32 %v286_v12, %v247_v20 }
  0xb5   : > { %v336_v23 = vpop.f32.mrf.mxu2 }
  0xb6   : > { %v342_v24 = vadd.f32 %v336_v23, %v287_v22 }
  0xb7   : > { %v404_v25 = vpop.f32.mrf.mxu3 }
  0xb8   : > { %v523_v26 = vpop.f32.mrf.mxu1  ;;  %v410_v27 = vadd.f32 %v404_v25, %v342_v24  ;;  %v457_v45 = vpop.f32.mrf.mxu0 }
  0xb9   : > { %v467_v28 = vadd.f32 %v457_v45, %v407_v7 }
  0xbb   : > { %v531_v29 = vadd.f32 %v521_v19, %v467_v28 }
  0xbd   : > { %v574_v30 = vpop.f32.mrf.mxu2 }
  0xbe   : > { %v584_v31 = vadd.f32 %v574_v30, %v531_v29 }
  0xbf   : > { %v641_v32 = vpop.f32.mrf.mxu3 }
  0xc0   : > { %v526_v33 = vpop.f32.mrf.mxu1  ;;  %v459_v34 = vpop.f32.mrf.mxu0  ;;  %v651_v35 = vadd.f32 %v641_v32, %v584_v31 }
  0xc1   : > { %v468_v56 = vadd.f32 %v459_v34, %v408_v14 }
  0xc3   : > { %v532_v59 = vadd.f32 %v523_v26, %v468_v56 }
  0xc5   : > { %v576_v36 = vpop.f32.mrf.mxu2 }
  0xc6   : > { %v585_v63 = vadd.f32 %v576_v36, %v532_v59 }
  0xc7   : > { %v643_v37 = vpop.f32.mrf.mxu3 }
  0xc8   : > { %v528_v38 = vpop.f32.mrf.mxu1  ;;  %v462_v39 = vpop.f32.mrf.mxu0  ;;  %v652_v2 = vadd.f32 %v643_v37, %v585_v63 }
  0xc9   : > { %v469_v0 = vadd.f32 %v462_v39, %v409_v21  ;;  %v1150_v21 = vpop.permute.xlu0 %1149 }
  0xcb   : > { %v533_v5 = vadd.f32 %v526_v33, %v469_v0 }
  0xcd   : > { %v579_v40 = vpop.f32.mrf.mxu2 }
  0xce   : > { %v586_v11 = vadd.f32 %v579_v40, %v533_v5 }
  0xcf   : > { %v646_v41 = vpop.f32.mrf.mxu3 }
  0xd0   : > { %v765_v42 = vpop.f32.mrf.mxu1  ;;  %v464_v43 = vpop.f32.mrf.mxu0  ;;  %v653_v15 = vadd.f32 %v646_v41, %v586_v11 }
  0xd1   : > { %v470_v12 = vadd.f32 %v464_v43, %v410_v27  ;;  %v1155_v39 = vpop.permute.xlu0 %1154 }
  0xd3   : > { %v534_v18 = vadd.f32 %v528_v38, %v470_v12 }
  0xd5   : > { %v581_v44 = vpop.f32.mrf.mxu2 }
  0xd6   : > { %v587_v45 = vadd.f32 %v581_v44, %v534_v18 }
  0xd7   : > { %v648_v46 = vpop.f32.mrf.mxu3 }
  0xd8   : > { %v767_v47 = vpop.f32.mrf.mxu1  ;;  %v701_v48 = vpop.f32.mrf.mxu0  ;;  %v654_v27 = vadd.f32 %v648_v46, %v587_v45 }
  0xd9   : > { %v711_v60 = vadd.f32 %v701_v48, %v651_v35 }
  0xdb   : > { %v775_v1 = vadd.f32 %v765_v42, %v711_v60 }
  0xdd   : > { %v818_v49 = vpop.f32.mrf.mxu2 }
  0xde   : > { %v828_v6 = vadd.f32 %v818_v49, %v775_v1 }
  0xdf   : > { %v885_v50 = vpop.f32.mrf.mxu3 }
  0xe0   : > { %v703_v51 = vpop.f32.mrf.mxu0  ;;  %v770_v52 = vpop.f32.mrf.mxu1  ;;  %v895_v8 = vadd.f32 %v885_v50, %v828_v6 }
  0xe1   : > { %v712_v7 = vadd.f32 %v703_v51, %v652_v2 }
  0xe3   : > { %v776_v13 = vadd.f32 %v767_v47, %v712_v7 }
  0xe5   : > { %v820_v53 = vpop.f32.mrf.mxu2 }
  0xe6   : > { %v829_v19 = vadd.f32 %v820_v53, %v776_v13 }
  0xe7   : > { %v887_v54 = vpop.f32.mrf.mxu3 }
  0xe8   : > { %v706_v55 = vpop.f32.mrf.mxu0  ;;  %v772_v57 = vpop.f32.mrf.mxu1  ;;  %v896_v23 = vadd.f32 %v887_v54, %v829_v19 }
  0xe9   : > { %v713_v20 = vadd.f32 %v706_v55, %v653_v15 }
  0xeb   : > { %v777_v28 = vadd.f32 %v770_v52, %v713_v20 }
  0xed   : > { %v823_v58 = vpop.f32.mrf.mxu2 }
  0xee   : > { %v830_v33 = vadd.f32 %v823_v58, %v777_v28 }
  0xef   : > { %v890_v61 = vpop.f32.mrf.mxu3 }
  0xf0   : > { %v708_v62 = vpop.f32.mrf.mxu0  ;;  %v1009_v4 = vpop.f32.mrf.mxu1  ;;  %v897_v37 = vadd.f32 %v890_v61, %v830_v33 }
  0xf1   : > { %v714_v34 = vadd.f32 %v708_v62, %v654_v27  ;;  %v1160_v61 = vpop.permute.xlu1 %1159 }
  0xf3   : > { %v778_v44 = vadd.f32 %v772_v57, %v714_v34 }
  0xf5   : > { %v825_v3 = vpop.f32.mrf.mxu2 }
  0xf6   : > { %v831_v55 = vadd.f32 %v825_v3, %v778_v44 }
  0xf7   : > { %v892_v9 = vpop.f32.mrf.mxu3 }
  0xf8   : > { %v945_v10 = vpop.f32.mrf.mxu0  ;;  %v1011_v22 = vpop.f32.mrf.mxu1  ;;  %v898_v60 = vadd.f32 %v892_v9, %v831_v55 }
  0xf9   : > { %v955_v14 = vadd.f32 %v945_v10, %v895_v8 }
  0xfb   : > { %v1019_v16 = vadd.f32 %v1009_v4, %v955_v14 }
  0xfd   : > { %v1062_v17 = vpop.f32.mrf.mxu2 }
  0xfe   : > { %v1072_v25 = vadd.f32 %v1062_v17, %v1019_v16  ;;  %v1165_v16 = vpop.permute.xlu1 %1164 }
  0xff   : > { %v1129_v24 = vpop.f32.mrf.mxu3 }
 0x100   : > { %v947_v26 = vpop.f32.mrf.mxu0  ;;  %v1863_v30 = vadd.f32 %v1129_v24, %v1072_v25  ;;  %v1014_v41 = vpop.f32.mrf.mxu1 }
 0x101   : > { %v956_v29 = vadd.f32 %v947_v26, %v896_v23 }
 0x102   : > { %v1186_v35 = vmul.f32 %v1863_v30, %v1863_v30  ;;  %v1167_v40 = vmul.f32 %v1150_v21, %v1863_v30 }
 0x103   : > { %v1020_v31 = vadd.f32 %v1011_v22, %v956_v29 }
 0x104   : > { %v1190_v47 = vmul.f32 %v1186_v35, %v1150_v21  ;;  %v1172_v51 = vsel %vm1171_vm4, %v1167_v40, 0.0 }
 0x105   : > { %v1064_v32 = vpop.f32.mrf.mxu2 }
 0x106   : > { %v1073_v36 = vadd.f32 %v1064_v32, %v1020_v31  ;;  %v1194_v58 = vsel %vm1171_vm4, %v1190_v47, 0.0 }
 0x107   : > { %v1131_v38 = vpop.f32.mrf.mxu3 }
 0x108   : > { %v950_v42 = vpop.f32.mrf.mxu0  ;;  %v1868_v43 = vadd.f32 %v1131_v38, %v1073_v36  ;;  %v1016_v4 = vpop.f32.mrf.mxu1 }
 0x109   : > { %v957_v46 = vadd.f32 %v950_v42, %v897_v37 }
 0x10a   : > { %v1168_v48 = vmul.f32 %v1155_v39, %v1868_v43  ;;  %v1187_v49 = vmul.f32 %v1868_v43, %v1868_v43 }
 0x10b   : > { %v1021_v50 = vadd.f32 %v1014_v41, %v957_v46 }
 0x10c   : > { %v1173_v52 = vsel %vm1171_vm4, %v1168_v48, 0.0  ;;  %v1191_v53 = vmul.f32 %v1187_v49, %v1155_v39 }
 0x10d   : > { %v1067_v54 = vpop.f32.mrf.mxu2  ;;  %v1174_v56 = vadd.f32 %v1173_v52, %v1172_v51 }
 0x10e   : > { %v1195_v57 = vsel %vm1171_vm4, %v1191_v53, 0.0  ;;  %v1074_v59 = vadd.f32 %v1067_v54, %v1021_v50 }
 0x10f   : > { %v1196_v62 = vadd.f32 %v1195_v57, %v1194_v58  ;;  %v1134_v63 = vpop.f32.mrf.mxu3 }
 0x110   : > { %v952_v0 = vpop.f32.mrf.mxu0  ;;  %v1141_v1 = vadd.f32 %v1134_v63, %v1074_v59 }
 0x111   : > { %v958_v2 = vadd.f32 %v952_v0, %v898_v60 }
 0x112   : > { %v1169_v5 = vmul.f32 %v1160_v61, %v1141_v1  ;;  %v1188_v6 = vmul.f32 %v1141_v1, %v1141_v1 }
 0x113   : > { %v1022_v7 = vadd.f32 %v1016_v4, %v958_v2 }
 0x114   : > { %v1175_v8 = vsel %vm1171_vm4, %v1169_v5, 0.0  ;;  %v1192_v3 = vmul.f32 %v1188_v6, %v1160_v61 }
 0x115   : > { %v1069_v10 = vpop.f32.mrf.mxu2  ;;  %v1176_v11 = vadd.f32 %v1175_v8, %v1174_v56 }
 0x116   : > { %v1197_v12 = vsel %vm1171_vm4, %v1192_v3, 0.0  ;;  %v1075_v13 = vadd.f32 %v1069_v10, %v1022_v7 }
 0x117   : > { %v1198_v14 = vadd.f32 %v1197_v12, %v1196_v62  ;;  %v1136_v9 = vpop.f32.mrf.mxu3 }
 0x118   : > { %v1142_v15 = vadd.f32 %v1136_v9, %v1075_v13 }
 0x11a   : > { %v1170_v17 = vmul.f32 %v1165_v16, %v1142_v15  ;;  %v1189_v18 = vmul.f32 %v1142_v15, %v1142_v15 }
 0x11c   : > { %v1178_v19 = vsel %vm1177_vm5, %v1170_v17, 0.0  ;;  %v1193_v20 = vmul.f32 %v1189_v18, %v1165_v16 }
 0x11d   : > { %v1179_v21 = vadd.f32 %v1178_v19, %v1176_v11 }
 0x11e   : > { %v1199_v22 = vsel %vm1177_vm5, %v1193_v20, 0.0 }
 0x11f   : > { %v1180_v23 = vrot.slane %v1179_v21, 4  ;;  %v1200_v24 = vadd.f32 %v1199_v22, %v1198_v14 }
 0x121   : > { %v1181_v25 = vadd.f32 %v1180_v23, %v1179_v21  ;;  %v1201_v26 = vrot.slane %v1200_v24, 4 }
 0x123   : > { %v1182_v45 = vrot.slane %v1181_v25, 2  ;;  %v1202_v28 = vadd.f32 %v1201_v26, %v1200_v24 }
 0x125   : > { %v1183_v29 = vadd.f32 %v1182_v45, %v1181_v25  ;;  %v1203_v27 = vrot.slane %v1202_v28, 2 }
 0x127   : > { %v1184_v31 = vrot.slane %v1183_v29, 1  ;;  %v1204_v32 = vadd.f32 %v1203_v27, %v1202_v28 }
 0x129   : > { %v1185_v33 = vadd.f32 %v1184_v31, %v1183_v29  ;;  %v1205_v34 = vrot.slane %v1204_v32, 1 }
 0x12b   : > { %v1206_v35 = vadd.f32 %v1205_v34, %v1204_v32  ;;  %v1207_v36 = vmul.f32 0.0625, %v1185_v33 }
 0x12d   : > { %v1208_v37 = vmul.f32 0.0625, %v1206_v35  ;;  %v1209_v38 = vmul.f32 %v1207_v36, %v1207_v36  ;;  %v1212_v39 = vsub.f32 %v1863_v30, %v1207_v36  ;;  %v1213_v40 = vsub.f32 %v1868_v43, %v1207_v36 }
 0x12e   : > { %v1214_v41 = vsub.f32 %v1141_v1, %v1207_v36  ;;  %v1215_v42 = vsub.f32 %v1142_v15, %v1207_v36 }
 0x12f   : > { %v1210_v44 = vsub.f32 %v1208_v37, %v1209_v38 }
 0x131   : > { %v1211_v46 = vmax.f32 %v1210_v44, 0.0 }
 0x133   : > { %v1216_v47 = vadd.f32 1e-05, %v1211_v46 }
 0x135   : > { %1607 = vrsqrt.f32 %v1216_v47  ;;  %vm1223_vm7 = vweird.f32 %v1216_v47 }
 0x13b   : > { %v1608_v48 = vpop.eup %1607 }
 0x13c   : > { %v1218_v49 = vmul.f32 %v1608_v48, %v1216_v47  ;;  %vm1224_vm6 = vweird.f32 %v1608_v48 }
 0x13d   : > { %vm1225_vm8 = vmor %vm1223_vm7, %vm1224_vm6 }
 0x13e   : > { %v1219_v50 = vmul.f32 %v1608_v48, %v1218_v49 }
 0x140   : > { %v1220_v51 = vmul.f32 0.5, %v1219_v50 }
 0x142   : > { %v1221_v52 = vsub.f32 1.5, %v1220_v51 }
 0x144   : > { %v1222_v53 = vmul.f32 %v1608_v48, %v1221_v52 }
 0x146   : > { %v1226_v54 = vsel %vm1225_vm8, %v1608_v48, %v1222_v53 }
 0x147   : > { %v1227_v30 = vmul.f32 %v1226_v54, %v1212_v39  ;;  %v1228_v55 = vmul.f32 %v1226_v54, %v1213_v40  ;;  %v1229_v43 = vmul.f32 %v1226_v54, %v1214_v41  ;;  %v1230_v56 = vmul.f32 %v1226_v54, %v1215_v42 }
 0x149   : > { %vm1231_vm9 = vcmp.gt.f32.partialorder %v1227_v30, 0.0  ;;  %vm1232_vm10 = vcmp.gt.f32.partialorder %v1228_v55, 0.0  ;;  %vm1233_vm11 = vcmp.gt.f32.partialorder %v1229_v43, 0.0  ;;  %vm1234_vm12 = vcmp.gt.f32.partialorder %v1230_v56, 0.0 }
 0x14a   : > { %v1235_v58 = vmul.f32 0.2, %v1227_v30  ;;  %v1236_v57 = vmul.f32 0.2, %v1228_v55  ;;  %v1237_v59 = vmul.f32 0.2, %v1229_v43 }
 0x14b   : > { %v1238_v60 = vmul.f32 0.2, %v1230_v56 }
 0x14c   : > { %v1239_v61 = vsel %vm1231_vm9, %v1227_v30, %v1235_v58  ;;  %v1240_v62 = vsel %vm1232_vm10, %v1228_v55, %v1236_v57  ;;  %v1241_v63 = vsel %vm1233_vm11, %v1229_v43, %v1237_v59 }
 0x14d   : > { %v1242_v0 = vsel %vm1234_vm12, %v1230_v56, %v1238_v60  ;;  %v1243_v1 = vpack.c.bf16 %v1239_v61, %v1239_v61  ;;  %v1244_v2 = vpack.c.bf16 %v1240_v62, %v1240_v62  ;;  %v1245_v4 = vpack.c.bf16 %v1241_v63, %v1241_v63 }
 0x14e   : > { %v1246_v5 = vpack.c.bf16 %v1242_v0, %v1242_v0 }
 0x14f   : > { %1247 = vst.msk [vmem:[%s170_s19] sm:$0xf] %vm1177_vm5, %v1243_v1 }
 0x150   : > { %1248 = vst.msk [vmem:[%s170_s19 + $0x4] sm:$0xf] %vm1177_vm5, %v1244_v2 }
 0x151   : > { %1249 = vst.msk [vmem:[%s170_s19 + $0x8] sm:$0xf] %vm1177_vm5, %v1245_v4 }
 0x152   : > { %1251 = vst.msk [vmem:[%s170_s19 + $0xc] sm:$0x3] %vm1250_vm13, %v1246_v5 }
 0x153 PF: > { %s13_s12 = sadd.s32 1, %s1615_s12  }
 0x154   : > { %p10_p4 = scmp.ge.s32.totalorder %s13_s12, 4  }
 0x156   :  { %12 = sbr.rel (!%p10_p4) target bundleno = 1 (0x1), region = 77 }

// kernel: discriminator_forward.9
= control target key start
LH: loop header
LB: loop body
LE: loop exit
PB: predicated region body
PF: predicated region fallthrough
CT: control target
= control target key end

     0   :  { %s1582_s12 = smov 0   ;;  %s1821_s0 = inlined_call_operand.vmem [shape: bf16[2,28,64], index: 0, kind: input, shape index: {}]   ;;  %s1822_s1 = inlined_call_operand.vmem [shape: bf16[16,64,128], index: 1, kind: input, shape index: {}]   ;;  %s1823_s2 = inlined_call_operand.<no memory space> [shape: f32[1,1], index: 2, kind: input, shape index: {}]   ;;  %s1824_s3 = inlined_call_operand.vmem [shape: f32[2,1,128], index: 3, kind: output, shape index: {}]  }
   0x1 LB: > { %s1080_s13 = sadd.s32 4294967295, %s1560_s12   ;;  %p1084_p0 = scmp.ge.s32.totalorder %s1560_s12, 1  ;;  %s1560_s12 = sphi %s1582_s12, %s15_s12  }
   0x2   : > { %p139_p1 = scmp.lt.s32.totalorder %s1560_s12, 3 }
   0x4   : > { %p140_p2 = pnand %p1084_p0, %p139_p1 }
   0x5   : > { %p161_p3 = scmp.lt.s32.totalorder (!%p140_p2), %s1080_s13, 1 }
   0x6   : > { %143 = sbr.rel (%p140_p2) target bundleno = 218 (0xda), region = 32 }
   0xb   : > { %v1489_v0 = vld [vmem:[%s1822_s1 + $0x38] sm:$0xff]  ;;  %v1488_v4 = vld [vmem:[%s1822_s1 + $0x30] sm:$0xff]  ;;  %s1826_s13 = smov (!%p161_p3, %s1080_s13), 1  ;;  %v1487_v8 = vld [vmem:[%s1822_s1 + $0x28] sm:$0xff]  ;;  %vm218_vm0 = vcmask 523264  }
   0xc   : > { %v1485_v1 = vld [vmem:[%s1822_s1 + $0x18] sm:$0xff]  ;;  %226 = vmatpush.bf16.msra.mxu0 %v1489_v0  ;;  %v1484_v5 = vld [vmem:[%s1822_s1 + $0x10] sm:$0xff]  ;;  %s1481_s29 = sshll.u32 %s1826_s13, 4  ;;  %v1483_v9 = vld [vmem:[%s1822_s1 + $0x8] sm:$0xff]  ;;  %s168_s20 = scalar_lea.vmem %s1824_s3, %s1826_s13 }
   0xd   : > { %v1493_v2 = vld [vmem:[%s1822_s1 + $0x58] sm:$0xff]  ;;  %266 = vmatpush.bf16.msra.mxu1 %v1485_v1  ;;  %v1492_v6 = vld [vmem:[%s1822_s1 + $0x50] sm:$0xff]  ;;  %s1623_s7 = scalar_lea.vmem %s1821_s0, %s1481_s29  ;;  %v1491_v12 = vld [vmem:[%s1822_s1 + $0x48] sm:$0xff] }
   0xe   : > { %v1497_v3 = vld [vmem:[%s1822_s1 + $0x78] sm:$0xff]  ;;  %320 = vmatpush.bf16.msra.mxu2 %v1493_v2  ;;  %v1496_v7 = vld [vmem:[%s1822_s1 + $0x70] sm:$0xff]  ;;  %v170_v10 = vld [vmem:[%s1623_s7] sm:$0x1] }
   0xf   : > { %374 = vmatpush.bf16.msra.mxu3 %v1497_v3  ;;  %v275_v11 = vld [vmem:[%s1623_s7] sm:$0x2]  ;;  %v1495_v13 = vld [vmem:[%s1822_s1 + $0x68] sm:$0xff]  ;;  %v189_v14 = vunpack.c.l.b16 %v170_v10  ;;  %v1509_v23 = vld [vmem:[%s1822_s1 + $0xd8] sm:$0xff] }
  0x10   : > { %227 = vmatpush.bf16.msra.mxu0 %v1488_v4  ;;  %v286_v15 = vunpack.c.l.b16 %v275_v11  ;;  %v1486_v18 = vld [vmem:[%s1822_s1 + $0x20] sm:$0xff]  ;;  %v1513_v24 = vld [vmem:[%s1822_s1 + $0xf8] sm:$0xff]  ;;  %v1508_v30 = vld [vmem:[%s1822_s1 + $0xd0] sm:$0xff] }
  0x11   : > { %267 = vmatpush.bf16.msra.mxu1 %v1484_v5  ;;  %v190_v16 = vpack.c.b16 %v189_v14, %v189_v14  ;;  %v1482_v19 = vld [vmem:[%s1822_s1] sm:$0xff]  ;;  %v1501_v28 = vld [vmem:[%s1822_s1 + $0x98] sm:$0xff]  ;;  %v1512_v31 = vld [vmem:[%s1822_s1 + $0xf0] sm:$0xff] }
  0x12   : > { %321 = vmatpush.bf16.msra.mxu2 %v1492_v6  ;;  %v287_v17 = vpack.c.b16 %v286_v15, %v286_v15  ;;  %v1490_v20 = vld [vmem:[%s1822_s1 + $0x40] sm:$0xff]  ;;  %v1505_v29 = vld [vmem:[%s1822_s1 + $0xb8] sm:$0xff]  ;;  %v1500_v33 = vld [vmem:[%s1822_s1 + $0x90] sm:$0xff] }
  0x13   : > { %375 = vmatpush.bf16.msra.mxu3 %v1496_v7  ;;  %v1494_v21 = vld [vmem:[%s1822_s1 + $0x60] sm:$0xff]  ;;  %v192_v25 = vshrl.u32 %v190_v16, 16  ;;  %v1504_v34 = vld [vmem:[%s1822_s1 + $0xb0] sm:$0xff]  ;;  %v1507_v37 = vld [vmem:[%s1822_s1 + $0xc8] sm:$0xff] }
  0x14   : > { %228 = vmatpush.bf16.msra.mxu0 %v1487_v8  ;;  %v340_v22 = vshrl.u32 %v287_v17, 16  ;;  %v288_v26 = vrot.slane %v287_v17, 1  ;;  %v491_v32 = vld [vmem:[%s1623_s7 + $0x4] sm:$0x2]  ;;  %v384_v35 = vld [vmem:[%s1623_s7 + $0x4] sm:$0x1] }
  0x15   : > { %268 = vmatpush.bf16.msra.mxu1 %v1483_v9  ;;  %v502_v36 = vunpack.c.l.b16 %v491_v32  ;;  %v1511_v38 = vld [vmem:[%s1822_s1 + $0xe8] sm:$0xff]  ;;  %v445_v39 = vunpack.c.l.b16 %v384_v35  ;;  %v1506_v43 = vld [vmem:[%s1822_s1 + $0xc0] sm:$0xff]  ;;  %v1525_v45 = vld [vmem:[%s1822_s1 + $0x158] sm:$0xff] }
  0x16   : > { %322 = vmatpush.bf16.msra.mxu2 %v1491_v12  ;;  %v342_v27 = vrot.slane %v340_v22, 1  ;;  %v1499_v40 = vld [vmem:[%s1822_s1 + $0x88] sm:$0xff]  ;;  %v1510_v44 = vld [vmem:[%s1822_s1 + $0xe0] sm:$0xff]  ;;  %v1529_v46 = vld [vmem:[%s1822_s1 + $0x178] sm:$0xff] }
  0x17   : > { %376 = vmatpush.bf16.msra.mxu3 %v1495_v13  ;;  %v1503_v41 = vld [vmem:[%s1822_s1 + $0xa8] sm:$0xff]  ;;  %v503_v42 = vpack.c.b16 %v502_v36, %v502_v36  ;;  %v446_v47 = vpack.c.b16 %v445_v39, %v445_v39  ;;  %v1498_v48 = vld [vmem:[%s1822_s1 + $0x80] sm:$0xff]  ;;  %v1517_v51 = vld [vmem:[%s1822_s1 + $0x118] sm:$0xff] }
  0x18   : > { %229 = vmatpush.bf16.msra.mxu0 %v1486_v18  ;;  %v1502_v49 = vld [vmem:[%s1822_s1 + $0xa0] sm:$0xff]  ;;  %v1521_v52 = vld [vmem:[%s1822_s1 + $0x138] sm:$0xff]  ;;  %v1524_v53 = vld [vmem:[%s1822_s1 + $0x150] sm:$0xff] }
  0x19   : > { %269 = vmatpush.bf16.msra.mxu1 %v1482_v19  ;;  %v556_v50 = vshrl.u32 %v503_v42, 16  ;;  %v1528_v54 = vld [vmem:[%s1822_s1 + $0x170] sm:$0xff]  ;;  %v448_v55 = vshrl.u32 %v446_v47, 16  ;;  %v504_v56 = vrot.slane %v503_v42, 1  ;;  %v707_v60 = vld [vmem:[%s1623_s7 + $0x8] sm:$0x2] }
  0x1a   : > { %323 = vmatpush.bf16.msra.mxu2 %v1490_v20  ;;  %v1516_v58 = vld [vmem:[%s1822_s1 + $0x110] sm:$0xff]  ;;  %v1523_v61 = vld [vmem:[%s1822_s1 + $0x148] sm:$0xff]  ;;  %v718_v0 = vunpack.c.l.b16 %v707_v60  ;;  %v1522_v3 = vld [vmem:[%s1822_s1 + $0x140] sm:$0xff] }
  0x1b   : > { %377 = vmatpush.bf16.msra.mxu3 %v1494_v21  ;;  %1111 = vmatmul.msk.bf16.vlgmr.msra.gmra.mxu0 %vm218_vm0, %v192_v25  ;;  %v558_v57 = vrot.slane %v556_v50, 1  ;;  %v1520_v59 = vld [vmem:[%s1822_s1 + $0x130] sm:$0xff]  ;;  %v1527_v62 = vld [vmem:[%s1822_s1 + $0x168] sm:$0xff]  ;;  %v1526_v4 = vld [vmem:[%s1822_s1 + $0x160] sm:$0xff] }
  0x1c   : > { %1128 = vmatmul.msk.bf16.vlgmr.msra.gmra.mxu1 %vm218_vm0, %v170_v10  ;;  %425 = vmatpush.bf16.msrb.mxu0 %v1501_v28  ;;  %v600_v63 = vld [vmem:[%s1623_s7 + $0x8] sm:$0x1]  ;;  %v1541_v6 = vld [vmem:[%s1822_s1 + $0x1d8] sm:$0xff]  ;;  %v719_v8 = vpack.c.b16 %v718_v0, %v718_v0  ;;  %v1514_v9 = vld [vmem:[%s1822_s1 + $0x100] sm:$0xff] }
  0x1d   : > { %1153 = vmatmul.msk.bf16.vlgmr.msra.gmra.mxu2 %vm218_vm0, %v288_v26  ;;  %481 = vmatpush.bf16.msrb.mxu1 %v1505_v29  ;;  %v1515_v1 = vld [vmem:[%s1822_s1 + $0x108] sm:$0xff]  ;;  %v661_v5 = vunpack.c.l.b16 %v600_v63  ;;  %v1545_v7 = vld [vmem:[%s1822_s1 + $0x1f8] sm:$0xff]  ;;  %v1518_v10 = vld [vmem:[%s1822_s1 + $0x120] sm:$0xff] }
  0x1e   : > { %536 = vmatpush.bf16.msrb.mxu2 %v1509_v23  ;;  %1178 = vmatmul.msk.bf16.vlgmr.msra.gmra.mxu3 %vm218_vm0, %v342_v27  ;;  %v1519_v2 = vld [vmem:[%s1822_s1 + $0x128] sm:$0xff]  ;;  %v1533_v11 = vld [vmem:[%s1822_s1 + $0x198] sm:$0xff]  ;;  %v1540_v14 = vld [vmem:[%s1822_s1 + $0x1d0] sm:$0xff]  ;;  %v772_v16 = vshrl.u32 %v719_v8, 16  ;;  %v720_v20 = vrot.slane %v719_v8, 1 }
  0x1f   : > { %590 = vmatpush.bf16.msrb.mxu3 %v1513_v24  ;;  %v1537_v12 = vld [vmem:[%s1822_s1 + $0x1b8] sm:$0xff]  ;;  %v662_v13 = vpack.c.b16 %v661_v5, %v661_v5  ;;  %v1544_v15 = vld [vmem:[%s1822_s1 + $0x1f0] sm:$0xff]  ;;  %v1539_v22 = vld [vmem:[%s1822_s1 + $0x1c8] sm:$0xff] }
  0x20   : > { %426 = vmatpush.bf16.msrb.mxu0 %v1500_v33  ;;  %v1532_v17 = vld [vmem:[%s1822_s1 + $0x190] sm:$0xff]  ;;  %v774_v21 = vrot.slane %v772_v16, 1  ;;  %v1543_v23 = vld [vmem:[%s1822_s1 + $0x1e8] sm:$0xff]  ;;  %v1538_v29 = vld [vmem:[%s1822_s1 + $0x1c0] sm:$0xff] }
  0x21   : > { %482 = vmatpush.bf16.msrb.mxu1 %v1504_v34  ;;  %v1536_v18 = vld [vmem:[%s1822_s1 + $0x1b0] sm:$0xff]  ;;  %v664_v19 = vshrl.u32 %v662_v13, 16  ;;  %v923_v24 = vld [vmem:[%s1623_s7 + $0xc] sm:$0x2]  ;;  %v816_v27 = vld [vmem:[%s1623_s7 + $0xc] sm:$0x1] }
  0x22   : > { %537 = vmatpush.bf16.msrb.mxu2 %v1508_v30  ;;  %v1531_v25 = vld [vmem:[%s1822_s1 + $0x188] sm:$0xff]  ;;  %v934_v28 = vunpack.c.l.b16 %v923_v24  ;;  %v1542_v30 = vld [vmem:[%s1822_s1 + $0x1e0] sm:$0xff]  ;;  %v877_v33 = vunpack.c.l.b16 %v816_v27 }
  0x23   : > { %591 = vmatpush.bf16.msrb.mxu3 %v1512_v31  ;;  %v1535_v26 = vld [vmem:[%s1822_s1 + $0x1a8] sm:$0xff]  ;;  %v1530_v31 = vld [vmem:[%s1822_s1 + $0x180] sm:$0xff] }
  0x24   : > { %427 = vmatpush.bf16.msrb.mxu0 %v1499_v40  ;;  %v1534_v32 = vld [vmem:[%s1822_s1 + $0x1a0] sm:$0xff]  ;;  %v935_v34 = vpack.c.b16 %v934_v28, %v934_v28 }
  0x25   : > { %483 = vmatpush.bf16.msrb.mxu1 %v1503_v41 }
  0x26   : > { %538 = vmatpush.bf16.msrb.mxu2 %v1507_v37  ;;  %v988_v36 = vshrl.u32 %v935_v34, 16 }
  0x27   : > { %592 = vmatpush.bf16.msrb.mxu3 %v1511_v38  ;;  %v936_v38 = vrot.slane %v935_v34, 1 }
  0x28   : > { %428 = vmatpush.bf16.msrb.mxu0 %v1498_v48  ;;  %v990_v39 = vrot.slane %v988_v36, 1 }
  0x29   : > { %484 = vmatpush.bf16.msrb.mxu1 %v1502_v49 }
  0x2a   : > { %539 = vmatpush.bf16.msrb.mxu2 %v1506_v43 }
  0x2b   : > { %593 = vmatpush.bf16.msrb.mxu3 %v1510_v44  ;;  %1203 = vmatmul.msk.bf16.vlgmr.msrb.gmra.mxu0 %vm218_vm0, %v384_v35  ;;  %v878_v35 = vpack.c.b16 %v877_v33, %v877_v33 }
  0x2c   : > { %641 = vmatpush.bf16.msra.mxu0 %v1517_v51  ;;  %1228 = vmatmul.msk.bf16.vlgmr.msrb.gmra.mxu1 %vm218_vm0, %v448_v55 }
  0x2d   : > { %697 = vmatpush.bf16.msra.mxu1 %v1521_v52  ;;  %1253 = vmatmul.msk.bf16.vlgmr.msrb.gmra.mxu2 %vm218_vm0, %v504_v56  ;;  %v880_v37 = vshrl.u32 %v878_v35, 16 }
  0x2e   : > { %752 = vmatpush.bf16.msra.mxu2 %v1525_v45  ;;  %1278 = vmatmul.msk.bf16.vlgmr.msrb.gmra.mxu3 %vm218_vm0, %v558_v57 }
  0x2f   : > { %806 = vmatpush.bf16.msra.mxu3 %v1529_v46 }
  0x30   : > { %642 = vmatpush.bf16.msra.mxu0 %v1516_v58 }
  0x31   : > { %698 = vmatpush.bf16.msra.mxu1 %v1520_v59 }
  0x32   : > { %753 = vmatpush.bf16.msra.mxu2 %v1524_v53 }
  0x33   : > { %807 = vmatpush.bf16.msra.mxu3 %v1528_v54 }
  0x34   : > { %643 = vmatpush.bf16.msra.mxu0 %v1515_v1 }
  0x35   : > { %699 = vmatpush.bf16.msra.mxu1 %v1519_v2 }
  0x36   : > { %754 = vmatpush.bf16.msra.mxu2 %v1523_v61 }
  0x37   : > { %808 = vmatpush.bf16.msra.mxu3 %v1527_v62 }
  0x38   : > { %644 = vmatpush.bf16.msra.mxu0 %v1514_v9 }
  0x39   : > { %700 = vmatpush.bf16.msra.mxu1 %v1518_v10 }
  0x3a   : > { %755 = vmatpush.bf16.msra.mxu2 %v1522_v3 }
  0x3b   : > { %809 = vmatpush.bf16.msra.mxu3 %v1526_v4  ;;  %1303 = vmatmul.msk.bf16.vlgmr.msra.gmra.mxu0 %vm218_vm0, %v600_v63 }
  0x3c   : > { %857 = vmatpush.bf16.msrb.mxu0 %v1533_v11  ;;  %1328 = vmatmul.msk.bf16.vlgmr.msra.gmra.mxu1 %vm218_vm0, %v664_v19 }
  0x3d   : > { %913 = vmatpush.bf16.msrb.mxu1 %v1537_v12  ;;  %1353 = vmatmul.msk.bf16.vlgmr.msra.gmra.mxu2 %vm218_vm0, %v720_v20 }
  0x3e   : > { %968 = vmatpush.bf16.msrb.mxu2 %v1541_v6  ;;  %1378 = vmatmul.msk.bf16.vlgmr.msra.gmra.mxu3 %vm218_vm0, %v774_v21 }
  0x3f   : > { %1022 = vmatpush.bf16.msrb.mxu3 %v1545_v7 }
  0x40   : > { %858 = vmatpush.bf16.msrb.mxu0 %v1532_v17 }
  0x41   : > { %914 = vmatpush.bf16.msrb.mxu1 %v1536_v18 }
  0x42   : > { %969 = vmatpush.bf16.msrb.mxu2 %v1540_v14 }
  0x43   : > { %1023 = vmatpush.bf16.msrb.mxu3 %v1544_v15 }
  0x44   : > { %859 = vmatpush.bf16.msrb.mxu0 %v1531_v25 }
  0x45   : > { %915 = vmatpush.bf16.msrb.mxu1 %v1535_v26 }
  0x46   : > { %970 = vmatpush.bf16.msrb.mxu2 %v1539_v22 }
  0x47   : > { %1024 = vmatpush.bf16.msrb.mxu3 %v1543_v23 }
  0x48   : > { %860 = vmatpush.bf16.msrb.mxu0 %v1530_v31 }
  0x49   : > { %916 = vmatpush.bf16.msrb.mxu1 %v1534_v32 }
  0x4a   : > { %971 = vmatpush.bf16.msrb.mxu2 %v1538_v29 }
  0x4b   : > { %1025 = vmatpush.bf16.msrb.mxu3 %v1542_v30  ;;  %1403 = vmatmul.msk.bf16.vlgmr.msrb.gmra.mxu0 %vm218_vm0, %v816_v27 }
  0x4c   : > { %1428 = vmatmul.msk.bf16.vlgmr.msrb.gmra.mxu1 %vm218_vm0, %v880_v37 }
  0x4d   : > { %1453 = vmatmul.msk.bf16.vlgmr.msrb.gmra.mxu2 %vm218_vm0, %v936_v38 }
  0x4e   : > { %1478 = vmatmul.msk.bf16.vlgmr.msrb.gmra.mxu3 %vm218_vm0, %v990_v39 }
  0x98   : > { %v231_v40 = vpop.f32.mrf.mxu0 }
  0x99   : > { %v271_v41 = vpop.f32.mrf.mxu1 }
  0x9a   : > { %v272_v48 = vadd.f32 %v271_v41, %v231_v40 }
  0xa0   : > { %v325_v42 = vpop.f32.mrf.mxu2  ;;  %v233_v44 = vpop.f32.mrf.mxu0 }
  0xa1   : > { %v379_v43 = vpop.f32.mrf.mxu3  ;;  %v273_v45 = vpop.f32.mrf.mxu1  ;;  %v329_v51 = vadd.f32 %v325_v42, %v272_v48 }
  0xa3   : > { %v383_v54 = vadd.f32 %v379_v43, %v329_v51 }
  0xa8   : > { %v327_v46 = vpop.f32.mrf.mxu2  ;;  %v430_v49 = vpop.f32.mrf.mxu0 }
  0xa9   : > { %v381_v47 = vpop.f32.mrf.mxu3  ;;  %v486_v50 = vpop.f32.mrf.mxu1  ;;  %v434_v57 = vadd.f32 %v430_v49, %v383_v54 }
  0xab   : > { %v490_v58 = vadd.f32 %v486_v50, %v434_v57 }
  0xb0   : > { %v541_v52 = vpop.f32.mrf.mxu2  ;;  %v432_v55 = vpop.f32.mrf.mxu0 }
  0xb1   : > { %v595_v53 = vpop.f32.mrf.mxu3  ;;  %v488_v56 = vpop.f32.mrf.mxu1  ;;  %v545_v61 = vadd.f32 %v541_v52, %v490_v58 }
  0xb3   : > { %v599_v0 = vadd.f32 %v595_v53, %v545_v61 }
  0xb8   : > { %v543_v59 = vpop.f32.mrf.mxu2  ;;  %v646_v62 = vpop.f32.mrf.mxu0 }
  0xb9   : > { %v597_v60 = vpop.f32.mrf.mxu3  ;;  %v702_v63 = vpop.f32.mrf.mxu1  ;;  %v650_v1 = vadd.f32 %v646_v62, %v599_v0 }
  0xbb   : > { %v706_v6 = vadd.f32 %v702_v63, %v650_v1 }
  0xc0   : > { %v757_v2 = vpop.f32.mrf.mxu2  ;;  %v648_v4 = vpop.f32.mrf.mxu0 }
  0xc1   : > { %v811_v3 = vpop.f32.mrf.mxu3  ;;  %v704_v5 = vpop.f32.mrf.mxu1  ;;  %v761_v7 = vadd.f32 %v757_v2, %v706_v6 }
  0xc3   : > { %v815_v10 = vadd.f32 %v811_v3, %v761_v7 }
  0xc8   : > { %v759_v8 = vpop.f32.mrf.mxu2  ;;  %v862_v11 = vpop.f32.mrf.mxu0 }
  0xc9   : > { %v813_v9 = vpop.f32.mrf.mxu3  ;;  %v918_v12 = vpop.f32.mrf.mxu1  ;;  %v866_v13 = vadd.f32 %v862_v11, %v815_v10 }
  0xcb   : > { %v922_v14 = vadd.f32 %v918_v12, %v866_v13 }
  0xd0   : > { %v973_v15 = vpop.f32.mrf.mxu2  ;;  %v864_v18 = vpop.f32.mrf.mxu0 }
  0xd1   : > { %v1027_v16 = vpop.f32.mrf.mxu3  ;;  %v977_v17 = vadd.f32 %v973_v15, %v922_v14  ;;  %v920_v19 = vpop.f32.mrf.mxu1 }
  0xd3   : > { %v1031_v20 = vadd.f32 %v1027_v16, %v977_v17 }
  0xd5   : > { %1032 = vst [vmem:[%s168_s20] sm:$0x1] %v1031_v20 }
  0xd8   : > { %v975_v21 = vpop.f32.mrf.mxu2 }
  0xd9   : > { %v1029_v22 = vpop.f32.mrf.mxu3 }
  0xda PF: > { %s15_s12 = sadd.s32 1, %s1560_s12  }
  0xdb   : > { %p12_p4 = scmp.ge.s32.totalorder %s15_s12, 4  }
  0xdd   :  { %14 = sbr.rel (!%p12_p4) target bundleno = 1 (0x1), region = 77 }

</bundles_post_ra>
